<compile_context>
chip_gen: v7x
topology: tpu7x:2x2x1
jax: 0.10.0
libtpu: 0.0.40
codegen_flags: <defaults>
</compile_context>

<pallas_src>
import functools

import jax
import jax.numpy as jnp
from jax.experimental import pallas as pl
from jax.experimental.pallas import tpu as pltpu


# Additive edge fill for the max pool. Valid ONLY because the pooled tensor is a
# SiLU output (>= -0.2785), so -1e30 behaves as a -inf pad. If the activation in
# front of the pool ever changes, this constant must be revisited.
_NEG = -1e30


def _silu(x):
    return x * jax.nn.sigmoid(x)


# ------------------------------------------------------------ fused kernel --
def _sppf_kernel(x_ref, w1_ref, b1_ref, w2_ref, b2_ref, eb_ref, o_ref, *,
                 nb, hw, w):
    """Fused SPPF in a flat (rows = nb*H*W, lanes = channels) layout."""
    m = nb * hw

    # ---- cv1: 1x1 conv == channel matmul (bf16 x bf16 -> f32 on the MXU) ----
    x = x_ref[...].reshape(m, x_ref.shape[-1])
    t = jnp.dot(x, w1_ref[...], preferred_element_type=jnp.float32) + b1_ref[...]
    t = _silu(t)                                             # (m, c_) f32

    eb = eb_ref[...]                                         # (m, 8) f32 edge biases

    def five_tap_max(a, bias_base, shifts):
        # out[r] = max_d a[r + shift_d], out-of-image taps masked to ~-inf.
        out = a
        for j, s in enumerate(shifts):
            rolled = pltpu.roll(a, (-s) % m, 0)              # rolled[r] = a[r + s]
            out = jnp.maximum(out, rolled + eb[:, bias_base + j:bias_base + j + 1])
        return out

    def pool5x5(a):
        # Separable MaxPool2d(5, stride=1, pad=2): H pass (row rolls by +-W/2W)
        # then W pass (row rolls by +-1/2). Rolls go to the XLU slot.
        v = five_tap_max(a, 0, (-2 * w, -w, w, 2 * w))
        return five_tap_max(v, 4, (-2, -1, 1, 2))

    # ---- cv2: channel concat folded into 4 accumulated partial MXU dots -----
    z = jnp.dot(t.astype(jnp.bfloat16), w2_ref[0],
                preferred_element_type=jnp.float32)
    y1 = pool5x5(t)
    z += jnp.dot(y1.astype(jnp.bfloat16), w2_ref[1],
                 preferred_element_type=jnp.float32)
    y2 = pool5x5(y1)
    z += jnp.dot(y2.astype(jnp.bfloat16), w2_ref[2],
                 preferred_element_type=jnp.float32)
    y3 = pool5x5(y2)
    z += jnp.dot(y3.astype(jnp.bfloat16), w2_ref[3],
                 preferred_element_type=jnp.float32)

    z = _silu(z + b2_ref[...])                               # (m, c2) f32
    o_ref[...] = z.reshape(o_ref.shape).astype(o_ref.dtype)


# --------------------------------------------------------------- helpers ----
def _edge_bias(nb, h, w):
    """(nb*h*w, 8) f32 additive masks, columns = row shifts (-2,-1,1,2) then
    col shifts (-2,-1,1,2), for the flat row-major (image, row, col) layout."""
    hw = h * w
    pos = jnp.arange(nb * hw, dtype=jnp.int32)
    row = (pos % hw) // w
    col = pos % w

    def ok(idx, d, limit):
        v = idx + d
        return jnp.where((v >= 0) & (v < limit), 0.0, _NEG).astype(jnp.float32)

    cols = [ok(row, d, h) for d in (-2, -1, 1, 2)] + \
           [ok(col, d, w) for d in (-2, -1, 1, 2)]
    return jnp.stack(cols, axis=1)


def _pick_images_per_step(n, hw, c1, c_, c2, cap=8):
    """Largest nb dividing n such that the per-step working set stays modest
    and the grid keeps >= 2 steps (so both v7x TensorCores get work)."""
    budget = 24 << 20
    best = 1
    for nb in range(1, min(n, cap) + 1):
        if n % nb:
            continue
        if n > 1 and n // nb < 2:
            continue
        if nb > 1 and hw % 8:
            continue        # avoid sublane-retiling reshapes for odd spatial sizes
        m = nb * hw
        need = (2 * m * c1 * 2 + 2 * m * c2 * 2      # double-buffered bf16 I/O blocks
                + 6 * m * c_ * 4 + m * c2 * 4        # f32 intermediates (t, y*, tmp, z)
                + m * 8 * 4)                         # edge-bias table
        if need <= budget:
            best = nb
    return best


# --------------------------------------------------------------- wrapper ----
def sppf_pallas(x_nchw, params):
    """SPPF forward. Accepts / returns NCHW (PyTorch convention); output bf16."""
    x = jnp.transpose(x_nchw, (0, 2, 3, 1))                  # NCHW -> NHWC
    n, h, w, c1 = x.shape
    c_ = params["w1"].shape[1]
    c2 = params["w2"].shape[1]
    hw = h * w

    nb = _pick_images_per_step(n, hw, c1, c_, c2)
    m = nb * hw

    x_flat = x.reshape(n, hw, c1).astype(jnp.bfloat16)       # spatial dims flattened
    w1 = params["w1"].astype(jnp.bfloat16)                   # (c1, c_)
    w2 = params["w2"].reshape(4, c_, c2).astype(jnp.bfloat16)  # per-branch weights
    b1 = params["b1"].reshape(1, c_).astype(jnp.float32)
    b2 = params["b2"].reshape(1, c2).astype(jnp.float32)
    eb = _edge_bias(nb, h, w)                                # (m, 8) f32

    # Working-set-derived VMEM limit, capped well under v7x's 64 MiB physical VMEM.
    wgt_bytes = 2 * ((c1 * c_ + 4 * c_ * c2) * 2 + (c_ + c2) * 4 + m * 8 * 4)
    work = 2 * m * c1 * 2 + 2 * m * c2 * 2 + 6 * m * c_ * 4 + m * c2 * 4 + wgt_bytes
    vmem_limit = int(min(max(work + (8 << 20), 16 << 20), 56 << 20))

    kernel = functools.partial(_sppf_kernel, nb=nb, hw=hw, w=w)
    out = pl.pallas_call(
        kernel,
        out_shape=jax.ShapeDtypeStruct((n, hw, c2), jnp.bfloat16),
        grid=(n // nb,),
        in_specs=[
            pl.BlockSpec((nb, hw, c1), lambda i: (i, 0, 0)),
            pl.BlockSpec((c1, c_), lambda i: (0, 0)),
            pl.BlockSpec((1, c_), lambda i: (0, 0)),
            pl.BlockSpec((4, c_, c2), lambda i: (0, 0, 0)),
            pl.BlockSpec((1, c2), lambda i: (0, 0)),
            pl.BlockSpec((m, 8), lambda i: (0, 0)),
        ],
        out_specs=pl.BlockSpec((nb, hw, c2), lambda i: (i, 0, 0)),
        compiler_params=pltpu.CompilerParams(
            dimension_semantics=("parallel",),
            vmem_limit_bytes=vmem_limit),
    )(x_flat, w1, b1, w2, b2, eb)

    out = out.reshape(n, h, w, c2)
    return jnp.transpose(out, (0, 3, 1, 2))                  # NHWC -> NCHW


# -------------------------------------------------------- params (BN fold) --
def _fold_bn(w, gamma, beta, mean, var, eps=1e-5):
    """Fold eval-mode BatchNorm into conv weight (Cin, Cout) and per-Cout bias."""
    scale = gamma / jnp.sqrt(var + eps)
    return w * scale, beta - mean * scale


def _make_conv_bn(key, cin, cout):
    kw, kg, kb, km, kv = jax.random.split(key, 5)
    w = jax.random.normal(kw, (cin, cout), jnp.float32) / jnp.sqrt(cin)
    gamma = jax.random.uniform(kg, (cout,), jnp.float32, 0.5, 1.5)
    beta = 0.1 * jax.random.normal(kb, (cout,), jnp.float32)
    mean = 0.1 * jax.random.normal(km, (cout,), jnp.float32)
    var = jax.random.uniform(kv, (cout,), jnp.float32, 0.5, 1.5)
    return _fold_bn(w, gamma, beta, mean, var)


def init_sppf_params(key, c1, c2):
    c_ = c1 // 2
    k1, k2 = jax.random.split(key)
    p = {}
    p["w1"], p["b1"] = _make_conv_bn(k1, c1, c_)
    p["w2"], p["b2"] = _make_conv_bn(k2, 4 * c_, c2)
    return p


# ------------------------------------------------------ pure-JAX reference --
def sppf_ref(x_nchw, params):
    """Reference SPPF. Matmul inputs rounded to bf16 (same as the kernel) with
    full-precision accumulation, so the comparison tolerance can stay tight."""
    x = jnp.transpose(x_nchw, (0, 2, 3, 1))

    def pw_silu(a, wgt, bias):
        ab = a.astype(jnp.bfloat16).astype(jnp.float32)
        wb = wgt.astype(jnp.bfloat16).astype(jnp.float32)
        y = jnp.einsum("nhwc,cd->nhwd", ab, wb,
                       precision=jax.lax.Precision.HIGHEST) + bias
        return y * jax.nn.sigmoid(y)

    def pool(a):
        return jax.lax.reduce_window(
            a, -jnp.inf, jax.lax.max, (1, 5, 5, 1), (1, 1, 1, 1),
            [(0, 0), (2, 2), (2, 2), (0, 0)])

    t = pw_silu(x, params["w1"], params["b1"])
    y1 = pool(t)
    y2 = pool(y1)
    y3 = pool(y2)
    out = pw_silu(jnp.concatenate([t, y1, y2, y3], axis=-1),
                  params["w2"], params["b2"])
    return jnp.transpose(out, (0, 3, 1, 2))


# -------------------------------------------------------------------- main --
if __name__ == "__main__":
    key = jax.random.PRNGKey(0)
    kx, kp = jax.random.split(key)

    # Small NCHW fixture consistent with SPPF (c1 even; SPPF sits on the deepest map).
    n, c1, h, w = 2, 64, 16, 16
    c2 = 128

    x = jax.random.normal(kx, (n, c1, h, w), jnp.float32)
    params = init_sppf_params(kp, c1, c2)

    out = jax.block_until_ready(sppf_pallas(x, params))
    ref = sppf_ref(x, params)

    assert out.shape == ref.shape == (n, c2, h, w)
    outf = out.astype(jnp.float32)
    err = float(jnp.max(jnp.abs(outf - ref)))
    assert jnp.allclose(outf, ref, atol=2e-2, rtol=2e-2), \
        f"mismatch vs reference, max abs err={err}"

    print("KERNEL_OK")
</pallas_src>

<mosaic_0001>
module attributes {stable_mosaic.version = 11 : i64} {
  func.func @_sppf_kernel(%arg0: i32, %arg1: memref<1x256x64xbf16, #tpu.memory_space<vmem>>, %arg2: memref<64x32xbf16, #tpu.memory_space<vmem>>, %arg3: memref<1x32xf32, #tpu.memory_space<vmem>>, %arg4: memref<4x32x128xbf16, #tpu.memory_space<vmem>>, %arg5: memref<1x128xf32, #tpu.memory_space<vmem>>, %arg6: memref<256x8xf32, #tpu.memory_space<vmem>>, %arg7: memref<1x256x128xbf16, #tpu.memory_space<vmem>>) attributes {dimension_semantics = [#tpu.dimension_semantics<parallel>], iteration_bounds = array<i64: 2>, scalar_prefetch = 0 : i64, scratch_operands = 0 : i64, tpu.core_type = #tpu.core_type<tc>, window_params = [{transform_indices = @transform_0, window_bounds = array<i64: 1, 256, 64>}, {pipeline_mode = #tpu.pipeline_mode<synchronous>, transform_indices = @transform_1, window_bounds = array<i64: 64, 32>}, {pipeline_mode = #tpu.pipeline_mode<synchronous>, transform_indices = @transform_2, window_bounds = array<i64: 1, 32>}, {pipeline_mode = #tpu.pipeline_mode<synchronous>, transform_indices = @transform_3, window_bounds = array<i64: 4, 32, 128>}, {pipeline_mode = #tpu.pipeline_mode<synchronous>, transform_indices = @transform_4, window_bounds = array<i64: 1, 128>}, {pipeline_mode = #tpu.pipeline_mode<synchronous>, transform_indices = @transform_5, window_bounds = array<i64: 256, 8>}, {transform_indices = @transform_6, window_bounds = array<i64: 1, 256, 128>}]} {
    %c0 = arith.constant 0 : index
    %c0_0 = arith.constant 0 : index
    %c0_1 = arith.constant 0 : index
    %0 = vector.load %arg1[%c0, %c0_0, %c0_1] : memref<1x256x64xbf16, #tpu.memory_space<vmem>>, vector<1x256x64xbf16>
    %1 = vector.shape_cast %0 : vector<1x256x64xbf16> to vector<256x64xbf16>
    %c0_2 = arith.constant 0 : index
    %c0_3 = arith.constant 0 : index
    %2 = vector.load %arg2[%c0_2, %c0_3] : memref<64x32xbf16, #tpu.memory_space<vmem>>, vector<64x32xbf16>
    %cst = arith.constant dense<0.000000e+00> : vector<256x32xf32>
    %3 = tpu.matmul %1, %2, %cst {dimension_numbers = #tpu.dot_dimension_numbers<[1], [0], [0], [1], [0, 0, 1, 1], [], []>} : vector<256x64xbf16>, vector<64x32xbf16>, vector<256x32xf32> -> vector<256x32xf32>
    %c0_4 = arith.constant 0 : index
    %c0_5 = arith.constant 0 : index
    %4 = vector.load %arg3[%c0_4, %c0_5] : memref<1x32xf32, #tpu.memory_space<vmem>>, vector<1x32xf32>
    %5 = vector.broadcast %4 : vector<1x32xf32> to vector<256x32xf32>
    %6 = arith.addf %3, %5 : vector<256x32xf32>
    %7 = arith.negf %6 : vector<256x32xf32>
    %8 = math.exp %7 : vector<256x32xf32>
    %cst_6 = arith.constant 1.000000e+00 : f32
    %9 = vector.broadcast %cst_6 : f32 to vector<256x32xf32>
    %10 = arith.addf %9, %8 : vector<256x32xf32>
    %11 = arith.divf %9, %10 : vector<256x32xf32>
    %12 = arith.mulf %6, %11 : vector<256x32xf32>
    %c0_7 = arith.constant 0 : index
    %c0_8 = arith.constant 0 : index
    %13 = vector.load %arg6[%c0_7, %c0_8] : memref<256x8xf32, #tpu.memory_space<vmem>>, vector<256x8xf32>
    %14 = arith.truncf %12 : vector<256x32xf32> to vector<256x32xbf16>
    %c0_9 = arith.constant 0 : index
    %c0_10 = arith.constant 0 : index
    %c0_11 = arith.constant 0 : index
    %15 = vector.load %arg4[%c0_9, %c0_10, %c0_11] : memref<4x32x128xbf16, #tpu.memory_space<vmem>>, vector<1x32x128xbf16>
    %16 = vector.shape_cast %15 : vector<1x32x128xbf16> to vector<32x128xbf16>
    %cst_12 = arith.constant dense<0.000000e+00> : vector<256x128xf32>
    %17 = tpu.matmul %14, %16, %cst_12 {dimension_numbers = #tpu.dot_dimension_numbers<[1], [0], [0], [1], [0, 0, 1, 1], [], []>} : vector<256x32xbf16>, vector<32x128xbf16>, vector<256x128xf32> -> vector<256x128xf32>
    %c32_i32 = arith.constant 32 : i32
    %18 = tpu.dynamic_rotate %12 by %c32_i32 dim 0 : vector<256x32xf32>, i32 -> vector<256x32xf32>
    %19 = vector.extract_strided_slice %13 {offsets = [0, 0], sizes = [256, 1], strides = [1, 1]} : vector<256x8xf32> to vector<256x1xf32>
    %20 = vector.broadcast %19 : vector<256x1xf32> to vector<256x32xf32>
    %21 = arith.addf %18, %20 : vector<256x32xf32>
    %22 = arith.maximumf %12, %21 : vector<256x32xf32>
    %c16_i32 = arith.constant 16 : i32
    %23 = tpu.dynamic_rotate %12 by %c16_i32 dim 0 : vector<256x32xf32>, i32 -> vector<256x32xf32>
    %24 = vector.extract_strided_slice %13 {offsets = [0, 1], sizes = [256, 1], strides = [1, 1]} : vector<256x8xf32> to vector<256x1xf32>
    %25 = vector.broadcast %24 : vector<256x1xf32> to vector<256x32xf32>
    %26 = arith.addf %23, %25 : vector<256x32xf32>
    %27 = arith.maximumf %22, %26 : vector<256x32xf32>
    %c240_i32 = arith.constant 240 : i32
    %28 = tpu.dynamic_rotate %12 by %c240_i32 dim 0 : vector<256x32xf32>, i32 -> vector<256x32xf32>
    %29 = vector.extract_strided_slice %13 {offsets = [0, 2], sizes = [256, 1], strides = [1, 1]} : vector<256x8xf32> to vector<256x1xf32>
    %30 = vector.broadcast %29 : vector<256x1xf32> to vector<256x32xf32>
    %31 = arith.addf %28, %30 : vector<256x32xf32>
    %32 = arith.maximumf %27, %31 : vector<256x32xf32>
    %c224_i32 = arith.constant 224 : i32
    %33 = tpu.dynamic_rotate %12 by %c224_i32 dim 0 : vector<256x32xf32>, i32 -> vector<256x32xf32>
    %34 = vector.extract_strided_slice %13 {offsets = [0, 3], sizes = [256, 1], strides = [1, 1]} : vector<256x8xf32> to vector<256x1xf32>
    %35 = vector.broadcast %34 : vector<256x1xf32> to vector<256x32xf32>
    %36 = arith.addf %33, %35 : vector<256x32xf32>
    %37 = arith.maximumf %32, %36 : vector<256x32xf32>
    %c2_i32 = arith.constant 2 : i32
    %38 = tpu.dynamic_rotate %37 by %c2_i32 dim 0 : vector<256x32xf32>, i32 -> vector<256x32xf32>
    %39 = vector.extract_strided_slice %13 {offsets = [0, 4], sizes = [256, 1], strides = [1, 1]} : vector<256x8xf32> to vector<256x1xf32>
    %40 = vector.broadcast %39 : vector<256x1xf32> to vector<256x32xf32>
    %41 = arith.addf %38, %40 : vector<256x32xf32>
    %42 = arith.maximumf %37, %41 : vector<256x32xf32>
    %c1_i32 = arith.constant 1 : i32
    %43 = tpu.dynamic_rotate %37 by %c1_i32 dim 0 : vector<256x32xf32>, i32 -> vector<256x32xf32>
    %44 = vector.extract_strided_slice %13 {offsets = [0, 5], sizes = [256, 1], strides = [1, 1]} : vector<256x8xf32> to vector<256x1xf32>
    %45 = vector.broadcast %44 : vector<256x1xf32> to vector<256x32xf32>
    %46 = arith.addf %43, %45 : vector<256x32xf32>
    %47 = arith.maximumf %42, %46 : vector<256x32xf32>
    %c255_i32 = arith.constant 255 : i32
    %48 = tpu.dynamic_rotate %37 by %c255_i32 dim 0 : vector<256x32xf32>, i32 -> vector<256x32xf32>
    %49 = vector.extract_strided_slice %13 {offsets = [0, 6], sizes = [256, 1], strides = [1, 1]} : vector<256x8xf32> to vector<256x1xf32>
    %50 = vector.broadcast %49 : vector<256x1xf32> to vector<256x32xf32>
    %51 = arith.addf %48, %50 : vector<256x32xf32>
    %52 = arith.maximumf %47, %51 : vector<256x32xf32>
    %c254_i32 = arith.constant 254 : i32
    %53 = tpu.dynamic_rotate %37 by %c254_i32 dim 0 : vector<256x32xf32>, i32 -> vector<256x32xf32>
    %54 = vector.extract_strided_slice %13 {offsets = [0, 7], sizes = [256, 1], strides = [1, 1]} : vector<256x8xf32> to vector<256x1xf32>
    %55 = vector.broadcast %54 : vector<256x1xf32> to vector<256x32xf32>
    %56 = arith.addf %53, %55 : vector<256x32xf32>
    %57 = arith.maximumf %52, %56 : vector<256x32xf32>
    %58 = arith.truncf %57 : vector<256x32xf32> to vector<256x32xbf16>
    %c1 = arith.constant 1 : index
    %c0_13 = arith.constant 0 : index
    %c0_14 = arith.constant 0 : index
    %59 = vector.load %arg4[%c1, %c0_13, %c0_14] : memref<4x32x128xbf16, #tpu.memory_space<vmem>>, vector<1x32x128xbf16>
    %60 = vector.shape_cast %59 : vector<1x32x128xbf16> to vector<32x128xbf16>
    %cst_15 = arith.constant dense<0.000000e+00> : vector<256x128xf32>
    %61 = tpu.matmul %58, %60, %cst_15 {dimension_numbers = #tpu.dot_dimension_numbers<[1], [0], [0], [1], [0, 0, 1, 1], [], []>} : vector<256x32xbf16>, vector<32x128xbf16>, vector<256x128xf32> -> vector<256x128xf32>
    %62 = arith.addf %17, %61 : vector<256x128xf32>
    %c32_i32_16 = arith.constant 32 : i32
    %63 = tpu.dynamic_rotate %57 by %c32_i32_16 dim 0 : vector<256x32xf32>, i32 -> vector<256x32xf32>
    %64 = vector.extract_strided_slice %13 {offsets = [0, 0], sizes = [256, 1], strides = [1, 1]} : vector<256x8xf32> to vector<256x1xf32>
    %65 = vector.broadcast %64 : vector<256x1xf32> to vector<256x32xf32>
    %66 = arith.addf %63, %65 : vector<256x32xf32>
    %67 = arith.maximumf %57, %66 : vector<256x32xf32>
    %c16_i32_17 = arith.constant 16 : i32
    %68 = tpu.dynamic_rotate %57 by %c16_i32_17 dim 0 : vector<256x32xf32>, i32 -> vector<256x32xf32>
    %69 = vector.extract_strided_slice %13 {offsets = [0, 1], sizes = [256, 1], strides = [1, 1]} : vector<256x8xf32> to vector<256x1xf32>
    %70 = vector.broadcast %69 : vector<256x1xf32> to vector<256x32xf32>
    %71 = arith.addf %68, %70 : vector<256x32xf32>
    %72 = arith.maximumf %67, %71 : vector<256x32xf32>
    %c240_i32_18 = arith.constant 240 : i32
    %73 = tpu.dynamic_rotate %57 by %c240_i32_18 dim 0 : vector<256x32xf32>, i32 -> vector<256x32xf32>
    %74 = vector.extract_strided_slice %13 {offsets = [0, 2], sizes = [256, 1], strides = [1, 1]} : vector<256x8xf32> to vector<256x1xf32>
    %75 = vector.broadcast %74 : vector<256x1xf32> to vector<256x32xf32>
    %76 = arith.addf %73, %75 : vector<256x32xf32>
    %77 = arith.maximumf %72, %76 : vector<256x32xf32>
    %c224_i32_19 = arith.constant 224 : i32
    %78 = tpu.dynamic_rotate %57 by %c224_i32_19 dim 0 : vector<256x32xf32>, i32 -> vector<256x32xf32>
    %79 = vector.extract_strided_slice %13 {offsets = [0, 3], sizes = [256, 1], strides = [1, 1]} : vector<256x8xf32> to vector<256x1xf32>
    %80 = vector.broadcast %79 : vector<256x1xf32> to vector<256x32xf32>
    %81 = arith.addf %78, %80 : vector<256x32xf32>
    %82 = arith.maximumf %77, %81 : vector<256x32xf32>
    %c2_i32_20 = arith.constant 2 : i32
    %83 = tpu.dynamic_rotate %82 by %c2_i32_20 dim 0 : vector<256x32xf32>, i32 -> vector<256x32xf32>
    %84 = vector.extract_strided_slice %13 {offsets = [0, 4], sizes = [256, 1], strides = [1, 1]} : vector<256x8xf32> to vector<256x1xf32>
    %85 = vector.broadcast %84 : vector<256x1xf32> to vector<256x32xf32>
    %86 = arith.addf %83, %85 : vector<256x32xf32>
    %87 = arith.maximumf %82, %86 : vector<256x32xf32>
    %c1_i32_21 = arith.constant 1 : i32
    %88 = tpu.dynamic_rotate %82 by %c1_i32_21 dim 0 : vector<256x32xf32>, i32 -> vector<256x32xf32>
    %89 = vector.extract_strided_slice %13 {offsets = [0, 5], sizes = [256, 1], strides = [1, 1]} : vector<256x8xf32> to vector<256x1xf32>
    %90 = vector.broadcast %89 : vector<256x1xf32> to vector<256x32xf32>
    %91 = arith.addf %88, %90 : vector<256x32xf32>
    %92 = arith.maximumf %87, %91 : vector<256x32xf32>
    %c255_i32_22 = arith.constant 255 : i32
    %93 = tpu.dynamic_rotate %82 by %c255_i32_22 dim 0 : vector<256x32xf32>, i32 -> vector<256x32xf32>
    %94 = vector.extract_strided_slice %13 {offsets = [0, 6], sizes = [256, 1], strides = [1, 1]} : vector<256x8xf32> to vector<256x1xf32>
    %95 = vector.broadcast %94 : vector<256x1xf32> to vector<256x32xf32>
    %96 = arith.addf %93, %95 : vector<256x32xf32>
    %97 = arith.maximumf %92, %96 : vector<256x32xf32>
    %c254_i32_23 = arith.constant 254 : i32
    %98 = tpu.dynamic_rotate %82 by %c254_i32_23 dim 0 : vector<256x32xf32>, i32 -> vector<256x32xf32>
    %99 = vector.extract_strided_slice %13 {offsets = [0, 7], sizes = [256, 1], strides = [1, 1]} : vector<256x8xf32> to vector<256x1xf32>
    %100 = vector.broadcast %99 : vector<256x1xf32> to vector<256x32xf32>
    %101 = arith.addf %98, %100 : vector<256x32xf32>
    %102 = arith.maximumf %97, %101 : vector<256x32xf32>
    %103 = arith.truncf %102 : vector<256x32xf32> to vector<256x32xbf16>
    %c2 = arith.constant 2 : index
    %c0_24 = arith.constant 0 : index
    %c0_25 = arith.constant 0 : index
    %104 = vector.load %arg4[%c2, %c0_24, %c0_25] : memref<4x32x128xbf16, #tpu.memory_space<vmem>>, vector<1x32x128xbf16>
    %105 = vector.shape_cast %104 : vector<1x32x128xbf16> to vector<32x128xbf16>
    %cst_26 = arith.constant dense<0.000000e+00> : vector<256x128xf32>
    %106 = tpu.matmul %103, %105, %cst_26 {dimension_numbers = #tpu.dot_dimension_numbers<[1], [0], [0], [1], [0, 0, 1, 1], [], []>} : vector<256x32xbf16>, vector<32x128xbf16>, vector<256x128xf32> -> vector<256x128xf32>
    %107 = arith.addf %62, %106 : vector<256x128xf32>
    %c32_i32_27 = arith.constant 32 : i32
    %108 = tpu.dynamic_rotate %102 by %c32_i32_27 dim 0 : vector<256x32xf32>, i32 -> vector<256x32xf32>
    %109 = vector.extract_strided_slice %13 {offsets = [0, 0], sizes = [256, 1], strides = [1, 1]} : vector<256x8xf32> to vector<256x1xf32>
    %110 = vector.broadcast %109 : vector<256x1xf32> to vector<256x32xf32>
    %111 = arith.addf %108, %110 : vector<256x32xf32>
    %112 = arith.maximumf %102, %111 : vector<256x32xf32>
    %c16_i32_28 = arith.constant 16 : i32
    %113 = tpu.dynamic_rotate %102 by %c16_i32_28 dim 0 : vector<256x32xf32>, i32 -> vector<256x32xf32>
    %114 = vector.extract_strided_slice %13 {offsets = [0, 1], sizes = [256, 1], strides = [1, 1]} : vector<256x8xf32> to vector<256x1xf32>
    %115 = vector.broadcast %114 : vector<256x1xf32> to vector<256x32xf32>
    %116 = arith.addf %113, %115 : vector<256x32xf32>
    %117 = arith.maximumf %112, %116 : vector<256x32xf32>
    %c240_i32_29 = arith.constant 240 : i32
    %118 = tpu.dynamic_rotate %102 by %c240_i32_29 dim 0 : vector<256x32xf32>, i32 -> vector<256x32xf32>
    %119 = vector.extract_strided_slice %13 {offsets = [0, 2], sizes = [256, 1], strides = [1, 1]} : vector<256x8xf32> to vector<256x1xf32>
    %120 = vector.broadcast %119 : vector<256x1xf32> to vector<256x32xf32>
    %121 = arith.addf %118, %120 : vector<256x32xf32>
    %122 = arith.maximumf %117, %121 : vector<256x32xf32>
    %c224_i32_30 = arith.constant 224 : i32
    %123 = tpu.dynamic_rotate %102 by %c224_i32_30 dim 0 : vector<256x32xf32>, i32 -> vector<256x32xf32>
    %124 = vector.extract_strided_slice %13 {offsets = [0, 3], sizes = [256, 1], strides = [1, 1]} : vector<256x8xf32> to vector<256x1xf32>
    %125 = vector.broadcast %124 : vector<256x1xf32> to vector<256x32xf32>
    %126 = arith.addf %123, %125 : vector<256x32xf32>
    %127 = arith.maximumf %122, %126 : vector<256x32xf32>
    %c2_i32_31 = arith.constant 2 : i32
    %128 = tpu.dynamic_rotate %127 by %c2_i32_31 dim 0 : vector<256x32xf32>, i32 -> vector<256x32xf32>
    %129 = vector.extract_strided_slice %13 {offsets = [0, 4], sizes = [256, 1], strides = [1, 1]} : vector<256x8xf32> to vector<256x1xf32>
    %130 = vector.broadcast %129 : vector<256x1xf32> to vector<256x32xf32>
    %131 = arith.addf %128, %130 : vector<256x32xf32>
    %132 = arith.maximumf %127, %131 : vector<256x32xf32>
    %c1_i32_32 = arith.constant 1 : i32
    %133 = tpu.dynamic_rotate %127 by %c1_i32_32 dim 0 : vector<256x32xf32>, i32 -> vector<256x32xf32>
    %134 = vector.extract_strided_slice %13 {offsets = [0, 5], sizes = [256, 1], strides = [1, 1]} : vector<256x8xf32> to vector<256x1xf32>
    %135 = vector.broadcast %134 : vector<256x1xf32> to vector<256x32xf32>
    %136 = arith.addf %133, %135 : vector<256x32xf32>
    %137 = arith.maximumf %132, %136 : vector<256x32xf32>
    %c255_i32_33 = arith.constant 255 : i32
    %138 = tpu.dynamic_rotate %127 by %c255_i32_33 dim 0 : vector<256x32xf32>, i32 -> vector<256x32xf32>
    %139 = vector.extract_strided_slice %13 {offsets = [0, 6], sizes = [256, 1], strides = [1, 1]} : vector<256x8xf32> to vector<256x1xf32>
    %140 = vector.broadcast %139 : vector<256x1xf32> to vector<256x32xf32>
    %141 = arith.addf %138, %140 : vector<256x32xf32>
    %142 = arith.maximumf %137, %141 : vector<256x32xf32>
    %c254_i32_34 = arith.constant 254 : i32
    %143 = tpu.dynamic_rotate %127 by %c254_i32_34 dim 0 : vector<256x32xf32>, i32 -> vector<256x32xf32>
    %144 = vector.extract_strided_slice %13 {offsets = [0, 7], sizes = [256, 1], strides = [1, 1]} : vector<256x8xf32> to vector<256x1xf32>
    %145 = vector.broadcast %144 : vector<256x1xf32> to vector<256x32xf32>
    %146 = arith.addf %143, %145 : vector<256x32xf32>
    %147 = arith.maximumf %142, %146 : vector<256x32xf32>
    %148 = arith.truncf %147 : vector<256x32xf32> to vector<256x32xbf16>
    %c3 = arith.constant 3 : index
    %c0_35 = arith.constant 0 : index
    %c0_36 = arith.constant 0 : index
    %149 = vector.load %arg4[%c3, %c0_35, %c0_36] : memref<4x32x128xbf16, #tpu.memory_space<vmem>>, vector<1x32x128xbf16>
    %150 = vector.shape_cast %149 : vector<1x32x128xbf16> to vector<32x128xbf16>
    %cst_37 = arith.constant dense<0.000000e+00> : vector<256x128xf32>
    %151 = tpu.matmul %148, %150, %cst_37 {dimension_numbers = #tpu.dot_dimension_numbers<[1], [0], [0], [1], [0, 0, 1, 1], [], []>} : vector<256x32xbf16>, vector<32x128xbf16>, vector<256x128xf32> -> vector<256x128xf32>
    %152 = arith.addf %107, %151 : vector<256x128xf32>
    %c0_38 = arith.constant 0 : index
    %c0_39 = arith.constant 0 : index
    %153 = vector.load %arg5[%c0_38, %c0_39] : memref<1x128xf32, #tpu.memory_space<vmem>>, vector<1x128xf32>
    %154 = vector.broadcast %153 : vector<1x128xf32> to vector<256x128xf32>
    %155 = arith.addf %152, %154 : vector<256x128xf32>
    %156 = arith.negf %155 : vector<256x128xf32>
    %157 = math.exp %156 : vector<256x128xf32>
    %cst_40 = arith.constant 1.000000e+00 : f32
    %158 = vector.broadcast %cst_40 : f32 to vector<256x128xf32>
    %159 = arith.addf %158, %157 : vector<256x128xf32>
    %160 = arith.divf %158, %159 : vector<256x128xf32>
    %161 = arith.mulf %155, %160 : vector<256x128xf32>
    %162 = vector.shape_cast %161 : vector<256x128xf32> to vector<1x256x128xf32>
    %163 = arith.truncf %162 : vector<1x256x128xf32> to vector<1x256x128xbf16>
    %c0_41 = arith.constant 0 : index
    %c0_42 = arith.constant 0 : index
    %c0_43 = arith.constant 0 : index
    %164 = vector.load %arg7[%c0_41, %c0_42, %c0_43] : memref<1x256x128xbf16, #tpu.memory_space<vmem>>, vector<1x256x128xbf16>
    tpu.vector_store %arg7[%c0_41, %c0_42, %c0_43], %163 {strides = array<i32>} : memref<1x256x128xbf16, #tpu.memory_space<vmem>>, vector<1x256x128xbf16>,
    return
  }
  func.func @transform_0(%arg0: i32) -> (i32, i32, i32) {
    %c0_i32 = arith.constant 0 : i32
    %c0_i32_0 = arith.constant 0 : i32
    %c0_i32_1 = arith.constant 0 : i32
    return %arg0, %c0_i32, %c0_i32_0 : i32, i32, i32
  }
  func.func @transform_1(%arg0: i32) -> (i32, i32) {
    %c0_i32 = arith.constant 0 : i32
    %c0_i32_0 = arith.constant 0 : i32
    %c0_i32_1 = arith.constant 0 : i32
    return %c0_i32, %c0_i32_0 : i32, i32
  }
  func.func @transform_2(%arg0: i32) -> (i32, i32) {
    %c0_i32 = arith.constant 0 : i32
    %c0_i32_0 = arith.constant 0 : i32
    %c0_i32_1 = arith.constant 0 : i32
    return %c0_i32, %c0_i32_0 : i32, i32
  }
  func.func @transform_3(%arg0: i32) -> (i32, i32, i32) {
    %c0_i32 = arith.constant 0 : i32
    %c0_i32_0 = arith.constant 0 : i32
    %c0_i32_1 = arith.constant 0 : i32
    %c0_i32_2 = arith.constant 0 : i32
    return %c0_i32, %c0_i32_0, %c0_i32_1 : i32, i32, i32
  }
  func.func @transform_4(%arg0: i32) -> (i32, i32) {
    %c0_i32 = arith.constant 0 : i32
    %c0_i32_0 = arith.constant 0 : i32
    %c0_i32_1 = arith.constant 0 : i32
    return %c0_i32, %c0_i32_0 : i32, i32
  }
  func.func @transform_5(%arg0: i32) -> (i32, i32) {
    %c0_i32 = arith.constant 0 : i32
    %c0_i32_0 = arith.constant 0 : i32
    %c0_i32_1 = arith.constant 0 : i32
    return %c0_i32, %c0_i32_0 : i32, i32
  }
  func.func @transform_6(%arg0: i32) -> (i32, i32, i32) {
    %c0_i32 = arith.constant 0 : i32
    %c0_i32_0 = arith.constant 0 : i32
    %c0_i32_1 = arith.constant 0 : i32
    return %arg0, %c0_i32, %c0_i32_0 : i32, i32, i32
  }
}

</mosaic_0001>

<bundles_post_ra>
// kernel: tpu_custom_call.1
= control target key start
LH: loop header
LB: loop body
LE: loop exit
PB: predicated region body
PF: predicated region fallthrough
CT: control target
= control target key end

     0   :  { %11 = vsyncpa [#allocation3], 0  ;;  %s13952_s0 = inlined_call_operand.vmem [shape: bf16[2,256,64], index: 0, kind: input, shape index: {}]   ;;  %s13953_s1 = inlined_call_operand.vmem [shape: bf16[64,32], index: 1, kind: input, shape index: {}]   ;;  %s13954_s2 = inlined_call_operand.vmem [shape: f32[1,32], index: 2, kind: input, shape index: {}]   ;;  %s13955_s3 = inlined_call_operand.vmem [shape: bf16[4,32,128], index: 3, kind: input, shape index: {}]   ;;  %s13956_s4 = inlined_call_operand.vmem [shape: f32[1,128], index: 4, kind: input, shape index: {}]   ;;  %s13957_s5 = inlined_call_operand.vmem [shape: f32[256,8], index: 5, kind: input, shape index: {}]   ;;  %s13958_s6 = inlined_call_operand.hbm [shape: bf16[2,256,128], index: 6, kind: output, shape index: {}]  }
   0x1   :  { %13 = vsyncpa [#allocation3 + $0x1], 0  ;;  %s7046_s21 = smov 0   ;;  %s7048_s22 = smov 0  }
   0x2   :  { %s7050_s23 = smov 0   ;;  %s7052_s24 = smov 0  }
   0x3 LB: > { %s7067_s25 = sadd.s32 4294967295, %s6998_s24   ;;  %s5765_s26 = sadd.s32 4294967294, %s6998_s24   ;;  %s6998_s24 = sphi %s7052_s24, %s16450_s24   ;;  %s6994_s23 = sphi %s7050_s23, %s16449_s23   ;;  %s6990_s22 = sphi %s7048_s22, %s16448_s22   ;;  %s6986_s21 = sphi %s7046_s21, %s16447_s21  }
   0x4   : > { %s7071_s27 = sadd.s32 1, %s6998_s24   ;;  %s157_s28 = sadd.s32 1, %s6994_s23 }
   0x5   : > { %s154_s29 = ssub.s32 %s6998_s24, %s7071_s27  ;;  %p167_p0 = scmp.ne.s32.totalorder %s6994_s23, %s6990_s22 }
   0x6   : > { %p155_p1 = scmp.eq.s32.totalorder %s154_s29, 0  ;;  %p168_p2 = scmp.eq.s32.totalorder %s7067_s25, 1 }
   0x7   : > { %p173_p3 = scmp.ne.s32.totalorder %s6990_s22, %s6986_s21  ;;  %p174_p4 = scmp.eq.s32.totalorder %s5765_s26, 1 }
   0x8   : > { %s7082_s30 = scalar_select %p155_p1, %s6994_s23, %s157_s28  }
   0x9   : > { %p7084_p5 = por %p168_p2, %p167_p0  ;;  %p7088_p6 = por %p174_p4, %p173_p3 }
   0xa   : > { %p5768_p7 = scmp.ge.s32.totalorder %s6998_s24, 1  ;;  %p215_p8 = scmp.lt.s32.totalorder %s6998_s24, 3 }
   0xc   : > { %p216_p9 = pnand %p5768_p7, %p215_p8 }
   0xe   : > { %219 = sbr.rel (%p216_p9) target bundleno = 1345 (0x541), region = 44 }
  0x15   : > { %v7097_v0 = vld [vmem:[%s13957_s5 + $0x10] sm:$0xff]  ;;  %v7102_v1 = vld [vmem:[%s13957_s5] sm:$0xff]  ;;  %p245_p10 = scmp.lt.s32.totalorder %s7067_s25, 1  ;;  %v7000_v2 = vmov 0   ;;  %v7114_v4 = vld [vmem:[%s13957_s5 + $0x18] sm:$0xff]  ;;  %vm402_vm0 = vcmask 523264  }
  0x16   : > { %6550 = vset.pattern.permute.xlu1 %v7000_v2  ;;  %6549 = vset.pattern.permute.xlu0 %v7000_v2  ;;  %v6610_v3 = vld [vmem:[%s13953_s1] sm:$0xff]   ;;  %v7119_v5 = vld [vmem:[%s13957_s5 + $0x8] sm:$0xff]  ;;  %v6612_v7 = vld [vmem:[%s13953_s1 + $0x10] sm:$0xff]   ;;  %v7001_v52 = vmov 1   ;;  %v7002_v56 = vmov 2   ;;  %vm2751_vm1 = vcmask 261120  }
  0x17   : > { %900 = vperm.xlu1 %6550, %v7097_v0   ;;  %890 = vperm.xlu0 %6549, %v7102_v1   ;;  %s246_s15 = scalar_select %p245_p10, %s7067_s25, 1  ;;  %v6611_v6 = vld [vmem:[%s13953_s1 + $0x8] sm:$0xff]   ;;  %v7142_v9 = vld [vmem:[%s13957_s5 + $0x20] sm:$0xff]  ;;  %v6613_v11 = vld [vmem:[%s13953_s1 + $0x18] sm:$0xff]  }
  0x18   : > { %6216 = vmatprep.subr.bf16.mxu0 %v6610_v3  ;;  %v7137_v8 = vld [vmem:[%s13957_s5 + $0x28] sm:$0xff]  ;;  %v7153_v12 = vld [vmem:[%s13957_s5 + $0x38] sm:$0xff]  ;;  %v7158_v13 = vld [vmem:[%s13957_s5 + $0x30] sm:$0xff]  ;;  %s242_s14 = sand.u32 1, %s6990_s22   ;;  %s6028_s16 = sshll.u32 %s7067_s25, 11 }
  0x19   : > { %6217 = vmatpush3.bf16.msra.mxu0 %v6610_v3  ;;  %s5995_s28 = sshll.u32 %s246_s15, 7  ;;  %v7164_v14 = vld [vmem:[%s13957_s5 + $0x48] sm:$0xff]  ;;  %v7171_v15 = vld [vmem:[%s13957_s5 + $0x40] sm:$0xff]  ;;  %v7181_v18 = vld [vmem:[%s13957_s5 + $0x58] sm:$0xff]  ;;  %s13903_s20 = scalar_lea.hbm %s13958_s6, %s6028_s16 }
  0x1a   : > { %6218 = vmatprep.subr.bf16.mxu0 %v6611_v6  ;;  %s7130_s12 = scalar_lea.vmem %s13952_s0, %s5995_s28  ;;  %v7186_v19 = vld [vmem:[%s13957_s5 + $0x50] sm:$0xff]  ;;  %v7194_v20 = vld [vmem:[%s13957_s5 + $0x68] sm:$0xff]  ;;  %v7199_v21 = vld [vmem:[%s13957_s5 + $0x60] sm:$0xff]  ;;  %s13911_s25 = scalar_lea.sflag [#allocation3], %s242_s14 }
  0x1b   : > { %905 = vperm.xlu1 %6550, %v7114_v4   ;;  %895 = vperm.xlu0 %6549, %v7119_v5   ;;  %v6614_v10 = vld [vmem:[%s7130_s12] sm:$0xff]   ;;  %v6615_v16 = vld [vmem:[%s7130_s12 + $0x8] sm:$0xff]   ;;  %v6616_v17 = vld [vmem:[%s7130_s12 + $0x10] sm:$0xff]   ;;  %s7008_s28 = smov [#allocation2]  }
  0x1c   : > { %6224 = vmatprep.mubr.msk.bf16.mxu0 %vm402_vm0, %v6614_v10  ;;  %v6617_v22 = vld [vmem:[%s7130_s12 + $0x18] sm:$0xff]   ;;  %v6618_v23 = vld [vmem:[%s7130_s12 + $0x20] sm:$0xff]   ;;  %v7214_v25 = vld [vmem:[%s13957_s5 + $0x70] sm:$0xff]  ;;  %s6940_s29 = sshll.u32 %s7008_s28, 4  ;;  %s6941_s29 = int_to_ptr.vmem [resolvable:$false] %s6940_s29 }
  0x1d   : > { %6219 = vmatpush3.bf16.msra.mxu0 %v6611_v6  ;;  %v7208_v24 = vld [vmem:[%s13957_s5 + $0x78] sm:$0xff]  ;;  %v7220_v26 = vld [vmem:[%s13957_s5 + $0x88] sm:$0xff]  ;;  %v7225_v27 = vld [vmem:[%s13957_s5 + $0x80] sm:$0xff]  ;;  %s6942_s9 = scalar_lea.vmem %s6941_s29, 4096 }
  0x1e   : > { %6220 = vmatprep.subr.bf16.mxu0 %v6612_v7  ;;  %v6619_v28 = vld [vmem:[%s7130_s12 + $0x28] sm:$0xff]   ;;  %v6620_v29 = vld [vmem:[%s7130_s12 + $0x30] sm:$0xff]   ;;  %v7234_v30 = vld [vmem:[%s13957_s5 + $0x98] sm:$0xff] }
  0x1f   : > { %915 = vperm.xlu1 %6550, %v7137_v8   ;;  %910 = vperm.xlu0 %6549, %v7142_v9   ;;  %v7239_v31 = vld [vmem:[%s13957_s5 + $0x90] sm:$0xff]  ;;  %v7250_v32 = vld [vmem:[%s13957_s5 + $0xa8] sm:$0xff]  ;;  %v7255_v33 = vld [vmem:[%s13957_s5 + $0xa0] sm:$0xff] }
  0x20   : > { %v6621_v34 = vld [vmem:[%s7130_s12 + $0x38] sm:$0xff]   ;;  %v6622_v35 = vld [vmem:[%s7130_s12 + $0x40] sm:$0xff]   ;;  %v7270_v37 = vld [vmem:[%s13957_s5 + $0xb0] sm:$0xff] }
  0x21   : > { %6221 = vmatpush3.bf16.msra.mxu0 %v6612_v7  ;;  %v7265_v36 = vld [vmem:[%s13957_s5 + $0xb8] sm:$0xff]  ;;  %v7278_v38 = vld [vmem:[%s13957_s5 + $0xc8] sm:$0xff]  ;;  %v7283_v39 = vld [vmem:[%s13957_s5 + $0xc0] sm:$0xff] }
  0x22   : > { %6222 = vmatprep.subr.bf16.mxu0 %v6613_v11  ;;  %v6623_v40 = vld [vmem:[%s7130_s12 + $0x48] sm:$0xff]   ;;  %v6624_v41 = vld [vmem:[%s7130_s12 + $0x50] sm:$0xff]   ;;  %v7293_v42 = vld [vmem:[%s13957_s5 + $0xd8] sm:$0xff] }
  0x23   : > { %925 = vperm.xlu1 %6550, %v7153_v12   ;;  %920 = vperm.xlu0 %6549, %v7158_v13   ;;  %v7298_v43 = vld [vmem:[%s13957_s5 + $0xd0] sm:$0xff]  ;;  %v7306_v44 = vld [vmem:[%s13957_s5 + $0xe8] sm:$0xff]  ;;  %v7311_v45 = vld [vmem:[%s13957_s5 + $0xe0] sm:$0xff] }
  0x24   : > { %v6625_v46 = vld [vmem:[%s7130_s12 + $0x58] sm:$0xff]   ;;  %v6626_v47 = vld [vmem:[%s7130_s12 + $0x60] sm:$0xff]   ;;  %v7326_v49 = vld [vmem:[%s13957_s5 + $0xf0] sm:$0xff] }
  0x25   : > { %6223 = vmatpush3.bf16.msra.mxu0 %v6613_v11  ;;  %v7321_v48 = vld [vmem:[%s13957_s5 + $0xf8] sm:$0xff]  ;;  %v6627_v50 = vld [vmem:[%s7130_s12 + $0x68] sm:$0xff]   ;;  %v6628_v51 = vld [vmem:[%s7130_s12 + $0x70] sm:$0xff]  }
  0x26   : > { %v6629_v53 = vld [vmem:[%s7130_s12 + $0x78] sm:$0xff]   ;;  %s5769_s12 = sshll.u32 %s242_s14, 7 }
  0x27   : > { %935 = vperm.xlu1 %6550, %v7164_v14   ;;  %930 = vperm.xlu0 %6549, %v7171_v15   ;;  %s13782_s15 = scalar_lea.vmem [#allocation2], %s5769_s12 }
  0x28   : > { %6225 = vmatmul.mubr.msk.bf16.vlgmr.msra.gmra.mrb[0].mxu0 %vm402_vm0, %v6615_v16  ;;  %s5703_s17 = sshll.u32 %s13782_s15, 4  ;;  %s13905_s17 = int_to_ptr.vmem [resolvable:$true] %s5703_s17 }
  0x29   : > { %6228 = vmatprep.mubr.msk.bf16.mxu0 %vm402_vm0, %v6616_v17  ;;  %s6936_s26 = scalar_lea.vmem %s13905_s17, 2048  ;;  %p6943_p0 = scmp.lt.s32.totalorder %s13905_s17, %s6941_s29 }
  0x2a   : > { %p6937_p11 = scmp.ne.s32.totalorder %s13905_s17, %s6936_s26  ;;  %p6944_p1 = scmp.lt.s32.totalorder %s6942_s9, %s6936_s26 }
  0x2b   : > { %945 = vperm.xlu1 %6550, %v7181_v18   ;;  %940 = vperm.xlu0 %6549, %v7186_v19  }
  0x2c   : > { %p6938_p12 = pnand %p6937_p11, %p7084_p5  ;;  %p6945_p2 = por %p6944_p1, %p6943_p0 }
  0x2e   : > { %p6939_p13 = pneg %p6938_p12 }
  0x2f   : > { %955 = vperm.xlu1 %6550, %v7194_v20   ;;  %950 = vperm.xlu0 %6549, %v7199_v21  }
  0x30   : > { %6229 = vmatmul.mubr.msk.bf16.gmra.mrb[4].mxu0 %vm402_vm0, %v6617_v22  ;;  %p6946_p3 = pnand %p6945_p2, %p6939_p13 }
  0x31   : > { %6232 = vmatprep.mubr.msk.bf16.mxu0 %vm402_vm0, %v6618_v23 }
  0x33   : > { %965 = vperm.xlu1 %6550, %v7208_v24   ;;  %960 = vperm.xlu0 %6549, %v7214_v25  }
  0x37   : > { %975 = vperm.xlu1 %6550, %v7220_v26   ;;  %970 = vperm.xlu0 %6549, %v7225_v27  }
  0x38   : > { %6233 = vmatmul.mubr.msk.bf16.gmra.mrb[8].mxu0 %vm402_vm0, %v6619_v28 }
  0x39   : > { %6236 = vmatprep.mubr.msk.bf16.mxu0 %vm402_vm0, %v6620_v29 }
  0x3b   : > { %985 = vperm.xlu1 %6550, %v7234_v30   ;;  %980 = vperm.xlu0 %6549, %v7239_v31  }
  0x3f   : > { %995 = vperm.xlu1 %6550, %v7250_v32   ;;  %990 = vperm.xlu0 %6549, %v7255_v33  }
  0x40   : > { %6237 = vmatmul.mubr.msk.bf16.gmra.mrb[12].mxu0 %vm402_vm0, %v6621_v34 }
  0x41   : > { %6240 = vmatprep.mubr.msk.bf16.mxu0 %vm402_vm0, %v6622_v35 }
  0x43   : > { %1005 = vperm.xlu1 %6550, %v7265_v36   ;;  %1000 = vperm.xlu0 %6549, %v7270_v37  }
  0x47   : > { %1015 = vperm.xlu1 %6550, %v7278_v38   ;;  %1010 = vperm.xlu0 %6549, %v7283_v39  }
  0x48   : > { %6241 = vmatmul.mubr.msk.bf16.gmra.mrb[16].mxu0 %vm402_vm0, %v6623_v40 }
  0x49   : > { %6244 = vmatprep.mubr.msk.bf16.mxu0 %vm402_vm0, %v6624_v41 }
  0x4b   : > { %1025 = vperm.xlu1 %6550, %v7293_v42   ;;  %1020 = vperm.xlu0 %6549, %v7298_v43  }
  0x4f   : > { %1035 = vperm.xlu1 %6550, %v7306_v44   ;;  %1030 = vperm.xlu0 %6549, %v7311_v45  }
  0x50   : > { %6245 = vmatmul.mubr.msk.bf16.gmra.mrb[20].mxu0 %vm402_vm0, %v6625_v46 }
  0x51   : > { %6248 = vmatprep.mubr.msk.bf16.mxu0 %vm402_vm0, %v6626_v47 }
  0x53   : > { %1045 = vperm.xlu1 %6550, %v7321_v48   ;;  %1040 = vperm.xlu0 %6549, %v7326_v49  }
  0x57   : > { %6552 = vset.pattern.permute.xlu1 %v7001_v52  ;;  %6551 = vset.pattern.permute.xlu0 %v7001_v52 }
  0x58   : > { %1117 = vperm.xlu1 %6552, %v7119_v5   ;;  %1113 = vperm.xlu0 %6551, %v7102_v1  }
  0x59   : > { %6249 = vmatmul.mubr.msk.bf16.gmra.mrb[24].mxu0 %vm402_vm0, %v6627_v50 }
  0x5a   : > { %6252 = vmatprep.mubr.msk.bf16.mxu0 %vm402_vm0, %v6628_v51 }
  0x5c   : > { %1121 = vperm.xlu1 %6552, %v7097_v0   ;;  %1125 = vperm.xlu0 %6551, %v7114_v4  }
  0x60   : > { %1129 = vperm.xlu1 %6552, %v7142_v9   ;;  %1133 = vperm.xlu0 %6551, %v7137_v8  }
  0x61   : > { %6253 = vmatmul.mubr.msk.bf16.gmra.mrb[28].mxu0 %vm402_vm0, %v6629_v53 }
  0x64   : > { %1137 = vperm.xlu1 %6552, %v7158_v13   ;;  %1141 = vperm.xlu0 %6551, %v7153_v12  }
  0x68   : > { %1145 = vperm.xlu1 %6552, %v7171_v15   ;;  %1149 = vperm.xlu0 %6551, %v7164_v14  }
  0x6c   : > { %1153 = vperm.xlu1 %6552, %v7186_v19   ;;  %1157 = vperm.xlu0 %6551, %v7181_v18  }
  0x70   : > { %1161 = vperm.xlu1 %6552, %v7199_v21   ;;  %1165 = vperm.xlu0 %6551, %v7194_v20  }
  0x74   : > { %1169 = vperm.xlu1 %6552, %v7214_v25   ;;  %1173 = vperm.xlu0 %6551, %v7208_v24  }
  0x78   : > { %1177 = vperm.xlu1 %6552, %v7225_v27   ;;  %1181 = vperm.xlu0 %6551, %v7220_v26  }
  0x7c   : > { %1185 = vperm.xlu1 %6552, %v7239_v31   ;;  %1189 = vperm.xlu0 %6551, %v7234_v30  }
  0x80   : > { %1193 = vperm.xlu1 %6552, %v7255_v33   ;;  %1197 = vperm.xlu0 %6551, %v7250_v32  }
  0x84   : > { %1201 = vperm.xlu1 %6552, %v7270_v37   ;;  %1205 = vperm.xlu0 %6551, %v7265_v36  }
  0x88   : > { %1209 = vperm.xlu1 %6552, %v7283_v39   ;;  %1213 = vperm.xlu0 %6551, %v7278_v38  }
  0x8c   : > { %1217 = vperm.xlu1 %6552, %v7298_v43   ;;  %1221 = vperm.xlu0 %6551, %v7293_v42  }
  0x90   : > { %1225 = vperm.xlu1 %6552, %v7311_v45   ;;  %1229 = vperm.xlu0 %6551, %v7306_v44  }
  0x94   : > { %1233 = vperm.xlu1 %6552, %v7326_v49   ;;  %1237 = vperm.xlu0 %6551, %v7321_v48  }
  0x96   : > { %v7369_v54 = vpop.permute.xlu1 %900  ;;  %v7371_v55 = vpop.permute.xlu0 %890 }
  0x97   : > { %14513 = vst [vmem:[#allocation5_spill] sm:$0xff] %v7369_v54  ;;  %14514 = vst [vmem:[#allocation6_spill] sm:$0xff] %v7371_v55  ;;  %v7003_v54 = vmov 3  }
  0x98   : > { %6553 = vset.pattern.permute.xlu1 %v7002_v56  ;;  %6554 = vset.pattern.permute.xlu0 %v7002_v56 }
  0x99   : > { %1305 = vperm.xlu1 %6553, %v7102_v1   ;;  %1309 = vperm.xlu0 %6554, %v7119_v5  }
  0x9a   : > { %v7375_v57 = vpop.permute.xlu1 %905  ;;  %v7377_v58 = vpop.permute.xlu0 %895 }
  0x9b   : > { %14515 = vst [vmem:[#allocation7_spill] sm:$0xff] %v7375_v57  ;;  %14516 = vst [vmem:[#allocation8_spill] sm:$0xff] %v7377_v58 }
  0x9d   : > { %1313 = vperm.xlu1 %6553, %v7097_v0   ;;  %1321 = vperm.xlu0 %6554, %v7142_v9  }
  0x9e   : > { %v7381_v59 = vpop.permute.xlu1 %915  ;;  %v7383_v60 = vpop.permute.xlu0 %910 }
  0x9f   : > { %14517 = vst [vmem:[#allocation9_spill] sm:$0xff] %v7381_v59  ;;  %14518 = vst [vmem:[#allocation10_spill] sm:$0xff] %v7383_v60 }
  0xa1   : > { %1317 = vperm.xlu1 %6553, %v7114_v4   ;;  %1329 = vperm.xlu0 %6554, %v7158_v13  }
  0xa2   : > { %v7387_v61 = vpop.permute.xlu1 %925  ;;  %v7389_v62 = vpop.permute.xlu0 %920 }
  0xa3   : > { %14519 = vst [vmem:[#allocation11_spill] sm:$0xff] %v7387_v61  ;;  %14520 = vst [vmem:[#allocation12_spill] sm:$0xff] %v7389_v62 }
  0xa5   : > { %1325 = vperm.xlu1 %6553, %v7137_v8   ;;  %1337 = vperm.xlu0 %6554, %v7171_v15  }
  0xa6   : > { %v7393_v63 = vpop.permute.xlu1 %935  ;;  %v7395_v2 = vpop.permute.xlu0 %930 }
  0xa7   : > { %14521 = vst [vmem:[#allocation13_spill] sm:$0xff] %v7393_v63  ;;  %14522 = vst [vmem:[#allocation14_spill] sm:$0xff] %v7395_v2 }
  0xa9   : > { %1333 = vperm.xlu1 %6553, %v7153_v12   ;;  %1345 = vperm.xlu0 %6554, %v7186_v19  }
  0xaa   : > { %v7399_v3 = vpop.permute.xlu1 %945  ;;  %v7401_v6 = vpop.permute.xlu0 %940 }
  0xab   : > { %14523 = vst [vmem:[#allocation15_spill] sm:$0xff] %v7399_v3  ;;  %14524 = vst [vmem:[#allocation16_spill] sm:$0xff] %v7401_v6 }
  0xad   : > { %1341 = vperm.xlu1 %6553, %v7164_v14   ;;  %1353 = vperm.xlu0 %6554, %v7199_v21  }
  0xae   : > { %v7405_v7 = vpop.permute.xlu1 %955  ;;  %v7407_v10 = vpop.permute.xlu0 %950 }
  0xaf   : > { %14525 = vst [vmem:[#allocation17_spill] sm:$0xff] %v7405_v7  ;;  %14526 = vst [vmem:[#allocation18_spill] sm:$0xff] %v7407_v10 }
  0xb1   : > { %1349 = vperm.xlu1 %6553, %v7181_v18   ;;  %1361 = vperm.xlu0 %6554, %v7214_v25  }
  0xb2   : > { %v7411_v11 = vpop.permute.xlu1 %965  ;;  %v7413_v16 = vpop.permute.xlu0 %960 }
  0xb3   : > { %14527 = vst [vmem:[#allocation19_spill] sm:$0xff] %v7411_v11  ;;  %14528 = vst [vmem:[#allocation20_spill] sm:$0xff] %v7413_v16  ;;  %v14013_v16 = vmov 4  }
  0xb5   : > { %1357 = vperm.xlu1 %6553, %v7194_v20   ;;  %1369 = vperm.xlu0 %6554, %v7225_v27  }
  0xb6   : > { %v7417_v17 = vpop.permute.xlu1 %975  ;;  %v7419_v22 = vpop.permute.xlu0 %970 }
  0xb7   : > { %14529 = vst [vmem:[#allocation21_spill] sm:$0xff] %v7417_v17  ;;  %14530 = vst [vmem:[#allocation22_spill] sm:$0xff] %v7419_v22 }
  0xb9   : > { %1365 = vperm.xlu1 %6553, %v7208_v24   ;;  %1377 = vperm.xlu0 %6554, %v7239_v31  }
  0xba   : > { %v7423_v23 = vpop.permute.xlu1 %985  ;;  %v7425_v28 = vpop.permute.xlu0 %980 }
  0xbb   : > { %14531 = vst [vmem:[#allocation23_spill] sm:$0xff] %v7423_v23  ;;  %14532 = vst [vmem:[#allocation24_spill] sm:$0xff] %v7425_v28 }
  0xbd   : > { %1373 = vperm.xlu1 %6553, %v7220_v26   ;;  %1385 = vperm.xlu0 %6554, %v7255_v33  }
  0xbe   : > { %v7429_v29 = vpop.permute.xlu1 %995  ;;  %v7431_v34 = vpop.permute.xlu0 %990 }
  0xbf   : > { %14533 = vst [vmem:[#allocation25_spill] sm:$0xff] %v7429_v29  ;;  %14534 = vst [vmem:[#allocation26_spill] sm:$0xff] %v7431_v34 }
  0xc1   : > { %1381 = vperm.xlu1 %6553, %v7234_v30   ;;  %1393 = vperm.xlu0 %6554, %v7270_v37  }
  0xc2   : > { %v7435_v35 = vpop.permute.xlu1 %1005  ;;  %v7437_v40 = vpop.permute.xlu0 %1000 }
  0xc3   : > { %14535 = vst [vmem:[#allocation27_spill] sm:$0xff] %v7435_v35  ;;  %14536 = vst [vmem:[#allocation28_spill] sm:$0xff] %v7437_v40 }
  0xc5   : > { %1389 = vperm.xlu1 %6553, %v7250_v32   ;;  %1401 = vperm.xlu0 %6554, %v7283_v39  }
  0xc6   : > { %v7441_v41 = vpop.permute.xlu1 %1015  ;;  %v7443_v46 = vpop.permute.xlu0 %1010 }
  0xc7   : > { %14537 = vst [vmem:[#allocation29_spill] sm:$0xff] %v7441_v41  ;;  %14538 = vst [vmem:[#allocation30_spill] sm:$0xff] %v7443_v46 }
  0xc9   : > { %1397 = vperm.xlu1 %6553, %v7265_v36   ;;  %1409 = vperm.xlu0 %6554, %v7298_v43  }
  0xca   : > { %v7447_v47 = vpop.permute.xlu1 %1025  ;;  %v7449_v50 = vpop.permute.xlu0 %1020 }
  0xcb   : > { %14539 = vst [vmem:[#allocation31_spill] sm:$0xff] %v7447_v47  ;;  %14540 = vst [vmem:[#allocation32_spill] sm:$0xff] %v7449_v50 }
  0xcd   : > { %1405 = vperm.xlu1 %6553, %v7278_v38   ;;  %1417 = vperm.xlu0 %6554, %v7311_v45  }
  0xce   : > { %v7453_v51 = vpop.permute.xlu1 %1035  ;;  %v7455_v52 = vpop.permute.xlu0 %1030 }
  0xcf   : > { %14541 = vst [vmem:[#allocation33_spill] sm:$0xff] %v7453_v51  ;;  %14542 = vst [vmem:[#allocation34_spill] sm:$0xff] %v7455_v52 }
  0xd1   : > { %1413 = vperm.xlu1 %6553, %v7293_v42   ;;  %1425 = vperm.xlu0 %6554, %v7326_v49  }
  0xd2   : > { %v7459_v53 = vpop.permute.xlu1 %1045  ;;  %v7461_v56 = vpop.permute.xlu0 %1040 }
  0xd3   : > { %14543 = vst [vmem:[#allocation35_spill] sm:$0xff] %v7459_v53  ;;  %14544 = vst [vmem:[#allocation36_spill] sm:$0xff] %v7461_v56 }
  0xd5   : > { %1421 = vperm.xlu1 %6553, %v7306_v44   ;;  %6555 = vset.pattern.permute.xlu0 %v7003_v54 }
  0xd6   : > { %1497 = vperm.xlu0 %6555, %v7102_v1  }
  0xd7   : > { %v7465_v58 = vpop.permute.xlu1 %1117  ;;  %v7467_v57 = vpop.permute.xlu0 %1113 }
  0xd8   : > { %14545 = vst [vmem:[#allocation37_spill] sm:$0xff] %v7465_v58  ;;  %14546 = vst [vmem:[#allocation38_spill] sm:$0xff] %v7467_v57 }
  0xd9   : > { %1429 = vperm.xlu1 %6553, %v7321_v48  }
  0xda   : > { %1509 = vperm.xlu0 %6555, %v7114_v4  }
  0xdb   : > { %v7471_v51 = vpop.permute.xlu1 %1121  ;;  %v7473_v47 = vpop.permute.xlu0 %1125 }
  0xdc   : > { %14547 = vst [vmem:[#allocation39_spill] sm:$0xff] %v7471_v51  ;;  %14548 = vst [vmem:[#allocation40_spill] sm:$0xff] %v7473_v47 }
  0xdd   : > { %6556 = vset.pattern.permute.xlu1 %v7003_v54 }
  0xde   : > { %1501 = vperm.xlu1 %6556, %v7119_v5   ;;  %1517 = vperm.xlu0 %6555, %v7137_v8  }
  0xdf   : > { %v7477_v53 = vpop.permute.xlu1 %1129  ;;  %v7479_v55 = vpop.permute.xlu0 %1133 }
  0xe0   : > { %14549 = vst [vmem:[#allocation41_spill] sm:$0xff] %v7477_v53  ;;  %14550 = vst [vmem:[#allocation42_spill] sm:$0xff] %v7479_v55 }
  0xe2   : > { %1505 = vperm.xlu1 %6556, %v7097_v0   ;;  %1525 = vperm.xlu0 %6555, %v7153_v12  }
  0xe3   : > { %v7483_v58 = vpop.permute.xlu1 %1137  ;;  %v7485_v57 = vpop.permute.xlu0 %1141 }
  0xe4   : > { %14551 = vst [vmem:[#allocation43_spill] sm:$0xff] %v7483_v58  ;;  %14552 = vst [vmem:[#allocation44_spill] sm:$0xff] %v7485_v57  ;;  %v14586_v57 = vmov 4  }
  0xe6   : > { %1513 = vperm.xlu1 %6556, %v7142_v9   ;;  %1533 = vperm.xlu0 %6555, %v7164_v14  }
  0xe7   : > { %v7489_v54 = vpop.permute.xlu1 %1145  ;;  %v7491_v51 = vpop.permute.xlu0 %1149 }
  0xe8   : > { %14553 = vst [vmem:[#allocation45_spill] sm:$0xff] %v7489_v54  ;;  %14554 = vst [vmem:[#allocation46_spill] sm:$0xff] %v7491_v51 }
  0xea   : > { %1521 = vperm.xlu1 %6556, %v7158_v13   ;;  %1541 = vperm.xlu0 %6555, %v7181_v18  }
  0xeb   : > { %v7495_v56 = vpop.permute.xlu1 %1153  ;;  %v7497_v52 = vpop.permute.xlu0 %1157 }
  0xec   : > { %14555 = vst [vmem:[#allocation47_spill] sm:$0xff] %v7495_v56  ;;  %14556 = vst [vmem:[#allocation48_spill] sm:$0xff] %v7497_v52  ;;  %v14004_v52 = vmov 7  }
  0xee   : > { %1529 = vperm.xlu1 %6556, %v7171_v15   ;;  %1549 = vperm.xlu0 %6555, %v7194_v20  }
  0xef   : > { %v7501_v41 = vpop.permute.xlu1 %1161  ;;  %v7503_v50 = vpop.permute.xlu0 %1165 }
  0xf0   : > { %14557 = vst [vmem:[#allocation49_spill] sm:$0xff] %v7501_v41  ;;  %14558 = vst [vmem:[#allocation50_spill] sm:$0xff] %v7503_v50 }
  0xf2   : > { %1537 = vperm.xlu1 %6556, %v7186_v19   ;;  %1557 = vperm.xlu0 %6555, %v7208_v24  }
  0xf3   : > { %v7507_v35 = vpop.permute.xlu1 %1169  ;;  %v7509_v29 = vpop.permute.xlu0 %1173 }
  0xf4   : > { %14559 = vst [vmem:[#allocation51_spill] sm:$0xff] %v7507_v35  ;;  %14560 = vst [vmem:[#allocation52_spill] sm:$0xff] %v7509_v29 }
  0xf6   : > { %1545 = vperm.xlu1 %6556, %v7199_v21   ;;  %1565 = vperm.xlu0 %6555, %v7220_v26  }
  0xf7   : > { %v7513_v46 = vpop.permute.xlu1 %1177  ;;  %v7515_v40 = vpop.permute.xlu0 %1181 }
  0xf8   : > { %14561 = vst [vmem:[#allocation53_spill] sm:$0xff] %v7513_v46  ;;  %14562 = vst [vmem:[#allocation54_spill] sm:$0xff] %v7515_v40 }
  0xfa   : > { %1553 = vperm.xlu1 %6556, %v7214_v25   ;;  %1573 = vperm.xlu0 %6555, %v7234_v30  }
  0xfb   : > { %v7519_v20 = vpop.permute.xlu1 %1185  ;;  %v7521_v23 = vpop.f32.mrb[0].mxu0 }
  0xfc   : > { %14563 = vst [vmem:[#allocation55_spill] sm:$0xff] %v7519_v20  ;;  %v7523_v24 = vpop.f32.mrb[1].mxu0  ;;  %v7525_v34 = vpop.permute.xlu0 %1189 }
  0xfd   : > { %14564 = vst [vmem:[#allocation56_spill] sm:$0xff] %v7525_v34  ;;  %v7527_v17 = vpop.f32.mrb[2].mxu0 }
  0xfe   : > { %1561 = vperm.xlu1 %6556, %v7225_v27   ;;  %1581 = vperm.xlu0 %6555, %v7250_v32   ;;  %v7531_v21 = vpop.f32.mrb[3].mxu0 }
  0xff   : > { %v7533_v26 = vpop.permute.xlu1 %1193 }
 0x100   : > { %14565 = vst [vmem:[#allocation57_spill] sm:$0xff] %v7533_v26  ;;  %v7535_v40 = vpop.permute.xlu0 %1197 }
 0x101   : > { %14566 = vst [vmem:[#allocation58_spill] sm:$0xff] %v7535_v40 }
 0x102   : > { %1569 = vperm.xlu1 %6556, %v7239_v31   ;;  %1589 = vperm.xlu0 %6555, %v7265_v36  }
 0x103   : > { %v7539_v30 = vpop.permute.xlu1 %1201  ;;  %v7541_v20 = vpop.f32.mrb[4].mxu0 }
 0x104   : > { %14567 = vst [vmem:[#allocation59_spill] sm:$0xff] %v7539_v30  ;;  %v7543_v34 = vpop.f32.mrb[5].mxu0  ;;  %v7545_v28 = vpop.permute.xlu0 %1205 }
 0x105   : > { %14568 = vst [vmem:[#allocation60_spill] sm:$0xff] %v7545_v28  ;;  %v7547_v29 = vpop.f32.mrb[6].mxu0 }
 0x106   : > { %1577 = vperm.xlu1 %6556, %v7255_v33   ;;  %1597 = vperm.xlu0 %6555, %v7278_v38   ;;  %v7551_v32 = vpop.f32.mrb[7].mxu0 }
 0x107   : > { %v7553_v40 = vpop.permute.xlu1 %1209 }
 0x108   : > { %14569 = vst [vmem:[#allocation61_spill] sm:$0xff] %v7553_v40  ;;  %v7555_v26 = vpop.permute.xlu0 %1213 }
 0x109   : > { %14570 = vst [vmem:[#allocation62_spill] sm:$0xff] %v7555_v26 }
 0x10a   : > { %1585 = vperm.xlu1 %6556, %v7270_v37   ;;  %1605 = vperm.xlu0 %6555, %v7293_v42  }
 0x10b   : > { %v7559_v36 = vpop.permute.xlu1 %1217  ;;  %v7561_v30 = vpop.f32.mrb[8].mxu0 }
 0x10c   : > { %14571 = vst [vmem:[#allocation63_spill] sm:$0xff] %v7559_v36  ;;  %v7563_v28 = vpop.f32.mrb[9].mxu0  ;;  %v7565_v11 = vpop.permute.xlu0 %1221 }
 0x10d   : > { %14572 = vst [vmem:[#allocation64_spill] sm:$0xff] %v7565_v11  ;;  %v7567_v46 = vpop.f32.mrb[10].mxu0 }
 0x10e   : > { %1593 = vperm.xlu1 %6556, %v7283_v39   ;;  %1613 = vperm.xlu0 %6555, %v7306_v44   ;;  %v7571_v38 = vpop.f32.mrb[11].mxu0 }
 0x10f   : > { %v7573_v26 = vpop.permute.xlu1 %1225 }
 0x110   : > { %14573 = vst [vmem:[#allocation65_spill] sm:$0xff] %v7573_v26  ;;  %v7575_v40 = vpop.permute.xlu0 %1229 }
 0x111   : > { %14574 = vst [vmem:[#allocation66_spill] sm:$0xff] %v7575_v40 }
 0x112   : > { %1601 = vperm.xlu1 %6556, %v7298_v43   ;;  %1621 = vperm.xlu0 %6555, %v7321_v48  }
 0x113   : > { %v7579_v36 = vpop.permute.xlu1 %1233  ;;  %v7581_v35 = vpop.f32.mrb[12].mxu0 }
 0x114   : > { %14575 = vst [vmem:[#allocation67_spill] sm:$0xff] %v7579_v36  ;;  %v7583_v11 = vpop.f32.mrb[13].mxu0  ;;  %v7585_v50 = vpop.permute.xlu0 %1237 }
 0x115   : > { %14576 = vst [vmem:[#allocation68_spill] sm:$0xff] %v7585_v50  ;;  %v7587_v39 = vpop.f32.mrb[14].mxu0 }
 0x116   : > { %1609 = vperm.xlu1 %6556, %v7311_v45   ;;  %6562 = vset.pattern.permute.xlu0 %v14004_v52  ;;  %v7591_v40 = vpop.f32.mrb[15].mxu0 }
 0x117   : > { %2635 = vperm.xlu0 %6562, %v7293_v42  }
 0x118   : > { %v7594_v43 = vpop.permute.xlu1 %1305  ;;  %v7596_v36 = vpop.permute.xlu0 %1309 }
 0x119   : > { %14577 = vst [vmem:[#allocation69_spill] sm:$0xff] %v7594_v43  ;;  %14578 = vst [vmem:[#allocation70_spill] sm:$0xff] %v7596_v36 }
 0x11a   : > { %1617 = vperm.xlu1 %6556, %v7326_v49  }
 0x11b   : > { %2527 = vperm.xlu0 %6562, %v7102_v1   ;;  %v7600_v50 = vpop.f32.mrb[16].mxu0 }
 0x11c   : > { %v7602_v26 = vpop.permute.xlu1 %1313  ;;  %v7604_v22 = vpop.f32.mrb[17].mxu0 }
 0x11d   : > { %14579 = vst [vmem:[#allocation71_spill] sm:$0xff] %v7602_v26  ;;  %v7606_v7 = vpop.permute.xlu0 %1321  ;;  %v7608_v52 = vpop.f32.mrb[18].mxu0 }
 0x11e   : > { %14580 = vst [vmem:[#allocation72_spill] sm:$0xff] %v7606_v7  ;;  %6557 = vset.pattern.permute.xlu1 %v14013_v16  ;;  %v7611_v3 = vpop.f32.mrb[19].mxu0 }
 0x11f   : > { %1756 = vperm.xlu1 %6557, %v7102_v1   ;;  %2535 = vperm.xlu0 %6562, %v7097_v0  }
 0x120   : > { %v7615_v41 = vpop.permute.xlu1 %1317 }
 0x121   : > { %14581 = vst [vmem:[#allocation73_spill] sm:$0xff] %v7615_v41  ;;  %v7617_v51 = vpop.permute.xlu0 %1329 }
 0x122   : > { %14582 = vst [vmem:[#allocation74_spill] sm:$0xff] %v7617_v51 }
 0x123   : > { %1764 = vperm.xlu1 %6557, %v7097_v0   ;;  %2559 = vperm.xlu0 %6562, %v7171_v15   ;;  %v7621_v10 = vpop.f32.mrb[20].mxu0 }
 0x124   : > { %v7623_v63 = vpop.permute.xlu1 %1325  ;;  %v7625_v56 = vpop.f32.mrb[21].mxu0 }
 0x125   : > { %14583 = vst [vmem:[#allocation75_spill] sm:$0xff] %v7623_v63  ;;  %v7627_v16 = vpop.permute.xlu0 %1337  ;;  %v7629_v6 = vpop.f32.mrb[22].mxu0 }
 0x126   : > { %14584 = vst [vmem:[#allocation76_spill] sm:$0xff] %v7627_v16  ;;  %v7631_v1 = vpop.f32.mrb[23].mxu0 }
 0x127   : > { %14585 = vst [vmem:[#allocation77_spill] sm:$0xff] %v7631_v1  ;;  %1768 = vperm.xlu1 %6557, %v7114_v4   ;;  %6576 = vset.pattern.permute.xlu0 %v14586_v57 }
 0x128   : > { %v7635_v51 = vpop.permute.xlu1 %1333  ;;  %1760 = vperm.xlu0 %6576, %v7119_v5  }
 0x129   : > { %14587 = vst [vmem:[#allocation78_spill] sm:$0xff] %v7635_v51  ;;  %v7638_v0 = vpop.permute.xlu0 %1345 }
 0x12a   : > { %14588 = vst [vmem:[#allocation79_spill] sm:$0xff] %v7638_v0 }
 0x12b   : > { %1776 = vperm.xlu1 %6557, %v7137_v8  }
 0x12c   : > { %v7641_v54 = vpop.f32.mrb[24].mxu0  ;;  %v7643_v63 = vpop.permute.xlu1 %1341  ;;  %1772 = vperm.xlu0 %6576, %v7142_v9  }
 0x12d   : > { %14589 = vst [vmem:[#allocation80_spill] sm:$0xff] %v7643_v63  ;;  %v7646_v16 = vpop.f32.mrb[25].mxu0  ;;  %v7648_v41 = vpop.permute.xlu0 %1353 }
 0x12e   : > { %14590 = vst [vmem:[#allocation81_spill] sm:$0xff] %v7648_v41  ;;  %v7650_v1 = vpop.f32.mrb[26].mxu0 }
 0x12f   : > { %14591 = vst [vmem:[#allocation82_spill] sm:$0xff] %v7650_v1  ;;  %v7652_v57 = vpop.f32.mrb[27].mxu0  ;;  %1784 = vperm.xlu1 %6557, %v7153_v12  }
 0x130   : > { %v7655_v51 = vpop.permute.xlu1 %1349  ;;  %1780 = vperm.xlu0 %6576, %v7158_v13  }
 0x131   : > { %14592 = vst [vmem:[#allocation83_spill] sm:$0xff] %v7655_v51  ;;  %v7658_v8 = vpop.permute.xlu0 %1361  ;;  %v14036_v51 = vmov 5  }
 0x132   : > { %14593 = vst [vmem:[#allocation84_spill] sm:$0xff] %v7658_v8 }
 0x133   : > { %1792 = vperm.xlu1 %6557, %v7164_v14  }
 0x134   : > { %v7661_v63 = vpop.f32.mrb[28].mxu0  ;;  %v7663_v9 = vpop.permute.xlu1 %1357  ;;  %1788 = vperm.xlu0 %6576, %v7171_v15   ;;  %v7683_v15 = vld [vmem:[%s13954_s2] ss:$0 sm:$0xff] }
 0x135   : > { %14594 = vst [vmem:[#allocation85_spill] sm:$0xff] %v7663_v9  ;;  %v7666_v41 = vpop.f32.mrb[29].mxu0  ;;  %v7668_v0 = vpop.permute.xlu0 %1369 }
 0x136   : > { %14595 = vst [vmem:[#allocation86_spill] sm:$0xff] %v7668_v0  ;;  %v7670_v1 = vpop.f32.mrb[30].mxu0 }
 0x137   : > { %14596 = vst [vmem:[#allocation87_spill] sm:$0xff] %v7670_v1  ;;  %v7672_v12 = vpop.f32.mrb[31].mxu0  ;;  %1864 = vperm.xlu1 %6557, %v7293_v42  }
 0x138   : > { %14597 = vst [vmem:[#allocation88_spill] sm:$0xff] %v7672_v12  ;;  %v7675_v13 = vpop.permute.xlu1 %1365  ;;  %1796 = vperm.xlu0 %6576, %v7186_v19   ;;  %v7697_v19 = vadd.f32 %v7683_v15, %v7523_v24 }
 0x139   : > { %14598 = vst [vmem:[#allocation89_spill] sm:$0xff] %v7675_v13  ;;  %v7678_v14 = vpop.permute.xlu0 %1377  ;;  %v7693_v13 = vadd.f32 %v7521_v23, %v7683_v15  ;;  %v7712_v23 = vadd.f32 %v7683_v15, %v7531_v21  ;;  %v7727_v21 = vadd.f32 %v7683_v15, %v7543_v34  ;;  %v7740_v34 = vadd.f32 %v7683_v15, %v7551_v32 }
 0x13a   : > { %14599 = vst [vmem:[#allocation90_spill] sm:$0xff] %v7678_v14  ;;  %v5809_v24 = vmul.f32 -1.442695, %v7697_v19 }
 0x13b   : > { %1872 = vperm.xlu1 %6557, %v7306_v44   ;;  %v5814_v32 = vmul.f32 -1.442695, %v7740_v34 }
 0x13c   : > { %v7686_v0 = vpop.permute.xlu1 %1373  ;;  %1868 = vperm.xlu0 %6576, %v7311_v45  }
 0x13d   : > { %14600 = vst [vmem:[#allocation91_spill] sm:$0xff] %v7686_v0  ;;  %v7689_v9 = vpop.permute.xlu0 %1385  ;;  %v7705_v0 = vadd.f32 %v7527_v17, %v7683_v15 }
 0x13e   : > { %14601 = vst [vmem:[#allocation92_spill] sm:$0xff] %v7689_v9  ;;  %v5811_v9 = vmul.f32 -1.442695, %v7693_v13 }
 0x13f   : > { %1880 = vperm.xlu1 %6557, %v7321_v48  }
 0x140   : > { %v7700_v14 = vpop.permute.xlu1 %1381  ;;  %1876 = vperm.xlu0 %6576, %v7326_v49   ;;  %6638 = vpow2.f32 %v5811_v9  ;;  %v7746_v9 = vadd.f32 %v7547_v29, %v7683_v15  ;;  %v7762_v29 = vadd.f32 %v7561_v30, %v7683_v15 }
 0x141   : > { %14602 = vst [vmem:[#allocation93_spill] sm:$0xff] %v7700_v14  ;;  %v7707_v8 = vpop.permute.xlu0 %1393  ;;  %v7718_v14 = vadd.f32 %v7541_v20, %v7683_v15  ;;  %6640 = vpow2.f32 %v5809_v24  ;;  %v7750_v24 = vadd.f32 %v7683_v15, %v7563_v28 }
 0x142   : > { %14603 = vst [vmem:[#allocation94_spill] sm:$0xff] %v7707_v8  ;;  %v5812_v8 = vmul.f32 -1.442695, %v7705_v0  ;;  %v5819_v30 = vmul.f32 -1.442695, %v7762_v29 }
 0x143   : > { %6558 = vset.pattern.permute.xlu1 %v14036_v51  ;;  %v5810_v51 = vmul.f32 -1.442695, %v7712_v23  ;;  %v5815_v20 = vmul.f32 -1.442695, %v7718_v14  ;;  %v5817_v28 = vmul.f32 -1.442695, %v7750_v24 }
 0x144   : > { %2125 = vperm.xlu1 %6558, %v7311_v45   ;;  %v7721_v17 = vpop.permute.xlu1 %1389  ;;  %1800 = vperm.xlu0 %6576, %v7181_v18   ;;  %6642 = vpow2.f32 %v5812_v8  ;;  %v5813_v18 = vmul.f32 -1.442695, %v7727_v21 }
 0x145   : > { %14604 = vst [vmem:[#allocation95_spill] sm:$0xff] %v7721_v17  ;;  %v7729_v12 = vpop.permute.xlu0 %1401  ;;  %6644 = vpow2.f32 %v5810_v51  ;;  %v5816_v51 = vmul.f32 -1.442695, %v7746_v9 }
 0x146   : > { %14605 = vst [vmem:[#allocation96_spill] sm:$0xff] %v7729_v12  ;;  %6646 = vpow2.f32 %v5815_v20 }
 0x147   : > { %6648 = vpow2.f32 %v5813_v18 }
 0x148   : > { %2129 = vperm.xlu1 %6558, %v7306_v44   ;;  %v7734_v1 = vpop.permute.xlu1 %1397  ;;  %1812 = vperm.xlu0 %6576, %v7214_v25   ;;  %6650 = vpow2.f32 %v5814_v32  ;;  %v14045_v32 = vmov 6  }
 0x149   : > { %14606 = vst [vmem:[#allocation97_spill] sm:$0xff] %v7734_v1  ;;  %v7742_v12 = vpop.permute.xlu0 %1409  ;;  %6652 = vpow2.f32 %v5816_v51 }
 0x14a   : > { %14607 = vst [vmem:[#allocation98_spill] sm:$0xff] %v7742_v12  ;;  %v6639_v20 = vpop.eup %6638  ;;  %6654 = vpow2.f32 %v5817_v28  ;;  %v7790_v28 = vadd.f32 %v7581_v35, %v7683_v15 }
 0x14b   : > { %v6641_v12 = vpop.eup %6640  ;;  %6656 = vpow2.f32 %v5819_v30  ;;  %v7801_v30 = vadd.f32 %v7587_v39, %v7683_v15 }
 0x14c   : > { %2137 = vperm.xlu1 %6558, %v7321_v48   ;;  %v7753_v25 = vpop.permute.xlu1 %1405  ;;  %1820 = vperm.xlu0 %6576, %v7225_v27   ;;  %v7770_v27 = vadd.f32 %v7683_v15, %v7571_v38 }
 0x14d   : > { %14608 = vst [vmem:[#allocation99_spill] sm:$0xff] %v7753_v25  ;;  %v7757_v8 = vpop.permute.xlu0 %1417  ;;  %v710_v25 = vadd.f32 1.0, %v6639_v20  ;;  %v5824_v39 = vmul.f32 -1.442695, %v7801_v30 }
 0x14e   : > { %14609 = vst [vmem:[#allocation100_spill] sm:$0xff] %v7757_v8  ;;  %v6643_v8 = vpop.eup %6642 }
 0x14f   : > { %v6645_v1 = vpop.eup %6644  ;;  %v711_v20 = vadd.f32 1.0, %v6643_v8  ;;  %6658 = vrcp.f32 %v710_v25 }
 0x150   : > { %2017 = vperm.xlu1 %6558, %v7119_v5   ;;  %v7766_v48 = vpop.permute.xlu1 %1413  ;;  %1828 = vperm.xlu0 %6576, %v7239_v31   ;;  %v708_v5 = vadd.f32 1.0, %v6641_v12  ;;  %v5818_v31 = vmul.f32 -1.442695, %v7770_v27 }
 0x151   : > { %14610 = vst [vmem:[#allocation101_spill] sm:$0xff] %v7766_v48  ;;  %v7773_v18 = vpop.permute.xlu0 %1425  ;;  %v7778_v48 = vadd.f32 %v7567_v46, %v7683_v15  ;;  %v709_v46 = vadd.f32 1.0, %v6645_v1 }
 0x152   : > { %14611 = vst [vmem:[#allocation102_spill] sm:$0xff] %v7773_v18  ;;  %v6647_v18 = vpop.eup %6646  ;;  %6660 = vrcp.f32 %v708_v5 }
 0x153   : > { %v6649_v12 = vpop.eup %6648  ;;  %v714_v8 = vadd.f32 1.0, %v6647_v18  ;;  %6662 = vpow2.f32 %v5818_v31 }
 0x154   : > { %6559 = vset.pattern.permute.xlu1 %v14045_v32  ;;  %v7781_v38 = vpop.permute.xlu1 %1421  ;;  %1836 = vperm.xlu0 %6576, %v7255_v33   ;;  %v5820_v32 = vmul.f32 -1.442695, %v7778_v48  ;;  %v7795_v33 = vadd.f32 %v7683_v15, %v7583_v11  ;;  %6664 = vrcp.f32 %v711_v20  ;;  %v712_v35 = vadd.f32 1.0, %v6649_v12  ;;  %v6651_v25 = vpop.eup %6650 }
 0x155   : > { %14612 = vst [vmem:[#allocation103_spill] sm:$0xff] %v7781_v38  ;;  %v7785_v51 = vpop.permute.xlu0 %1497  ;;  %2382 = vperm.xlu1 %6559, %v7311_v45   ;;  %6666 = vrcp.f32 %v709_v46  ;;  %v5823_v11 = vmul.f32 -1.442695, %v7790_v28  ;;  %v6653_v5 = vpop.eup %6652  ;;  %v14616_v20 = vmov 5   ;;  %v713_v46 = vadd.f32 1.0, %v6651_v25 }
 0x156   : > { %14613 = vst [vmem:[#allocation104_spill] sm:$0xff] %v7785_v51  ;;  %6668 = vpow2.f32 %v5820_v32  ;;  %v5821_v18 = vmul.f32 -1.442695, %v7795_v33  ;;  %v6655_v31 = vpop.eup %6654  ;;  %v715_v32 = vadd.f32 1.0, %v6653_v5 }
 0x157   : > { %6670 = vrcp.f32 %v714_v8  ;;  %v6657_v8 = vpop.eup %6656 }
 0x158   : > { %v7797_v38 = vpop.permute.xlu1 %1429  ;;  %1844 = vperm.xlu0 %6576, %v7270_v37   ;;  %v7812_v37 = vadd.f32 %v7683_v15, %v7591_v40  ;;  %6672 = vrcp.f32 %v712_v35  ;;  %v7823_v40 = vadd.f32 %v7600_v50, %v7683_v15  ;;  %v718_v5 = vadd.f32 1.0, %v6657_v8 }
 0x159   : > { %14614 = vst [vmem:[#allocation105_spill] sm:$0xff] %v7797_v38  ;;  %v7804_v1 = vpop.permute.xlu0 %1509  ;;  %2386 = vperm.xlu1 %6559, %v7306_v44   ;;  %6674 = vpow2.f32 %v5823_v11  ;;  %v716_v38 = vadd.f32 1.0, %v6655_v31  ;;  %v14621_v31 = vmov 6  }
 0x15a   : > { %14615 = vst [vmem:[#allocation106_spill] sm:$0xff] %v7804_v1  ;;  %6676 = vpow2.f32 %v5821_v18  ;;  %v5822_v35 = vmul.f32 -1.442695, %v7812_v37  ;;  %v7833_v18 = vadd.f32 %v7683_v15, %v7604_v22  ;;  %v5827_v50 = vmul.f32 -1.442695, %v7823_v40 }
 0x15b   : > { %6678 = vpow2.f32 %v5824_v39 }
 0x15c   : > { %6596 = vset.pattern.permute.xlu0 %v14616_v20  ;;  %6680 = vrcp.f32 %v713_v46  ;;  %v5825_v51 = vmul.f32 -1.442695, %v7833_v18 }
 0x15d   : > { %v7815_v12 = vpop.permute.xlu1 %1501  ;;  %v7817_v1 = vpop.permute.xlu0 %1517  ;;  %6560 = vset.pattern.permute.xlu1 %v14616_v20  ;;  %2121 = vperm.xlu0 %6596, %v7293_v42   ;;  %6682 = vrcp.f32 %v715_v32 }
 0x15e   : > { %14617 = vst [vmem:[#allocation107_spill] sm:$0xff] %v7815_v12  ;;  %14618 = vst [vmem:[#allocation108_spill] sm:$0xff] %v7817_v1  ;;  %2025 = vperm.xlu1 %6560, %v7114_v4   ;;  %v6659_v12 = vpop.eup %6658  ;;  %6684 = vrcp.f32 %v716_v38  ;;  %v7848_v38 = vadd.f32 %v7608_v52, %v7683_v15 }
 0x15f   : > { %v6661_v11 = vpop.eup %6660  ;;  %6686 = vpow2.f32 %v5822_v35 }
 0x160   : > { %v6663_v42 = vpop.eup %6662  ;;  %6688 = vrcp.f32 %v718_v5  ;;  %v7859_v35 = vmul.f32 %v6661_v11, %v7697_v19 }
 0x161   : > { %v7827_v25 = vpop.permute.xlu1 %1505  ;;  %v7829_v1 = vpop.permute.xlu0 %1525  ;;  %2133 = vperm.xlu0 %6596, %v7326_v49   ;;  %v717_v8 = vadd.f32 1.0, %v6663_v42  ;;  %6690 = vpow2.f32 %v5827_v50 }
 0x162   : > { %14619 = vst [vmem:[#allocation109_spill] sm:$0xff] %v7827_v25  ;;  %14620 = vst [vmem:[#allocation110_spill] sm:$0xff] %v7829_v1  ;;  %v6665_v4 = vpop.eup %6664  ;;  %6561 = vset.pattern.permute.xlu1 %v14621_v31  ;;  %v7839_v1 = vmul.f32 %v6659_v12, %v7693_v13  ;;  %v7853_v13 = vadd.f32 %v7683_v15, %v7611_v3 }
 0x163   : > { %v6667_v39 = vpop.eup %6666  ;;  %2390 = vperm.xlu1 %6561, %v7326_v49   ;;  %v6894_v49 = vld [vmem:[%s13957_s5] sm:$0xff]  ;;  %14625 = vst [vmem:[#allocation114_spill] sm:$0xff] %v7859_v35  ;;  %v7862_v52 = vmul.f32 %v6665_v4, %v7705_v0  ;;  %6692 = vrcp.f32 %v717_v8  ;;  %v5828_v4 = vmul.f32 -1.442695, %v7848_v38  ;;  %v7895_v8 = vld [vmem:[%s13957_s5 + $0x10] sm:$0xff] }
 0x164   : > { %14622 = vst [vmem:[#allocation111_spill] sm:$0xff] %v7839_v1  ;;  %v6669_v22 = vpop.eup %6668  ;;  %v7865_v5 = vmul.f32 %v6667_v39, %v7712_v23  ;;  %v7869_v3 = vadd.f32 %v7594_v43, %v7839_v1  ;;  %v1052_v23 = vadd.f32 %v7383_v60, %v7859_v35  ;;  %v1054_v50 = vadd.f32 %v7389_v62, %v7839_v1 }
 0x165   : > { %v7842_v46 = vpop.permute.xlu1 %1513  ;;  %v7844_v32 = vpop.permute.xlu0 %1533  ;;  %2013 = vperm.xlu0 %6596, %v6894_v49   ;;  %14626 = vst [vmem:[#allocation115_spill] sm:$0xff] %v7862_v52  ;;  %6694 = vpow2.f32 %v5825_v51  ;;  %v7903_v51 = vadd.f32 %v7596_v36, %v7862_v52 }
 0x166   : > { %14623 = vst [vmem:[#allocation112_spill] sm:$0xff] %v7842_v46  ;;  %14624 = vst [vmem:[#allocation113_spill] sm:$0xff] %v7844_v32  ;;  %v6671_v25 = vpop.eup %6670  ;;  %v719_v32 = vadd.f32 1.0, %v6669_v22  ;;  %v7873_v46 = vadd.f32 %v7477_v53, %v7839_v1  ;;  %v7890_v53 = vadd.f32 %v7621_v10, %v7683_v15  ;;  %v7907_v10 = vadd.f32 %v7683_v15, %v7625_v56 }
 0x167   : > { %v6673_v12 = vpop.eup %6672  ;;  %14627 = vst [vmem:[#allocation116_spill] sm:$0xff] %v7865_v5  ;;  %14628 = vst [vmem:[#allocation117_spill] sm:$0xff] %v7869_v3  ;;  %2270 = vperm.xlu1 %6561, %v6894_v49   ;;  %v7885_v22 = vmul.f32 %v6671_v25, %v7718_v14  ;;  %v5826_v49 = vmul.f32 -1.442695, %v7853_v13 }
 0x168   : > { %v6675_v42 = vpop.eup %6674  ;;  %v7899_v62 = vmul.f32 %v6673_v12, %v7727_v21  ;;  %14633 = vst [vmem:[#allocation122_spill] sm:$0xff] %v7903_v51  ;;  %6696 = vrcp.f32 %v719_v32  ;;  %v7916_v21 = vld [vmem:[%s13957_s5 + $0x8] sm:$0xff]  ;;  %v14640_v51 = vmov 7  }
 0x169   : > { %v7875_v19 = vpop.permute.xlu1 %1521  ;;  %v7877_v11 = vpop.permute.xlu0 %1541  ;;  %14631 = vst [vmem:[#allocation120_spill] sm:$0xff] %v7885_v22  ;;  %2021 = vperm.xlu0 %6596, %v7895_v8   ;;  %v722_v14 = vadd.f32 1.0, %v6675_v42  ;;  %6698 = vpow2.f32 %v5828_v4  ;;  %v7939_v4 = vld [vmem:[%s13957_s5 + $0x20] sm:$0xff] }
 0x16a   : > { %14629 = vst [vmem:[#allocation118_spill] sm:$0xff] %v7875_v19  ;;  %14630 = vst [vmem:[#allocation119_spill] sm:$0xff] %v7877_v11  ;;  %v6677_v0 = vpop.eup %6676  ;;  %v1053_v11 = vadd.f32 %v7381_v59, %v7865_v5  ;;  %v1245_v19 = vadd.f32 %v7479_v55, %v7862_v52  ;;  %v7929_v55 = vadd.f32 %v7473_v47, %v7865_v5  ;;  %6700 = vpow2.f32 %v5826_v49 }
 0x16b   : > { %v6679_v39 = vpop.eup %6678  ;;  %14632 = vst [vmem:[#allocation121_spill] sm:$0xff] %v7899_v62  ;;  %v720_v60 = vadd.f32 1.0, %v6677_v0  ;;  %2274 = vperm.xlu1 %6561, %v7916_v21   ;;  %v7925_v0 = vadd.f32 %v7387_v61, %v7862_v52  ;;  %6702 = vrcp.f32 %v722_v14  ;;  %v1246_v61 = vadd.f32 %v7483_v58, %v7899_v62 }
 0x16c   : > { %v6681_v43 = vpop.eup %6680  ;;  %v723_v32 = vadd.f32 1.0, %v6679_v39  ;;  %14636 = vst [vmem:[#allocation125_spill] sm:$0xff] %v7929_v55  ;;  %v1084_v39 = vmax.f32 %v7899_v62, %v1052_v23  ;;  %v1056_v47 = vadd.f32 %v7395_v2, %v7899_v62  ;;  %v14647_v2 = vld [vmem:[#allocation73_spill] sm:$0xff] }
 0x16d   : > { %v6683_v25 = vpop.eup %6682  ;;  %v7919_v12 = vpop.permute.xlu1 %1529  ;;  %v7932_v36 = vmul.f32 %v6681_v43, %v7740_v34  ;;  %2029 = vperm.xlu0 %6596, %v7939_v4   ;;  %v5829_v43 = vmul.f32 -1.442695, %v7907_v10  ;;  %6704 = vrcp.f32 %v720_v60  ;;  %v7970_v60 = vadd.f32 %v7602_v26, %v7899_v62 }
 0x16e   : > { %14634 = vst [vmem:[#allocation123_spill] sm:$0xff] %v7919_v12  ;;  %v7921_v56 = vpop.permute.xlu0 %1549  ;;  %v6685_v42 = vpop.eup %6684  ;;  %v1086_v12 = vmax.f32 %v7885_v22, %v1054_v50  ;;  %v7947_v50 = vmul.f32 %v6683_v25, %v7746_v9  ;;  %6706 = vrcp.f32 %v723_v32  ;;  %v7961_v9 = vadd.f32 %v7606_v7, %v7885_v22  ;;  %v7980_v32 = vld [vmem:[%s13957_s5 + $0x38] sm:$0xff] }
 0x16f   : > { %14635 = vst [vmem:[#allocation124_spill] sm:$0xff] %v7921_v56  ;;  %v6687_v59 = vpop.eup %6686  ;;  %14637 = vst [vmem:[#allocation126_spill] sm:$0xff] %v7932_v36  ;;  %v5831_v56 = vmul.f32 -1.442695, %v7890_v53  ;;  %v7950_v49 = vmul.f32 %v6685_v42, %v7750_v24  ;;  %6563 = vset.pattern.permute.xlu1 %v14640_v51  ;;  %v7965_v24 = vadd.f32 %v7629_v6, %v7683_v15  ;;  %v14645_v42 = vld [vmem:[#allocation77_spill] sm:$0xff] }
 0x170   : > { %v6689_v34 = vpop.eup %6688  ;;  %14638 = vst [vmem:[#allocation127_spill] sm:$0xff] %v7947_v50  ;;  %v721_v3 = vadd.f32 1.0, %v6687_v59  ;;  %14643 = vst [vmem:[#allocation131_spill] sm:$0xff] %v7961_v9  ;;  %2639 = vperm.xlu1 %6563, %v7311_v45   ;;  %v1085_v25 = vmax.f32 %v7932_v36, %v1053_v11  ;;  %v7975_v59 = vadd.f32 %v7683_v15, %v14645_v42  ;;  %v14670_v9 = vld [vmem:[#allocation78_spill] sm:$0xff] }
 0x171   : > { %14639 = vst [vmem:[#allocation128_spill] sm:$0xff] %v7950_v49  ;;  %v7955_v14 = vpop.permute.xlu1 %1537  ;;  %v6691_v58 = vpop.eup %6690  ;;  %14644 = vst [vmem:[#allocation132_spill] sm:$0xff] %v7970_v60  ;;  %6708 = vpow2.f32 %v5831_v56  ;;  %2041 = vperm.xlu0 %6596, %v7980_v32   ;;  %v7984_v45 = vmax.f32 %v1084_v39, %v7873_v46  ;;  %v7988_v56 = vadd.f32 %v14647_v2, %v7932_v36 }
 0x172   : > { %14641 = vst [vmem:[#allocation129_spill] sm:$0xff] %v7955_v14  ;;  %v7957_v23 = vpop.permute.xlu0 %1557  ;;  %v6693_v6 = vpop.eup %6692  ;;  %v7990_v11 = vmax.f32 %v1086_v12, %v1246_v61  ;;  %6710 = vpow2.f32 %v5829_v43  ;;  %v7993_v7 = vmul.f32 %v6689_v34, %v7762_v29  ;;  %v726_v26 = vadd.f32 1.0, %v6691_v58  ;;  %v14653_v61 = vld [vmem:[#allocation75_spill] sm:$0xff]  ;;  %v14655_v29 = vld [vmem:[#allocation45_spill] sm:$0xff] }
 0x173   : > { %14642 = vst [vmem:[#allocation130_spill] sm:$0xff] %v7957_v23  ;;  %14646 = vst [vmem:[#allocation77_spill] sm:$0xff] %v7984_v45  ;;  %v6695_v42 = vpop.eup %6694  ;;  %v1088_v23 = vmax.f32 %v7950_v49, %v1056_v47  ;;  %v7998_v14 = vadd.f32 %v7683_v15, %v7646_v16  ;;  %6712 = vrcp.f32 %v721_v3  ;;  %v8006_v12 = vadd.f32 %v14653_v61, %v7947_v50  ;;  %v14656_v3 = vld [vmem:[#allocation76_spill] sm:$0xff] }
 0x174   : > { %14648 = vst [vmem:[#allocation133_spill] sm:$0xff] %v7988_v56  ;;  %14649 = vst [vmem:[#allocation134_spill] sm:$0xff] %v7990_v11  ;;  %v5832_v43 = vmul.f32 -1.442695, %v7965_v24  ;;  %v8011_v58 = vadd.f32 %v7641_v54, %v7683_v15  ;;  %2643 = vperm.xlu1 %6563, %v7306_v44   ;;  %v6697_v47 = vpop.eup %6696  ;;  %v8014_v16 = vmax.f32 %v1085_v25, %v1245_v19  ;;  %v5830_v61 = vmul.f32 -1.442695, %v7975_v59 }
 0x175   : > { %14650 = vst [vmem:[#allocation135_spill] sm:$0xff] %v7993_v7  ;;  %v8000_v46 = vpop.permute.xlu1 %1545  ;;  %14654 = vst [vmem:[#allocation138_spill] sm:$0xff] %v8006_v12  ;;  %v1248_v34 = vadd.f32 %v14655_v29, %v7885_v22  ;;  %v8020_v2 = vadd.f32 %v14656_v3, %v7993_v7  ;;  %v6699_v44 = vpop.eup %6698  ;;  %v8030_v54 = vmul.f32 %v6693_v6, %v7770_v27  ;;  %v724_v19 = vadd.f32 1.0, %v6695_v42  ;;  %v14660_v25 = vld [vmem:[#allocation74_spill] sm:$0xff]  ;;  %v14663_v56 = vld [vmem:[#allocation44_spill] sm:$0xff] }
 0x176   : > { %14651 = vst [vmem:[#allocation136_spill] sm:$0xff] %v8000_v46  ;;  %v8002_v39 = vpop.permute.xlu0 %1565  ;;  %v8034_v29 = vadd.f32 %v14660_v25, %v7950_v49  ;;  %v1087_v3 = vmax.f32 %v7947_v50, %v7925_v0  ;;  %v6701_v46 = vpop.eup %6700  ;;  %6714 = vrcp.f32 %v726_v26  ;;  %v1247_v55 = vadd.f32 %v14663_v56, %v7932_v36  ;;  %v14667_v56 = vld [vmem:[#allocation16_spill] sm:$0xff] }
 0x177   : > { %14652 = vst [vmem:[#allocation137_spill] sm:$0xff] %v8002_v39  ;;  %14657 = vst [vmem:[#allocation139_spill] sm:$0xff] %v8020_v2  ;;  %v8026_v39 = vld [vmem:[%s13957_s5 + $0x40] sm:$0xff]  ;;  %v8038_v60 = vmax.f32 %v1088_v23, %v1248_v34  ;;  %v6703_v6 = vpop.eup %6702  ;;  %6716 = vpow2.f32 %v5832_v43  ;;  %v5835_v0 = vmul.f32 -1.442695, %v8011_v58  ;;  %v8052_v26 = vadd.f32 %v7683_v15, %v7652_v57  ;;  %v8063_v43 = vld [vmem:[%s13957_s5 + $0x28] sm:$0xff] }
 0x178   : > { %14658 = vst [vmem:[#allocation140_spill] sm:$0xff] %v8026_v39  ;;  %2045 = vperm.xlu0 %6596, %v8026_v39   ;;  %14659 = vst [vmem:[#allocation141_spill] sm:$0xff] %v8030_v54  ;;  %v5833_v39 = vmul.f32 -1.442695, %v7998_v14  ;;  %6564 = vset.pattern.permute.xlu1 %v14616_v20  ;;  %v6705_v23 = vpop.eup %6704  ;;  %v8056_v34 = vmul.f32 %v6697_v47, %v7778_v48  ;;  %v727_v25 = vadd.f32 1.0, %v6699_v44  ;;  %6718 = vpow2.f32 %v5830_v61  ;;  %v8069_v57 = vld [vmem:[%s13957_s5 + $0x50] sm:$0xff] }
 0x179   : > { %14661 = vst [vmem:[#allocation142_spill] sm:$0xff] %v8034_v29  ;;  %14662 = vst [vmem:[#allocation143_spill] sm:$0xff] %v8038_v60  ;;  %v8043_v1 = vpop.permute.xlu1 %1553  ;;  %2033 = vperm.xlu1 %6564, %v8063_v43   ;;  %v6707_v48 = vpop.eup %6706  ;;  %6720 = vrcp.f32 %v724_v19  ;;  %v725_v61 = vadd.f32 1.0, %v6701_v46  ;;  %v8082_v45 = vadd.f32 %v14670_v9, %v8030_v54  ;;  %v8089_v47 = vmul.f32 %v6705_v23, %v7795_v33  ;;  %v14674_v44 = vld [vmem:[#allocation82_spill] sm:$0xff]  ;;  %v8108_v33 = vld [vmem:[%s13957_s5 + $0x60] sm:$0xff] }
 0x17a   : > { %14664 = vst [vmem:[#allocation144_spill] sm:$0xff] %v8043_v1  ;;  %v8045_v27 = vpop.permute.xlu0 %1573  ;;  %14666 = vst [vmem:[#allocation146_spill] sm:$0xff] %v8056_v34  ;;  %v8078_v1 = vmax.f32 %v1087_v3, %v1247_v55  ;;  %6722 = vpow2.f32 %v5833_v39  ;;  %v8093_v29 = vadd.f32 %v14674_v44, %v7683_v15  ;;  %v5834_v55 = vmul.f32 -1.442695, %v8052_v26  ;;  %v14677_v23 = vld [vmem:[#allocation13_spill] sm:$0xff]  ;;  %v14678_v9 = vld [vmem:[#allocation18_spill] sm:$0xff] }
 0x17b   : > { %14665 = vst [vmem:[#allocation145_spill] sm:$0xff] %v8045_v27  ;;  %v1058_v27 = vadd.f32 %v14667_v56, %v7885_v22  ;;  %14668 = vst [vmem:[#allocation147_spill] sm:$0xff] %v8069_v57  ;;  %v6709_v42 = vpop.eup %6708  ;;  %6724 = vpow2.f32 %v5835_v0  ;;  %v8097_v3 = vmul.f32 %v6703_v6, %v7790_v28  ;;  %v8102_v56 = vadd.f32 %v7661_v63, %v7683_v15 }
 0x17c   : > { %2053 = vperm.xlu0 %6596, %v8069_v57   ;;  %14669 = vst [vmem:[#allocation148_spill] sm:$0xff] %v8078_v1  ;;  %14671 = vst [vmem:[#allocation149_spill] sm:$0xff] %v8082_v45  ;;  %v6711_v19 = vpop.eup %6710  ;;  %6726 = vrcp.f32 %v727_v25  ;;  %v730_v28 = vadd.f32 1.0, %v6709_v42  ;;  %v14676_v25 = vld [vmem:[#allocation47_spill] sm:$0xff]  ;;  %v1057_v44 = vadd.f32 %v14677_v23, %v7932_v36 }
 0x17d   : > { %v8084_v57 = vpop.permute.xlu1 %1561  ;;  %v1090_v39 = vmax.f32 %v7993_v7, %v1058_v27  ;;  %6565 = vset.pattern.permute.xlu1 %v14621_v31  ;;  %14675 = vst [vmem:[#allocation82_spill] sm:$0xff] %v8108_v33  ;;  %v6713_v0 = vpop.eup %6712  ;;  %6728 = vrcp.f32 %v725_v61  ;;  %v1250_v6 = vadd.f32 %v14676_v25, %v7950_v49  ;;  %v8115_v27 = vadd.f32 %v7683_v15, %v7666_v41  ;;  %v14682_v41 = vld [vmem:[#allocation79_spill] sm:$0xff] }
 0x17e   : > { %14672 = vst [vmem:[#allocation150_spill] sm:$0xff] %v8084_v57  ;;  %v8086_v46 = vpop.permute.xlu0 %1581  ;;  %2278 = vperm.xlu1 %6565, %v7895_v8   ;;  %v728_v63 = vadd.f32 1.0, %v6711_v19  ;;  %v14679_v57 = vld [vmem:[#allocation87_spill] sm:$0xff]  ;;  %v8132_v2 = vadd.f32 %v14682_v41, %v8089_v47  ;;  %v5836_v8 = vmul.f32 -1.442695, %v8093_v29  ;;  %6730 = vpow2.f32 %v5834_v55  ;;  %v14684_v19 = vld [vmem:[#allocation88_spill] sm:$0xff] }
 0x17f   : > { %14673 = vst [vmem:[#allocation151_spill] sm:$0xff] %v8086_v46  ;;  %v1060_v46 = vadd.f32 %v14678_v9, %v7950_v49  ;;  %v8124_v61 = vadd.f32 %v14679_v57, %v7683_v15  ;;  %v8137_v23 = vadd.f32 %v7683_v15, %v14684_v19  ;;  %v5839_v41 = vmul.f32 -1.442695, %v8102_v56  ;;  %v6903_v55 = vld [vmem:[%s13957_s5 + $0xb0] sm:$0xff] }
 0x180   : > { %2061 = vperm.xlu0 %6596, %v8108_v33   ;;  %14683 = vst [vmem:[#allocation153_spill] sm:$0xff] %v8132_v2  ;;  %v8139_v9 = vpop.eup %6714  ;;  %v8151_v15 = vmul.f32 %v6707_v48, %v7801_v30  ;;  %6732 = vrcp.f32 %v730_v28  ;;  %v8153_v19 = vmax.f32 %v1090_v39, %v1250_v6  ;;  %v5837_v57 = vmul.f32 -1.442695, %v8115_v27  ;;  %v6904_v30 = vld [vmem:[%s13957_s5 + $0xf0] sm:$0xff] }
 0x181   : > { %v8126_v42 = vpop.permute.xlu1 %1569  ;;  %v6717_v11 = vpop.eup %6716  ;;  %6734 = vrcp.f32 %v728_v63  ;;  %v1092_v45 = vmax.f32 %v8089_v47, %v1060_v46  ;;  %v5838_v46 = vmul.f32 -1.442695, %v8137_v23 }
 0x182   : > { %14680 = vst [vmem:[#allocation87_spill] sm:$0xff] %v8126_v42  ;;  %v8128_v25 = vpop.permute.xlu0 %1589  ;;  %v1089_v42 = vmax.f32 %v8030_v54, %v1057_v44  ;;  %14686 = vst [vmem:[#allocation88_spill] sm:$0xff] %v8153_v19  ;;  %6566 = vset.pattern.permute.xlu1 %v14640_v51  ;;  %v6719_v44 = vpop.eup %6718  ;;  %6736 = vpow2.f32 %v5836_v8  ;;  %v731_v1 = vadd.f32 1.0, %v6717_v11  ;;  %v14694_v8 = vld [vmem:[#allocation81_spill] sm:$0xff]  ;;  %v14698_v19 = vld [vmem:[#allocation20_spill] sm:$0xff] }
 0x183   : > { %14681 = vst [vmem:[#allocation152_spill] sm:$0xff] %v8128_v25  ;;  %v14685_v25 = vld [vmem:[#allocation46_spill] sm:$0xff]  ;;  %2647 = vperm.xlu1 %6566, %v6904_v30   ;;  %v6721_v28 = vpop.eup %6720  ;;  %v14692_v30 = vld [vmem:[#allocation49_spill] sm:$0xff]  ;;  %6738 = vpow2.f32 %v5839_v41  ;;  %v8188_v2 = vadd.f32 %v14694_v8, %v8097_v3  ;;  %v1062_v22 = vadd.f32 %v14698_v19, %v7993_v7 }
 0x184   : > { %v1249_v60 = vadd.f32 %v14685_v25, %v7947_v50  ;;  %2101 = vperm.xlu0 %6596, %v6903_v55   ;;  %v8158_v25 = vmul.f32 %v6713_v0, %v7812_v37  ;;  %v5840_v55 = vmul.f32 -1.442695, %v8124_v61  ;;  %v14689_v37 = vld [vmem:[#allocation80_spill] sm:$0xff]  ;;  %v6723_v63 = vpop.eup %6722  ;;  %6740 = vpow2.f32 %v5837_v57 }
 0x185   : > { %v8165_v48 = vpop.permute.xlu1 %1577  ;;  %v8173_v0 = vadd.f32 %v14689_v37, %v8056_v34  ;;  %v6725_v6 = vpop.eup %6724  ;;  %v729_v37 = vadd.f32 1.0, %v6719_v44  ;;  %14695 = vst [vmem:[#allocation159_spill] sm:$0xff] %v8188_v2  ;;  %v8193_v41 = vmul.f32 %v6721_v28, %v7833_v18  ;;  %v6906_v44 = vld [vmem:[%s13957_s5 + $0xf8] sm:$0xff]  ;;  %v14701_v18 = vld [vmem:[#allocation17_spill] sm:$0xff] }
 0x186   : > { %14687 = vst [vmem:[#allocation154_spill] sm:$0xff] %v8165_v48  ;;  %v8167_v39 = vpop.permute.xlu0 %1597  ;;  %v8176_v49 = vmax.f32 %v1089_v42, %v1249_v60  ;;  %v1252_v48 = vadd.f32 %v14692_v30, %v7993_v7  ;;  %v14696_v60 = vld [vmem:[#allocation15_spill] sm:$0xff]  ;;  %v6727_v42 = vpop.eup %6726  ;;  %6742 = vpow2.f32 %v5840_v55  ;;  %v1061_v28 = vadd.f32 %v14701_v18, %v8030_v54  ;;  %v14703_v7 = vld [vmem:[#allocation48_spill] sm:$0xff] }
 0x187   : > { %14688 = vst [vmem:[#allocation155_spill] sm:$0xff] %v8167_v39  ;;  %14690 = vst [vmem:[#allocation156_spill] sm:$0xff] %v8173_v0  ;;  %v8183_v39 = vld [vmem:[%s13957_s5 + $0xc8] sm:$0xff]  ;;  %v1059_v11 = vadd.f32 %v14696_v60, %v7947_v50  ;;  %2651 = vperm.xlu1 %6566, %v6906_v44   ;;  %v6729_v57 = vpop.eup %6728  ;;  %v732_v60 = vadd.f32 1.0, %v6723_v63  ;;  %6744 = vpow2.f32 %v5838_v46  ;;  %v734_v55 = vadd.f32 1.0, %v6725_v6  ;;  %v14705_v46 = vld [vmem:[#allocation83_spill] sm:$0xff] }
 0x188   : > { %14691 = vst [vmem:[#allocation157_spill] sm:$0xff] %v8176_v49  ;;  %14693 = vst [vmem:[#allocation158_spill] sm:$0xff] %v8183_v39  ;;  %2113 = vperm.xlu0 %6596, %v8183_v39   ;;  %v8195_v30 = vmax.f32 %v1092_v45, %v1252_v48  ;;  %v14702_v45 = vld [vmem:[#allocation22_spill] sm:$0xff]  ;;  %6746 = vrcp.f32 %v731_v1  ;;  %v1251_v12 = vadd.f32 %v14703_v7, %v8030_v54  ;;  %v6907_v1 = vld [vmem:[%s13957_s5 + $0xd8] sm:$0xff] }
 0x189   : > { %v8202_v8 = vpop.permute.xlu1 %1585  ;;  %v1064_v48 = vadd.f32 %v14702_v45, %v8089_v47  ;;  %v1091_v19 = vmax.f32 %v8056_v34, %v1059_v11  ;;  %6748 = vrcp.f32 %v729_v37  ;;  %v1093_v18 = vmax.f32 %v8158_v25, %v1061_v28  ;;  %v14707_v28 = vld [vmem:[#allocation51_spill] sm:$0xff] }
 0x18a   : > { %14697 = vst [vmem:[#allocation160_spill] sm:$0xff] %v8195_v30  ;;  %14699 = vst [vmem:[#allocation161_spill] sm:$0xff] %v8202_v8  ;;  %v8204_v39 = vpop.permute.xlu0 %1605  ;;  %v6731_v8 = vpop.eup %6730  ;;  %v8224_v6 = vmul.f32 %v8139_v9, %v7823_v40  ;;  %v8228_v37 = vadd.f32 %v14705_v46, %v8158_v25  ;;  %v1094_v11 = vmax.f32 %v8097_v3, %v1062_v22  ;;  %6750 = vrcp.f32 %v732_v60  ;;  %v14714_v60 = vld [vmem:[#allocation85_spill] sm:$0xff] }
 0x18b   : > { %14700 = vst [vmem:[#allocation162_spill] sm:$0xff] %v8204_v39  ;;  %v14704_v39 = vld [vmem:[#allocation50_spill] sm:$0xff]  ;;  %v1254_v63 = vadd.f32 %v14707_v28, %v8089_v47  ;;  %2531 = vperm.xlu1 %6566, %v7916_v21   ;;  %v8239_v0 = vmul.f32 %v6727_v42, %v7848_v38  ;;  %v1096_v9 = vmax.f32 %v8193_v41, %v1064_v48  ;;  %6752 = vrcp.f32 %v734_v55  ;;  %v14716_v48 = vld [vmem:[#allocation53_spill] sm:$0xff] }
 0x18c   : > { %6604 = vset.pattern.permute.xlu0 %v14621_v31  ;;  %v1253_v45 = vadd.f32 %v14704_v39, %v8056_v34  ;;  %14706 = vst [vmem:[#allocation163_spill] sm:$0xff] %v8228_v37  ;;  %v8245_v46 = vmul.f32 %v6729_v57, %v7853_v13  ;;  %v733_v21 = vadd.f32 1.0, %v6731_v8  ;;  %v8247_v28 = vmax.f32 %v1091_v19, %v1251_v12  ;;  %v14718_v57 = vld [vmem:[#allocation19_spill] sm:$0xff]  ;;  %v14724_v12 = vld [vmem:[#allocation52_spill] sm:$0xff] }
 0x18d   : > { %2378 = vperm.xlu0 %6604, %v6907_v1   ;;  %v8234_v39 = vpop.permute.xlu1 %1593  ;;  %v6733_v1 = vpop.eup %6732  ;;  %v8257_v42 = vadd.f32 %v14714_v60, %v8151_v15  ;;  %v1256_v40 = vadd.f32 %v14716_v48, %v8097_v3  ;;  %v8266_v19 = vmax.f32 %v1094_v11, %v1254_v63  ;;  %v1255_v63 = vadd.f32 %v14724_v12, %v8158_v25  ;;  %v14725_v11 = vld [vmem:[#allocation24_spill] sm:$0xff]  ;;  %v8288_v48 = vld [vmem:[%s13957_s5 + $0x30] sm:$0xff] }
 0x18e   : > { %14708 = vst [vmem:[#allocation164_spill] sm:$0xff] %v8234_v39  ;;  %v8236_v7 = vpop.permute.xlu0 %1613  ;;  %v6735_v22 = vpop.eup %6734  ;;  %14710 = vst [vmem:[#allocation166_spill] sm:$0xff] %v8247_v28  ;;  %v8253_v38 = vmax.f32 %v1093_v18, %v1253_v45  ;;  %v8262_v8 = vmul.f32 %v6733_v1, %v7890_v53  ;;  %v1063_v18 = vadd.f32 %v14718_v57, %v8056_v34  ;;  %v14722_v53 = vld [vmem:[#allocation86_spill] sm:$0xff]  ;;  %6754 = vrcp.f32 %v733_v21 }
 0x18f   : > { %14709 = vst [vmem:[#allocation165_spill] sm:$0xff] %v8236_v7  ;;  %v6737_v39 = vpop.eup %6736  ;;  %v14711_v7 = vld [vmem:[#allocation84_spill] sm:$0xff]  ;;  %14715 = vst [vmem:[#allocation169_spill] sm:$0xff] %v8257_v42  ;;  %6567 = vset.pattern.permute.xlu1 %v14616_v20  ;;  %v8279_v1 = vadd.f32 %v14722_v53, %v8224_v6  ;;  %v1066_v60 = vadd.f32 %v14725_v11, %v8097_v3  ;;  %v14726_v53 = vld [vmem:[#allocation21_spill] sm:$0xff]  ;;  %v8295_v12 = vmul.f32 %v6735_v22, %v7907_v10 }
 0x190   : > { %v8251_v49 = vadd.f32 %v14711_v7, %v8193_v41  ;;  %14713 = vst [vmem:[#allocation168_spill] sm:$0xff] %v8253_v38  ;;  %v6739_v13 = vpop.eup %6738  ;;  %14717 = vst [vmem:[#allocation170_spill] sm:$0xff] %v8266_v19  ;;  %2037 = vperm.xlu1 %6567, %v8288_v48   ;;  %v14731_v38 = vld [vmem:[#allocation55_spill] sm:$0xff] }
 0x191   : > { %2394 = vperm.xlu0 %6604, %v6906_v44   ;;  %v8271_v45 = vpop.permute.xlu1 %1601  ;;  %v6741_v7 = vpop.eup %6740  ;;  %v8275_v44 = vmax.f32 %v1096_v9, %v1256_v40  ;;  %14723 = vst [vmem:[#allocation174_spill] sm:$0xff] %v8279_v1  ;;  %v735_v40 = vadd.f32 1.0, %v6737_v39  ;;  %v1095_v9 = vmax.f32 %v8151_v15, %v1063_v18  ;;  %v738_v2 = vadd.f32 1.0, %v6739_v13  ;;  %v8304_v39 = vld [vmem:[%s13957_s5 + $0x18] sm:$0xff]  ;;  %v14729_v13 = vld [vmem:[#allocation54_spill] sm:$0xff] }
 0x192   : > { %14712 = vst [vmem:[#allocation167_spill] sm:$0xff] %v8251_v49  ;;  %14719 = vst [vmem:[#allocation171_spill] sm:$0xff] %v8271_v45  ;;  %v8273_v55 = vpop.permute.xlu0 %1621  ;;  %v6743_v57 = vpop.eup %6742  ;;  %v736_v18 = vadd.f32 1.0, %v6741_v7  ;;  %v1257_v11 = vadd.f32 %v14729_v13, %v8151_v15  ;;  %v1098_v42 = vmax.f32 %v8224_v6, %v1066_v60  ;;  %v1258_v37 = vadd.f32 %v14731_v38, %v8193_v41  ;;  %v14732_v7 = vld [vmem:[#allocation26_spill] sm:$0xff] }
 0x193   : > { %14720 = vst [vmem:[#allocation172_spill] sm:$0xff] %v8273_v55  ;;  %14721 = vst [vmem:[#allocation173_spill] sm:$0xff] %v8275_v44  ;;  %v1065_v55 = vadd.f32 %v14726_v53, %v8158_v25  ;;  %v6745_v45 = vpop.eup %6744  ;;  %v14727_v53 = vld [vmem:[#allocation89_spill] sm:$0xff]  ;;  %v739_v19 = vadd.f32 1.0, %v6743_v57  ;;  %v1068_v28 = vadd.f32 %v14732_v7, %v8193_v41  ;;  %6756 = vrcp.f32 %v735_v40  ;;  %v14735_v7 = vld [vmem:[#allocation90_spill] sm:$0xff] }
 0x194   : > { %v6747_v21 = vpop.eup %6746  ;;  %v8309_v10 = vadd.f32 %v14727_v53, %v8245_v46  ;;  %6568 = vset.pattern.permute.xlu1 %v14621_v31  ;;  %v737_v13 = vadd.f32 1.0, %v6745_v45  ;;  %6758 = vrcp.f32 %v738_v2  ;;  %v8334_v38 = vadd.f32 %v14735_v7, %v8295_v12  ;;  %v14753_v44 = vld [vmem:[#allocation58_spill] sm:$0xff] }
 0x195   : > { %2282 = vperm.xlu0 %6604, %v8304_v39   ;;  %v1097_v22 = vmax.f32 %v8245_v46, %v1065_v55  ;;  %v8314_v49 = vpop.permute.xlu1 %1609  ;;  %v6749_v30 = vpop.eup %6748  ;;  %2286 = vperm.xlu1 %6568, %v7939_v4   ;;  %v8330_v57 = vmul.f32 %v6747_v21, %v7965_v24  ;;  %6760 = vrcp.f32 %v736_v18  ;;  %v8350_v21 = vmax.f32 %v1098_v42, %v1258_v37  ;;  %v14745_v18 = vld [vmem:[#allocation30_spill] sm:$0xff] }
 0x196   : > { %14728 = vst [vmem:[#allocation175_spill] sm:$0xff] %v8309_v10  ;;  %14730 = vst [vmem:[#allocation176_spill] sm:$0xff] %v8314_v49  ;;  %v8322_v53 = vpop.permute.xlu0 %2635  ;;  %v8326_v49 = vmax.f32 %v1095_v9, %v1255_v63  ;;  %v6751_v60 = vpop.eup %6750  ;;  %v8342_v63 = vmul.f32 %v6749_v30, %v7975_v59  ;;  %6762 = vrcp.f32 %v739_v19  ;;  %v1100_v55 = vmax.f32 %v8295_v12, %v1068_v28  ;;  %v14744_v30 = vld [vmem:[#allocation28_spill] sm:$0xff]  ;;  %v14746_v28 = vld [vmem:[#allocation57_spill] sm:$0xff] }
 0x197   : > { %14733 = vst [vmem:[#allocation177_spill] sm:$0xff] %v8322_v53  ;;  %14736 = vst [vmem:[#allocation179_spill] sm:$0xff] %v8334_v38  ;;  %v14737_v53 = vld [vmem:[#allocation91_spill] sm:$0xff]  ;;  %v6753_v45 = vpop.eup %6752  ;;  %v8346_v9 = vmax.f32 %v1097_v22, %v1257_v11  ;;  %v8358_v59 = vmul.f32 %v6751_v60, %v7998_v14  ;;  %6764 = vrcp.f32 %v737_v13  ;;  %v1070_v11 = vadd.f32 %v14744_v30, %v8224_v6  ;;  %v14747_v19 = vld [vmem:[#allocation92_spill] sm:$0xff] }
 0x198   : > { %14734 = vst [vmem:[#allocation178_spill] sm:$0xff] %v8326_v49  ;;  %v8338_v40 = vadd.f32 %v14737_v53, %v8239_v0  ;;  %14741 = vst [vmem:[#allocation183_spill] sm:$0xff] %v8350_v21  ;;  %v14742_v53 = vld [vmem:[#allocation23_spill] sm:$0xff]  ;;  %v1072_v22 = vadd.f32 %v14745_v18, %v8295_v12  ;;  %v8366_v37 = vmul.f32 %v6753_v45, %v8011_v58  ;;  %v14749_v14 = vld [vmem:[#allocation25_spill] sm:$0xff] }
 0x199   : > { %2298 = vperm.xlu0 %6604, %v7980_v32   ;;  %14739 = vst [vmem:[#allocation181_spill] sm:$0xff] %v8346_v9  ;;  %v8348_v2 = vpop.permute.xlu1 %1617  ;;  %v1067_v7 = vadd.f32 %v14742_v53, %v8151_v15  ;;  %2290 = vperm.xlu1 %6568, %v8063_v43   ;;  %v1260_v42 = vadd.f32 %v14746_v28, %v8224_v6  ;;  %v8379_v60 = vld [vmem:[%s13957_s5 + $0x58] sm:$0xff]  ;;  %v8385_v58 = vld [vmem:[%s13955_s3] sm:$0xff]   ;;  %v6631_v45 = vld [vmem:[%s13955_s3 + $0x10] sm:$0xff]  }
 0x19a   : > { %14738 = vst [vmem:[#allocation180_spill] sm:$0xff] %v8338_v40  ;;  %14740 = vst [vmem:[#allocation182_spill] sm:$0xff] %v8348_v2  ;;  %v8355_v1 = vpop.permute.xlu0 %2527  ;;  %v8372_v24 = vadd.f32 %v14747_v19, %v8262_v8  ;;  %v1069_v13 = vadd.f32 %v14749_v14, %v8245_v46  ;;  %v6755_v19 = vpop.eup %6754  ;;  %v14751_v14 = vld [vmem:[#allocation56_spill] sm:$0xff]  ;;  %6400 = vmatprep.subr.bf16.mxu1 %v8385_v58  ;;  %6256 = vmatprep.subr.bf16.mxu0 %v6631_v45 }
 0x19b   : > { %14743 = vst [vmem:[#allocation184_spill] sm:$0xff] %v8355_v1  ;;  %14750 = vst [vmem:[#allocation186_spill] sm:$0xff] %v8379_v60  ;;  %v1099_v28 = vmax.f32 %v8239_v0, %v1067_v7  ;;  %v1259_v53 = vadd.f32 %v14751_v14, %v8245_v46  ;;  %v8397_v1 = vmax.f32 %v1100_v55, %v1260_v42  ;;  %v14756_v7 = vld [vmem:[#allocation59_spill] sm:$0xff]  ;;  %6402 = vmatpush3.bf16.msra.mxu1 %v8385_v58 }
 0x19c   : > { %14748 = vst [vmem:[#allocation185_spill] sm:$0xff] %v8372_v24  ;;  %v1101_v2 = vmax.f32 %v8342_v63, %v1069_v13  ;;  %v1102_v18 = vmax.f32 %v8262_v8, %v1070_v11  ;;  %v1262_v30 = vadd.f32 %v14756_v7, %v8295_v12  ;;  %v1104_v55 = vmax.f32 %v8358_v59, %v1072_v22  ;;  %v14757_v13 = vld [vmem:[#allocation93_spill] sm:$0xff]  ;;  %v14759_v14 = vld [vmem:[#allocation27_spill] sm:$0xff]  ;;  %v14761_v7 = vld [vmem:[#allocation94_spill] sm:$0xff] }
 0x19d   : > { %2314 = vperm.xlu0 %6604, %v8379_v60   ;;  %14752 = vst [vmem:[#allocation187_spill] sm:$0xff] %v8397_v1  ;;  %v1261_v60 = vadd.f32 %v14753_v44, %v8239_v0  ;;  %6569 = vset.pattern.permute.xlu1 %v14640_v51  ;;  %v8414_v42 = vmul.f32 %v6755_v19, %v8052_v26  ;;  %v6757_v11 = vpop.eup %6756  ;;  %v14763_v26 = vld [vmem:[#allocation61_spill] sm:$0xff]  ;;  %v14793_v1 = vld [vmem:[#allocation7_spill] sm:$0xff] }
 0x19e   : > { %v8402_v10 = vpop.permute.xlu1 %1756  ;;  %v8404_v49 = vpop.permute.xlu0 %2535  ;;  %v8418_v44 = vadd.f32 %v14757_v13, %v8342_v63  ;;  %2539 = vperm.xlu1 %6569, %v8304_v39   ;;  %v8424_v22 = vmax.f32 %v1099_v28, %v1259_v53  ;;  %v1264_v19 = vadd.f32 %v14763_v26, %v8262_v8  ;;  %v14764_v13 = vld [vmem:[#allocation32_spill] sm:$0xff]  ;;  %6257 = vmatpush3.bf16.msra.mxu0 %v6631_v45  ;;  %v14777_v45 = vld [vmem:[#allocation29_spill] sm:$0xff] }
 0x19f   : > { %14754 = vst [vmem:[#allocation188_spill] sm:$0xff] %v8402_v10  ;;  %14755 = vst [vmem:[#allocation189_spill] sm:$0xff] %v8404_v49  ;;  %v1071_v49 = vadd.f32 %v14759_v14, %v8239_v0  ;;  %v8428_v10 = vadd.f32 %v14761_v7, %v8358_v59  ;;  %v1074_v38 = vadd.f32 %v14764_v13, %v8262_v8  ;;  %v6759_v21 = vpop.eup %6758  ;;  %v14767_v28 = vld [vmem:[#allocation60_spill] sm:$0xff]  ;;  %v14786_v24 = vld [vmem:[#allocation65_spill] sm:$0xff] }
 0x1a0   : > { %14758 = vst [vmem:[#allocation190_spill] sm:$0xff] %v8418_v44  ;;  %14760 = vst [vmem:[#allocation191_spill] sm:$0xff] %v8424_v22  ;;  %v8434_v14 = vmax.f32 %v1101_v2, %v1261_v60  ;;  %v8438_v39 = vadd.f32 %v7721_v17, %v8330_v57  ;;  %v1263_v7 = vadd.f32 %v14767_v28, %v8342_v63  ;;  %v6761_v26 = vpop.eup %6760  ;;  %v14772_v60 = vld [vmem:[#allocation96_spill] sm:$0xff]  ;;  %v1720_v44 = vlaneseq  ;;  %v14809_v22 = vld [vmem:[#allocation111_spill] sm:$0xff] }
 0x1a1   : > { %2318 = vperm.xlu0 %6604, %v8108_v33   ;;  %14762 = vst [vmem:[#allocation192_spill] sm:$0xff] %v8428_v10  ;;  %v1103_v53 = vmax.f32 %v8330_v57, %v1071_v49  ;;  %v8449_v13 = vmax.f32 %v1102_v18, %v1262_v30  ;;  %v8451_v2 = vmax.f32 %v1104_v55, %v1264_v19  ;;  %v6763_v49 = vpop.eup %6762  ;;  %v8470_v30 = vld [vmem:[%s13957_s5 + $0x68] sm:$0xff] }
 0x1a2   : > { %14765 = vst [vmem:[#allocation193_spill] sm:$0xff] %v8434_v14  ;;  %14766 = vst [vmem:[#allocation194_spill] sm:$0xff] %v8438_v39  ;;  %v8443_v33 = vpop.permute.xlu1 %1764  ;;  %v8445_v40 = vpop.permute.xlu0 %2559  ;;  %v8455_v17 = vadd.f32 %v14772_v60, %v8366_v37  ;;  %v8458_v9 = vmul.f32 %v6757_v11, %v8093_v29  ;;  %6570 = vset.pattern.permute.xlu1 %v14621_v31  ;;  %v1106_v55 = vmax.f32 %v8366_v37, %v1074_v38  ;;  %v14776_v11 = vld [vmem:[#allocation63_spill] sm:$0xff]  ;;  %v14797_v39 = vld [vmem:[#allocation5_spill] sm:$0xff] }
 0x1a3   : > { %14768 = vst [vmem:[#allocation195_spill] sm:$0xff] %v8443_v33  ;;  %14769 = vst [vmem:[#allocation196_spill] sm:$0xff] %v8445_v40  ;;  %v14774_v40 = vld [vmem:[#allocation97_spill] sm:$0xff]  ;;  %v6765_v18 = vpop.eup %6764  ;;  %v1266_v19 = vadd.f32 %v14776_v11, %v8358_v59  ;;  %v1073_v28 = vadd.f32 %v14777_v45, %v8342_v63  ;;  %2294 = vperm.xlu1 %6570, %v8288_v48   ;;  %v8482_v60 = vmul.f32 %v6759_v21, %v8102_v56  ;;  %v14781_v56 = vld [vmem:[#allocation62_spill] sm:$0xff] }
 0x1a4   : > { %14770 = vst [vmem:[#allocation197_spill] sm:$0xff] %v8449_v13  ;;  %14771 = vst [vmem:[#allocation198_spill] sm:$0xff] %v8451_v2  ;;  %v8464_v33 = vadd.f32 %v14774_v40, %v8414_v42  ;;  %v8485_v40 = vmul.f32 %v6761_v26, %v8115_v27  ;;  %v8489_v29 = vmax.f32 %v1103_v53, %v1263_v7  ;;  %v14783_v53 = vld [vmem:[#allocation99_spill] sm:$0xff]  ;;  %v14802_v14 = vld [vmem:[#allocation38_spill] sm:$0xff] }
 0x1a5   : > { %14773 = vst [vmem:[#allocation199_spill] sm:$0xff] %v8455_v17  ;;  %2322 = vperm.xlu0 %6604, %v8470_v30   ;;  %14778 = vst [vmem:[#allocation201_spill] sm:$0xff] %v8482_v60  ;;  %v8494_v11 = vmul.f32 %v6763_v49, %v8124_v61  ;;  %v1105_v10 = vmax.f32 %v8414_v42, %v1073_v28  ;;  %v1265_v21 = vadd.f32 %v14781_v56, %v8330_v57  ;;  %v14784_v49 = vld [vmem:[#allocation34_spill] sm:$0xff]  ;;  %v6912_v28 = vld [vmem:[%s13957_s5 + $0x80] sm:$0xff] }
 0x1a6   : > { %14775 = vst [vmem:[#allocation200_spill] sm:$0xff] %v8464_v33  ;;  %14779 = vst [vmem:[#allocation202_spill] sm:$0xff] %v8489_v29  ;;  %v8491_v38 = vpop.permute.xlu1 %1768  ;;  %v8504_v26 = vmul.f32 %v6765_v18, %v8137_v23  ;;  %v8510_v61 = vadd.f32 %v14783_v53, %v8458_v9  ;;  %v1076_v45 = vadd.f32 %v14784_v49, %v8358_v59  ;;  %v6632_v23 = vld [vmem:[%s13955_s3 + $0x8] sm:$0xff]   ;;  %v6633_v18 = vld [vmem:[%s13955_s3 + $0x18] sm:$0xff]  }
 0x1a7   : > { %14780 = vst [vmem:[#allocation203_spill] sm:$0xff] %v8491_v38  ;;  %v8501_v27 = vpop.permute.xlu0 %1760  ;;  %v8523_v7 = vmax.f32 %v1106_v55, %v1266_v19  ;;  %v1268_v56 = vadd.f32 %v14786_v24, %v8366_v37  ;;  %v14787_v49 = vld [vmem:[#allocation36_spill] sm:$0xff]  ;;  %6571 = vset.pattern.permute.xlu1 %v14640_v51  ;;  %v14790_v17 = vld [vmem:[#allocation6_spill] sm:$0xff]  ;;  %6401 = vmatprep.subr.bf16.mxu1 %v6632_v23 }
 0x1a8   : > { %14782 = vst [vmem:[#allocation204_spill] sm:$0xff] %v8501_v27  ;;  %v1078_v53 = vadd.f32 %v14787_v49, %v8366_v37  ;;  %v14788_v27 = vld [vmem:[#allocation100_spill] sm:$0xff]  ;;  %v1048_v2 = vadd.f32 %v14790_v17, %v8485_v40  ;;  %2543 = vperm.xlu1 %6571, %v7939_v4   ;;  %v875_v19 = vpack.c.bf16 %v8151_v15, %v8097_v3  ;;  %v14792_v49 = vld [vmem:[#allocation31_spill] sm:$0xff] }
 0x1a9   : > { %2334 = vperm.xlu0 %6604, %v6912_v28   ;;  %14785 = vst [vmem:[#allocation205_spill] sm:$0xff] %v8523_v7  ;;  %v874_v28 = vpack.c.bf16 %v8158_v25, %v8089_v47  ;;  %v8534_v38 = vadd.f32 %v14788_v27, %v8482_v60  ;;  %v8543_v24 = vmax.f32 %v1105_v10, %v1265_v21  ;;  %v14795_v4 = vld [vmem:[#allocation64_spill] sm:$0xff]  ;;  %v8560_v21 = vld [vmem:[%s13957_s5 + $0x88] sm:$0xff] }
 0x1aa   : > { %v8539_v55 = vpop.permute.xlu1 %1776  ;;  %v1075_v13 = vadd.f32 %v14792_v49, %v8330_v57  ;;  %v1051_v27 = vadd.f32 %v14793_v1, %v8494_v11  ;;  %6403 = vmatpush3.bf16.msra.mxu1 %v6632_v23  ;;  %6258 = vmatprep.subr.bf16.mxu0 %v6633_v18  ;;  %v1267_v17 = vadd.f32 %v14795_v4, %v8414_v42  ;;  %v14799_v4 = vld [vmem:[#allocation67_spill] sm:$0xff] }
 0x1ab   : > { %14789 = vst [vmem:[#allocation206_spill] sm:$0xff] %v8534_v38  ;;  %14791 = vst [vmem:[#allocation207_spill] sm:$0xff] %v8539_v55  ;;  %v8549_v33 = vpop.permute.xlu0 %1772  ;;  %v14796_v55 = vld [vmem:[#allocation8_spill] sm:$0xff]  ;;  %v1050_v10 = vadd.f32 %v14797_v39, %v8482_v60  ;;  %6259 = vmatpush3.bf16.msra.mxu0 %v6633_v18  ;;  %v1108_v23 = vmax.f32 %v8485_v40, %v1076_v45  ;;  %v1110_v49 = vmax.f32 %v8482_v60, %v1078_v53  ;;  %v14800_v39 = vld [vmem:[#allocation102_spill] sm:$0xff] }
 0x1ac   : > { %14794 = vst [vmem:[#allocation208_spill] sm:$0xff] %v8549_v33  ;;  %v1049_v29 = vadd.f32 %v14796_v55, %v8504_v26  ;;  %14798 = vst [vmem:[#allocation209_spill] sm:$0xff] %v8560_v21  ;;  %v1270_v1 = vadd.f32 %v14799_v4, %v8485_v40  ;;  %6308 = vmatprep.mubr.msk.bf16.mxu1 %vm2751_vm1, %v874_v28  ;;  %6292 = vmatprep.subr.bf16.mxu0 %v8385_v58  ;;  %v14804_v28 = vld [vmem:[#allocation104_spill] sm:$0xff]  ;;  %v14840_v38 = vld [vmem:[#allocation118_spill] sm:$0xff] }
 0x1ad   : > { %2338 = vperm.xlu0 %6604, %v8560_v21   ;;  %v8571_v55 = vadd.f32 %v14800_v39, %v7859_v35  ;;  %v1080_v33 = vmax.f32 %v7859_v35, %v1048_v2  ;;  %v1240_v18 = vadd.f32 %v14802_v14, %v8482_v60  ;;  %2547 = vperm.xlu1 %6571, %v8063_v43   ;;  %v14806_v14 = vld [vmem:[#allocation98_spill] sm:$0xff] }
 0x1ae   : > { %v8577_v45 = vpop.permute.xlu1 %1784  ;;  %6309 = vmatmul.mubr.msk.bf16.vlgmr.msra.gmra.mrb[0].mxu1 %vm2751_vm1, %v875_v19  ;;  %v1107_v58 = vmax.f32 %v8458_v9, %v1075_v13  ;;  %v1624_v4 = vadd.f32 %v14804_v28, %v7899_v62  ;;  %v1083_v2 = vmax.f32 %v7862_v52, %v1051_v27  ;;  %v8590_v60 = vadd.f32 %v14806_v14, %v8485_v40  ;;  %v14808_v19 = vld [vmem:[#allocation108_spill] sm:$0xff]  ;;  %v8599_v13 = vld [vmem:[%s13957_s5 + $0xa0] sm:$0xff]  ;;  %v14817_v52 = vld [vmem:[#allocation106_spill] sm:$0xff] }
 0x1af   : > { %14801 = vst [vmem:[#allocation210_spill] sm:$0xff] %v8571_v55  ;;  %14803 = vst [vmem:[#allocation211_spill] sm:$0xff] %v8577_v45  ;;  %v8586_v39 = vpop.permute.xlu0 %1780  ;;  %v1081_v43 = vmax.f32 %v7865_v5, %v1049_v29  ;;  %v1629_v45 = vadd.f32 %v14808_v19, %v8030_v54  ;;  %v1082_v53 = vmax.f32 %v14809_v22, %v1050_v10  ;;  %v14812_v28 = vld [vmem:[#allocation105_spill] sm:$0xff] }
 0x1b0   : > { %14805 = vst [vmem:[#allocation212_spill] sm:$0xff] %v8586_v39  ;;  %14807 = vst [vmem:[#allocation213_spill] sm:$0xff] %v8590_v60  ;;  %v8602_v27 = vmax.f32 %v1108_v23, %v1268_v56  ;;  %v8604_v62 = vmax.f32 %v1110_v49, %v1270_v1  ;;  %v8608_v14 = vadd.f32 %v14812_v28, %v7865_v5  ;;  %v14813_v10 = vld [vmem:[#allocation37_spill] sm:$0xff]  ;;  %v14814_v39 = vld [vmem:[#allocation39_spill] sm:$0xff] }
 0x1b1   : > { %2350 = vperm.xlu0 %6604, %v8599_v13   ;;  %v876_v29 = vpack.c.bf16 %v8245_v46, %v8193_v41  ;;  %v1272_v54 = vmax.f32 %v1080_v33, %v1240_v18  ;;  %v1241_v19 = vadd.f32 %v14813_v10, %v8494_v11  ;;  %v1242_v22 = vadd.f32 %v14814_v39, %v7859_v35  ;;  %v14816_v23 = vld [vmem:[#allocation125_spill] sm:$0xff]  ;;  %v14818_v18 = vld [vmem:[#allocation107_spill] sm:$0xff] }
 0x1b2   : > { %14810 = vst [vmem:[#allocation214_spill] sm:$0xff] %v8602_v27  ;;  %14811 = vst [vmem:[#allocation215_spill] sm:$0xff] %v8604_v62  ;;  %2551 = vperm.xlu1 %6571, %v8288_v48   ;;  %v8617_v56 = vpop.permute.xlu1 %1792  ;;  %v877_v1 = vpack.c.bf16 %v8239_v0, %v8224_v6  ;;  %v8621_v49 = vmax.f32 %v1107_v58, %v1267_v17  ;;  %v1275_v28 = vmax.f32 %v1083_v2, %v14816_v23  ;;  %v14823_v23 = vld [vmem:[#allocation158_spill] sm:$0xff]  ;;  %v14834_v55 = vld [vmem:[#allocation113_spill] sm:$0xff] }
 0x1b3   : > { %14815 = vst [vmem:[#allocation216_spill] sm:$0xff] %v8617_v56  ;;  %v1627_v33 = vadd.f32 %v14817_v52, %v7947_v50  ;;  %v1625_v10 = vadd.f32 %v14818_v18, %v7932_v36  ;;  %v8628_v5 = vpop.permute.xlu0 %1788  ;;  %6312 = vmatprep.mubr.msk.bf16.mxu1 %vm2751_vm1, %v876_v29  ;;  %v1273_v39 = vmax.f32 %v1081_v43, %v1241_v19  ;;  %v14820_v56 = vld [vmem:[#allocation138_spill] sm:$0xff]  ;;  %v14824_v36 = vld [vmem:[#allocation101_spill] sm:$0xff]  ;;  %v14825_v43 = vld [vmem:[#allocation103_spill] sm:$0xff] }
 0x1b4   : > { %14819 = vst [vmem:[#allocation125_spill] sm:$0xff] %v8628_v5  ;;  %v14821_v17 = vmax.f32 %v8014_v16, %v14820_v56  ;;  %v1274_v2 = vmax.f32 %v1082_v53, %v1242_v22  ;;  %v8643_v52 = vadd.f32 %v14824_v36, %v8504_v26  ;;  %v8649_v19 = vadd.f32 %v14825_v43, %v8494_v11  ;;  %v14826_v16 = vld [vmem:[#allocation117_spill] sm:$0xff]  ;;  %v14827_v56 = vld [vmem:[#allocation120_spill] sm:$0xff]  ;;  %v14860_v27 = vld [vmem:[#allocation142_spill] sm:$0xff] }
 0x1b5   : > { %2370 = vperm.xlu0 %6604, %v14823_v23   ;;  %v14828_v22 = vld [vmem:[#allocation109_spill] sm:$0xff]  ;;  %v14832_v36 = vld [vmem:[#allocation128_spill] sm:$0xff] }
 0x1b6   : > { %v8636_v58 = vmax.f32 %v14821_v17, %v1629_v45  ;;  %v1464_v45 = vmax.f32 %v1272_v54, %v14826_v16  ;;  %v1626_v53 = vadd.f32 %v14828_v22, %v14827_v56  ;;  %v14829_v17 = vld [vmem:[#allocation110_spill] sm:$0xff]  ;;  %2555 = vperm.xlu1 %6571, %v7980_v32   ;;  %v8657_v50 = vpop.permute.xlu1 %1864  ;;  %6313 = vmatmul.mubr.msk.bf16.gmra.mrb[4].mxu1 %vm2751_vm1, %v877_v1  ;;  %v14831_v18 = vld [vmem:[#allocation133_spill] sm:$0xff]  ;;  %v14833_v5 = vld [vmem:[#allocation112_spill] sm:$0xff] }
 0x1b7   : > { %v1631_v48 = vadd.f32 %v14829_v17, %v8056_v34  ;;  %14830 = vst [vmem:[#allocation158_spill] sm:$0xff] %v8657_v50  ;;  %v1467_v29 = vmax.f32 %v1275_v28, %v14831_v18  ;;  %v1628_v43 = vadd.f32 %v14833_v5, %v14832_v36  ;;  %v1633_v54 = vadd.f32 %v14834_v55, %v8158_v25  ;;  %v14835_v16 = vld [vmem:[#allocation33_spill] sm:$0xff]  ;;  %v8667_v22 = vpop.permute.xlu0 %1796  ;;  %v14837_v34 = vld [vmem:[#allocation122_spill] sm:$0xff]  ;;  %v14838_v32 = vld [vmem:[#allocation132_spill] sm:$0xff] }
 0x1b8   : > { %14822 = vst [vmem:[#allocation138_spill] sm:$0xff] %v8636_v58  ;;  %v1077_v56 = vadd.f32 %v14835_v16, %v8414_v42  ;;  %14836 = vst [vmem:[#allocation117_spill] sm:$0xff] %v8667_v22  ;;  %v1465_v17 = vmax.f32 %v1273_v39, %v14837_v34  ;;  %v1466_v62 = vmax.f32 %v1274_v2, %v14838_v32  ;;  %v14839_v50 = vld [vmem:[#allocation135_spill] sm:$0xff]  ;;  %v14842_v16 = vld [vmem:[#allocation66_spill] sm:$0xff]  ;;  %v8683_v2 = vshrl.u32 %v1720_v44, 7 }
 0x1b9   : > { %v1630_v1 = vadd.f32 %v14840_v38, %v14839_v50  ;;  %v14841_v28 = vld [vmem:[#allocation119_spill] sm:$0xff]  ;;  %v1269_v55 = vadd.f32 %v14842_v16, %v8458_v9  ;;  %v8685_v32 = vmax.f32 %v1464_v45, %v1624_v4  ;;  %v8698_v16 = vmax.f32 %v1467_v29, %v1627_v33  ;;  %v14847_v4 = vld [vmem:[#allocation68_spill] sm:$0xff]  ;;  %v14852_v33 = vld [vmem:[#allocation77_spill] sm:$0xff] }
 0x1ba   : > { %v1635_v18 = vadd.f32 %v14841_v28, %v8151_v15  ;;  %v6915_v36 = vld [vmem:[%s13957_s5 + $0xd0] sm:$0xff]  ;;  %v1109_v25 = vmax.f32 %v8504_v26, %v1077_v56  ;;  %v8687_v50 = vmax.f32 %v1465_v17, %v1625_v10  ;;  %v8689_v15 = vmax.f32 %v1466_v62, %v1626_v53  ;;  %6572 = vset.pattern.permute.xlu1 %v14616_v20  ;;  %v8706_v62 = vld [vmem:[%s13957_s5 + $0x48] sm:$0xff]  ;;  %v14849_v45 = vld [vmem:[#allocation148_spill] sm:$0xff] }
 0x1bb   : > { %2374 = vperm.xlu0 %6604, %v6915_v36   ;;  %v14843_v34 = vld [vmem:[#allocation35_spill] sm:$0xff]  ;;  %v8694_v36 = vpop.permute.xlu1 %1872  ;;  %14846 = vst [vmem:[#allocation122_spill] sm:$0xff] %v8698_v16  ;;  %v1271_v10 = vadd.f32 %v14847_v4, %v8504_v26  ;;  %2049 = vperm.xlu1 %6572, %v8706_v62   ;;  %v14850_v53 = vld [vmem:[#allocation149_spill] sm:$0xff]  ;;  %v14856_v4 = vld [vmem:[#allocation156_spill] sm:$0xff]  ;;  %vm2493_vm2 = vcmp.lt.s32.totalorder %v8683_v2, 6  ;;  %vm1722_vm3 = vcmp.lt.s32.totalorder %v8683_v2, 2 }
 0x1bc   : > { %v1079_v39 = vadd.f32 %v14843_v34, %v8458_v9  ;;  %v14844_v28 = vld [vmem:[#allocation123_spill] sm:$0xff]  ;;  %14845 = vst [vmem:[#allocation133_spill] sm:$0xff] %v8694_v36  ;;  %v14851_v17 = vmax.f32 %v14849_v45, %v14850_v53  ;;  %v14855_v5 = vld [vmem:[#allocation157_spill] sm:$0xff]  ;;  %v14859_v22 = vld [vmem:[#allocation134_spill] sm:$0xff]  ;;  %vm1979_vm4 = vcmp.lt.s32.totalorder %v8683_v2, 1  ;;  %vm2236_vm5 = vcmp.lt.s32.totalorder %v8683_v2, 7 }
 0x1bd   : > { %v1632_v38 = vadd.f32 %v14844_v28, %v8089_v47  ;;  %v8709_v47 = vpop.permute.xlu0 %1868  ;;  %v14853_v29 = vld [vmem:[#allocation131_spill] sm:$0xff]  ;;  %v14857_v34 = vmax.f32 %v14855_v5, %v14856_v4  ;;  %v14861_v60 = vmax.f32 %v14859_v22, %v14860_v27  ;;  %v14862_v45 = vld [vmem:[#allocation166_spill] sm:$0xff] }
 0x1be   : > { %v1111_v44 = vmax.f32 %v8494_v11, %v1079_v39  ;;  %14848 = vst [vmem:[#allocation132_spill] sm:$0xff] %v8709_v47  ;;  %v8714_v56 = vmax.f32 %v14851_v17, %v1631_v48  ;;  %v14854_v39 = vmax.f32 %v14852_v33, %v14853_v29  ;;  %v14863_v48 = vld [vmem:[#allocation163_spill] sm:$0xff]  ;;  %v8739_v29 = vmax.f32 %v1109_v25, %v1269_v55  ;;  %v14872_v25 = vld [vmem:[#allocation130_spill] sm:$0xff]  ;;  %v14900_v47 = vld [vmem:[#allocation144_spill] sm:$0xff] }
 0x1bf   : > { %v8724_v36 = vmax.f32 %v14857_v34, %v1633_v54  ;;  %v8729_v7 = vmax.f32 %v14861_v60, %v1630_v1  ;;  %6609 = vset.pattern.permute.xlu0 %v14640_v51  ;;  %v14864_v53 = vmax.f32 %v14862_v45, %v14863_v48  ;;  %v14867_v5 = vld [vmem:[#allocation143_spill] sm:$0xff]  ;;  %v14205_v1 = vrot.slane %v8687_v50, 2  ;;  %v8751_v34 = vpop.permute.xlu1 %1880  ;;  %6573 = vset.pattern.permute.xlu1 %v14621_v31  ;;  %v14885_v54 = vld [vmem:[#allocation88_spill] sm:$0xff] }
 0x1c0   : > { %v8719_v28 = vmax.f32 %v14854_v39, %v1628_v43  ;;  %v14866_v43 = vld [vmem:[#allocation124_spill] sm:$0xff]  ;;  %2579 = vperm.xlu0 %6609, %v8470_v30   ;;  %v14868_v27 = vld [vmem:[#allocation139_spill] sm:$0xff]  ;;  %14870 = vst [vmem:[#allocation77_spill] sm:$0xff] %v8751_v34  ;;  %v1639_v4 = vadd.f32 %v14872_v25, %v8239_v0  ;;  %v8757_v39 = vmax.f32 %v1111_v44, %v1271_v10  ;;  %v1689_v48 = vrot.slane %v8687_v50, 6  ;;  %v14876_v10 = vld [vmem:[#allocation169_spill] sm:$0xff] }
 0x1c1   : > { %14858 = vst [vmem:[#allocation148_spill] sm:$0xff] %v8724_v36  ;;  %v8735_v17 = vmax.f32 %v14864_v53, %v1635_v18  ;;  %v1637_v33 = vadd.f32 %v14866_v43, %v8245_v46  ;;  %v14869_v60 = vmax.f32 %v14867_v5, %v14868_v27  ;;  %v14871_v46 = vld [vmem:[#allocation129_spill] sm:$0xff]  ;;  %v1690_v53 = vrot.slane %v8689_v15, 6  ;;  %v14874_v5 = vld [vmem:[#allocation140_spill] sm:$0xff] }
 0x1c2   : > { %v1634_v55 = vadd.f32 %v14871_v46, %v8097_v3  ;;  %2302 = vperm.xlu1 %6573, %v14874_v5   ;;  %v878_v3 = vpack.c.bf16 %v8342_v63, %v8295_v12  ;;  %v879_v0 = vpack.c.bf16 %v8330_v57, %v8262_v8  ;;  %v14875_v44 = vld [vmem:[#allocation168_spill] sm:$0xff]  ;;  %v8782_v5 = vld [vmem:[%s13957_s5 + $0x70] sm:$0xff]  ;;  %v14886_v25 = vld [vmem:[#allocation153_spill] sm:$0xff]  ;;  %v880_v45 = vpack.c.bf16 %v8414_v42, %v8358_v59 }
 0x1c3   : > { %14865 = vst [vmem:[#allocation149_spill] sm:$0xff] %v8735_v17  ;;  %v8746_v22 = vmax.f32 %v14869_v60, %v1632_v38  ;;  %v8761_v38 = vpop.permute.xlu0 %1876  ;;  %v14877_v27 = vmax.f32 %v14875_v44, %v14876_v10  ;;  %14879 = vst [vmem:[#allocation156_spill] sm:$0xff] %v8782_v5  ;;  %v14882_v10 = vrot.slane %v8698_v16, 2  ;;  %v14887_v43 = vmax.f32 %v14885_v54, %v14886_v25 }
 0x1c4   : > { %14873 = vst [vmem:[#allocation131_spill] sm:$0xff] %v8761_v38  ;;  %2583 = vperm.xlu0 %6609, %v8782_v5   ;;  %6316 = vmatprep.mubr.msk.bf16.mxu1 %vm2751_vm1, %v878_v3  ;;  %v14888_v38 = vld [vmem:[#allocation178_spill] sm:$0xff]  ;;  %v1692_v5 = vrot.slane %v8719_v28, 6  ;;  %v14894_v3 = vld [vmem:[#allocation136_spill] sm:$0xff] }
 0x1c5   : > { %v8773_v60 = vmax.f32 %v14877_v27, %v1637_v33  ;;  %v14880_v33 = vrot.slane %v8685_v32, 2  ;;  %v14883_v27 = vrot.slane %v8689_v15, 2  ;;  %v8808_v46 = vmax.f32 %v14887_v43, %v1634_v55  ;;  %6317 = vmatmul.mubr.msk.bf16.gmra.mrb[8].mxu1 %vm2751_vm1, %v879_v0 }
 0x1c6   : > { %v1636_v54 = vadd.f32 %v14894_v3, %v8193_v41  ;;  %v8826_v43 = vsel %vm1722_vm3, %v1689_v48, %v1690_v53  ;;  %v14896_v55 = vrot.slane %v8685_v32, 6  ;;  %6574 = vset.pattern.permute.xlu1 %v14616_v20  ;;  %v1693_v0 = vrot.slane %v8636_v58, 6  ;;  %6320 = vmatprep.mubr.msk.bf16.mxu1 %vm2751_vm1, %v880_v45 }
 0x1c7   : > { %14878 = vst [vmem:[#allocation157_spill] sm:$0xff] %v8773_v60  ;;  %v8793_v44 = vsel %vm2493_vm2, %v14880_v33, %v14205_v1  ;;  %v8801_v18 = vsel %vm2493_vm2, %v14883_v27, %v14882_v10  ;;  %v14889_v33 = vld [vmem:[#allocation175_spill] sm:$0xff]  ;;  %v8817_v10 = vpop.permute.xlu1 %2125  ;;  %v8819_v27 = vpop.permute.xlu0 %1800  ;;  %14895 = vst [vmem:[#allocation139_spill] sm:$0xff] %v8826_v43  ;;  %v1694_v41 = vrot.slane %v8729_v7, 6  ;;  %v14902_v3 = vrot.slane %v8746_v22, 2 }
 0x1c8   : > { %14881 = vst [vmem:[#allocation134_spill] sm:$0xff] %v8793_v44  ;;  %14884 = vst [vmem:[#allocation142_spill] sm:$0xff] %v8801_v18  ;;  %v14890_v1 = vmax.f32 %v14888_v38, %v14889_v33  ;;  %v8833_v25 = vsel %vm1722_vm3, %v14896_v55, %v1689_v48  ;;  %v14899_v33 = vld [vmem:[#allocation186_spill] sm:$0xff]  ;;  %2595 = vperm.xlu0 %6609, %v8560_v21   ;;  %v1638_v48 = vadd.f32 %v14900_v47, %v8224_v6 }
 0x1c9   : > { %14892 = vst [vmem:[#allocation163_spill] sm:$0xff] %v8817_v10  ;;  %14893 = vst [vmem:[#allocation143_spill] sm:$0xff] %v8819_v27  ;;  %2057 = vperm.xlu1 %6574, %v14899_v33   ;;  %v14901_v55 = vrot.slane %v8724_v36, 2  ;;  %v1696_v27 = vrot.slane %v8746_v22, 6  ;;  %v14905_v10 = vld [vmem:[#allocation145_spill] sm:$0xff]  ;;  %v8863_v6 = vsel %vm1722_vm3, %v1692_v5, %v1693_v0  ;;  %v1695_v47 = vrot.slane %v8714_v56, 6 }
 0x1ca   : > { %v8813_v34 = vmax.f32 %v14890_v1, %v1639_v4  ;;  %v1691_v1 = vrot.slane %v8698_v16, 6  ;;  %14897 = vst [vmem:[#allocation140_spill] sm:$0xff] %v8833_v25  ;;  %v14898_v4 = vld [vmem:[#allocation137_spill] sm:$0xff]  ;;  %v1643_v21 = vadd.f32 %v14905_v10, %v8330_v57  ;;  %14906 = vst [vmem:[#allocation88_spill] sm:$0xff] %v8863_v6  ;;  %v1697_v10 = vrot.slane %v8724_v36, 6  ;;  %v6919_v33 = vld [vmem:[%s13957_s5 + $0xa8] sm:$0xff] }
 0x1cb   : > { %v1641_v38 = vadd.f32 %v14898_v4, %v8342_v63  ;;  %v8852_v63 = vsel %vm2493_vm2, %v14902_v3, %v14901_v55  ;;  %v8866_v25 = vpop.permute.xlu1 %2129  ;;  %v8868_v43 = vpop.permute.xlu0 %1812  ;;  %v14909_v3 = vld [vmem:[#allocation160_spill] sm:$0xff]  ;;  %v14910_v55 = vld [vmem:[#allocation159_spill] sm:$0xff]  ;;  %v14914_v6 = vld [vmem:[#allocation181_spill] sm:$0xff]  ;;  %v8891_v18 = vsel %vm1722_vm3, %v1694_v41, %v1695_v47 }
 0x1cc   : > { %14891 = vst [vmem:[#allocation166_spill] sm:$0xff] %v8813_v34  ;;  %14903 = vst [vmem:[#allocation168_spill] sm:$0xff] %v8852_v63  ;;  %v8856_v4 = vsel %vm1722_vm3, %v1690_v53, %v1691_v1  ;;  %v881_v53 = vpack.c.bf16 %v8458_v9, %v8366_v37  ;;  %v8880_v57 = vsel %vm1722_vm3, %v1691_v1, %v1692_v5  ;;  %v8902_v5 = vld [vmem:[%s13957_s5 + $0x90] sm:$0xff] }
 0x1cd   : > { %14904 = vst [vmem:[#allocation169_spill] sm:$0xff] %v8856_v4  ;;  %14907 = vst [vmem:[#allocation153_spill] sm:$0xff] %v8866_v25  ;;  %v14911_v4 = vmax.f32 %v14909_v3, %v14910_v55  ;;  %v1698_v25 = vrot.slane %v8808_v46, 6  ;;  %6575 = vset.pattern.permute.xlu1 %v14621_v31  ;;  %2599 = vperm.xlu0 %6609, %v8902_v5   ;;  %v14928_v3 = vld [vmem:[#allocation191_spill] sm:$0xff]  ;;  %v14929_v55 = vld [vmem:[#allocation190_spill] sm:$0xff] }
 0x1ce   : > { %14908 = vst [vmem:[#allocation178_spill] sm:$0xff] %v8868_v43  ;;  %14913 = vst [vmem:[#allocation160_spill] sm:$0xff] %v8880_v57  ;;  %v14915_v43 = vld [vmem:[#allocation180_spill] sm:$0xff]  ;;  %2306 = vperm.xlu1 %6575, %v8706_v62   ;;  %6321 = vmatmul.mubr.msk.bf16.gmra.mrb[12].mxu1 %vm2751_vm1, %v881_v53  ;;  %v14937_v53 = vrot.slane %v8735_v17, 6 }
 0x1cf   : > { %v8876_v63 = vmax.f32 %v14911_v4, %v1636_v54  ;;  %v14916_v20 = vmax.f32 %v14914_v6, %v14915_v43  ;;  %14918 = vst [vmem:[#allocation181_spill] sm:$0xff] %v8891_v18  ;;  %v8895_v54 = vsel %vm1722_vm3, %v1693_v0, %v1694_v41  ;;  %14920 = vst [vmem:[#allocation217_spill] sm:$0xff] %v8902_v5  ;;  %v14922_v43 = vld [vmem:[#allocation167_spill] sm:$0xff] }
 0x1d0   : > { %14919 = vst [vmem:[#allocation180_spill] sm:$0xff] %v8895_v54  ;;  %v8914_v41 = vsel %vm1722_vm3, %v1696_v27, %v1697_v10  ;;  %v8918_v6 = vsel %vm1722_vm3, %v1695_v47, %v1696_v27  ;;  %v14930_v5 = vmax.f32 %v14928_v3, %v14929_v55  ;;  %v882_v47 = vpack.c.bf16 %v8504_v26, %v8485_v40  ;;  %v14935_v3 = vld [vmem:[#allocation151_spill] sm:$0xff] }
 0x1d1   : > { %14912 = vst [vmem:[#allocation175_spill] sm:$0xff] %v8876_v63  ;;  %v8887_v45 = vmax.f32 %v14916_v20, %v1641_v38  ;;  %v14921_v20 = vld [vmem:[#allocation170_spill] sm:$0xff]  ;;  %14926 = vst [vmem:[#allocation167_spill] sm:$0xff] %v8914_v41  ;;  %v8937_v27 = vsel %vm1722_vm3, %v1697_v10, %v1698_v25  ;;  %v1645_v55 = vadd.f32 %v14935_v3, %v8414_v42  ;;  %2607 = vperm.xlu0 %6609, %v8599_v13   ;;  %v14955_v41 = vld [vmem:[#allocation179_spill] sm:$0xff] }
 0x1d2   : > { %v14923_v1 = vmax.f32 %v14921_v20, %v14922_v43  ;;  %v14925_v38 = vld [vmem:[#allocation150_spill] sm:$0xff]  ;;  %14927 = vst [vmem:[#allocation218_spill] sm:$0xff] %v8918_v6  ;;  %v8924_v54 = vmax.f32 %v14930_v5, %v1643_v21  ;;  %v8927_v20 = vpop.permute.xlu1 %2137  ;;  %v1948_v43 = vrot.slane %v8687_v50, 7  ;;  %14934 = vst [vmem:[#allocation220_spill] sm:$0xff] %v8937_v27  ;;  %6324 = vmatprep.mubr.msk.bf16.mxu1 %vm2751_vm1, %v882_v47  ;;  %v14939_v5 = vld [vmem:[#allocation173_spill] sm:$0xff]  ;;  %v14946_v10 = vrot.slane %v8685_v32, 7 }
 0x1d3   : > { %14917 = vst [vmem:[#allocation159_spill] sm:$0xff] %v8887_v45  ;;  %v1640_v0 = vadd.f32 %v14925_v38, %v8295_v12  ;;  %14932 = vst [vmem:[#allocation190_spill] sm:$0xff] %v8927_v20  ;;  %v8929_v12 = vpop.permute.xlu0 %1820  ;;  %v14940_v21 = vld [vmem:[#allocation174_spill] sm:$0xff]  ;;  %v14954_v6 = vld [vmem:[#allocation183_spill] sm:$0xff] }
 0x1d4   : > { %v8908_v4 = vmax.f32 %v14923_v1, %v1638_v48  ;;  %14931 = vst [vmem:[#allocation191_spill] sm:$0xff] %v8924_v54  ;;  %14933 = vst [vmem:[#allocation219_spill] sm:$0xff] %v8929_v12  ;;  %v14936_v48 = vld [vmem:[#allocation87_spill] sm:$0xff]  ;;  %v8950_v12 = vsel %vm1722_vm3, %v1698_v25, %v14937_v53  ;;  %v14941_v1 = vmax.f32 %v14939_v5, %v14940_v21  ;;  %v1949_v25 = vrot.slane %v8689_v15, 7  ;;  %v14944_v53 = vld [vmem:[#allocation82_spill] sm:$0xff] }
 0x1d5   : > { %v1642_v38 = vadd.f32 %v14936_v48, %v8262_v8  ;;  %14938 = vst [vmem:[#allocation221_spill] sm:$0xff] %v8950_v12  ;;  %v14943_v8 = vmov 4   ;;  %v8971_v47 = vsel %vm1979_vm4, %v14946_v10, %v1948_v43  ;;  %v2205_v21 = vrot.slane %v8687_v50, 1  ;;  %v14948_v5 = vld [vmem:[#allocation201_spill] sm:$0xff]  ;;  %v14959_v3 = vld [vmem:[#allocation154_spill] sm:$0xff]  ;;  %2611 = vperm.xlu0 %6609, %v6919_v33  }
 0x1d6   : > { %14924 = vst [vmem:[#allocation170_spill] sm:$0xff] %v8908_v4  ;;  %v8958_v20 = vmax.f32 %v14941_v1, %v1640_v0  ;;  %6577 = vset.pattern.permute.xlu1 %v14943_v8  ;;  %v8965_v13 = vpop.permute.xlu1 %2017  ;;  %14947 = vst [vmem:[#allocation82_spill] sm:$0xff] %v8971_v47  ;;  %v883_v1 = vpack.c.bf16 %v8494_v11, %v14948_v5  ;;  %v1950_v48 = vrot.slane %v8698_v16, 7  ;;  %v1951_v12 = vrot.slane %v8719_v28, 7  ;;  %v6634_v10 = vld [vmem:[%s13955_s3 + $0x20] sm:$0xff]  }
 0x1d7   : > { %1804 = vperm.xlu1 %6577, %v14944_v53   ;;  %14945 = vst [vmem:[#allocation174_spill] sm:$0xff] %v8965_v13  ;;  %v8977_v42 = vpop.permute.xlu0 %1828  ;;  %v14950_v0 = vld [vmem:[#allocation193_spill] sm:$0xff]  ;;  %v14951_v13 = vld [vmem:[#allocation194_spill] sm:$0xff]  ;;  %v14958_v53 = vld [vmem:[#allocation152_spill] sm:$0xff]  ;;  %v1644_v44 = vadd.f32 %v14959_v3, %v8358_v59  ;;  %v1953_v59 = vrot.slane %v8729_v7, 7  ;;  %6328 = vmatprep.subr.bf16.mxu1 %v6634_v10 }
 0x1d8   : > { %14942 = vst [vmem:[#allocation173_spill] sm:$0xff] %v8958_v20  ;;  %14949 = vst [vmem:[#allocation201_spill] sm:$0xff] %v8977_v42  ;;  %v14952_v47 = vmax.f32 %v14950_v0, %v14951_v13  ;;  %v14956_v42 = vmax.f32 %v14954_v6, %v14955_v41  ;;  %v1647_v57 = vadd.f32 %v14958_v53, %v8458_v9  ;;  %v14960_v13 = vrot.slane %v8908_v4, 6  ;;  %v14964_v6 = vld [vmem:[#allocation155_spill] sm:$0xff]  ;;  %v14971_v3 = vld [vmem:[#allocation202_spill] sm:$0xff] }
 0x1d9   : > { %v9014_v9 = vsel %vm1979_vm4, %v1948_v43, %v1949_v25  ;;  %v1649_v33 = vadd.f32 %v14964_v6, %v8504_v26  ;;  %6325 = vmatmul.mubr.msk.bf16.gmra.mrb[16].mxu1 %vm2751_vm1, %v883_v1  ;;  %v6635_v26 = vld [vmem:[%s13955_s3 + $0x28] sm:$0xff]   ;;  %v1954_v1 = vrot.slane %v8714_v56, 7  ;;  %v14972_v53 = vld [vmem:[#allocation200_spill] sm:$0xff]  ;;  %2627 = vperm.xlu0 %6609, %v14823_v23  }
 0x1da   : > { %v8989_v27 = vmax.f32 %v14952_v47, %v1645_v55  ;;  %v8994_v18 = vmax.f32 %v14956_v42, %v1642_v38  ;;  %v14961_v55 = vrot.slane %v8773_v60, 6  ;;  %14963 = vst [vmem:[#allocation179_spill] sm:$0xff] %v9014_v9  ;;  %v9022_v42 = vsel %vm1979_vm4, %v1949_v25, %v1950_v48  ;;  %6329 = vmatpush3.bf16.msra.mxu1 %v6634_v10 }
 0x1db   : > { %6578 = vset.pattern.permute.xlu1 %v14621_v31  ;;  %14965 = vst [vmem:[#allocation222_spill] sm:$0xff] %v9022_v42  ;;  %v14966_v47 = vrot.slane %v8685_v32, 1  ;;  %v14969_v25 = vrot.slane %v8689_v15, 1  ;;  %v14976_v42 = vld [vmem:[#allocation185_spill] sm:$0xff]  ;;  %6330 = vmatprep.subr.bf16.mxu1 %v6635_v26  ;;  %v14980_v10 = vrot.slane %v8958_v20, 6 }
 0x1dc   : > { %14953 = vst [vmem:[#allocation193_spill] sm:$0xff] %v8989_v27  ;;  %14957 = vst [vmem:[#allocation194_spill] sm:$0xff] %v8994_v18  ;;  %v9009_v41 = vsel %vm1722_vm3, %v14961_v55, %v14960_v13  ;;  %v14967_v13 = vld [vmem:[#allocation147_spill] sm:$0xff]  ;;  %v9036_v55 = vpop.permute.xlu0 %1836 }
 0x1dd   : > { %14962 = vst [vmem:[#allocation183_spill] sm:$0xff] %v9009_v41  ;;  %v9028_v0 = vsel %vm2236_vm5, %v14966_v47, %v2205_v21  ;;  %2310 = vperm.xlu1 %6578, %v14967_v13   ;;  %14968 = vst [vmem:[#allocation147_spill] sm:$0xff] %v9036_v55  ;;  %v9042_v38 = vsel %vm2236_vm5, %v2205_v21, %v14969_v25  ;;  %v9046_v47 = vsel %vm1979_vm4, %v1950_v48, %v1951_v12  ;;  %v14975_v55 = vld [vmem:[#allocation187_spill] sm:$0xff]  ;;  %v9062_v48 = vpop.permute.xlu1 %2382  ;;  %v14989_v21 = vld [vmem:[#allocation162_spill] sm:$0xff] }
 0x1de   : > { %14970 = vst [vmem:[#allocation223_spill] sm:$0xff] %v9046_v47  ;;  %v14973_v13 = vmax.f32 %v14971_v3, %v14972_v53  ;;  %v14977_v9 = vmax.f32 %v14975_v55, %v14976_v42  ;;  %14979 = vst [vmem:[#allocation187_spill] sm:$0xff] %v9062_v48  ;;  %v14981_v3 = vrot.slane %v8813_v34, 6  ;;  %v1952_v53 = vrot.slane %v8636_v58, 7  ;;  %v14986_v55 = vld [vmem:[#allocation161_spill] sm:$0xff]  ;;  %6331 = vmatpush3.bf16.msra.mxu1 %v6635_v26 }
 0x1df   : > { %v14987_v25 = vrot.slane %v8746_v22, 7  ;;  %v1651_v43 = vadd.f32 %v14989_v21, %v8494_v11  ;;  %v14995_v11 = vrot.slane %v8994_v18, 6  ;;  %v2208_v21 = vrot.slane %v8719_v28, 1 }
 0x1e0   : > { %v9053_v6 = vmax.f32 %v14973_v13, %v1647_v57  ;;  %v9058_v41 = vmax.f32 %v14977_v9, %v1644_v44  ;;  %v9071_v57 = vsel %vm1722_vm3, %v14981_v3, %v14980_v10  ;;  %v9075_v44 = vsel %vm1979_vm4, %v1953_v59, %v1954_v1  ;;  %v9096_v23 = vpop.permute.xlu0 %1844 }
 0x1e1   : > { %14982 = vst [vmem:[#allocation185_spill] sm:$0xff] %v9071_v57  ;;  %14983 = vst [vmem:[#allocation224_spill] sm:$0xff] %v9075_v44  ;;  %v14984_v9 = vmax.f32 %v8543_v24, %v8510_v61  ;;  %v1646_v13 = vadd.f32 %v14986_v55, %v8366_v37  ;;  %v9090_v10 = vsel %vm1979_vm4, %v1954_v1, %v14987_v25  ;;  %6579 = vset.pattern.permute.xlu1 %v14640_v51  ;;  %v9121_v24 = vpop.permute.xlu1 %2386  ;;  %v15009_v55 = vld [vmem:[#allocation116_spill] sm:$0xff] }
 0x1e2   : > { %14974 = vst [vmem:[#allocation202_spill] sm:$0xff] %v9053_v6  ;;  %14978 = vst [vmem:[#allocation200_spill] sm:$0xff] %v9058_v41  ;;  %v9101_v37 = vsel %vm1979_vm4, %v1951_v12, %v1952_v53  ;;  %v14992_v61 = vrot.slane %v8808_v46, 7  ;;  %v14996_v25 = vrot.slane %v8887_v45, 6  ;;  %2563 = vperm.xlu1 %6579, %v8706_v62   ;;  %v14999_v3 = vrot.slane %v8876_v63, 7 }
 0x1e3   : > { %v9082_v42 = vmax.f32 %v14984_v9, %v1649_v33  ;;  %14988 = vst [vmem:[#allocation226_spill] sm:$0xff] %v9090_v10  ;;  %14990 = vst [vmem:[#allocation227_spill] sm:$0xff] %v9096_v23  ;;  %v14993_v33 = vrot.slane %v8724_v36, 7  ;;  %v9143_v12 = vsel %vm1979_vm4, %v1952_v53, %v1953_v59  ;;  %v15011_v44 = vrot.slane %v8689_v15, 1 }
 0x1e4   : > { %14991 = vst [vmem:[#allocation228_spill] sm:$0xff] %v9101_v37  ;;  %v9117_v9 = vsel %vm1722_vm3, %v14996_v25, %v14995_v11  ;;  %14998 = vst [vmem:[#allocation231_spill] sm:$0xff] %v9121_v24  ;;  %v15002_v11 = vrot.slane %v8689_v15, 2  ;;  %v15003_v25 = vrot.slane %v8687_v50, 2  ;;  %v15010_v37 = vld [vmem:[#allocation165_spill] sm:$0xff]  ;;  %v15013_v59 = vmax.f32 %v8621_v49, %v8643_v52  ;;  %v15021_v49 = vld [vmem:[#allocation176_spill] sm:$0xff] }
 0x1e5   : > { %14985 = vst [vmem:[#allocation225_spill] sm:$0xff] %v9082_v42  ;;  %v9109_v1 = vsel %vm1979_vm4, %v14993_v33, %v14992_v61  ;;  %14997 = vst [vmem:[#allocation230_spill] sm:$0xff] %v9117_v9  ;;  %v15000_v61 = vrot.slane %v8735_v17, 7  ;;  %v2207_v33 = vrot.slane %v8698_v16, 1  ;;  %v1653_v10 = vadd.f32 %v15010_v37, %v15009_v55  ;;  %v15015_v55 = vld [vmem:[#allocation171_spill] sm:$0xff] }
 0x1e6   : > { %14994 = vst [vmem:[#allocation229_spill] sm:$0xff] %v9109_v1  ;;  %v9139_v62 = vsel %vm2493_vm2, %v15003_v25, %v15002_v11  ;;  %15005 = vst [vmem:[#allocation234_spill] sm:$0xff] %v9143_v12  ;;  %v9163_v53 = vmax.f32 %v15013_v59, %v1651_v43  ;;  %v1650_v37 = vadd.f32 %v15015_v55, %v14948_v5  ;;  %v15016_v12 = vld [vmem:[#allocation115_spill] sm:$0xff]  ;;  %v15018_v25 = vrot.slane %v9058_v41, 6  ;;  %v9186_v5 = vpop.permute.xlu0 %2121  ;;  %v9203_v55 = vpop.permute.xlu1 %2025 }
 0x1e7   : > { %v9129_v26 = vsel %vm1979_vm4, %v15000_v61, %v14999_v3  ;;  %15004 = vst [vmem:[#allocation233_spill] sm:$0xff] %v9139_v62  ;;  %v15006_v3 = vld [vmem:[#allocation197_spill] sm:$0xff]  ;;  %v15007_v61 = vld [vmem:[#allocation192_spill] sm:$0xff]  ;;  %v9157_v11 = vsel %vm2236_vm5, %v15011_v44, %v2207_v33  ;;  %v15019_v24 = vrot.slane %v8924_v54, 6  ;;  %6580 = vset.pattern.permute.xlu1 %v14943_v8  ;;  %v1652_v43 = vadd.f32 %v15021_v49, %v7859_v35  ;;  %v15028_v49 = vld [vmem:[#allocation199_spill] sm:$0xff] }
 0x1e8   : > { %15001 = vst [vmem:[#allocation232_spill] sm:$0xff] %v9129_v26  ;;  %v15008_v26 = vmax.f32 %v15006_v3, %v15007_v61  ;;  %15012 = vst [vmem:[#allocation197_spill] sm:$0xff] %v9157_v11  ;;  %v15014_v3 = vld [vmem:[#allocation164_spill] sm:$0xff]  ;;  %v2211_v61 = vrot.slane %v8714_v56, 1  ;;  %1808 = vperm.xlu1 %6580, %v8470_v30   ;;  %v9190_v59 = vsel %vm2236_vm5, %v2207_v33, %v2208_v21  ;;  %v15063_v11 = vld [vmem:[#allocation186_spill] sm:$0xff] }
 0x1e9   : > { %v15017_v44 = vld [vmem:[#allocation172_spill] sm:$0xff]  ;;  %v9179_v52 = vsel %vm1722_vm3, %v15019_v24, %v15018_v25  ;;  %15022 = vst [vmem:[#allocation235_spill] sm:$0xff] %v9186_v5  ;;  %15023 = vst [vmem:[#allocation236_spill] sm:$0xff] %v9190_v59  ;;  %v2210_v24 = vrot.slane %v8729_v7, 1  ;;  %v15025_v25 = vmax.f32 %v8739_v29, %v8649_v19  ;;  %v15031_v29 = vld [vmem:[#allocation205_spill] sm:$0xff] }
 0x1ea   : > { %v9149_v1 = vmax.f32 %v15008_v26, %v1646_v13  ;;  %v1648_v13 = vadd.f32 %v15014_v3, %v8485_v40  ;;  %v2209_v26 = vrot.slane %v8636_v58, 1  ;;  %v1655_v47 = vadd.f32 %v15017_v44, %v15016_v12  ;;  %15020 = vst [vmem:[#allocation192_spill] sm:$0xff] %v9179_v52  ;;  %15026 = vst [vmem:[#allocation238_spill] sm:$0xff] %v9203_v55  ;;  %v15027_v3 = vld [vmem:[#allocation198_spill] sm:$0xff]  ;;  %v9233_v19 = vpop.permute.xlu0 %2133 }
 0x1eb   : > { %v9200_v40 = vmax.f32 %v15025_v25, %v1653_v10  ;;  %v15029_v23 = vmax.f32 %v15027_v3, %v15028_v49  ;;  %v15032_v10 = vld [vmem:[#allocation213_spill] sm:$0xff]  ;;  %v15035_v44 = vmax.f32 %v8757_v39, %v8608_v14  ;;  %v2216_v3 = vrot.slane %v8876_v63, 1  ;;  %v15038_v49 = vld [vmem:[#allocation206_spill] sm:$0xff] }
 0x1ec   : > { %v9194_v12 = vsel %vm2236_vm5, %v2208_v21, %v2209_v26  ;;  %v15033_v25 = vmax.f32 %v15031_v29, %v15032_v10  ;;  %6581 = vset.pattern.permute.xlu1 %v14640_v51  ;;  %v15042_v29 = vrot.slane %v8746_v22, 1  ;;  %v9244_v39 = vsel %vm2236_vm5, %v2209_v26, %v2210_v24 }
 0x1ed   : > { %15024 = vst [vmem:[#allocation237_spill] sm:$0xff] %v9194_v12  ;;  %v9210_v21 = vmax.f32 %v15029_v23, %v1648_v13  ;;  %v9223_v33 = vmax.f32 %v15035_v44, %v1655_v47  ;;  %v15037_v13 = vld [vmem:[#allocation214_spill] sm:$0xff]  ;;  %15044 = vst [vmem:[#allocation239_spill] sm:$0xff] %v9244_v39  ;;  %v15045_v47 = vld [vmem:[#allocation111_spill] sm:$0xff]  ;;  %v15047_v10 = vrot.slane %v9149_v1, 6  ;;  %v15050_v26 = vrot.slane %v9149_v1, 7 }
 0x1ee   : > { %v9218_v35 = vmax.f32 %v15033_v25, %v1650_v37  ;;  %v15039_v12 = vmax.f32 %v15037_v13, %v15038_v49  ;;  %15041 = vst [vmem:[#allocation214_spill] sm:$0xff] %v9233_v19  ;;  %v9240_v14 = vsel %vm2236_vm5, %v2211_v61, %v15042_v29  ;;  %v15046_v44 = vld [vmem:[#allocation182_spill] sm:$0xff]  ;;  %v15048_v25 = vrot.slane %v8989_v27, 6  ;;  %v6920_v49 = vld [vmem:[%s13957_s5 + $0x50] sm:$0xff]  ;;  %v9293_v39 = vpop.permute.xlu0 %2013 }
 0x1ef   : > { %15030 = vst [vmem:[#allocation198_spill] sm:$0xff] %v9210_v21  ;;  %15036 = vst [vmem:[#allocation205_spill] sm:$0xff] %v9223_v33  ;;  %2567 = vperm.xlu1 %6581, %v6920_v49   ;;  %v15051_v29 = vrot.slane %v8989_v27, 7  ;;  %v2233_v23 = vrot.slane %v9200_v40, 1  ;;  %v1719_v49 = vrot.slane %v9223_v33, 6  ;;  %v2235_v9 = vrot.slane %v9223_v33, 1 }
 0x1f0   : > { %15034 = vst [vmem:[#allocation199_spill] sm:$0xff] %v9218_v35  ;;  %v9230_v52 = vmax.f32 %v15039_v12, %v1652_v43  ;;  %15043 = vst [vmem:[#allocation206_spill] sm:$0xff] %v9240_v14  ;;  %v1654_v12 = vadd.f32 %v15046_v44, %v15045_v47  ;;  %v9255_v13 = vsel %vm1722_vm3, %v15048_v25, %v15047_v10  ;;  %v9270_v47 = vpop.permute.xlu1 %2390  ;;  %v15054_v14 = vrot.slane %v8735_v17, 1 }
 0x1f1   : > { %15049 = vst [vmem:[#allocation240_spill] sm:$0xff] %v9255_v13  ;;  %v9266_v37 = vsel %vm1979_vm4, %v15051_v29, %v15050_v26  ;;  %15053 = vst [vmem:[#allocation242_spill] sm:$0xff] %v9270_v47  ;;  %v15056_v29 = vrot.slane %v8719_v28, 2  ;;  %v15057_v43 = vrot.slane %v8698_v16, 2  ;;  %v1978_v25 = vrot.slane %v9223_v33, 7 }
 0x1f2   : > { %15040 = vst [vmem:[#allocation213_spill] sm:$0xff] %v9230_v52  ;;  %15052 = vst [vmem:[#allocation241_spill] sm:$0xff] %v9266_v37  ;;  %v9280_v26 = vsel %vm2236_vm5, %v15054_v14, %v2216_v3  ;;  %v2489_v10 = vrot.slane %v9230_v52, 2  ;;  %v2217_v13 = vrot.slane %v8773_v60, 1  ;;  %v15060_v14 = vld [vmem:[#allocation215_spill] sm:$0xff]  ;;  %v15065_v44 = vrot.slane %v9082_v42, 7  ;;  %v9357_v55 = vpop.permute.xlu0 %2021 }
 0x1f3   : > { %15055 = vst [vmem:[#allocation243_spill] sm:$0xff] %v9280_v26  ;;  %v9288_v37 = vsel %vm2493_vm2, %v15057_v43, %v15056_v29  ;;  %15059 = vst [vmem:[#allocation245_spill] sm:$0xff] %v9293_v39  ;;  %v15061_v26 = vld [vmem:[#allocation210_spill] sm:$0xff]  ;;  %2571 = vperm.xlu1 %6581, %v15063_v11   ;;  %v2492_v43 = vrot.slane %v9223_v33, 2  ;;  %v15066_v48 = vrot.slane %v9210_v21, 7  ;;  %v9321_v11 = vsel %vm2236_vm5, %v2210_v24, %v2211_v61  ;;  %v15086_v33 = vld [vmem:[#allocation184_spill] sm:$0xff] }
 0x1f4   : > { %15058 = vst [vmem:[#allocation244_spill] sm:$0xff] %v9288_v37  ;;  %v15062_v47 = vmax.f32 %v15060_v14, %v15061_v26  ;;  %v9305_v37 = vpop.permute.xlu1 %2270  ;;  %15069 = vst [vmem:[#allocation246_spill] sm:$0xff] %v9321_v11  ;;  %v15070_v26 = vrot.slane %v8685_v32, 6  ;;  %v15071_v29 = vrot.slane %v9163_v53, 6  ;;  %v1975_v61 = vrot.slane %v9230_v52, 7 }
 0x1f5   : > { %15064 = vst [vmem:[#allocation215_spill] sm:$0xff] %v9305_v37  ;;  %v9313_v57 = vsel %vm1979_vm4, %v15066_v48, %v15065_v44  ;;  %v15072_v48 = vrot.slane %v9218_v35, 6  ;;  %v15073_v24 = vrot.slane %v9163_v53, 2  ;;  %15078 = vst [vmem:[#allocation248_spill] sm:$0xff] %v9357_v55  ;;  %v15079_v19 = vrot.slane %v8685_v32, 2 }
 0x1f6   : > { %v9299_v59 = vmax.f32 %v15062_v47, %v1654_v12  ;;  %15067 = vst [vmem:[#allocation210_spill] sm:$0xff] %v9313_v57  ;;  %v9317_v47 = vsel %vm2236_vm5, %v2216_v3, %v2217_v13  ;;  %v1754_v14 = vsel %vm1722_vm3, %v1719_v49, %v15070_v26  ;;  %v1716_v3 = vrot.slane %v9230_v52, 6 }
 0x1f7   : > { %15068 = vst [vmem:[#allocation186_spill] sm:$0xff] %v9317_v47  ;;  %v9334_v44 = vsel %vm1722_vm3, %v15072_v48, %v15071_v29  ;;  %v2497_v12 = vsel %vm2493_vm2, %v15073_v24, %v2489_v10  ;;  %v2232_v47 = vrot.slane %v9230_v52, 1  ;;  %v15074_v26 = vrot.slane %v9163_v53, 7  ;;  %6582 = vset.pattern.permute.xlu1 %v14943_v8 }
 0x1f8   : > { %v15075_v57 = vrot.slane %v9218_v35, 7  ;;  %v15077_v29 = vrot.slane %v8685_v32, 7  ;;  %v1718_v24 = vrot.slane %v9299_v59, 6  ;;  %v9365_v5 = vsel %vm2493_vm2, %v2492_v43, %v15079_v19 }
 0x1f9   : > { %15080 = vst [vmem:[#allocation249_spill] sm:$0xff] %v9365_v5  ;;  %v1977_v6 = vrot.slane %v9299_v59, 7  ;;  %v2234_v19 = vrot.slane %v9299_v59, 1  ;;  %v9388_v5 = vld [vmem:[%s13957_s5 + $0x78] sm:$0xff]  ;;  %v15094_v21 = vrot.slane %v9163_v53, 7  ;;  %v9426_v8 = vsel %vm2236_vm5, %v2232_v47, %v2233_v23 }
 0x1fa   : > { %v9349_v11 = vsel %vm1979_vm4, %v15075_v57, %v15074_v26  ;;  %v9355_v48 = vsel %vm1979_vm4, %v1978_v25, %v15077_v29  ;;  %v15081_v57 = vrot.slane %v8685_v32, 1  ;;  %v15083_v29 = vrot.slane %v8908_v4, 1  ;;  %1816 = vperm.xlu1 %6582, %v9388_v5   ;;  %15098 = vst [vmem:[#allocation256_spill] sm:$0xff] %v9426_v8 }
 0x1fb   : > { %15076 = vst [vmem:[#allocation247_spill] sm:$0xff] %v9349_v11  ;;  %v15085_v11 = vld [vmem:[#allocation134_spill] sm:$0xff]  ;;  %v9413_v62 = vsel %vm1979_vm4, %v15094_v21, %v1975_v61  ;;  %v15101_v21 = vld [vmem:[#allocation189_spill] sm:$0xff]  ;;  %v15107_v8 = vrot.slane %v9200_v40, 6  ;;  %v15170_v16 = vrot.slane %v8887_v45, 2 }
 0x1fc   : > { %v9371_v26 = vsel %vm2236_vm5, %v2235_v9, %v15081_v57  ;;  %v9377_v55 = vsel %vm2236_vm5, %v2217_v13, %v15083_v29  ;;  %v9381_v52 = vadd.f32 %v15086_v33, %v15085_v11  ;;  %v9391_v57 = vpop.permute.xlu1 %2274  ;;  %v2221_v13 = vrot.slane %v8887_v45, 1  ;;  %v15089_v29 = vld [vmem:[#allocation177_spill] sm:$0xff]  ;;  %15095 = vst [vmem:[#allocation255_spill] sm:$0xff] %v9413_v62 }
 0x1fd   : > { %15082 = vst [vmem:[#allocation250_spill] sm:$0xff] %v9371_v26  ;;  %15084 = vst [vmem:[#allocation251_spill] sm:$0xff] %v9377_v55  ;;  %v9395_v55 = vadd.f32 %v15089_v29, %v2497_v12  ;;  %v15091_v11 = vrot.slane %v9200_v40, 6  ;;  %v15092_v26 = vrot.slane %v9163_v53, 6  ;;  %v15096_v12 = vld [vmem:[#allocation188_spill] sm:$0xff] }
 0x1fe   : > { %15087 = vst [vmem:[#allocation134_spill] sm:$0xff] %v9381_v52  ;;  %15088 = vst [vmem:[#allocation252_spill] sm:$0xff] %v9391_v57  ;;  %v9416_v29 = vadd.f32 %v15096_v12, %v1754_v14  ;;  %v9437_v14 = vsel %vm1722_vm3, %v1718_v24, %v1719_v49  ;;  %v15103_v12 = vrot.slane %v9200_v40, 2  ;;  %v9459_v49 = vsel %vm1979_vm4, %v1977_v6, %v1978_v25 }
 0x1ff   : > { %15090 = vst [vmem:[#allocation253_spill] sm:$0xff] %v9395_v55  ;;  %v9401_v33 = vsel %vm1722_vm3, %v1716_v3, %v15091_v11  ;;  %v9407_v52 = vsel %vm1722_vm3, %v15092_v26, %v1716_v3  ;;  %v15097_v55 = vrot.slane %v9200_v40, 7  ;;  %v9428_v3 = vpop.permute.xlu0 %2029  ;;  %v2491_v26 = vrot.slane %v9299_v59, 2  ;;  %15108 = vst [vmem:[#allocation260_spill] sm:$0xff] %v9459_v49 }
 0x200   : > { %15093 = vst [vmem:[#allocation254_spill] sm:$0xff] %v9407_v52  ;;  %15099 = vst [vmem:[#allocation257_spill] sm:$0xff] %v9428_v3  ;;  %v15100_v52 = vld [vmem:[#allocation142_spill] sm:$0xff]  ;;  %v9479_v25 = vsel %vm2236_vm5, %v2234_v19, %v2235_v9  ;;  %v2467_v9 = vrot.slane %v8729_v7, 2 }
 0x201   : > { %v9422_v11 = vsel %vm1979_vm4, %v1975_v61, %v15097_v55  ;;  %v9433_v62 = vadd.f32 %v15101_v21, %v15100_v52  ;;  %v9443_v55 = vsel %vm2493_vm2, %v2489_v10, %v15103_v12  ;;  %v15105_v61 = vrot.slane %v9163_v53, 1  ;;  %15115 = vst [vmem:[#allocation262_spill] sm:$0xff] %v9479_v25 }
 0x202   : > { %15104 = vst [vmem:[#allocation258_spill] sm:$0xff] %v9443_v55  ;;  %v9455_v52 = vsel %vm1722_vm3, %v15107_v8, %v1718_v24  ;;  %v9463_v10 = vsel %vm2236_vm5, %v2233_v23, %v2234_v19  ;;  %v15110_v12 = vmov 5   ;;  %v2466_v21 = vrot.slane %v8636_v58, 2  ;;  %v9482_v23 = vpop.permute.xlu1 %2639  ;;  %v15126_v19 = vld [vmem:[#allocation196_spill] sm:$0xff]  ;;  %v15190_v58 = vld [vmem:[#allocation218_spill] sm:$0xff] }
 0x203   : > { %15102 = vst [vmem:[#allocation142_spill] sm:$0xff] %v9433_v62  ;;  %v9449_v3 = vsel %vm2236_vm5, %v15105_v61, %v2232_v47  ;;  %15109 = vst [vmem:[#allocation261_spill] sm:$0xff] %v9463_v10  ;;  %6583 = vset.pattern.permute.xlu1 %v15110_v12  ;;  %v15111_v47 = vld [vmem:[#allocation139_spill] sm:$0xff]  ;;  %v15113_v55 = vrot.slane %v9200_v40, 7  ;;  %v15118_v10 = vrot.slane %v9200_v40, 2  ;;  %v15123_v24 = vrot.slane %v8719_v28, 2 }
 0x204   : > { %15106 = vst [vmem:[#allocation259_spill] sm:$0xff] %v9449_v3  ;;  %v15112_v61 = vld [vmem:[#allocation195_spill] sm:$0xff]  ;;  %2065 = vperm.xlu1 %6583, %v8470_v30   ;;  %15116 = vst [vmem:[#allocation263_spill] sm:$0xff] %v9482_v23  ;;  %v9499_v30 = vsel %vm2493_vm2, %v2491_v26, %v2492_v43  ;;  %v15128_v43 = vld [vmem:[#allocation169_spill] sm:$0xff]  ;;  %v14241_v25 = vrot.slane %v9082_v42, 1 }
 0x205   : > { %v9469_v62 = vadd.f32 %v15112_v61, %v15111_v47  ;;  %v9475_v8 = vsel %vm1979_vm4, %v15113_v55, %v1977_v6  ;;  %v9487_v61 = vpop.permute.xlu0 %2041  ;;  %v9493_v6 = vsel %vm2493_vm2, %v15118_v10, %v2491_v26  ;;  %15120 = vst [vmem:[#allocation266_spill] sm:$0xff] %v9499_v30  ;;  %v15121_v55 = vrot.slane %v8958_v20, 1  ;;  %v15129_v26 = vld [vmem:[#allocation203_spill] sm:$0xff]  ;;  %v15132_v3 = vld [vmem:[#allocation204_spill] sm:$0xff] }
 0x206   : > { %15114 = vst [vmem:[#allocation139_spill] sm:$0xff] %v9475_v8  ;;  %15117 = vst [vmem:[#allocation264_spill] sm:$0xff] %v9487_v61  ;;  %v9511_v10 = vsel %vm2493_vm2, %v15123_v24, %v2466_v21  ;;  %v2230_v61 = vrot.slane %v9218_v35, 1  ;;  %v9520_v30 = vadd.f32 %v15129_v26, %v15128_v43  ;;  %v9531_v8 = vpop.permute.xlu1 %2643  ;;  %v15139_v24 = vrot.slane %v8989_v27, 1 }
 0x207   : > { %15119 = vst [vmem:[#allocation265_spill] sm:$0xff] %v9493_v6  ;;  %v9505_v47 = vsel %vm2236_vm5, %v15121_v55, %v2221_v13  ;;  %15124 = vst [vmem:[#allocation268_spill] sm:$0xff] %v9511_v10  ;;  %v15125_v6 = vld [vmem:[#allocation168_spill] sm:$0xff]  ;;  %v2468_v55 = vrot.slane %v8714_v56, 2 }
 0x208   : > { %15122 = vst [vmem:[#allocation267_spill] sm:$0xff] %v9505_v47  ;;  %v9516_v23 = vadd.f32 %v15126_v19, %v15125_v6  ;;  %15130 = vst [vmem:[#allocation169_spill] sm:$0xff] %v9520_v30  ;;  %v15131_v47 = vld [vmem:[#allocation140_spill] sm:$0xff]  ;;  %v15135_v6 = vrot.slane %v8994_v18, 1  ;;  %v2214_v30 = vrot.slane %v8808_v46, 1 }
 0x209   : > { %v9526_v49 = vadd.f32 %v15132_v3, %v15131_v47  ;;  %v15133_v10 = vld [vmem:[#allocation156_spill] sm:$0xff]  ;;  %15134 = vst [vmem:[#allocation140_spill] sm:$0xff] %v9531_v8  ;;  %v9540_v19 = vpop.permute.xlu0 %2045  ;;  %v9544_v47 = vsel %vm2493_vm2, %v2466_v21, %v2467_v9  ;;  %v9563_v21 = vsel %vm2236_vm5, %v14241_v25, %v2230_v61  ;;  %v15168_v8 = vrot.slane %v8813_v34, 2 }
 0x20a   : > { %15127 = vst [vmem:[#allocation168_spill] sm:$0xff] %v9516_v23  ;;  %2069 = vperm.xlu1 %6583, %v15133_v10   ;;  %v9537_v43 = vsel %vm2236_vm5, %v2221_v13, %v15135_v6  ;;  %15137 = vst [vmem:[#allocation269_spill] sm:$0xff] %v9540_v19  ;;  %v15140_v23 = vrot.slane %v9058_v41, 1  ;;  %v9556_v13 = vsel %vm2493_vm2, %v2467_v9, %v2468_v55  ;;  %v2475_v6 = vrot.slane %v8908_v4, 2 }
 0x20b   : > { %15136 = vst [vmem:[#allocation156_spill] sm:$0xff] %v9537_v43  ;;  %15138 = vst [vmem:[#allocation270_spill] sm:$0xff] %v9544_v47  ;;  %v15144_v43 = vrot.slane %v8746_v22, 2  ;;  %v15158_v47 = vld [vmem:[#allocation208_spill] sm:$0xff] }
 0x20c   : > { %v9552_v26 = vsel %vm2236_vm5, %v15140_v23, %v15139_v24  ;;  %15142 = vst [vmem:[#allocation272_spill] sm:$0xff] %v9556_v13  ;;  %15143 = vst [vmem:[#allocation273_spill] sm:$0xff] %v9563_v21  ;;  %v15146_v23 = vrot.slane %v9163_v53, 1  ;;  %v15148_v24 = vrot.slane %v8724_v36, 7  ;;  %v15155_v21 = vrot.slane %v8808_v46, 7 }
 0x20d   : > { %15141 = vst [vmem:[#allocation271_spill] sm:$0xff] %v9552_v26  ;;  %v9569_v3 = vsel %vm2493_vm2, %v2468_v55, %v15144_v43  ;;  %v15149_v26 = vrot.slane %v8746_v22, 7  ;;  %v2213_v43 = vrot.slane %v8724_v36, 1 }
 0x20e   : > { %15145 = vst [vmem:[#allocation274_spill] sm:$0xff] %v9569_v3  ;;  %v9575_v9 = vsel %vm2236_vm5, %v2230_v61, %v15146_v23  ;;  %v2479_v3 = vrot.slane %v8994_v18, 2  ;;  %v15151_v23 = vld [vmem:[#allocation88_spill] sm:$0xff]  ;;  %2073 = vperm.xlu1 %6583, %v9388_v5   ;;  %v9610_v61 = vpop.permute.xlu1 %2033 }
 0x20f   : > { %15147 = vst [vmem:[#allocation275_spill] sm:$0xff] %v9575_v9  ;;  %v9583_v25 = vsel %vm1979_vm4, %v15149_v26, %v15148_v24  ;;  %v15152_v9 = vld [vmem:[#allocation207_spill] sm:$0xff]  ;;  %v15154_v24 = vrot.slane %v8735_v17, 7  ;;  %15160 = vst [vmem:[#allocation278_spill] sm:$0xff] %v9610_v61 }
 0x210   : > { %15150 = vst [vmem:[#allocation276_spill] sm:$0xff] %v9583_v25  ;;  %v9594_v13 = vadd.f32 %v15152_v9, %v15151_v23  ;;  %v15157_v25 = vld [vmem:[#allocation160_spill] sm:$0xff]  ;;  %v9612_v23 = vpop.permute.xlu0 %2053  ;;  %v15162_v9 = vrot.slane %v8773_v60, 2  ;;  %v15167_v61 = vld [vmem:[#allocation211_spill] sm:$0xff] }
 0x211   : > { %v9604_v55 = vsel %vm1979_vm4, %v15155_v21, %v15154_v24  ;;  %v9608_v19 = vadd.f32 %v15158_v47, %v15157_v25  ;;  %15161 = vst [vmem:[#allocation279_spill] sm:$0xff] %v9612_v23  ;;  %v15164_v21 = vrot.slane %v8746_v22, 1  ;;  %v15166_v23 = vld [vmem:[#allocation181_spill] sm:$0xff] }
 0x212   : > { %15153 = vst [vmem:[#allocation88_spill] sm:$0xff] %v9594_v13  ;;  %15156 = vst [vmem:[#allocation277_spill] sm:$0xff] %v9604_v55  ;;  %v9618_v26 = vsel %vm2493_vm2, %v15162_v9, %v2475_v6  ;;  %v1700_v55 = vrot.slane %v8876_v63, 6  ;;  %v9633_v9 = vadd.f32 %v15167_v61, %v15166_v23  ;;  %v15173_v23 = vld [vmem:[#allocation212_spill] sm:$0xff]  ;;  %6584 = vset.pattern.permute.xlu1 %v14640_v51  ;;  %v6922_v24 = vld [vmem:[%s13957_s5 + $0x60] sm:$0xff]  ;;  %v9679_v47 = vpop.permute.xlu1 %2278  ;;  %v15182_v13 = vrot.slane %v9058_v41, 2 }
 0x213   : > { %15159 = vst [vmem:[#allocation160_spill] sm:$0xff] %v9608_v19  ;;  %15163 = vst [vmem:[#allocation280_spill] sm:$0xff] %v9618_v26  ;;  %v9626_v25 = vsel %vm2236_vm5, %v15164_v21, %v2213_v43  ;;  %v9639_v26 = vsel %vm2493_vm2, %v2475_v6, %v15168_v8  ;;  %v9645_v21 = vsel %vm2493_vm2, %v15170_v16, %v2479_v3  ;;  %v15174_v8 = vrot.slane %v8924_v54, 2  ;;  %v15191_v19 = vld [vmem:[#allocation125_spill] sm:$0xff] }
 0x214   : > { %15165 = vst [vmem:[#allocation281_spill] sm:$0xff] %v9626_v25  ;;  %15169 = vst [vmem:[#allocation181_spill] sm:$0xff] %v9639_v26  ;;  %v15172_v25 = vld [vmem:[#allocation180_spill] sm:$0xff]  ;;  %v2482_v16 = vrot.slane %v8989_v27, 2  ;;  %2575 = vperm.xlu1 %6584, %v6922_v24  }
 0x215   : > { %15171 = vst [vmem:[#allocation282_spill] sm:$0xff] %v9645_v21  ;;  %v9652_v61 = vadd.f32 %v15173_v23, %v15172_v25  ;;  %v9659_v6 = vsel %vm2493_vm2, %v2479_v3, %v15174_v8  ;;  %v9667_v25 = vpop.permute.xlu0 %2061  ;;  %v9671_v23 = vsel %vm2236_vm5, %v2213_v43, %v2214_v30  ;;  %v2471_v3 = vrot.slane %v8808_v46, 2  ;;  %v15178_v8 = vld [vmem:[#allocation167_spill] sm:$0xff]  ;;  %15181 = vst [vmem:[#allocation285_spill] sm:$0xff] %v9679_v47 }
 0x216   : > { %15175 = vst [vmem:[#allocation180_spill] sm:$0xff] %v9659_v6  ;;  %15176 = vst [vmem:[#allocation283_spill] sm:$0xff] %v9667_v25  ;;  %v15179_v6 = vld [vmem:[#allocation216_spill] sm:$0xff]  ;;  %v9685_v24 = vsel %vm2493_vm2, %v15182_v13, %v2482_v16  ;;  %v15184_v25 = vrot.slane %v8735_v17, 6  ;;  %v15186_v21 = vrot.slane %v8735_v17, 1 }
 0x217   : > { %15177 = vst [vmem:[#allocation284_spill] sm:$0xff] %v9671_v23  ;;  %v9677_v26 = vadd.f32 %v15179_v6, %v15178_v8  ;;  %15183 = vst [vmem:[#allocation286_spill] sm:$0xff] %v9685_v24  ;;  %v15188_v23 = vrot.slane %v9149_v1, 2  ;;  %v15195_v24 = vrot.slane %v9218_v35, 2 }
 0x218   : > { %v9691_v43 = vsel %vm1722_vm3, %v15184_v25, %v1700_v55  ;;  %v9697_v8 = vsel %vm2236_vm5, %v2214_v30, %v15186_v21  ;;  %v2473_v25 = vrot.slane %v8876_v63, 2  ;;  %v9713_v30 = vadd.f32 %v15191_v19, %v15190_v58  ;;  %6585 = vset.pattern.permute.xlu1 %v14621_v31 }
 0x219   : > { %15180 = vst [vmem:[#allocation167_spill] sm:$0xff] %v9677_v26  ;;  %15185 = vst [vmem:[#allocation287_spill] sm:$0xff] %v9691_v43  ;;  %v9705_v13 = vsel %vm2493_vm2, %v2482_v16, %v15188_v23  ;;  %v15192_v21 = vrot.slane %v8773_v60, 6  ;;  %v2472_v23 = vrot.slane %v8735_v17, 2  ;;  %v9723_v16 = vpop.permute.xlu0 %2101  ;;  %v15196_v43 = vrot.slane %v9082_v42, 2  ;;  %2326 = vperm.xlu1 %6585, %v15133_v10   ;;  %v15333_v17 = vld [vmem:[#allocation262_spill] sm:$0xff] }
 0x21a   : > { %15187 = vst [vmem:[#allocation288_spill] sm:$0xff] %v9697_v8  ;;  %15189 = vst [vmem:[#allocation289_spill] sm:$0xff] %v9705_v13  ;;  %v15198_v19 = vrot.slane %v8724_v36, 2  ;;  %v15207_v13 = vrot.slane %v8876_v63, 7  ;;  %v15212_v63 = vld [vmem:[#allocation117_spill] sm:$0xff] }
 0x21b   : > { %v9719_v6 = vsel %vm1722_vm3, %v1700_v55, %v15192_v21  ;;  %15194 = vst [vmem:[#allocation290_spill] sm:$0xff] %v9723_v16  ;;  %v9731_v58 = vsel %vm2493_vm2, %v15196_v43, %v15195_v24  ;;  %v1960_v21 = vrot.slane %v8773_v60, 7  ;;  %v9746_v8 = vsel %vm2493_vm2, %v2471_v3, %v2472_v23  ;;  %v9761_v16 = vpop.permute.xlu1 %2647 }
 0x21c   : > { %15193 = vst [vmem:[#allocation218_spill] sm:$0xff] %v9719_v6  ;;  %15197 = vst [vmem:[#allocation291_spill] sm:$0xff] %v9731_v58  ;;  %v9737_v55 = vsel %vm2493_vm2, %v15198_v19, %v2471_v3  ;;  %v1961_v6 = vrot.slane %v8908_v4, 7  ;;  %v15201_v24 = vrot.slane %v8813_v34, 6  ;;  %v15202_v43 = vrot.slane %v8908_v4, 6 }
 0x21d   : > { %15199 = vst [vmem:[#allocation292_spill] sm:$0xff] %v9737_v55  ;;  %15200 = vst [vmem:[#allocation293_spill] sm:$0xff] %v9746_v8  ;;  %v1962_v58 = vrot.slane %v8813_v34, 7  ;;  %v15204_v55 = vld [vmem:[#allocation158_spill] sm:$0xff]  ;;  %v9765_v3 = vsel %vm2493_vm2, %v2472_v23, %v2473_v25  ;;  %v9771_v8 = vsel %vm1979_vm4, %v15207_v13, %v1960_v21  ;;  %2330 = vperm.xlu1 %6585, %v9388_v5  }
 0x21e   : > { %v9754_v19 = vsel %vm1722_vm3, %v15202_v43, %v15201_v24  ;;  %v9759_v10 = vadd.f32 %v15204_v55, %v9334_v44  ;;  %15205 = vst [vmem:[#allocation295_spill] sm:$0xff] %v9761_v16  ;;  %15206 = vst [vmem:[#allocation296_spill] sm:$0xff] %v9765_v3  ;;  %v1963_v24 = vrot.slane %v8958_v20, 7  ;;  %v2140_v44 = vadd.f32 %v9293_v39, %v9355_v48  ;;  %v15211_v3 = vld [vmem:[#allocation220_spill] sm:$0xff] }
 0x21f   : > { %15203 = vst [vmem:[#allocation294_spill] sm:$0xff] %v9754_v19  ;;  %15208 = vst [vmem:[#allocation297_spill] sm:$0xff] %v9771_v8  ;;  %v15209_v55 = vrot.slane %v8773_v60, 2  ;;  %v2219_v19 = vrot.slane %v8813_v34, 1  ;;  %v9787_v13 = vadd.f32 %v15212_v63, %v15211_v3  ;;  %v9789_v8 = vpop.permute.xlu0 %2113  ;;  %v9793_v43 = vsel %vm1979_vm4, %v1960_v21, %v1961_v6  ;;  %v9825_v36 = vpop.permute.xlu1 %2651 }
 0x220   : > { %15213 = vst [vmem:[#allocation220_spill] sm:$0xff] %v9789_v8  ;;  %15214 = vst [vmem:[#allocation299_spill] sm:$0xff] %v9793_v43  ;;  %v9797_v48 = vsel %vm1979_vm4, %v1961_v6, %v1962_v58  ;;  %v2477_v60 = vrot.slane %v8958_v20, 2  ;;  %v15218_v3 = vrot.slane %v8908_v4, 1  ;;  %v15220_v21 = vrot.slane %v8958_v20, 1  ;;  %v15338_v8 = vld [vmem:[#allocation192_spill] sm:$0xff] }
 0x221   : > { %v9782_v23 = vsel %vm2493_vm2, %v2473_v25, %v15209_v55  ;;  %15215 = vst [vmem:[#allocation300_spill] sm:$0xff] %v9797_v48  ;;  %v15216_v25 = vld [vmem:[#allocation82_spill] sm:$0xff]  ;;  %v15222_v6 = vrot.slane %v8887_v45, 6  ;;  %v15223_v48 = vrot.slane %v8958_v20, 6  ;;  %15225 = vst [vmem:[#allocation303_spill] sm:$0xff] %v9825_v36 }
 0x222   : > { %15210 = vst [vmem:[#allocation298_spill] sm:$0xff] %v9782_v23  ;;  %v15217_v55 = vld [vmem:[#allocation174_spill] sm:$0xff]  ;;  %v9807_v63 = vsel %vm2236_vm5, %v15218_v3, %v2219_v19  ;;  %v9813_v43 = vsel %vm2236_vm5, %v2219_v19, %v15220_v21  ;;  %v9829_v3 = vsel %vm1979_vm4, %v1962_v58, %v1963_v24  ;;  %v15227_v19 = vrot.slane %v8924_v54, 6 }
 0x223   : > { %v2141_v23 = vadd.f32 %v15217_v55, %v15216_v25  ;;  %15219 = vst [vmem:[#allocation82_spill] sm:$0xff] %v9807_v63  ;;  %15221 = vst [vmem:[#allocation301_spill] sm:$0xff] %v9813_v43  ;;  %v9821_v25 = vsel %vm1722_vm3, %v15223_v48, %v15222_v6  ;;  %v15228_v21 = vrot.slane %v8994_v18, 6  ;;  %v1965_v48 = vrot.slane %v8994_v18, 7 }
 0x224   : > { %15224 = vst [vmem:[#allocation302_spill] sm:$0xff] %v9821_v25  ;;  %15226 = vst [vmem:[#allocation304_spill] sm:$0xff] %v9829_v3  ;;  %v15230_v6 = vmax.f32 %v8685_v32, %v9416_v29  ;;  %v2397_v25 = vadd.f32 %v9305_v37, %v9028_v0  ;;  %v2398_v58 = vadd.f32 %v9391_v57, %v9042_v38  ;;  %v1964_v3 = vrot.slane %v8887_v45, 7 }
 0x225   : > { %v9837_v43 = vsel %vm1722_vm3, %v15228_v21, %v15227_v19  ;;  %v15231_v19 = vld [vmem:[#allocation133_spill] sm:$0xff]  ;;  %v1966_v0 = vrot.slane %v8924_v54, 7  ;;  %v15234_v38 = vmax.f32 %v8687_v50, %v9526_v49  ;;  %v15238_v63 = vrot.slane %v8887_v45, 2 }
 0x226   : > { %15229 = vst [vmem:[#allocation305_spill] sm:$0xff] %v9837_v43  ;;  %v2172_v26 = vmax.f32 %v15230_v6, %v2140_v44  ;;  %v9852_v21 = vadd.f32 %v15231_v19, %v9401_v33  ;;  %v15232_v43 = vrot.slane %v8813_v34, 2  ;;  %v15235_v44 = vmov 4   ;;  %v9865_v6 = vpop.permute.xlu0 %2378  ;;  %v15241_v34 = vld [vmem:[#allocation132_spill] sm:$0xff]  ;;  %v15242_v49 = vld [vmem:[#allocation209_spill] sm:$0xff] }
 0x227   : > { %v2173_v29 = vmax.f32 %v15234_v38, %v2141_v23  ;;  %6586 = vset.pattern.permute.xlu1 %v15235_v44  ;;  %15236 = vst [vmem:[#allocation307_spill] sm:$0xff] %v9865_v6  ;;  %v9869_v33 = vsel %vm1979_vm4, %v1963_v24, %v1964_v3  ;;  %v2223_v19 = vrot.slane %v8924_v54, 1  ;;  %v9881_v23 = vpop.permute.xlu1 %2531  ;;  %v9885_v38 = vsel %vm1979_vm4, %v1964_v3, %v1965_v48 }
 0x228   : > { %v9858_v32 = vsel %vm2493_vm2, %v15232_v43, %v2477_v60  ;;  %15237 = vst [vmem:[#allocation308_spill] sm:$0xff] %v9869_v33  ;;  %v9875_v43 = vsel %vm2493_vm2, %v2477_v60, %v15238_v63  ;;  %1824 = vperm.xlu1 %6586, %v15242_v49   ;;  %15244 = vst [vmem:[#allocation209_spill] sm:$0xff] %v9885_v38  ;;  %v15245_v24 = vrot.slane %v8989_v27, 6  ;;  %v15246_v33 = vrot.slane %v9058_v41, 6  ;;  %v15250_v38 = vld [vmem:[#allocation77_spill] sm:$0xff] }
 0x229   : > { %15233 = vst [vmem:[#allocation306_spill] sm:$0xff] %v9858_v32  ;;  %15239 = vst [vmem:[#allocation309_spill] sm:$0xff] %v9875_v43  ;;  %v15240_v32 = vld [vmem:[#allocation254_spill] sm:$0xff]  ;;  %v1967_v63 = vrot.slane %v9058_v41, 7  ;;  %v2429_v43 = vmax.f32 %v2172_v26, %v2397_v25  ;;  %v9900_v45 = vsel %vm1979_vm4, %v1965_v48, %v1966_v0  ;;  %v1944_v3 = vmax.f32 %v9200_v40, %v9852_v21 }
 0x22a   : > { %v1911_v50 = vadd.f32 %v15241_v34, %v15240_v32  ;;  %15243 = vst [vmem:[#allocation254_spill] sm:$0xff] %v9881_v23  ;;  %v9893_v60 = vsel %vm1722_vm3, %v15246_v33, %v15245_v24  ;;  %v2430_v32 = vmax.f32 %v2173_v29, %v2398_v58  ;;  %v15248_v34 = vld [vmem:[#allocation233_spill] sm:$0xff]  ;;  %v9906_v57 = vadd.f32 %v15250_v38, %v9437_v14  ;;  %v15253_v25 = vld [vmem:[#allocation198_spill] sm:$0xff]  ;;  %v9917_v29 = vpop.permute.xlu0 %2394 }
 0x22b   : > { %15247 = vst [vmem:[#allocation310_spill] sm:$0xff] %v9893_v60  ;;  %v2655_v49 = vadd.f32 %v9881_v23, %v15248_v34  ;;  %15249 = vst [vmem:[#allocation233_spill] sm:$0xff] %v9900_v45  ;;  %v15251_v33 = vrot.slane %v8994_v18, 1  ;;  %v1712_v58 = vrot.slane %v15253_v25, 6  ;;  %v15255_v48 = vrot.slane %v9058_v41, 1  ;;  %v15262_v60 = vld [vmem:[#allocation131_spill] sm:$0xff] }
 0x22c   : > { %15254 = vst [vmem:[#allocation312_spill] sm:$0xff] %v9917_v29  ;;  %v15257_v14 = vrot.slane %v9058_v41, 2  ;;  %v15258_v21 = vrot.slane %v8924_v54, 2  ;;  %6587 = vset.pattern.permute.xlu1 %v15110_v12  ;;  %v15274_v45 = vld [vmem:[#allocation163_spill] sm:$0xff]  ;;  %v15381_v41 = vld [vmem:[#allocation38_spill] sm:$0xff] }
 0x22d   : > { %v9912_v26 = vsel %vm2236_vm5, %v15251_v33, %v2223_v19  ;;  %v9915_v34 = vmax.f32 %v2430_v32, %v2655_v49  ;;  %v9923_v40 = vsel %vm2236_vm5, %v2223_v19, %v15255_v48  ;;  %v15260_v33 = vld [vmem:[#allocation202_spill] sm:$0xff]  ;;  %v15261_v32 = vld [vmem:[#allocation213_spill] sm:$0xff]  ;;  %v9942_v19 = vsel %vm1979_vm4, %v1966_v0, %v1967_v63 }
 0x22e   : > { %15252 = vst [vmem:[#allocation311_spill] sm:$0xff] %v9912_v26  ;;  %15256 = vst [vmem:[#allocation313_spill] sm:$0xff] %v9923_v40  ;;  %v9931_v24 = vsel %vm2493_vm2, %v15258_v21, %v15257_v14  ;;  %v1711_v38 = vrot.slane %v15260_v33, 6  ;;  %v1943_v49 = vmax.f32 %v15261_v32, %v1911_v50  ;;  %v9937_v26 = vadd.f32 %v15262_v60, %v9455_v52  ;;  %v15264_v40 = vld [vmem:[#allocation134_spill] sm:$0xff]  ;;  %v9951_v14 = vld [vmem:[%s13957_s5 + $0x80] sm:$0xff]  ;;  %v9954_v52 = vpop.permute.xlu1 %2037  ;;  %v9986_v37 = vpop.permute.xlu0 %2282 }
 0x22f   : > { %15259 = vst [vmem:[#allocation314_spill] sm:$0xff] %v9931_v24  ;;  %15263 = vst [vmem:[#allocation213_spill] sm:$0xff] %v9942_v19  ;;  %v1713_v48 = vrot.slane %v9082_v42, 6  ;;  %v9946_v54 = vmax.f32 %v2429_v43, %v15264_v40  ;;  %2077 = vperm.xlu1 %6587, %v9951_v14   ;;  %v15266_v50 = vrot.slane %v9149_v1, 6  ;;  %v15268_v21 = vrot.slane %v8989_v27, 7  ;;  %v15270_v32 = vld [vmem:[#allocation205_spill] sm:$0xff] }
 0x230   : > { %15265 = vst [vmem:[#allocation134_spill] sm:$0xff] %v9954_v52  ;;  %v1970_v40 = vrot.slane %v15260_v33, 7  ;;  %v1946_v60 = vmax.f32 %v15270_v32, %v9906_v57  ;;  %v9973_v24 = vsel %vm1722_vm3, %v1711_v38, %v1712_v58  ;;  %v15279_v32 = vrot.slane %v9149_v1, 7 }
 0x231   : > { %v9960_v0 = vsel %vm1722_vm3, %v15266_v50, %v1711_v38  ;;  %v9966_v43 = vsel %vm1979_vm4, %v1967_v63, %v15268_v21  ;;  %15271 = vst [vmem:[#allocation205_spill] sm:$0xff] %v9973_v24  ;;  %v9977_v19 = vsel %vm1722_vm3, %v1712_v58, %v1713_v48  ;;  %v2226_v50 = vrot.slane %v9149_v1, 1  ;;  %v15275_v63 = vld [vmem:[#allocation221_spill] sm:$0xff]  ;;  %v15276_v21 = vld [vmem:[#allocation143_spill] sm:$0xff] }
 0x232   : > { %15267 = vst [vmem:[#allocation315_spill] sm:$0xff] %v9960_v0  ;;  %15269 = vst [vmem:[#allocation316_spill] sm:$0xff] %v9966_v43  ;;  %v15273_v0 = vld [vmem:[#allocation255_spill] sm:$0xff]  ;;  %v9984_v43 = vadd.f32 %v15276_v21, %v15275_v63  ;;  %v2718_v57 = vpack.c.bf16 %v9915_v34, %v9946_v54  ;;  %v2228_v38 = vrot.slane %v15253_v25, 1  ;;  %v1945_v58 = vmax.f32 %v9299_v59, %v9937_v26  ;;  %v15288_v21 = vld [vmem:[#allocation153_spill] sm:$0xff] }
 0x233   : > { %15272 = vst [vmem:[#allocation317_spill] sm:$0xff] %v9977_v19  ;;  %v2168_v23 = vadd.f32 %v15274_v45, %v15273_v0  ;;  %15278 = vst [vmem:[#allocation221_spill] sm:$0xff] %v9986_v37  ;;  %v9997_v24 = vsel %vm1979_vm4, %v15279_v32, %v1970_v40  ;;  %v2227_v0 = vrot.slane %v15260_v33, 1  ;;  %v2485_v63 = vrot.slane %v15253_v25, 2  ;;  %6588 = vset.pattern.permute.xlu1 %v14640_v51 }
 0x234   : > { %15277 = vst [vmem:[#allocation255_spill] sm:$0xff] %v9984_v43  ;;  %15280 = vst [vmem:[#allocation318_spill] sm:$0xff] %v9997_v24  ;;  %6260 = vmatprep.mubr.msk.bf16.mxu0 %vm2751_vm1, %v2718_v57  ;;  %v15281_v45 = vrot.slane %v9218_v35, 6  ;;  %v15283_v59 = vrot.slane %v15253_v25, 7  ;;  %v15285_v32 = vrot.slane %v9218_v35, 7  ;;  %v15286_v24 = vrot.slane %v9082_v42, 7  ;;  %2587 = vperm.xlu1 %6588, %v9388_v5  }
 0x235   : > { %v2169_v55 = vadd.f32 %v15288_v21, %v9422_v11  ;;  %v15293_v21 = vld [vmem:[#allocation183_spill] sm:$0xff]  ;;  %v15294_v5 = vld [vmem:[#allocation178_spill] sm:$0xff] }
 0x236   : > { %v10007_v19 = vsel %vm1722_vm3, %v1713_v48, %v15281_v45  ;;  %v10013_v26 = vsel %vm1979_vm4, %v1970_v40, %v15283_v59  ;;  %v10021_v57 = vsel %vm1979_vm4, %v15286_v24, %v15285_v32  ;;  %v10026_v45 = vpop.permute.xlu1 %2286  ;;  %v15290_v48 = vrot.slane %v8989_v27, 1  ;;  %v15299_v25 = vld [vmem:[#allocation235_spill] sm:$0xff] }
 0x237   : > { %15282 = vst [vmem:[#allocation319_spill] sm:$0xff] %v10007_v19  ;;  %15284 = vst [vmem:[#allocation320_spill] sm:$0xff] %v10013_v26  ;;  %v10036_v59 = vsel %vm2236_vm5, %v2226_v50, %v2227_v0  ;;  %v2484_v24 = vrot.slane %v15260_v33, 2  ;;  %v2200_v32 = vmax.f32 %v1943_v49, %v2168_v23  ;;  %v10045_v19 = vpop.permute.xlu0 %2298  ;;  %v15298_v26 = vld [vmem:[#allocation247_spill] sm:$0xff]  ;;  %v15302_v49 = vrot.slane %v9149_v1, 2 }
 0x238   : > { %15287 = vst [vmem:[#allocation321_spill] sm:$0xff] %v10021_v57  ;;  %15289 = vst [vmem:[#allocation322_spill] sm:$0xff] %v10026_v45  ;;  %v10032_v40 = vsel %vm2236_vm5, %v15290_v48, %v2226_v50  ;;  %v10043_v57 = vadd.f32 %v15294_v5, %v15293_v21  ;;  %v10049_v48 = vsel %vm2236_vm5, %v2227_v0, %v2228_v38  ;;  %v15305_v0 = vld [vmem:[#allocation139_spill] sm:$0xff]  ;;  %v15309_v27 = vrot.slane %v9082_v42, 2 }
 0x239   : > { %15291 = vst [vmem:[#allocation323_spill] sm:$0xff] %v10032_v40  ;;  %15292 = vst [vmem:[#allocation324_spill] sm:$0xff] %v10036_v59  ;;  %v2167_v50 = vadd.f32 %v15299_v25, %v15298_v26  ;;  %v15300_v59 = vrot.slane %v9082_v42, 1  ;;  %v10063_v21 = vsel %vm2493_vm2, %v15302_v49, %v2484_v24  ;;  %v10067_v11 = vsel %vm2493_vm2, %v2484_v24, %v2485_v63  ;;  %v15307_v26 = vld [vmem:[#allocation179_spill] sm:$0xff]  ;;  %v15308_v25 = vld [vmem:[#allocation248_spill] sm:$0xff] }
 0x23a   : > { %15295 = vst [vmem:[#allocation183_spill] sm:$0xff] %v10043_v57  ;;  %15296 = vst [vmem:[#allocation325_spill] sm:$0xff] %v10045_v19  ;;  %v2142_v40 = vadd.f32 %v15308_v25, %v15307_v26  ;;  %v15312_v49 = vrot.slane %v9218_v35, 2  ;;  %v15317_v26 = vld [vmem:[#allocation238_spill] sm:$0xff]  ;;  %v15318_v42 = vld [vmem:[#allocation259_spill] sm:$0xff]  ;;  %6589 = vset.pattern.permute.xlu1 %v15235_v44 }
 0x23b   : > { %15297 = vst [vmem:[#allocation326_spill] sm:$0xff] %v10049_v48  ;;  %v10057_v23 = vsel %vm2236_vm5, %v2228_v38, %v15300_v59  ;;  %15303 = vst [vmem:[#allocation327_spill] sm:$0xff] %v10063_v21  ;;  %v15306_v48 = vld [vmem:[#allocation214_spill] sm:$0xff]  ;;  %v10077_v38 = vsel %vm2493_vm2, %v2485_v63, %v15309_v27  ;;  %v15311_v59 = vrot.slane %v9163_v53, 2  ;;  %v15314_v21 = vld [vmem:[#allocation260_spill] sm:$0xff]  ;;  %v2424_v43 = vadd.f32 %v9865_v6, %v15318_v42  ;;  %v10094_v27 = vpop.permute.xlu1 %2290  ;;  %v10112_v6 = vpop.permute.xlu0 %2314 }
 0x23c   : > { %15301 = vst [vmem:[#allocation247_spill] sm:$0xff] %v10057_v23  ;;  %15304 = vst [vmem:[#allocation328_spill] sm:$0xff] %v10067_v11  ;;  %v2170_v33 = vadd.f32 %v15306_v48, %v15305_v0  ;;  %v2201_v11 = vmax.f32 %v1944_v3, %v2169_v55  ;;  %v15315_v0 = vld [vmem:[#allocation190_spill] sm:$0xff]  ;;  %v15323_v55 = vld [vmem:[#allocation256_spill] sm:$0xff] }
 0x23d   : > { %15310 = vst [vmem:[#allocation139_spill] sm:$0xff] %v10077_v38  ;;  %v10085_v24 = vsel %vm2493_vm2, %v15312_v49, %v15311_v59  ;;  %v2171_v48 = vadd.f32 %v15315_v0, %v15314_v21  ;;  %v15316_v23 = vld [vmem:[#allocation222_spill] sm:$0xff]  ;;  %15319 = vst [vmem:[#allocation260_spill] sm:$0xff] %v10094_v27  ;;  %v15320_v38 = vld [vmem:[#allocation185_spill] sm:$0xff] }
 0x23e   : > { %15313 = vst [vmem:[#allocation179_spill] sm:$0xff] %v10085_v24  ;;  %v2143_v5 = vadd.f32 %v15317_v26, %v15316_v23  ;;  %v15321_v59 = vld [vmem:[#allocation219_spill] sm:$0xff]  ;;  %v15325_v0 = vld [vmem:[#allocation197_spill] sm:$0xff]  ;;  %v10109_v42 = vld [vmem:[%s13957_s5 + $0x98] sm:$0xff]  ;;  %v2202_v4 = vmax.f32 %v1945_v58, %v2170_v33 }
 0x23f   : > { %v10100_v49 = vadd.f32 %v15321_v59, %v15320_v38  ;;  %v15324_v3 = vld [vmem:[#allocation187_spill] sm:$0xff]  ;;  %v2399_v23 = vadd.f32 %v9679_v47, %v15325_v0  ;;  %1832 = vperm.xlu1 %6589, %v10109_v42   ;;  %15326 = vst [vmem:[#allocation259_spill] sm:$0xff] %v10112_v6  ;;  %v15327_v63 = vld [vmem:[#allocation230_spill] sm:$0xff]  ;;  %v15328_v24 = vld [vmem:[#allocation201_spill] sm:$0xff]  ;;  %v15330_v38 = vmax.f32 %v9163_v53, %v9759_v10 }
 0x240   : > { %v2425_v21 = vadd.f32 %v15324_v3, %v15323_v55  ;;  %v10116_v35 = vadd.f32 %v15328_v24, %v15327_v63  ;;  %v15331_v3 = vld [vmem:[#allocation250_spill] sm:$0xff]  ;;  %v15332_v59 = vld [vmem:[#allocation236_spill] sm:$0xff]  ;;  %v15335_v6 = vmax.f32 %v8689_v15, %v9469_v62  ;;  %v15337_v24 = vld [vmem:[#allocation263_spill] sm:$0xff] }
 0x241   : > { %15322 = vst [vmem:[#allocation222_spill] sm:$0xff] %v10100_v49  ;;  %v2199_v55 = vmax.f32 %v15330_v38, %v2167_v50  ;;  %v2428_v0 = vadd.f32 %v9917_v29, %v15331_v3  ;;  %v2400_v57 = vadd.f32 %v9986_v37, %v15332_v59  ;;  %v15334_v47 = vld [vmem:[#allocation242_spill] sm:$0xff]  ;;  %v15339_v53 = vld [vmem:[#allocation147_spill] sm:$0xff]  ;;  %v2203_v3 = vmax.f32 %v1946_v60, %v2171_v48  ;;  %v15342_v29 = vld [vmem:[#allocation169_spill] sm:$0xff] }
 0x242   : > { %15329 = vst [vmem:[#allocation185_spill] sm:$0xff] %v10116_v35  ;;  %v2427_v26 = vadd.f32 %v15334_v47, %v15333_v17  ;;  %v2174_v25 = vmax.f32 %v15335_v6, %v2142_v40  ;;  %v15336_v63 = vld [vmem:[#allocation258_spill] sm:$0xff]  ;;  %v10134_v10 = vadd.f32 %v15339_v53, %v15338_v8  ;;  %v2457_v58 = vmax.f32 %v2200_v32, %v2425_v21  ;;  %v15344_v37 = vld [vmem:[#allocation240_spill] sm:$0xff]  ;;  %v15345_v17 = vld [vmem:[#allocation227_spill] sm:$0xff]  ;;  %v10146_v40 = vpop.permute.xlu1 %2539  ;;  %v10148_v8 = vpop.permute.xlu0 %2318 }
 0x243   : > { %v2682_v39 = vadd.f32 %v15337_v24, %v15336_v63  ;;  %v2456_v50 = vmax.f32 %v2199_v55, %v2424_v43  ;;  %v15341_v38 = vld [vmem:[#allocation122_spill] sm:$0xff]  ;;  %v10141_v47 = vadd.f32 %v15345_v17, %v15344_v37  ;;  %6590 = vset.pattern.permute.xlu1 %v15110_v12  ;;  %15347 = vst [vmem:[#allocation197_spill] sm:$0xff] %v10146_v40  ;;  %15348 = vst [vmem:[#allocation230_spill] sm:$0xff] %v10148_v8  ;;  %v15349_v60 = vld [vmem:[#allocation261_spill] sm:$0xff] }
 0x244   : > { %15340 = vst [vmem:[#allocation256_spill] sm:$0xff] %v10134_v10  ;;  %v15343_v59 = vmax.f32 %v15341_v38, %v15342_v29  ;;  %v2431_v15 = vmax.f32 %v2174_v25, %v2399_v23  ;;  %v15346_v62 = vld [vmem:[#allocation266_spill] sm:$0xff]  ;;  %v15350_v43 = vld [vmem:[#allocation231_spill] sm:$0xff]  ;;  %v2460_v29 = vmax.f32 %v2203_v3, %v2428_v0  ;;  %v15351_v32 = vld [vmem:[#allocation244_spill] sm:$0xff]  ;;  %v2459_v55 = vmax.f32 %v2202_v4, %v2427_v26 }
 0x245   : > { %v2684_v6 = vadd.f32 %v9761_v16, %v15346_v62  ;;  %v2426_v48 = vadd.f32 %v15350_v43, %v15349_v60  ;;  %v2657_v21 = vadd.f32 %v10146_v40, %v15351_v32  ;;  %v6925_v37 = vld [vmem:[%s13957_s5 + $0x88] sm:$0xff]  ;;  %v10161_v63 = vmax.f32 %v2457_v58, %v2682_v39  ;;  %v15353_v38 = vld [vmem:[#allocation265_spill] sm:$0xff]  ;;  %v15354_v0 = vld [vmem:[#allocation140_spill] sm:$0xff] }
 0x246   : > { %v2175_v33 = vmax.f32 %v15343_v59, %v2143_v5  ;;  %2081 = vperm.xlu1 %6590, %v6925_v37   ;;  %v15355_v3 = vld [vmem:[#allocation249_spill] sm:$0xff]  ;;  %v15358_v37 = vld [vmem:[#allocation223_spill] sm:$0xff]  ;;  %v15360_v4 = vld [vmem:[#allocation142_spill] sm:$0xff]  ;;  %v10181_v58 = vpop.permute.xlu0 %2322  ;;  %v10190_v16 = vpop.permute.xlu1 %2294 }
 0x247   : > { %15352 = vst [vmem:[#allocation250_spill] sm:$0xff] %v10161_v63  ;;  %v2685_v59 = vadd.f32 %v9825_v36, %v15355_v3  ;;  %v15359_v25 = vld [vmem:[#allocation257_spill] sm:$0xff]  ;;  %v10177_v39 = vmax.f32 %v2431_v15, %v15360_v4  ;;  %v10179_v26 = vmax.f32 %v2459_v55, %v2684_v6  ;;  %15362 = vst [vmem:[#allocation258_spill] sm:$0xff] %v10181_v58  ;;  %v15363_v3 = vld [vmem:[#allocation224_spill] sm:$0xff] }
 0x248   : > { %v2432_v5 = vmax.f32 %v2175_v33, %v2400_v57  ;;  %v2683_v57 = vadd.f32 %v15354_v0, %v15353_v38  ;;  %v15356_v33 = vld [vmem:[#allocation253_spill] sm:$0xff]  ;;  %v2144_v23 = vadd.f32 %v15359_v25, %v15358_v37  ;;  %15367 = vst [vmem:[#allocation122_spill] sm:$0xff] %v10190_v16  ;;  %v15368_v37 = vld [vmem:[#allocation39_spill] sm:$0xff]  ;;  %v15369_v6 = vld [vmem:[#allocation102_spill] sm:$0xff] }
 0x249   : > { %v10168_v62 = vmax.f32 %v2456_v50, %v15356_v33  ;;  %15361 = vst [vmem:[#allocation262_spill] sm:$0xff] %v10179_v26  ;;  %v2458_v50 = vmax.f32 %v2201_v11, %v2426_v48  ;;  %v10187_v33 = vmax.f32 %v2460_v29, %v2685_v59  ;;  %v15366_v32 = vld [vmem:[#allocation217_spill] sm:$0xff]  ;;  %v10194_v15 = vadd.f32 %v9946_v54, %v15368_v37  ;;  %v15371_v4 = vld [vmem:[#allocation6_spill] sm:$0xff]  ;;  %v15375_v38 = vld [vmem:[#allocation35_spill] sm:$0xff] }
 0x24a   : > { %v10170_v60 = vmax.f32 %v2432_v5, %v2657_v21  ;;  %v15364_v5 = vld [vmem:[#allocation264_spill] sm:$0xff]  ;;  %2085 = vperm.xlu1 %6590, %v15366_v32   ;;  %v10198_v55 = vadd.f32 %v9946_v54, %v15369_v6  ;;  %v3182_v11 = vadd.f32 %v10161_v63, %v15371_v4  ;;  %v15373_v59 = vld [vmem:[#allocation226_spill] sm:$0xff]  ;;  %v15374_v32 = vld [vmem:[#allocation269_spill] sm:$0xff] }
 0x24b   : > { %15357 = vst [vmem:[#allocation236_spill] sm:$0xff] %v10168_v62  ;;  %v2147_v21 = vadd.f32 %v15364_v5, %v15363_v3  ;;  %15365 = vst [vmem:[#allocation192_spill] sm:$0xff] %v10187_v33  ;;  %v10204_v29 = vmax.f32 %v2458_v50, %v2683_v57  ;;  %v2148_v3 = vadd.f32 %v15374_v32, %v15373_v59  ;;  %v15376_v24 = vld [vmem:[#allocation237_spill] sm:$0xff]  ;;  %v15377_v17 = vld [vmem:[#allocation176_spill] sm:$0xff]  ;;  %v10222_v50 = vpop.permute.xlu0 %2334 }
 0x24c   : > { %15370 = vst [vmem:[#allocation169_spill] sm:$0xff] %v10198_v55  ;;  %v2719_v48 = vpack.c.bf16 %v10170_v60, %v10177_v39  ;;  %v3213_v0 = vadd.f32 %v10168_v62, %v15375_v38  ;;  %v2401_v43 = vadd.f32 %v10026_v45, %v15376_v24  ;;  %v10214_v55 = vadd.f32 %v9946_v54, %v15377_v17  ;;  %v15379_v4 = vld [vmem:[#allocation160_spill] sm:$0xff]  ;;  %v15383_v59 = vld [vmem:[#allocation10_spill] sm:$0xff]  ;;  %v15384_v24 = vld [vmem:[#allocation67_spill] sm:$0xff] }
 0x24d   : > { %15372 = vst [vmem:[#allocation240_spill] sm:$0xff] %v10204_v29  ;;  %v15380_v53 = vmax.f32 %v8719_v28, %v15379_v4  ;;  %v3246_v57 = vadd.f32 %v10179_v26, %v15381_v41  ;;  %15382 = vst [vmem:[#allocation261_spill] sm:$0xff] %v10222_v50  ;;  %v10226_v38 = vadd.f32 %v9946_v54, %v15383_v59  ;;  %v15397_v49 = vld [vmem:[#allocation8_spill] sm:$0xff]  ;;  %v15400_v5 = vld [vmem:[#allocation239_spill] sm:$0xff] }
 0x24e   : > { %15378 = vst [vmem:[#allocation266_spill] sm:$0xff] %v10214_v55  ;;  %6261 = vmatmul.mubr.msk.bf16.vlgmr.msra.gmra.mrb[32].mxu0 %vm2751_vm1, %v2719_v48  ;;  %v10230_v35 = vadd.f32 %v10161_v63, %v15384_v24  ;;  %v15386_v55 = vmax.f32 %v8714_v56, %v9633_v9  ;;  %2089 = vperm.xlu1 %6590, %v10109_v42   ;;  %v15387_v48 = vld [vmem:[#allocation164_spill] sm:$0xff]  ;;  %v10249_v9 = vpop.permute.xlu1 %2543  ;;  %v15419_v37 = vld [vmem:[#allocation70_spill] sm:$0xff]  ;;  %v15467_v17 = vld [vmem:[#allocation203_spill] sm:$0xff] }
 0x24f   : > { %v2176_v10 = vmax.f32 %v15380_v53, %v2144_v23  ;;  %v3245_v53 = vmax.f32 %v10187_v33, %v3213_v0  ;;  %v6926_v23 = vld [vmem:[%s13955_s3] sm:$0xff]   ;;  %v3214_v4 = vmax.f32 %v9946_v54, %v3182_v11  ;;  %v10245_v41 = vadd.f32 %v10161_v63, %v15387_v48  ;;  %v15389_v24 = vld [vmem:[#allocation228_spill] sm:$0xff]  ;;  %15391 = vst [vmem:[#allocation249_spill] sm:$0xff] %v10249_v9 }
 0x250   : > { %15385 = vst [vmem:[#allocation244_spill] sm:$0xff] %v10230_v35  ;;  %v10235_v28 = vmax.f32 %v15386_v55, %v2147_v21  ;;  %6293 = vmatpush3.bf16.msra.mxu0 %v6926_v23  ;;  %v15390_v35 = vld [vmem:[#allocation278_spill] sm:$0xff]  ;;  %v15394_v23 = vld [vmem:[#allocation68_spill] sm:$0xff]  ;;  %v15395_v11 = vmax.f32 %v8746_v22, %v9713_v30 }
 0x251   : > { %15388 = vst [vmem:[#allocation265_spill] sm:$0xff] %v10245_v41  ;;  %v2145_v56 = vadd.f32 %v15390_v35, %v15389_v24  ;;  %v15392_v21 = vld [vmem:[#allocation98_spill] sm:$0xff]  ;;  %v3277_v54 = vadd.f32 %v10204_v29, %v15394_v23  ;;  %v2433_v24 = vmax.f32 %v2176_v10, %v2401_v43  ;;  %v15396_v41 = vld [vmem:[#allocation268_spill] sm:$0xff]  ;;  %v3278_v32 = vmax.f32 %v3214_v4, %v3246_v57  ;;  %v10275_v35 = vpop.permute.xlu0 %2338  ;;  %v15407_v4 = vld [vmem:[#allocation5_spill] sm:$0xff] }
 0x252   : > { %v10253_v0 = vadd.f32 %v10161_v63, %v15392_v21  ;;  %v6927_v55 = vld [vmem:[%s13955_s3 + $0x8] sm:$0xff]   ;;  %v10263_v48 = vmax.f32 %v15395_v11, %v2148_v3  ;;  %v2658_v18 = vadd.f32 %v10249_v9, %v15396_v41  ;;  %v3183_v21 = vadd.f32 %v10204_v29, %v15397_v49  ;;  %15401 = vst [vmem:[#allocation142_spill] sm:$0xff] %v10275_v35  ;;  %v15404_v3 = vld [vmem:[#allocation88_spill] sm:$0xff] }
 0x253   : > { %6294 = vmatprep.subr.bf16.mxu0 %v6927_v55  ;;  %v2402_v23 = vadd.f32 %v10094_v27, %v15400_v5  ;;  %v3309_v22 = vmax.f32 %v3245_v53, %v3277_v54  ;;  %v15402_v30 = vld [vmem:[#allocation234_spill] sm:$0xff]  ;;  %6591 = vset.pattern.permute.xlu1 %v14640_v51  ;;  %v3184_v5 = vadd.f32 %v10179_v26, %v15407_v4  ;;  %v10290_v53 = vpop.permute.xlu1 %2547  ;;  %v15409_v54 = vld [vmem:[#allocation101_spill] sm:$0xff] }
 0x254   : > { %15393 = vst [vmem:[#allocation253_spill] sm:$0xff] %v10253_v0  ;;  %v15398_v0 = vld [vmem:[#allocation155_spill] sm:$0xff]  ;;  %v2146_v10 = vadd.f32 %v9954_v52, %v15402_v30  ;;  %v10279_v43 = vmax.f32 %v2433_v24, %v2658_v18  ;;  %6295 = vmatpush3.bf16.msra.mxu0 %v6927_v55  ;;  %v15403_v41 = vld [vmem:[#allocation138_spill] sm:$0xff]  ;;  %2591 = vperm.xlu1 %6591, %v9951_v14   ;;  %15408 = vst [vmem:[#allocation224_spill] sm:$0xff] %v10290_v53 }
 0x255   : > { %v10271_v20 = vadd.f32 %v10204_v29, %v15398_v0  ;;  %v15405_v11 = vmax.f32 %v15403_v41, %v15404_v3  ;;  %v15406_v0 = vld [vmem:[#allocation69_spill] sm:$0xff]  ;;  %v10294_v18 = vadd.f32 %v10204_v29, %v15409_v54  ;;  %v15413_v41 = vld [vmem:[#allocation172_spill] sm:$0xff]  ;;  %v15416_v9 = vld [vmem:[#allocation270_spill] sm:$0xff] }
 0x256   : > { %v3310_v57 = vadd.f32 %v10177_v39, %v15406_v0  ;;  %v15411_v24 = vld [vmem:[#allocation105_spill] sm:$0xff]  ;;  %v3405_v3 = vadd.f32 %v10170_v60, %v15413_v41  ;;  %v15415_v14 = vld [vmem:[#allocation104_spill] sm:$0xff]  ;;  %v2659_v54 = vadd.f32 %v10290_v53, %v15416_v9  ;;  %v15436_v29 = vld [vmem:[#allocation274_spill] sm:$0xff] }
 0x257   : > { %15399 = vst [vmem:[#allocation223_spill] sm:$0xff] %v10271_v20  ;;  %v2177_v49 = vmax.f32 %v15405_v11, %v2145_v56  ;;  %15410 = vst [vmem:[#allocation217_spill] sm:$0xff] %v10294_v18  ;;  %v3341_v55 = vadd.f32 %v9915_v34, %v15411_v24  ;;  %v15412_v30 = vld [vmem:[#allocation37_spill] sm:$0xff]  ;;  %v15414_v11 = vld [vmem:[#allocation246_spill] sm:$0xff]  ;;  %v3374_v52 = vadd.f32 %v10279_v43, %v15415_v14  ;;  %v10308_v18 = vpop.permute.xlu0 %2350 }
 0x258   : > { %v3247_v56 = vadd.f32 %v10187_v33, %v15412_v30  ;;  %v2403_v4 = vadd.f32 %v10190_v16, %v15414_v11  ;;  %v3342_v20 = vmax.f32 %v3278_v32, %v3310_v57  ;;  %15417 = vst [vmem:[#allocation226_spill] sm:$0xff] %v10308_v18  ;;  %v3215_v24 = vmax.f32 %v9915_v34, %v3183_v21  ;;  %v15420_v57 = vld [vmem:[#allocation206_spill] sm:$0xff]  ;;  %v10324_v21 = vpop.permute.xlu1 %2551 }
 0x259   : > { %v2434_v27 = vmax.f32 %v2177_v49, %v2402_v23  ;;  %v3373_v0 = vmax.f32 %v3309_v22, %v3341_v55  ;;  %v15418_v30 = vmax.f32 %v8729_v7, %v9652_v61  ;;  %v3311_v11 = vadd.f32 %v10170_v60, %v15419_v37  ;;  %6592 = vset.pattern.permute.xlu1 %v14621_v31  ;;  %v15423_v61 = vld [vmem:[#allocation272_spill] sm:$0xff]  ;;  %v15487_v31 = vld [vmem:[#allocation171_spill] sm:$0xff] }
 0x25a   : > { %v3216_v32 = vmax.f32 %v10177_v39, %v3184_v5  ;;  %v2404_v49 = vadd.f32 %v10045_v19, %v15420_v57  ;;  %v10319_v23 = vmax.f32 %v3342_v20, %v3374_v52  ;;  %15421 = vst [vmem:[#allocation237_spill] sm:$0xff] %v10324_v21  ;;  %v3279_v22 = vmax.f32 %v3215_v24, %v3247_v56  ;;  %v6928_v5 = vld [vmem:[%s13957_s5 + $0x90] sm:$0xff]  ;;  %v15424_v20 = vld [vmem:[#allocation229_spill] sm:$0xff]  ;;  %v15457_v37 = vld [vmem:[#allocation12_spill] sm:$0xff] }
 0x25b   : > { %v2178_v41 = vmax.f32 %v15418_v30, %v2146_v10  ;;  %v10321_v9 = vmax.f32 %v2434_v27, %v2659_v54  ;;  %v10326_v55 = vmax.f32 %v3373_v0, %v3405_v3  ;;  %v2660_v10 = vadd.f32 %v10324_v21, %v15423_v61  ;;  %2342 = vperm.xlu1 %6592, %v6928_v5   ;;  %v15425_v52 = vld [vmem:[#allocation279_spill] sm:$0xff]  ;;  %v10339_v0 = vpop.permute.xlu0 %2370 }
 0x25c   : > { %v2150_v27 = vadd.f32 %v15425_v52, %v15424_v20  ;;  %v15426_v54 = vld [vmem:[#allocation7_spill] sm:$0xff]  ;;  %15428 = vst [vmem:[#allocation10_spill] sm:$0xff] %v10339_v0  ;;  %v3343_v56 = vmax.f32 %v3279_v22, %v3311_v11  ;;  %v15430_v20 = vld [vmem:[#allocation241_spill] sm:$0xff]  ;;  %v15431_v52 = vld [vmem:[#allocation290_spill] sm:$0xff]  ;;  %v3280_v14 = vmax.f32 %v3216_v32, %v10194_v15 }
 0x25d   : > { %15422 = vst [vmem:[#allocation160_spill] sm:$0xff] %v10326_v55  ;;  %v2435_v7 = vmax.f32 %v2178_v41, %v2403_v4  ;;  %v3185_v30 = vadd.f32 %v10187_v33, %v15426_v54  ;;  %v15427_v57 = vld [vmem:[#allocation71_spill] sm:$0xff]  ;;  %v2720_v5 = vpack.c.bf16 %v10321_v9, %v10279_v43  ;;  %v2162_v54 = vadd.f32 %v15431_v52, %v15430_v20  ;;  %v15433_v11 = vld [vmem:[#allocation40_spill] sm:$0xff]  ;;  %v15434_v20 = vld [vmem:[#allocation73_spill] sm:$0xff] }
 0x25e   : > { %v3312_v24 = vadd.f32 %v10279_v43, %v15427_v57  ;;  %v15429_v41 = vld [vmem:[#allocation107_spill] sm:$0xff]  ;;  %v10353_v57 = vpop.permute.xlu1 %2555  ;;  %v3438_v4 = vrot.slane %v10319_v23, 6  ;;  %v3249_v22 = vadd.f32 %v9915_v34, %v15433_v11  ;;  %v14312_v63 = vrot.slane %v10326_v55, 6  ;;  %v15435_v15 = vld [vmem:[#allocation109_spill] sm:$0xff] }
 0x25f   : > { %v3375_v3 = vadd.f32 %v10321_v9, %v15429_v41  ;;  %v10345_v61 = vmax.f32 %v2435_v7, %v2660_v10  ;;  %v3217_v19 = vmax.f32 %v10170_v60, %v3185_v30  ;;  %15432 = vst [vmem:[#allocation228_spill] sm:$0xff] %v10353_v57  ;;  %v2436_v7 = vmax.f32 %v10235_v28, %v2404_v49  ;;  %v10370_v21 = vpop.permute.xlu0 %2374 }
 0x260   : > { %6264 = vmatprep.mubr.msk.bf16.mxu0 %vm2751_vm1, %v2720_v5  ;;  %v3313_v30 = vadd.f32 %v10321_v9, %v15434_v20  ;;  %v3344_v52 = vmax.f32 %v3280_v14, %v3312_v24  ;;  %v2661_v41 = vadd.f32 %v10353_v57, %v15436_v29  ;;  %2346 = vperm.xlu1 %6592, %v10109_v42   ;;  %v15442_v20 = vld [vmem:[#allocation11_spill] sm:$0xff] }
 0x261   : > { %v10359_v10 = vmax.f32 %v3343_v56, %v3375_v3  ;;  %v3376_v32 = vadd.f32 %v10345_v61, %v15435_v15  ;;  %15437 = vst [vmem:[#allocation268_spill] sm:$0xff] %v10370_v21  ;;  %v15438_v28 = vmax.f32 %v8808_v46, %v9787_v13  ;;  %v15440_v56 = vld [vmem:[#allocation232_spill] sm:$0xff]  ;;  %v15441_v3 = vld [vmem:[#allocation283_spill] sm:$0xff]  ;;  %v3501_v29 = vsel %vm1722_vm3, %v14312_v63, %v3438_v4  ;;  %v15443_v13 = vld [vmem:[#allocation41_spill] sm:$0xff] }
 0x262   : > { %v10379_v5 = vadd.f32 %v15441_v3, %v15440_v56  ;;  %v3281_v24 = vmax.f32 %v3217_v19, %v3249_v22  ;;  %v10388_v15 = vmax.f32 %v2436_v7, %v2661_v41  ;;  %v3189_v46 = vadd.f32 %v10170_v60, %v15442_v20  ;;  %v15446_v63 = vld [vmem:[#allocation44_spill] sm:$0xff] }
 0x263   : > { %v10375_v49 = vmax.f32 %v15438_v28, %v2150_v27  ;;  %v3439_v14 = vrot.slane %v10359_v10, 6  ;;  %v10386_v57 = vmax.f32 %v3344_v52, %v3376_v32  ;;  %v3250_v27 = vadd.f32 %v10177_v39, %v15443_v13  ;;  %v10403_v52 = vpop.permute.xlu1 %2049  ;;  %v15447_v7 = vld [vmem:[#allocation188_spill] sm:$0xff]  ;;  %v15454_v13 = vld [vmem:[#allocation210_spill] sm:$0xff] }
 0x264   : > { %v15444_v28 = vmax.f32 %v9149_v1, %v10141_v47  ;;  %v3218_v3 = vmax.f32 %v10279_v43, %v10226_v38  ;;  %v3253_v19 = vadd.f32 %v10321_v9, %v15446_v63  ;;  %v3345_v41 = vmax.f32 %v3281_v24, %v3313_v30  ;;  %6593 = vset.pattern.permute.xlu1 %v15235_v44  ;;  %v15448_v47 = vld [vmem:[#allocation106_spill] sm:$0xff] }
 0x265   : > { %15439 = vst [vmem:[#allocation239_spill] sm:$0xff] %v10375_v49  ;;  %v3221_v22 = vmax.f32 %v10388_v15, %v3189_v46  ;;  %v3502_v32 = vadd.f32 %v3501_v29, %v15447_v7  ;;  %v3566_v20 = vrot.slane %v10319_v23, 7  ;;  %v3440_v1 = vrot.slane %v10386_v57, 6  ;;  %v10415_v38 = vld [vmem:[%s13957_s5 + $0xa8] sm:$0xff]  ;;  %v15449_v29 = vld [vmem:[#allocation72_spill] sm:$0xff]  ;;  %v10425_v7 = vpop.permute.xlu0 %2579 }
 0x266   : > { %v10397_v56 = vmax.f32 %v15444_v28, %v2162_v54  ;;  %v3377_v54 = vadd.f32 %v10388_v15, %v15448_v47  ;;  %1840 = vperm.xlu1 %6593, %v10415_v38   ;;  %v3500_v30 = vsel %vm1722_vm3, %v3438_v4, %v3439_v14  ;;  %v3567_v24 = vrot.slane %v10359_v10, 7  ;;  %15451 = vst [vmem:[#allocation88_spill] sm:$0xff] %v10425_v7  ;;  %v15452_v63 = vld [vmem:[#allocation182_spill] sm:$0xff]  ;;  %v15455_v4 = vld [vmem:[#allocation220_spill] sm:$0xff] }
 0x267   : > { %v3314_v46 = vadd.f32 %v10345_v61, %v15449_v29  ;;  %v10423_v28 = vmax.f32 %v3221_v22, %v3253_v19  ;;  %v10432_v16 = vadd.f32 %v10177_v39, %v15452_v63  ;;  %v10436_v53 = vadd.f32 %v15455_v4, %v15454_v13  ;;  %v15458_v22 = vld [vmem:[#allocation14_spill] sm:$0xff]  ;;  %v10449_v47 = vpop.permute.xlu1 %2302 }
 0x268   : > { %15445 = vst [vmem:[#allocation234_spill] sm:$0xff] %v10397_v56  ;;  %v2721_v56 = vpack.c.bf16 %v10388_v15, %v10345_v61  ;;  %v10440_v29 = vadd.f32 %v10177_v39, %v15457_v37  ;;  %v10442_v19 = vmax.f32 %v3345_v41, %v3377_v54  ;;  %v3282_v45 = vmax.f32 %v3218_v3, %v3250_v27 }
 0x269   : > { %15450 = vst [vmem:[#allocation138_spill] sm:$0xff] %v10423_v28  ;;  %15453 = vst [vmem:[#allocation246_spill] sm:$0xff] %v10432_v16  ;;  %v10446_v28 = vadd.f32 %v10279_v43, %v15458_v22  ;;  %v15460_v16 = vld [vmem:[#allocation204_spill] sm:$0xff]  ;;  %v15461_v13 = vrot.slane %v10326_v55, 7  ;;  %v3499_v39 = vsel %vm1722_vm3, %v3439_v14, %v3440_v1  ;;  %v3534_v3 = vmax.f32 %v10319_v23, %v3502_v32  ;;  %v15464_v22 = vld [vmem:[#allocation195_spill] sm:$0xff]  ;;  %v10479_v37 = vpop.permute.xlu0 %2583 }
 0x26a   : > { %15456 = vst [vmem:[#allocation270_spill] sm:$0xff] %v10436_v53  ;;  %6265 = vmatmul.mubr.msk.bf16.gmra.mrb[36].mxu0 %vm2751_vm1, %v2721_v56  ;;  %15459 = vst [vmem:[#allocation206_spill] sm:$0xff] %v10449_v47  ;;  %v3503_v63 = vadd.f32 %v3500_v30, %v15460_v16  ;;  %v14323_v41 = vrot.slane %v10442_v19, 6  ;;  %6594 = vset.pattern.permute.xlu1 %v15110_v12  ;;  %v3628_v27 = vsel %vm1979_vm4, %v3566_v20, %v3567_v24  ;;  %v15462_v30 = vld [vmem:[#allocation281_spill] sm:$0xff] }
 0x26b   : > { %v3629_v4 = vsel %vm1979_vm4, %v15461_v13, %v3566_v20  ;;  %v3346_v56 = vmax.f32 %v3282_v45, %v3314_v46  ;;  %v3568_v54 = vrot.slane %v10386_v57, 7  ;;  %v2405_v16 = vadd.f32 %v10449_v47, %v15462_v30  ;;  %v6930_v13 = vld [vmem:[%s13957_s5 + $0xa0] sm:$0xff]  ;;  %15465 = vst [vmem:[#allocation272_spill] sm:$0xff] %v10479_v37  ;;  %v10484_v25 = vpop.permute.xlu1 %2057 }
 0x26c   : > { %2093 = vperm.xlu1 %6594, %v6930_v13   ;;  %v3498_v32 = vsel %vm1722_vm3, %v3440_v1, %v14323_v41  ;;  %v3535_v20 = vmax.f32 %v10359_v10, %v3503_v63  ;;  %v15463_v45 = vld [vmem:[#allocation245_spill] sm:$0xff]  ;;  %v3695_v53 = vrot.slane %v10359_v10, 1  ;;  %v3504_v30 = vadd.f32 %v3499_v39, %v15464_v22  ;;  %v15466_v13 = vld [vmem:[#allocation174_spill] sm:$0xff]  ;;  %15468 = vst [vmem:[#allocation229_spill] sm:$0xff] %v10484_v25  ;;  %v15470_v41 = vld [vmem:[#allocation168_spill] sm:$0xff] }
 0x26d   : > { %v3630_v46 = vadd.f32 %v3629_v4, %v15463_v45  ;;  %v2437_v47 = vmax.f32 %v10263_v48, %v2405_v16  ;;  %v3631_v36 = vadd.f32 %v3628_v27, %v15466_v13  ;;  %v3696_v14 = vrot.slane %v10386_v57, 1  ;;  %v15472_v45 = vld [vmem:[#allocation112_spill] sm:$0xff] }
 0x26e   : > { %v3505_v6 = vadd.f32 %v3498_v32, %v15467_v17  ;;  %v15469_v63 = vrot.slane %v10319_v23, 1  ;;  %v3824_v39 = vrot.slane %v10386_v57, 2  ;;  %v3697_v16 = vrot.slane %v10442_v19, 1  ;;  %v15471_v17 = vld [vmem:[#allocation215_spill] sm:$0xff] }
 0x26f   : > { %v3662_v1 = vmax.f32 %v3534_v3, %v3630_v46  ;;  %v3825_v48 = vrot.slane %v10442_v19, 2  ;;  %v10494_v27 = vmax.f32 %v2437_v47, %v15470_v41  ;;  %v3823_v32 = vrot.slane %v10359_v10, 2 }
 0x270   : > { %v3756_v4 = vsel %vm2236_vm5, %v15469_v63, %v3695_v53  ;;  %6595 = vset.pattern.permute.xlu1 %v14640_v51  ;;  %v3663_v46 = vmax.f32 %v3535_v20, %v3631_v36  ;;  %v3755_v63 = vsel %vm2236_vm5, %v3695_v53, %v3696_v14  ;;  %v3536_v13 = vmax.f32 %v10386_v57, %v3504_v30  ;;  %v15473_v51 = vld [vmem:[#allocation252_spill] sm:$0xff]  ;;  %v10525_v30 = vpop.permute.xlu1 %2306 }
 0x271   : > { %2603 = vperm.xlu1 %6595, %v10109_v42   ;;  %v3758_v22 = vadd.f32 %v3756_v4, %v15471_v17  ;;  %v3378_v47 = vadd.f32 %v10494_v27, %v15472_v45  ;;  %v3627_v41 = vsel %vm1979_vm4, %v3567_v24, %v3568_v54  ;;  %v14325_v10 = vrot.slane %v10319_v23, 2  ;;  %v10515_v4 = vpop.permute.xlu0 %2595  ;;  %15475 = vst [vmem:[#allocation40_spill] sm:$0xff] %v10525_v30  ;;  %v15484_v17 = vld [vmem:[#allocation100_spill] sm:$0xff] }
 0x272   : > { %v3537_v3 = vmax.f32 %v10442_v19, %v3505_v6  ;;  %v3759_v42 = vadd.f32 %v3755_v63, %v15473_v51  ;;  %v3883_v53 = vsel %vm2493_vm2, %v3823_v32, %v3824_v39  ;;  %15474 = vst [vmem:[#allocation241_spill] sm:$0xff] %v10515_v4  ;;  %v3754_v57 = vsel %vm2236_vm5, %v3696_v14, %v3697_v16 }
 0x273   : > { %v3790_v36 = vmax.f32 %v3662_v1, %v3758_v22  ;;  %v10513_v20 = vmax.f32 %v3346_v56, %v3378_v47  ;;  %v3882_v24 = vsel %vm2493_vm2, %v3824_v39, %v3825_v48  ;;  %v3884_v6 = vsel %vm2493_vm2, %v14325_v10, %v3823_v32  ;;  %v15476_v1 = vld [vmem:[#allocation184_spill] sm:$0xff]  ;;  %v15477_v56 = vld [vmem:[#allocation254_spill] sm:$0xff] }
 0x274   : > { %v3791_v22 = vmax.f32 %v3663_v46, %v3759_v42  ;;  %v3886_v63 = vadd.f32 %v3884_v6, %v15476_v1  ;;  %v3887_v47 = vadd.f32 %v3883_v53, %v15477_v56  ;;  %v15478_v51 = vrot.slane %v10442_v19, 7  ;;  %v10541_v46 = vld [vmem:[%s13957_s5 + $0xb8] sm:$0xff] }
 0x275   : > { %6597 = vset.pattern.permute.xlu1 %v15235_v44  ;;  %v3222_v39 = vmax.f32 %v10494_v27, %v10446_v28  ;;  %v15479_v42 = vld [vmem:[#allocation248_spill] sm:$0xff]  ;;  %v15483_v28 = vld [vmem:[#allocation285_spill] sm:$0xff]  ;;  %v10553_v32 = vadd.f32 %v10179_v26, %v15484_v17  ;;  %v15486_v45 = vrot.slane %v10513_v20, 1 }
 0x276   : > { %v3626_v14 = vsel %vm1979_vm4, %v3568_v54, %v15478_v51  ;;  %1848 = vperm.xlu1 %6597, %v10541_v46   ;;  %v3632_v53 = vadd.f32 %v3627_v41, %v15479_v42  ;;  %v10545_v6 = vmax.f32 %v3790_v36, %v3886_v63  ;;  %v10547_v10 = vmax.f32 %v3791_v22, %v3887_v47  ;;  %v15482_v51 = vld [vmem:[#allocation238_spill] sm:$0xff]  ;;  %v15489_v36 = vld [vmem:[#allocation45_spill] sm:$0xff]  ;;  %v10567_v63 = vpop.permute.xlu1 %1804 }
 0x277   : > { %v3633_v54 = vadd.f32 %v3626_v14, %v15482_v51  ;;  %v3760_v56 = vadd.f32 %v3754_v57, %v15483_v28  ;;  %15485 = vst [vmem:[#allocation210_spill] sm:$0xff] %v10553_v32  ;;  %v3753_v49 = vsel %vm2236_vm5, %v3697_v16, %v15486_v45  ;;  %v10561_v41 = vadd.f32 %v10179_v26, %v15487_v31  ;;  %v15491_v14 = vld [vmem:[#allocation221_spill] sm:$0xff]  ;;  %v10574_v45 = vpop.permute.xlu0 %2599 }
 0x278   : > { %15480 = vst [vmem:[#allocation274_spill] sm:$0xff] %v10545_v6  ;;  %15481 = vst [vmem:[#allocation232_spill] sm:$0xff] %v10547_v10  ;;  %v3664_v1 = vmax.f32 %v3536_v13, %v3632_v53  ;;  %v3254_v22 = vadd.f32 %v10345_v61, %v15489_v36  ;;  %v3950_v57 = vpack.c.bf16 %v10547_v10, %v10545_v6  ;;  %v15492_v53 = vld [vmem:[#allocation165_spill] sm:$0xff]  ;;  %v15495_v51 = vrot.slane %v10513_v20, 2 }
 0x279   : > { %15488 = vst [vmem:[#allocation281_spill] sm:$0xff] %v10561_v41  ;;  %15490 = vst [vmem:[#allocation168_spill] sm:$0xff] %v10567_v63  ;;  %v3665_v47 = vmax.f32 %v3537_v3, %v3633_v54  ;;  %v3761_v13 = vadd.f32 %v3753_v49, %v15491_v14  ;;  %v10572_v28 = vadd.f32 %v9915_v34, %v15492_v53  ;;  %v15496_v31 = vld [vmem:[#allocation189_spill] sm:$0xff]  ;;  %v15497_v53 = vld [vmem:[#allocation66_spill] sm:$0xff] }
 0x27a   : > { %15494 = vst [vmem:[#allocation329_spill] sm:$0xff] %v10574_v45  ;;  %6598 = vset.pattern.permute.xlu1 %v15110_v12  ;;  %v3792_v16 = vmax.f32 %v3664_v1, %v3760_v56  ;;  %v3881_v42 = vsel %vm2493_vm2, %v3825_v48, %v15495_v51  ;;  %v3888_v17 = vadd.f32 %v3882_v24, %v15496_v31  ;;  %v15499_v1 = vld [vmem:[#allocation99_spill] sm:$0xff]  ;;  %v15501_v48 = vld [vmem:[#allocation152_spill] sm:$0xff]  ;;  %v15503_v51 = vld [vmem:[#allocation9_spill] sm:$0xff]  ;;  %v10623_v32 = vpop.permute.xlu1 %2310 }
 0x27b   : > { %15493 = vst [vmem:[#allocation45_spill] sm:$0xff] %v10572_v28  ;;  %6332 = vmatprep.mubr.msk.bf16.mxu1 %vm2751_vm1, %v3950_v57  ;;  %2097 = vperm.xlu1 %6598, %v10415_v38   ;;  %v3793_v49 = vmax.f32 %v3665_v47, %v3761_v13  ;;  %v3889_v3 = vadd.f32 %v3881_v42, %v10146_v40  ;;  %v15504_v47 = vld [vmem:[#allocation103_spill] sm:$0xff]  ;;  %v15508_v13 = vld [vmem:[#allocation162_spill] sm:$0xff]  ;;  %v10643_v26 = vpop.permute.xlu0 %2607 }
 0x27c   : > { %v10585_v54 = vmax.f32 %v3222_v39, %v3254_v22  ;;  %v10589_v14 = vadd.f32 %v10168_v62, %v15497_v53  ;;  %v10593_v56 = vadd.f32 %v10168_v62, %v15499_v1  ;;  %v10597_v24 = vadd.f32 %v10168_v62, %v15501_v48  ;;  %v15510_v31 = vld [vmem:[#allocation243_spill] sm:$0xff]  ;;  %v15512_v48 = vld [vmem:[#allocation186_spill] sm:$0xff]  ;;  %v15524_v62 = vld [vmem:[#allocation13_spill] sm:$0xff] }
 0x27d   : > { %v3187_v57 = vadd.f32 %v9915_v34, %v15503_v51  ;;  %v10603_v42 = vadd.f32 %v10187_v33, %v15504_v47  ;;  %v10605_v39 = vmax.f32 %v3792_v16, %v3888_v17  ;;  %v10607_v22 = vmax.f32 %v3793_v49, %v3889_v3  ;;  %v15511_v1 = vld [vmem:[#allocation259_spill] sm:$0xff]  ;;  %v15513_v34 = vld [vmem:[#allocation276_spill] sm:$0xff]  ;;  %15514 = vst [vmem:[#allocation243_spill] sm:$0xff] %v10623_v32  ;;  %v15515_v16 = vld [vmem:[#allocation42_spill] sm:$0xff] }
 0x27e   : > { %15498 = vst [vmem:[#allocation330_spill] sm:$0xff] %v10589_v14  ;;  %15500 = vst [vmem:[#allocation331_spill] sm:$0xff] %v10593_v56  ;;  %v10611_v40 = vadd.f32 %v10187_v33, %v15508_v13  ;;  %v10615_v53 = vadd.f32 %v15511_v1, %v15510_v31  ;;  %v10619_v41 = vadd.f32 %v10148_v8, %v15512_v48  ;;  %v15516_v3 = vld [vmem:[#allocation251_spill] sm:$0xff]  ;;  %v15517_v33 = vld [vmem:[#allocation284_spill] sm:$0xff] }
 0x27f   : > { %15502 = vst [vmem:[#allocation332_spill] sm:$0xff] %v10597_v24  ;;  %15505 = vst [vmem:[#allocation9_spill] sm:$0xff] %v10603_v42  ;;  %v2149_v47 = vadd.f32 %v10403_v52, %v15513_v34  ;;  %v3251_v49 = vadd.f32 %v10170_v60, %v15515_v16  ;;  %v10631_v13 = vadd.f32 %v10181_v58, %v15516_v3  ;;  %6599 = vset.pattern.permute.xlu1 %v15235_v44  ;;  %v15519_v3 = vld [vmem:[#allocation267_spill] sm:$0xff]  ;;  %v15528_v58 = vld [vmem:[#allocation148_spill] sm:$0xff] }
 0x280   : > { %15506 = vst [vmem:[#allocation333_spill] sm:$0xff] %v10605_v39  ;;  %15507 = vst [vmem:[#allocation334_spill] sm:$0xff] %v10607_v22  ;;  %v3219_v31 = vmax.f32 %v10321_v9, %v3187_v57  ;;  %v3951_v48 = vpack.c.bf16 %v10607_v22, %v10605_v39  ;;  %v3220_v17 = vmax.f32 %v10345_v61, %v10440_v29  ;;  %v10648_v57 = vld [vmem:[%s13957_s5 + $0xc0] sm:$0xff]  ;;  %v15522_v29 = vld [vmem:[#allocation156_spill] sm:$0xff] }
 0x281   : > { %15509 = vst [vmem:[#allocation335_spill] sm:$0xff] %v10611_v40  ;;  %v2406_v60 = vadd.f32 %v10525_v30, %v15517_v33  ;;  %15518 = vst [vmem:[#allocation186_spill] sm:$0xff] %v10643_v26  ;;  %1852 = vperm.xlu1 %6599, %v10648_v57   ;;  %v10653_v34 = vadd.f32 %v10222_v50, %v15519_v3  ;;  %v15521_v40 = vld [vmem:[#allocation43_spill] sm:$0xff]  ;;  %v10659_v56 = vadd.f32 %v10275_v35, %v15522_v29  ;;  %v15531_v35 = vld [vmem:[#allocation16_spill] sm:$0xff] }
 0x282   : > { %v3252_v24 = vadd.f32 %v10279_v43, %v15521_v40  ;;  %6333 = vmatmul.mubr.msk.bf16.vlgmr.msra.gmra.mrb[20].mxu1 %vm2751_vm1, %v3951_v48  ;;  %v3191_v28 = vadd.f32 %v10321_v9, %v15524_v62  ;;  %v15525_v42 = vld [vmem:[#allocation271_spill] sm:$0xff]  ;;  %v3283_v29 = vmax.f32 %v3219_v31, %v3251_v49  ;;  %v10676_v48 = vadd.f32 %v10345_v61, %v15531_v35  ;;  %v15532_v33 = vld [vmem:[#allocation273_spill] sm:$0xff]  ;;  %v6933_v61 = vld [vmem:[%s13957_s5 + $0xc8] sm:$0xff] }
 0x283   : > { %15520 = vst [vmem:[#allocation276_spill] sm:$0xff] %v10653_v34  ;;  %15523 = vst [vmem:[#allocation42_spill] sm:$0xff] %v10659_v56  ;;  %v10667_v14 = vadd.f32 %v10308_v18, %v15525_v42  ;;  %v15527_v3 = vld [vmem:[#allocation75_spill] sm:$0xff]  ;;  %v10680_v34 = vadd.f32 %v10339_v0, %v15532_v33  ;;  %v10684_v18 = vpop.permute.xlu1 %2563  ;;  %v15536_v56 = vld [vmem:[#allocation277_spill] sm:$0xff] }
 0x284   : > { %v3315_v50 = vadd.f32 %v10388_v15, %v15527_v3  ;;  %v15529_v43 = vld [vmem:[#allocation167_spill] sm:$0xff]  ;;  %15535 = vst [vmem:[#allocation267_spill] sm:$0xff] %v10684_v18 }
 0x285   : > { %15526 = vst [vmem:[#allocation251_spill] sm:$0xff] %v10667_v14  ;;  %v15530_v8 = vmax.f32 %v15528_v58, %v15529_v43  ;;  %15533 = vst [vmem:[#allocation284_spill] sm:$0xff] %v10680_v34  ;;  %v15534_v9 = vld [vmem:[#allocation287_spill] sm:$0xff]  ;;  %v10686_v14 = vmax.f32 %v3220_v17, %v3252_v24  ;;  %v2151_v58 = vadd.f32 %v10484_v25, %v15536_v56  ;;  %1856 = vperm.xlu1 %6599, %v6933_v61   ;;  %v15539_v43 = vld [vmem:[#allocation46_spill] sm:$0xff] }
 0x286   : > { %v1895_v42 = vadd.f32 %v10567_v63, %v15534_v9  ;;  %v15538_v31 = vld [vmem:[#allocation15_spill] sm:$0xff]  ;;  %v3255_v24 = vadd.f32 %v10388_v15, %v15539_v43  ;;  %v15543_v56 = vrot.slane %v10442_v19, 6  ;;  %v3347_v61 = vmax.f32 %v3283_v29, %v3315_v50  ;;  %v15545_v34 = vld [vmem:[#allocation181_spill] sm:$0xff]  ;;  %v15561_v25 = vld [vmem:[#allocation108_spill] sm:$0xff] }
 0x287   : > { %v2181_v1 = vmax.f32 %v15530_v8, %v2149_v47  ;;  %v15537_v47 = vld [vmem:[#allocation292_spill] sm:$0xff]  ;;  %v10697_v33 = vadd.f32 %v10388_v15, %v15538_v31  ;;  %v15540_v17 = vld [vmem:[#allocation275_spill] sm:$0xff]  ;;  %v10717_v63 = vadd.f32 %v10479_v37, %v15545_v34  ;;  %v10719_v15 = vpop.permute.xlu0 %2611  ;;  %v15548_v31 = vld [vmem:[#allocation282_spill] sm:$0xff]  ;;  %v10744_v43 = vpop.permute.xlu1 %1808 }
 0x288   : > { %v2663_v49 = vadd.f32 %v10684_v18, %v15537_v47  ;;  %v10703_v9 = vadd.f32 %v10370_v21, %v15540_v17  ;;  %v15544_v47 = vld [vmem:[#allocation280_spill] sm:$0xff]  ;;  %15546 = vst [vmem:[#allocation156_spill] sm:$0xff] %v10719_v15  ;;  %v15547_v21 = vld [vmem:[#allocation47_spill] sm:$0xff]  ;;  %v15552_v37 = vld [vmem:[#allocation149_spill] sm:$0xff] }
 0x289   : > { %v2438_v8 = vmax.f32 %v2181_v1, %v2406_v60  ;;  %v15542_v1 = vrot.slane %v10513_v20, 6  ;;  %v10713_v0 = vadd.f32 %v10425_v7, %v15544_v47  ;;  %v15550_v50 = vld [vmem:[#allocation175_spill] sm:$0xff]  ;;  %v15551_v47 = vld [vmem:[#allocation74_spill] sm:$0xff]  ;;  %6600 = vset.pattern.permute.xlu1 %v15110_v12  ;;  %15555 = vst [vmem:[#allocation271_spill] sm:$0xff] %v10744_v43 }
 0x28a   : > { %15541 = vst [vmem:[#allocation43_spill] sm:$0xff] %v10703_v9  ;;  %v10725_v9 = vadd.f32 %v10494_v27, %v15547_v21  ;;  %v1927_v29 = vmax.f32 %v15550_v50, %v1895_v42  ;;  %v10735_v34 = vadd.f32 %v10494_v27, %v15551_v47  ;;  %v15553_v7 = vld [vmem:[#allocation255_spill] sm:$0xff]  ;;  %v15557_v42 = vld [vmem:[#allocation180_spill] sm:$0xff]  ;;  %2105 = vperm.xlu1 %6600, %v10541_v46  }
 0x28b   : > { %v3497_v60 = vsel %vm1722_vm3, %v15543_v56, %v15542_v1  ;;  %v10721_v17 = vmax.f32 %v2438_v8, %v2663_v49  ;;  %v10729_v1 = vadd.f32 %v10515_v4, %v15548_v31  ;;  %v15554_v8 = vmax.f32 %v15552_v37, %v15553_v7  ;;  %v15556_v31 = vld [vmem:[#allocation208_spill] sm:$0xff]  ;;  %v15559_v56 = vld [vmem:[#allocation286_spill] sm:$0xff] }
 0x28c   : > { %v3506_v4 = vadd.f32 %v3497_v60, %v15556_v31  ;;  %v10749_v50 = vadd.f32 %v10574_v45, %v15557_v42  ;;  %v15564_v42 = vrot.slane %v10326_v55, 1  ;;  %v10779_v45 = vmax.f32 %v1927_v29, %v10379_v5 }
 0x28d   : > { %15549 = vst [vmem:[#allocation13_spill] sm:$0xff] %v10729_v1  ;;  %v10740_v49 = vmax.f32 %v15554_v8, %v2151_v58  ;;  %v3223_v21 = vmax.f32 %v10721_v17, %v3191_v28  ;;  %v10753_v1 = vadd.f32 %v10643_v26, %v15559_v56  ;;  %v3379_v37 = vadd.f32 %v10721_v17, %v15561_v25  ;;  %v15562_v58 = vld [vmem:[#allocation288_spill] sm:$0xff] }
 0x28e   : > { %15558 = vst [vmem:[#allocation75_spill] sm:$0xff] %v10749_v50  ;;  %v2722_v7 = vpack.c.bf16 %v10721_v17, %v10494_v27  ;;  %v10762_v28 = vadd.f32 %v10545_v6, %v15383_v59  ;;  %v2407_v60 = vadd.f32 %v10623_v32, %v15562_v58  ;;  %v15563_v56 = vrot.slane %v10319_v23, 1  ;;  %v15600_v50 = vld [vmem:[#allocation78_spill] sm:$0xff] }
 0x28f   : > { %15560 = vst [vmem:[#allocation148_spill] sm:$0xff] %v10753_v1  ;;  %v10766_v8 = vmax.f32 %v3223_v21, %v3255_v24  ;;  %v10776_v26 = vadd.f32 %v10547_v10, %v15433_v11  ;;  %v10781_v59 = vmax.f32 %v3347_v61, %v3379_v37  ;;  %v15566_v21 = vrot.slane %v10513_v20, 7  ;;  %v15568_v1 = vld [vmem:[#allocation289_spill] sm:$0xff]  ;;  %v10794_v11 = vpop.permute.xlu0 %2627 }
 0x290   : > { %v3757_v31 = vsel %vm2236_vm5, %v15564_v42, %v15563_v56  ;;  %6268 = vmatprep.mubr.msk.bf16.mxu0 %vm2751_vm1, %v2722_v7  ;;  %v15567_v24 = vrot.slane %v10442_v19, 7  ;;  %v10792_v56 = vadd.f32 %v10719_v15, %v15568_v1  ;;  %15570 = vst [vmem:[#allocation273_spill] sm:$0xff] %v10794_v11  ;;  %v3348_v5 = vmax.f32 %v10686_v14, %v10735_v34  ;;  %v10803_v7 = vpop.permute.xlu1 %2567  ;;  %v15573_v1 = vld [vmem:[#allocation18_spill] sm:$0xff]  ;;  %v15576_v14 = vld [vmem:[#allocation239_spill] sm:$0xff] }
 0x291   : > { %15565 = vst [vmem:[#allocation167_spill] sm:$0xff] %v10776_v26  ;;  %v2440_v61 = vmax.f32 %v10740_v49, %v10615_v53  ;;  %v3538_v29 = vmax.f32 %v10513_v20, %v3506_v4  ;;  %v15571_v19 = vmov 6   ;;  %15572 = vst [vmem:[#allocation287_spill] sm:$0xff] %v10803_v7  ;;  %v2439_v34 = vmax.f32 %v15576_v14, %v2407_v60  ;;  %v15577_v4 = vld [vmem:[#allocation293_spill] sm:$0xff] }
 0x292   : > { %v3625_v58 = vsel %vm1979_vm4, %v15567_v24, %v15566_v21  ;;  %15569 = vst [vmem:[#allocation16_spill] sm:$0xff] %v10792_v56  ;;  %6601 = vset.pattern.permute.xlu1 %v15571_v19  ;;  %v10808_v21 = vadd.f32 %v10494_v27, %v15573_v1  ;;  %v15574_v24 = vld [vmem:[#allocation312_spill] sm:$0xff]  ;;  %v2664_v53 = vadd.f32 %v10803_v7, %v15577_v4  ;;  %v15578_v49 = vld [vmem:[#allocation257_spill] sm:$0xff]  ;;  %v15579_v15 = vrot.slane %v10319_v23, 2  ;;  %v15581_v56 = vld [vmem:[#allocation291_spill] sm:$0xff] }
 0x293   : > { %v10811_v26 = vadd.f32 %v3757_v31, %v15574_v24  ;;  %2354 = vperm.xlu1 %6601, %v10415_v38   ;;  %v3634_v37 = vadd.f32 %v3625_v58, %v15578_v49  ;;  %v15580_v42 = vrot.slane %v10326_v55, 2  ;;  %v10826_v31 = vadd.f32 %v10794_v11, %v15581_v56  ;;  %v15587_v24 = vld [vmem:[#allocation102_spill] sm:$0xff]  ;;  %v15589_v11 = vld [vmem:[#allocation176_spill] sm:$0xff] }
 0x294   : > { %v15583_v60 = vrot.slane %v10781_v59, 6  ;;  %v15584_v38 = vrot.slane %v10513_v20, 6  ;;  %v15585_v58 = vrot.slane %v10781_v59, 1  ;;  %v15586_v23 = vrot.slane %v10513_v20, 1 }
 0x295   : > { %15575 = vst [vmem:[#allocation277_spill] sm:$0xff] %v10811_v26  ;;  %v3885_v27 = vsel %vm2493_vm2, %v15580_v42, %v15579_v15  ;;  %15582 = vst [vmem:[#allocation292_spill] sm:$0xff] %v10826_v31  ;;  %v10842_v42 = vmax.f32 %v2439_v34, %v2664_v53  ;;  %v3666_v56 = vmax.f32 %v3538_v29, %v3634_v37  ;;  %v3571_v26 = vrot.slane %v10781_v59, 7  ;;  %v15597_v15 = vld [vmem:[#allocation322_spill] sm:$0xff]  ;;  %v15606_v31 = vld [vmem:[#allocation69_spill] sm:$0xff] }
 0x296   : > { %v3496_v14 = vsel %vm1722_vm3, %v15584_v38, %v15583_v60  ;;  %v3752_v4 = vsel %vm2236_vm5, %v15586_v23, %v15585_v58  ;;  %v10846_v49 = vadd.f32 %v10545_v6, %v15587_v24  ;;  %v10850_v60 = vadd.f32 %v10545_v6, %v15589_v11  ;;  %v10852_v38 = vpop.permute.xlu1 %2571  ;;  %v15592_v23 = vld [vmem:[#allocation303_spill] sm:$0xff]  ;;  %v15608_v34 = vld [vmem:[#allocation70_spill] sm:$0xff] }
 0x297   : > { %15591 = vst [vmem:[#allocation181_spill] sm:$0xff] %v10852_v38  ;;  %v3827_v58 = vrot.slane %v10781_v59, 2  ;;  %v10857_v55 = vadd.f32 %v3885_v27, %v15592_v23  ;;  %v3224_v37 = vmax.f32 %v10842_v42, %v10676_v48  ;;  %6602 = vset.pattern.permute.xlu1 %v15235_v44  ;;  %v15596_v24 = vld [vmem:[#allocation207_spill] sm:$0xff]  ;;  %v3317_v7 = vadd.f32 %v10721_v17, %v15600_v50  ;;  %v15601_v27 = vld [vmem:[#allocation118_spill] sm:$0xff] }
 0x298   : > { %15588 = vst [vmem:[#allocation275_spill] sm:$0xff] %v10846_v49  ;;  %15590 = vst [vmem:[#allocation280_spill] sm:$0xff] %v10850_v60  ;;  %v3507_v11 = vadd.f32 %v3496_v14, %v15596_v24  ;;  %v3762_v49 = vadd.f32 %v3752_v4, %v15597_v15  ;;  %v3380_v23 = vadd.f32 %v10842_v42, %v15601_v27  ;;  %v10877_v44 = vld [vmem:[%s13957_s5 + $0xd0] sm:$0xff]  ;;  %v15605_v4 = vld [vmem:[#allocation218_spill] sm:$0xff]  ;;  %v15623_v50 = vrot.slane %v10781_v59, 6 }
 0x299   : > { %15593 = vst [vmem:[#allocation282_spill] sm:$0xff] %v10857_v55  ;;  %v15602_v55 = vld [vmem:[#allocation296_spill] sm:$0xff]  ;;  %1860 = vperm.xlu1 %6602, %v10877_v44   ;;  %v15603_v48 = vld [vmem:[#allocation39_spill] sm:$0xff]  ;;  %v1896_v1 = vadd.f32 %v10744_v43, %v15605_v4  ;;  %v10887_v60 = vmax.f32 %v3224_v37, %v10725_v9  ;;  %v10895_v53 = vadd.f32 %v10607_v22, %v15608_v34  ;;  %v15611_v9 = vrot.slane %v10513_v20, 2 }
 0x29a   : > { %v2665_v29 = vadd.f32 %v10852_v38, %v15602_v55  ;;  %v10882_v14 = vadd.f32 %v10545_v6, %v15603_v48  ;;  %v10891_v55 = vadd.f32 %v10605_v39, %v15606_v31  ;;  %v10897_v38 = vmax.f32 %v3348_v5, %v3380_v23  ;;  %v10909_v31 = vpop.permute.xlu1 %1816 }
 0x29b   : > { %15609 = vst [vmem:[#allocation149_spill] sm:$0xff] %v10895_v53  ;;  %v15610_v48 = vrot.slane %v10513_v20, 7  ;;  %v3880_v37 = vsel %vm2493_vm2, %v15611_v9, %v3827_v58  ;;  %15612 = vst [vmem:[#allocation255_spill] sm:$0xff] %v10909_v31  ;;  %v3794_v34 = vmax.f32 %v3666_v56, %v3762_v49  ;;  %v15613_v53 = vld [vmem:[#allocation105_spill] sm:$0xff]  ;;  %v15618_v20 = vld [vmem:[#allocation138_spill] sm:$0xff] }
 0x29c   : > { %15604 = vst [vmem:[#allocation175_spill] sm:$0xff] %v10882_v14  ;;  %15607 = vst [vmem:[#allocation74_spill] sm:$0xff] %v10891_v55  ;;  %v10899_v15 = vmax.f32 %v2440_v61, %v2665_v29  ;;  %v3539_v55 = vmax.f32 %v10781_v59, %v3507_v11  ;;  %v10914_v5 = vadd.f32 %v10547_v10, %v15613_v53  ;;  %v15615_v61 = vld [vmem:[#allocation172_spill] sm:$0xff]  ;;  %v3444_v9 = vrot.slane %v10897_v38, 6  ;;  %v15619_v49 = vld [vmem:[#allocation110_spill] sm:$0xff] }
 0x29d   : > { %v3624_v4 = vsel %vm1979_vm4, %v15610_v48, %v3571_v26  ;;  %v10918_v23 = vadd.f32 %v10607_v22, %v15615_v61  ;;  %v15617_v29 = vld [vmem:[#allocation48_spill] sm:$0xff]  ;;  %v3349_v14 = vmax.f32 %v15618_v20, %v3317_v7  ;;  %6603 = vset.pattern.permute.xlu1 %v15110_v12  ;;  %v15620_v11 = vld [vmem:[#allocation278_spill] sm:$0xff]  ;;  %v15622_v7 = vld [vmem:[#allocation157_spill] sm:$0xff]  ;;  %v3828_v43 = vrot.slane %v10897_v38, 2 }
 0x29e   : > { %15614 = vst [vmem:[#allocation180_spill] sm:$0xff] %v10914_v5  ;;  %v3257_v48 = vadd.f32 %v10721_v17, %v15617_v29  ;;  %v3225_v6 = vmax.f32 %v10899_v15, %v10697_v33  ;;  %v3381_v56 = vadd.f32 %v10899_v15, %v15619_v49  ;;  %2109 = vperm.xlu1 %6603, %v10648_v57   ;;  %v3700_v33 = vrot.slane %v10897_v38, 1 }
 0x29f   : > { %15616 = vst [vmem:[#allocation286_spill] sm:$0xff] %v10918_v23  ;;  %v2723_v53 = vpack.c.bf16 %v10899_v15, %v10842_v42  ;;  %v3635_v61 = vadd.f32 %v3624_v4, %v15620_v11  ;;  %v15621_v23 = vld [vmem:[#allocation249_spill] sm:$0xff]  ;;  %v1928_v20 = vmax.f32 %v15622_v7, %v1896_v1  ;;  %v3495_v4 = vsel %vm1722_vm3, %v15623_v50, %v3444_v9  ;;  %v15633_v11 = vld [vmem:[#allocation211_spill] sm:$0xff] }
 0x2a0   : > { %v3890_v5 = vadd.f32 %v3880_v37, %v15621_v23  ;;  %v10935_v29 = vmax.f32 %v3225_v6, %v3257_v48  ;;  %v10939_v27 = vmax.f32 %v3349_v14, %v3381_v56  ;;  %v10948_v37 = vpop.permute.xlu1 %2065  ;;  %v15625_v6 = vrot.slane %v10781_v59, 1  ;;  %v15626_v48 = vld [vmem:[#allocation212_spill] sm:$0xff] }
 0x2a1   : > { %6269 = vmatmul.mubr.msk.bf16.gmra.mrb[40].mxu0 %vm2751_vm1, %v2723_v53  ;;  %v3667_v49 = vmax.f32 %v3539_v55, %v3635_v61  ;;  %15624 = vst [vmem:[#allocation108_spill] sm:$0xff] %v10948_v37  ;;  %v3879_v14 = vsel %vm2493_vm2, %v3827_v58, %v3828_v43  ;;  %v3508_v56 = vadd.f32 %v3495_v4, %v15626_v48  ;;  %v3572_v55 = vrot.slane %v10897_v38, 7  ;;  %v15628_v53 = vld [vmem:[#allocation260_spill] sm:$0xff] }
 0x2a2   : > { %v10942_v24 = vmax.f32 %v3794_v34, %v3890_v5  ;;  %v3751_v1 = vsel %vm2236_vm5, %v15625_v6, %v3700_v33  ;;  %6605 = vset.pattern.permute.xlu1 %v15571_v19  ;;  %v15627_v5 = vld [vmem:[#allocation297_spill] sm:$0xff]  ;;  %v15629_v59 = vld [vmem:[#allocation224_spill] sm:$0xff]  ;;  %v10967_v6 = vld [vmem:[%s13957_s5 + $0xb0] sm:$0xff]  ;;  %v14378_v4 = vrot.slane %v10939_v27, 7 }
 0x2a3   : > { %v2153_v50 = vadd.f32 %v10948_v37, %v15627_v5  ;;  %v3763_v61 = vadd.f32 %v3751_v1, %v15628_v53  ;;  %v3891_v7 = vadd.f32 %v3879_v14, %v15629_v59  ;;  %2358 = vperm.xlu1 %6605, %v10967_v6   ;;  %v3540_v58 = vmax.f32 %v10897_v38, %v3508_v56  ;;  %v15631_v59 = vld [vmem:[#allocation134_spill] sm:$0xff] }
 0x2a4   : > { %v3623_v34 = vsel %vm1979_vm4, %v3571_v26, %v3572_v55  ;;  %v14380_v5 = vrot.slane %v10939_v27, 1  ;;  %v15630_v14 = vrot.slane %v10939_v27, 6  ;;  %v10980_v23 = vpop.permute.xlu1 %2069  ;;  %v3622_v26 = vsel %vm1979_vm4, %v3572_v55, %v14378_v4  ;;  %v15636_v4 = vld [vmem:[#allocation122_spill] sm:$0xff] }
 0x2a5   : > { %v2185_v37 = vmax.f32 %v1928_v20, %v2153_v50  ;;  %v3795_v1 = vmax.f32 %v3667_v49, %v3763_v61  ;;  %v3636_v53 = vadd.f32 %v3623_v34, %v15631_v59  ;;  %15632 = vst [vmem:[#allocation288_spill] sm:$0xff] %v10980_v23  ;;  %v14379_v20 = vrot.slane %v10939_v27, 2  ;;  %v15634_v34 = vld [vmem:[#allocation264_spill] sm:$0xff]  ;;  %v15635_v61 = vld [vmem:[#allocation41_spill] sm:$0xff] }
 0x2a6   : > { %v3494_v48 = vsel %vm1722_vm3, %v3444_v9, %v15630_v14  ;;  %v3750_v49 = vsel %vm2236_vm5, %v3700_v33, %v14380_v5  ;;  %v3637_v50 = vadd.f32 %v3622_v26, %v15634_v34  ;;  %v15655_v34 = vld [vmem:[#allocation20_spill] sm:$0xff] }
 0x2a7   : > { %v3509_v38 = vadd.f32 %v3494_v48, %v15633_v11  ;;  %v2442_v9 = vmax.f32 %v2185_v37, %v10631_v13  ;;  %v10993_v56 = vmax.f32 %v3795_v1, %v3891_v7  ;;  %v4292_v48 = vadd.f32 %v10605_v39, %v15635_v61  ;;  %2362 = vperm.xlu1 %6605, %v10541_v46   ;;  %v15637_v13 = vld [vmem:[#allocation17_spill] sm:$0xff]  ;;  %v15640_v61 = vld [vmem:[#allocation50_spill] sm:$0xff] }
 0x2a8   : > { %v3668_v14 = vmax.f32 %v3540_v58, %v3636_v53  ;;  %v3764_v11 = vadd.f32 %v3750_v49, %v15636_v4  ;;  %v3878_v33 = vsel %vm2493_vm2, %v3828_v43, %v14379_v20  ;;  %v3195_v37 = vadd.f32 %v10721_v17, %v15637_v13  ;;  %v11018_v58 = vpop.permute.xlu1 %2073  ;;  %v15639_v49 = vld [vmem:[#allocation237_spill] sm:$0xff]  ;;  %v15641_v20 = vld [vmem:[#allocation12_spill] sm:$0xff] }
 0x2a9   : > { %v3541_v55 = vmax.f32 %v10939_v27, %v3509_v38  ;;  %v11008_v7 = vmax.f32 %v2442_v9, %v10713_v0  ;;  %v3952_v1 = vpack.c.bf16 %v10993_v56, %v10942_v24  ;;  %v11014_v38 = vadd.f32 %v10547_v10, %v15503_v51  ;;  %15638 = vst [vmem:[#allocation289_spill] sm:$0xff] %v11018_v58 }
 0x2aa   : > { %v4260_v53 = vmax.f32 %v10942_v24, %v10762_v28  ;;  %v3796_v43 = vmax.f32 %v3668_v14, %v3764_v11  ;;  %v3892_v17 = vadd.f32 %v3878_v33, %v15639_v49  ;;  %v3259_v0 = vadd.f32 %v10899_v15, %v15640_v61  ;;  %v15647_v61 = vld [vmem:[#allocation76_spill] sm:$0xff]  ;;  %v15651_v11 = vld [vmem:[#allocation294_spill] sm:$0xff]  ;;  %v15657_v14 = vld [vmem:[#allocation299_spill] sm:$0xff] }
 0x2ab   : > { %v11020_v26 = vmax.f32 %v3541_v55, %v3637_v50  ;;  %v3227_v9 = vmax.f32 %v11008_v7, %v3195_v37  ;;  %6336 = vmatprep.mubr.msk.bf16.mxu1 %vm2751_vm1, %v3952_v1  ;;  %v4230_v51 = vadd.f32 %v10605_v39, %v15641_v20  ;;  %v11031_v28 = vadd.f32 %v10607_v22, %v15515_v16  ;;  %v15646_v37 = vld [vmem:[#allocation11_spill] sm:$0xff]  ;;  %v15648_v49 = vld [vmem:[#allocation80_spill] sm:$0xff] }
 0x2ac   : > { %6606 = vset.pattern.permute.xlu1 %v15110_v12  ;;  %v11034_v50 = vmax.f32 %v3796_v43, %v3892_v17  ;;  %v11042_v1 = vadd.f32 %v10607_v22, %v15646_v37  ;;  %v3318_v20 = vadd.f32 %v10842_v42, %v15647_v61  ;;  %v3319_v16 = vadd.f32 %v10899_v15, %v15648_v49  ;;  %v15654_v55 = vld [vmem:[#allocation72_spill] sm:$0xff]  ;;  %v15659_v17 = vld [vmem:[#allocation182_spill] sm:$0xff] }
 0x2ad   : > { %2117 = vperm.xlu1 %6606, %v10877_v44   ;;  %v11049_v12 = vmax.f32 %v3227_v9, %v3259_v0  ;;  %v1898_v10 = vadd.f32 %v10909_v31, %v15651_v11  ;;  %v11057_v22 = vmax.f32 %v4260_v53, %v4292_v48  ;;  %v11065_v49 = vadd.f32 %v10842_v42, %v15655_v34  ;;  %v15656_v0 = vld [vmem:[#allocation49_spill] sm:$0xff]  ;;  %v11071_v11 = vpop.permute.xlu1 %2575  ;;  %v15662_v37 = vld [vmem:[#allocation298_spill] sm:$0xff] }
 0x2ae   : > { %v11061_v4 = vadd.f32 %v11034_v50, %v15654_v55  ;;  %v3258_v9 = vadd.f32 %v10842_v42, %v15656_v0  ;;  %v2154_v43 = vadd.f32 %v10980_v23, %v15657_v14  ;;  %15658 = vst [vmem:[#allocation239_spill] sm:$0xff] %v11071_v11  ;;  %v11075_v48 = vadd.f32 %v10605_v39, %v15659_v17  ;;  %v15661_v53 = vld [vmem:[#allocation113_spill] sm:$0xff]  ;;  %v15663_v14 = vld [vmem:[#allocation19_spill] sm:$0xff]  ;;  %v15664_v39 = vld [vmem:[#allocation166_spill] sm:$0xff] }
 0x2af   : > { %v3383_v55 = vadd.f32 %v11008_v7, %v15661_v53  ;;  %v2666_v33 = vadd.f32 %v11071_v11, %v15662_v37  ;;  %v4262_v42 = vmax.f32 %v11034_v50, %v4230_v51  ;;  %v3350_v34 = vmax.f32 %v10585_v54, %v3318_v20  ;;  %v15665_v53 = vld [vmem:[#allocation83_spill] sm:$0xff]  ;;  %v15666_v51 = vld [vmem:[#allocation300_spill] sm:$0xff]  ;;  %v15699_v0 = vld [vmem:[#allocation125_spill] sm:$0xff] }
 0x2b0   : > { %15660 = vst [vmem:[#allocation293_spill] sm:$0xff] %v11075_v48  ;;  %v11087_v31 = vadd.f32 %v10899_v15, %v15663_v14  ;;  %v3351_v17 = vmax.f32 %v10766_v8, %v3319_v16  ;;  %v4294_v48 = vadd.f32 %v10942_v24, %v15521_v40  ;;  %v1930_v37 = vmax.f32 %v15664_v39, %v1898_v10  ;;  %v15668_v8 = vld [vmem:[#allocation170_spill] sm:$0xff]  ;;  %v15671_v14 = vld [vmem:[#allocation71_spill] sm:$0xff]  ;;  %v15673_v39 = vld [vmem:[#allocation73_spill] sm:$0xff] }
 0x2b1   : > { %6607 = vset.pattern.permute.xlu1 %v15571_v19  ;;  %v11096_v5 = vadd.f32 %v11008_v7, %v15665_v53  ;;  %v2155_v54 = vadd.f32 %v11018_v58, %v15666_v51  ;;  %v15667_v15 = vmax.f32 %v10779_v45, %v10619_v41  ;;  %v15669_v19 = vld [vmem:[#allocation183_spill] sm:$0xff]  ;;  %v11111_v10 = vadd.f32 %v10942_v24, %v15671_v14  ;;  %v15675_v58 = vld [vmem:[#allocation21_spill] sm:$0xff] }
 0x2b2   : > { %2366 = vperm.xlu1 %6607, %v10648_v57   ;;  %v15670_v16 = vmax.f32 %v15668_v8, %v15669_v19  ;;  %v11115_v53 = vadd.f32 %v10993_v56, %v15673_v39  ;;  %v11117_v51 = vmax.f32 %v4262_v42, %v4294_v48  ;;  %v11121_v41 = vadd.f32 %v11008_v7, %v15675_v58  ;;  %v15678_v8 = vld [vmem:[#allocation123_spill] sm:$0xff]  ;;  %v15679_v48 = vld [vmem:[#allocation82_spill] sm:$0xff] }
 0x2b3   : > { %v11103_v20 = vmax.f32 %v15667_v15, %v2666_v33  ;;  %15672 = vst [vmem:[#allocation291_spill] sm:$0xff] %v11111_v10  ;;  %v11123_v45 = vmax.f32 %v3351_v17, %v3383_v55  ;;  %v15677_v15 = vld [vmem:[#allocation52_spill] sm:$0xff]  ;;  %v15683_v58 = vld [vmem:[#allocation107_spill] sm:$0xff] }
 0x2b4   : > { %v2186_v40 = vmax.f32 %v15670_v16, %v2154_v43  ;;  %15674 = vst [vmem:[#allocation102_spill] sm:$0xff] %v11115_v53  ;;  %v11127_v43 = vpop.permute.xlu1 %2326  ;;  %v11131_v14 = vadd.f32 %v11008_v7, %v15677_v15  ;;  %v15680_v55 = vld [vmem:[#allocation104_spill] sm:$0xff]  ;;  %v15682_v53 = vmov 7   ;;  %v11152_v15 = vadd.f32 %v10993_v56, %v15683_v58  ;;  %v15687_v58 = vld [vmem:[#allocation109_spill] sm:$0xff] }
 0x2b5   : > { %v3226_v33 = vmax.f32 %v11103_v20, %v10808_v21  ;;  %15676 = vst [vmem:[#allocation176_spill] sm:$0xff] %v11127_v43  ;;  %v3382_v19 = vadd.f32 %v11103_v20, %v15678_v8  ;;  %v2411_v42 = vadd.f32 %v11127_v43, %v15679_v48  ;;  %v2724_v16 = vpack.c.bf16 %v11008_v7, %v11103_v20 }
 0x2b6   : > { %v11141_v17 = vadd.f32 %v10942_v24, %v15680_v55  ;;  %v11143_v21 = vmax.f32 %v1930_v37, %v2155_v54  ;;  %6608 = vset.pattern.permute.xlu1 %v15682_v53  ;;  %15684 = vst [vmem:[#allocation39_spill] sm:$0xff] %v11152_v15  ;;  %v4261_v7 = vmax.f32 %v10993_v56, %v11014_v38  ;;  %v3703_v38 = vrot.slane %v11123_v45, 1  ;;  %v15689_v55 = vld [vmem:[#allocation14_spill] sm:$0xff]  ;;  %v15690_v54 = vld [vmem:[#allocation44_spill] sm:$0xff] }
 0x2b7   : > { %v11145_v39 = vmax.f32 %v3226_v33, %v3258_v9  ;;  %v3414_v48 = vmax.f32 %v3350_v34, %v3382_v19  ;;  %v2443_v43 = vmax.f32 %v2186_v40, %v2411_v42  ;;  %2615 = vperm.xlu1 %6608, %v10967_v6   ;;  %6272 = vmatprep.mubr.msk.bf16.mxu0 %vm2751_vm1, %v2724_v16  ;;  %v15685_v9 = vld [vmem:[#allocation79_spill] sm:$0xff]  ;;  %v3831_v16 = vrot.slane %v11123_v45, 2 }
 0x2b8   : > { %15681 = vst [vmem:[#allocation296_spill] sm:$0xff] %v11141_v17  ;;  %v3320_v37 = vadd.f32 %v11103_v20, %v15685_v9  ;;  %v11160_v53 = vpop.permute.xlu1 %2330  ;;  %v11166_v34 = vadd.f32 %v11034_v50, %v15687_v58  ;;  %v11175_v10 = vadd.f32 %v10942_v24, %v15689_v55  ;;  %v11179_v33 = vadd.f32 %v10993_v56, %v15690_v54  ;;  %v15691_v55 = vld [vmem:[#allocation129_spill] sm:$0xff] }
 0x2b9   : > { %15686 = vst [vmem:[#allocation218_spill] sm:$0xff] %v11160_v53  ;;  %v3446_v40 = vrot.slane %v3414_v48, 6  ;;  %v11169_v6 = vmax.f32 %v2443_v43, %v10717_v63  ;;  %v3702_v19 = vrot.slane %v3414_v48, 1  ;;  %v3830_v42 = vrot.slane %v3414_v48, 2  ;;  %v15695_v17 = vld [vmem:[#allocation325_spill] sm:$0xff] }
 0x2ba   : > { %15688 = vst [vmem:[#allocation69_spill] sm:$0xff] %v11166_v34  ;;  %v3574_v58 = vrot.slane %v3414_v48, 7  ;;  %v11183_v63 = vmax.f32 %v4261_v7, %v11031_v28  ;;  %v11187_v43 = vadd.f32 %v11034_v50, %v15489_v36  ;;  %v11191_v34 = vadd.f32 %v10993_v56, %v15524_v62 }
 0x2bb   : > { %2619 = vperm.xlu1 %6608, %v10541_v46   ;;  %v3352_v24 = vmax.f32 %v10887_v60, %v3320_v37  ;;  %v3384_v54 = vadd.f32 %v11169_v6, %v15691_v55  ;;  %v15692_v15 = vrot.slane %v10939_v27, 1  ;;  %v15693_v28 = vrot.slane %v10939_v27, 2 }
 0x2bc   : > { %v11204_v7 = vpop.permute.xlu1 %1824  ;;  %v15696_v56 = vrot.slane %v11123_v45, 6  ;;  %v15697_v37 = vrot.slane %v10939_v27, 6  ;;  %v15701_v23 = vrot.slane %v11123_v45, 7 }
 0x2bd   : > { %v3749_v46 = vsel %vm2236_vm5, %v15692_v15, %v3702_v19  ;;  %v3877_v36 = vsel %vm2493_vm2, %v15693_v28, %v3830_v42  ;;  %15694 = vst [vmem:[#allocation70_spill] sm:$0xff] %v11204_v7  ;;  %v11217_v15 = vadd.f32 %v11034_v50, %v15531_v35  ;;  %v11219_v9 = vmax.f32 %v3352_v24, %v3384_v54  ;;  %v15698_v28 = vld [vmem:[#allocation228_spill] sm:$0xff] }
 0x2be   : > { %v3765_v62 = vadd.f32 %v3749_v46, %v15695_v17  ;;  %v3492_v60 = vsel %vm1722_vm3, %v3446_v40, %v15696_v56  ;;  %v3493_v55 = vsel %vm1722_vm3, %v15697_v37, %v3446_v40  ;;  %v3893_v13 = vadd.f32 %v3877_v36, %v15698_v28  ;;  %v15700_v17 = vld [vmem:[#allocation216_spill] sm:$0xff]  ;;  %v15705_v37 = vld [vmem:[#allocation301_spill] sm:$0xff] }
 0x2bf   : > { %v3510_v46 = vadd.f32 %v3493_v55, %v15699_v0  ;;  %v3511_v8 = vadd.f32 %v3492_v60, %v15700_v17  ;;  %2623 = vperm.xlu1 %6608, %v10648_v57   ;;  %v3620_v40 = vsel %vm1979_vm4, %v3574_v58, %v15701_v23  ;;  %v15702_v35 = vrot.slane %v10939_v27, 7  ;;  %v15703_v55 = vld [vmem:[#allocation22_spill] sm:$0xff] }
 0x2c0   : > { %v3797_v56 = vmax.f32 %v11020_v26, %v3765_v62  ;;  %v3748_v54 = vsel %vm2236_vm5, %v3702_v19, %v3703_v38  ;;  %v11238_v36 = vadd.f32 %v11103_v20, %v15703_v55  ;;  %v15704_v62 = vld [vmem:[#allocation269_spill] sm:$0xff]  ;;  %v2412_v23 = vadd.f32 %v11160_v53, %v15705_v37  ;;  %v15707_v0 = vld [vmem:[#allocation206_spill] sm:$0xff] }
 0x2c1   : > { %v3621_v24 = vsel %vm1979_vm4, %v15702_v35, %v3574_v58  ;;  %v3542_v57 = vmax.f32 %v3414_v48, %v3510_v46  ;;  %v3543_v26 = vmax.f32 %v11123_v45, %v3511_v8  ;;  %v3639_v27 = vadd.f32 %v3620_v40, %v10403_v52  ;;  %v11248_v35 = vpop.permute.xlu1 %2077 }
 0x2c2   : > { %v3638_v60 = vadd.f32 %v3621_v24, %v15704_v62  ;;  %v11244_v17 = vmax.f32 %v3797_v56, %v3893_v13  ;;  %v14394_v58 = vrot.slane %v11219_v9, 1  ;;  %15706 = vst [vmem:[#allocation105_spill] sm:$0xff] %v11248_v35  ;;  %v3766_v55 = vadd.f32 %v3748_v54, %v15707_v0 }
 0x2c3   : > { %v14393_v48 = vrot.slane %v11219_v9, 2  ;;  %v3876_v8 = vsel %vm2493_vm2, %v3830_v42, %v3831_v16  ;;  %v3228_v46 = vmax.f32 %v11169_v6, %v11065_v49  ;;  %2631 = vperm.xlu1 %6608, %v10877_v44   ;;  %v3671_v56 = vmax.f32 %v3543_v26, %v3639_v27  ;;  %v15708_v49 = vld [vmem:[#allocation196_spill] sm:$0xff]  ;;  %v15709_v44 = vld [vmem:[#allocation81_spill] sm:$0xff]  ;;  %v15710_v26 = vld [vmem:[#allocation302_spill] sm:$0xff] }
 0x2c4   : > { %v3670_v19 = vmax.f32 %v3542_v57, %v3638_v60  ;;  %v3953_v13 = vpack.c.bf16 %v11244_v17, %v11034_v50  ;;  %v3747_v40 = vsel %vm2236_vm5, %v3703_v38, %v14394_v58  ;;  %v3894_v57 = vadd.f32 %v3876_v8, %v15708_v49  ;;  %v15711_v8 = vld [vmem:[#allocation304_spill] sm:$0xff] }
 0x2c5   : > { %v3767_v24 = vadd.f32 %v3747_v40, %v10525_v30  ;;  %v3875_v42 = vsel %vm2493_vm2, %v3831_v16, %v14393_v48  ;;  %v11271_v60 = vadd.f32 %v11169_v6, %v15709_v44  ;;  %v2444_v50 = vmax.f32 %v11143_v21, %v2412_v23  ;;  %v11286_v48 = vpop.permute.xlu1 %2587  ;;  %v15717_v44 = vld [vmem:[#allocation279_spill] sm:$0xff]  ;;  %v15750_v30 = vld [vmem:[#allocation209_spill] sm:$0xff] }
 0x2c6   : > { %v3798_v54 = vmax.f32 %v3670_v19, %v3766_v55  ;;  %v11276_v37 = vadd.f32 %v11204_v7, %v15710_v26  ;;  %6337 = vmatmul.mubr.msk.bf16.gmra.mrb[24].mxu1 %vm2751_vm1, %v3953_v13  ;;  %v3448_v38 = vrot.slane %v11219_v9, 6  ;;  %v3895_v27 = vadd.f32 %v3875_v42, %v10684_v18  ;;  %15712 = vst [vmem:[#allocation172_spill] sm:$0xff] %v11286_v48  ;;  %v6636_v13 = vld [vmem:[%s13955_s3 + $0x30] sm:$0xff]   ;;  %v15715_v26 = vld [vmem:[#allocation117_spill] sm:$0xff]  ;;  %v15718_v18 = vld [vmem:[#allocation112_spill] sm:$0xff] }
 0x2c7   : > { %v3799_v55 = vmax.f32 %v3671_v56, %v3767_v24  ;;  %v3576_v19 = vrot.slane %v11219_v9, 7  ;;  %v2156_v40 = vadd.f32 %v11248_v35, %v15711_v8  ;;  %v15713_v21 = vrot.slane %v11123_v45, 6  ;;  %6364 = vmatprep.subr.bf16.mxu1 %v6636_v13 }
 0x2c8   : > { %v11281_v16 = vmax.f32 %v3798_v54, %v3894_v57  ;;  %v4357_v56 = vadd.f32 %v11244_v17, %v15527_v3  ;;  %v4263_v24 = vmax.f32 %v11244_v17, %v11042_v1  ;;  %v15714_v54 = vld [vmem:[#allocation306_spill] sm:$0xff]  ;;  %v15716_v58 = vrot.slane %v11123_v45, 7  ;;  %6365 = vmatpush3.bf16.msra.mxu1 %v6636_v13 }
 0x2c9   : > { %v3491_v23 = vsel %vm1722_vm3, %v15713_v21, %v3448_v38  ;;  %v2669_v42 = vadd.f32 %v11286_v48, %v15714_v54  ;;  %v11301_v57 = vmax.f32 %v3799_v55, %v3895_v27 }
 0x2ca   : > { %v3512_v8 = vadd.f32 %v3491_v23, %v15715_v26  ;;  %v3619_v21 = vsel %vm1979_vm4, %v15716_v58, %v3576_v19  ;;  %v4420_v3 = vadd.f32 %v11281_v16, %v15718_v18  ;;  %v11313_v1 = vadd.f32 %v11281_v16, %v15551_v47  ;;  %v15727_v47 = vld [vmem:[#allocation173_spill] sm:$0xff] }
 0x2cb   : > { %v3640_v7 = vadd.f32 %v3619_v21, %v15717_v44  ;;  %v4389_v55 = vmax.f32 %v11183_v63, %v4357_v56  ;;  %v11316_v27 = vmax.f32 %v2444_v50, %v2669_v42  ;;  %v3954_v45 = vpack.c.bf16 %v11301_v57, %v11281_v16  ;;  %v15721_v56 = vld [vmem:[#allocation51_spill] sm:$0xff]  ;;  %v15722_v42 = vld [vmem:[#allocation24_spill] sm:$0xff] }
 0x2cc   : > { %v3544_v23 = vmax.f32 %v11219_v9, %v3512_v8  ;;  %v4421_v58 = vadd.f32 %v11301_v57, %v15561_v25  ;;  %v15719_v18 = vmax.f32 %v11057_v22, %v11061_v4  ;;  %v4264_v63 = vmax.f32 %v11281_v16, %v11175_v10  ;;  %v15723_v8 = vld [vmem:[#allocation53_spill] sm:$0xff]  ;;  %v11348_v10 = vpop.permute.xlu1 %1832  ;;  %v15726_v21 = vld [vmem:[#allocation119_spill] sm:$0xff] }
 0x2cd   : > { %v11333_v50 = vmax.f32 %v4263_v24, %v11179_v33  ;;  %v3260_v13 = vadd.f32 %v11103_v20, %v15721_v56  ;;  %v11339_v25 = vadd.f32 %v11169_v6, %v15722_v42  ;;  %v11343_v22 = vadd.f32 %v11169_v6, %v15723_v8  ;;  %6340 = vmatprep.mubr.msk.bf16.mxu1 %vm2751_vm1, %v3954_v45  ;;  %v15725_v33 = vld [vmem:[#allocation159_spill] sm:$0xff]  ;;  %v15728_v42 = vld [vmem:[#allocation222_spill] sm:$0xff] }
 0x2ce   : > { %v11326_v54 = vmax.f32 %v15719_v18, %v4420_v3  ;;  %v3229_v4 = vmax.f32 %v11316_v27, %v11087_v31  ;;  %15724 = vst [vmem:[#allocation157_spill] sm:$0xff] %v11348_v10  ;;  %v1932_v24 = vmax.f32 %v15725_v33, %v11276_v37  ;;  %v3385_v20 = vadd.f32 %v11316_v27, %v15726_v21  ;;  %v15730_v33 = vld [vmem:[#allocation85_spill] sm:$0xff]  ;;  %v15748_v21 = vld [vmem:[#allocation207_spill] sm:$0xff] }
 0x2cf   : > { %v2725_v3 = vpack.c.bf16 %v11316_v27, %v11169_v6  ;;  %v3672_v18 = vmax.f32 %v3544_v23, %v3640_v7  ;;  %v15729_v8 = vmax.f32 %v15727_v47, %v15728_v42  ;;  %v11364_v45 = vmax.f32 %v3228_v46, %v3260_v13 }
 0x2d0   : > { %15720 = vst [vmem:[#allocation138_spill] sm:$0xff] %v11326_v54  ;;  %v11362_v31 = vmax.f32 %v3229_v4, %v11131_v14  ;;  %v11370_v44 = vadd.f32 %v11316_v27, %v15730_v33  ;;  %v15731_v6 = vmax.f32 %v10935_v29, %v11096_v5  ;;  %v11379_v14 = vmax.f32 %v4389_v55, %v4421_v58  ;;  %v11389_v5 = vpop.permute.xlu1 %2081  ;;  %v15733_v58 = vld [vmem:[#allocation308_spill] sm:$0xff] }
 0x2d1   : > { %v11359_v56 = vmax.f32 %v15729_v8, %v2156_v40  ;;  %6273 = vmatmul.mubr.msk.bf16.gmra.mrb[44].mxu0 %vm2751_vm1, %v2725_v3  ;;  %v11384_v47 = vmax.f32 %v4264_v63, %v11187_v43  ;;  %15732 = vst [vmem:[#allocation297_spill] sm:$0xff] %v11389_v5  ;;  %v2157_v4 = vadd.f32 %v11389_v5, %v15733_v58  ;;  %v15734_v58 = vrot.slane %v11219_v9, 1 }
 0x2d2   : > { %v11375_v7 = vmax.f32 %v15731_v6, %v3385_v20  ;;  %v4741_v63 = vrot.slane %v11379_v14, 1  ;;  %v15735_v13 = vrot.slane %v11219_v9, 2  ;;  %v15739_v20 = vld [vmem:[#allocation229_spill] sm:$0xff]  ;;  %v15741_v9 = vrot.slane %v11326_v54, 6 }
 0x2d3   : > { %v14406_v26 = vrot.slane %v11326_v54, 2 }
 0x2d4   : > { %v14398_v29 = vrot.slane %v11375_v7, 6  ;;  %v14399_v42 = vrot.slane %v11375_v7, 7  ;;  %v14400_v8 = vrot.slane %v11375_v7, 1  ;;  %v14401_v55 = vrot.slane %v11375_v7, 2  ;;  %v11425_v46 = vpop.permute.xlu1 %2085 }
 0x2d5   : > { %15738 = vst [vmem:[#allocation134_spill] sm:$0xff] %v11425_v46 }
 0x2d6   : > { %v3490_v3 = vsel %vm1722_vm3, %v3448_v38, %v14398_v29  ;;  %v3618_v6 = vsel %vm1979_vm4, %v3576_v19, %v14399_v42  ;;  %v3746_v37 = vsel %vm2236_vm5, %v15734_v58, %v14400_v8  ;;  %v3874_v40 = vsel %vm2493_vm2, %v15735_v13, %v14401_v55  ;;  %v15736_v29 = vld [vmem:[#allocation143_spill] sm:$0xff]  ;;  %v15737_v19 = vld [vmem:[#allocation78_spill] sm:$0xff] }
 0x2d7   : > { %v2189_v38 = vmax.f32 %v1932_v24, %v2157_v4  ;;  %v3513_v23 = vadd.f32 %v3490_v3, %v15736_v29  ;;  %v3768_v43 = vadd.f32 %v3746_v37, %v10623_v32  ;;  %v11423_v42 = vadd.f32 %v11301_v57, %v15737_v19 }
 0x2d8   : > { %v3641_v58 = vadd.f32 %v3618_v6, %v15739_v20  ;;  %v15740_v8 = vrot.slane %v11379_v14, 6  ;;  %v15742_v24 = vrot.slane %v11379_v14, 7  ;;  %v15743_v4 = vrot.slane %v11326_v54, 7  ;;  %v15745_v6 = vld [vmem:[#allocation42_spill] sm:$0xff]  ;;  %v15746_v20 = vld [vmem:[#allocation287_spill] sm:$0xff] }
 0x2d9   : > { %v15744_v3 = vrot.slane %v11326_v54, 1  ;;  %v2446_v55 = vmax.f32 %v2189_v38, %v15745_v6  ;;  %v3545_v33 = vmax.f32 %v11375_v7, %v3513_v23  ;;  %v3800_v32 = vmax.f32 %v3672_v18, %v3768_v43  ;;  %v11459_v18 = vpop.permute.xlu1 %2089  ;;  %v15752_v43 = vld [vmem:[#allocation278_spill] sm:$0xff] }
 0x2da   : > { %v4538_v13 = vsel %vm1722_vm3, %v15741_v9, %v15740_v8  ;;  %v4666_v37 = vsel %vm1979_vm4, %v15743_v4, %v15742_v24  ;;  %v3896_v29 = vadd.f32 %v3874_v40, %v15746_v20  ;;  %v15747_v8 = vld [vmem:[#allocation305_spill] sm:$0xff]  ;;  %v4869_v24 = vrot.slane %v11379_v14, 2  ;;  %15751 = vst [vmem:[#allocation41_spill] sm:$0xff] %v11459_v18 }
 0x2db   : > { %v4794_v19 = vsel %vm2236_vm5, %v15744_v3, %v4741_v63  ;;  %v1902_v9 = vadd.f32 %v11348_v10, %v15747_v8  ;;  %v4549_v5 = vadd.f32 %v4538_v13, %v15748_v21  ;;  %v15749_v4 = vld [vmem:[#allocation13_spill] sm:$0xff]  ;;  %v2158_v3 = vadd.f32 %v11425_v46, %v15750_v30  ;;  %v15753_v13 = vld [vmem:[#allocation54_spill] sm:$0xff]  ;;  %v15760_v10 = vld [vmem:[#allocation23_spill] sm:$0xff] }
 0x2dc   : > { %v2703_v49 = vmax.f32 %v2446_v55, %v15749_v4  ;;  %v11455_v38 = vmax.f32 %v3545_v33, %v3641_v58  ;;  %v11457_v23 = vmax.f32 %v3800_v32, %v3896_v29  ;;  %v4677_v6 = vadd.f32 %v4666_v37, %v15752_v43  ;;  %v15754_v33 = vld [vmem:[#allocation124_spill] sm:$0xff]  ;;  %v15755_v58 = vld [vmem:[#allocation106_spill] sm:$0xff]  ;;  %v15757_v37 = vld [vmem:[#allocation233_spill] sm:$0xff] }
 0x2dd   : > { %v4581_v40 = vmax.f32 %v11379_v14, %v4549_v5  ;;  %v4922_v21 = vsel %vm2493_vm2, %v14406_v26, %v4869_v24  ;;  %v3263_v30 = vadd.f32 %v11316_v27, %v15753_v13  ;;  %v11475_v5 = vadd.f32 %v11244_v17, %v15755_v58  ;;  %v15758_v4 = vld [vmem:[#allocation276_spill] sm:$0xff]  ;;  %v15759_v26 = vld [vmem:[#allocation118_spill] sm:$0xff] }
 0x2de   : > { %v3231_v32 = vmax.f32 %v2703_v49, %v11121_v41  ;;  %v3387_v29 = vadd.f32 %v2703_v49, %v15754_v33  ;;  %v2159_v8 = vadd.f32 %v11459_v18, %v15757_v37  ;;  %v2445_v43 = vmax.f32 %v11359_v56, %v15758_v4  ;;  %v15761_v33 = vld [vmem:[#allocation89_spill] sm:$0xff]  ;;  %v15762_v37 = vld [vmem:[#allocation191_spill] sm:$0xff]  ;;  %v15763_v13 = vld [vmem:[#allocation194_spill] sm:$0xff] }
 0x2df   : > { %15756 = vst [vmem:[#allocation12_spill] sm:$0xff] %v11475_v5  ;;  %v4422_v55 = vadd.f32 %v11457_v23, %v15759_v26  ;;  %v4709_v54 = vmax.f32 %v4581_v40, %v4677_v6  ;;  %v11485_v46 = vadd.f32 %v11316_v27, %v15760_v10  ;;  %v3355_v41 = vmax.f32 %v11049_v12, %v11370_v44  ;;  %v15764_v56 = vld [vmem:[#allocation185_spill] sm:$0xff]  ;;  %v15767_v27 = vld [vmem:[#allocation322_spill] sm:$0xff]  ;;  %v11508_v44 = vpop.permute.xlu1 %2591 }
 0x2e0   : > { %v11490_v58 = vadd.f32 %v2703_v49, %v15761_v33  ;;  %v11492_v5 = vmax.f32 %v3231_v32, %v3263_v30  ;;  %v1934_v18 = vmax.f32 %v15762_v37, %v1902_v9  ;;  %v15765_v4 = vmax.f32 %v15763_v13, %v15764_v56  ;;  %15769 = vst [vmem:[#allocation76_spill] sm:$0xff] %v11508_v44  ;;  %v15770_v30 = vld [vmem:[#allocation56_spill] sm:$0xff]  ;;  %v15771_v9 = vld [vmem:[#allocation25_spill] sm:$0xff]  ;;  %v15772_v13 = vld [vmem:[#allocation46_spill] sm:$0xff] }
 0x2e1   : > { %v15766_v26 = vmax.f32 %v11117_v51, %v11313_v1  ;;  %v11504_v6 = vadd.f32 %v4794_v19, %v15767_v27  ;;  %v11506_v12 = vmax.f32 %v3355_v41, %v3387_v29  ;;  %v11511_v32 = vadd.f32 %v2703_v49, %v15770_v30  ;;  %v15773_v51 = vld [vmem:[#allocation309_spill] sm:$0xff]  ;;  %v15787_v30 = vld [vmem:[#allocation84_spill] sm:$0xff] }
 0x2e2   : > { %v2190_v20 = vmax.f32 %v15765_v4, %v2158_v3  ;;  %v11514_v37 = vadd.f32 %v2703_v49, %v15771_v9  ;;  %v4297_v3 = vadd.f32 %v11244_v17, %v15772_v13  ;;  %v11518_v56 = vmax.f32 %v1934_v18, %v2159_v8  ;;  %v15777_v4 = vld [vmem:[#allocation260_spill] sm:$0xff]  ;;  %v15786_v9 = vld [vmem:[#allocation311_spill] sm:$0xff] }
 0x2e3   : > { %v11501_v40 = vmax.f32 %v15766_v26, %v4422_v55  ;;  %15768 = vst [vmem:[#allocation11_spill] sm:$0xff] %v11504_v6  ;;  %v2670_v1 = vadd.f32 %v11508_v44, %v15773_v51  ;;  %v15774_v26 = vmax.f32 %v11301_v57, %v11191_v34  ;;  %v15775_v51 = vld [vmem:[#allocation249_spill] sm:$0xff]  ;;  %v15789_v6 = vmax.f32 %v11145_v39, %v11271_v60 }
 0x2e4   : > { %v11542_v29 = vadd.f32 %v4922_v21, %v15775_v51 }
 0x2e5   : > { %v14416_v19 = vrot.slane %v11501_v40, 1  ;;  %v14415_v55 = vrot.slane %v11501_v40, 2  ;;  %v11531_v27 = vmax.f32 %v15774_v26, %v4297_v3  ;;  %v2702_v18 = vmax.f32 %v2445_v43, %v2670_v1 }
 0x2e6   : > { %15776 = vst [vmem:[#allocation294_spill] sm:$0xff] %v11542_v29  ;;  %v15778_v34 = vrot.slane %v11501_v40, 6  ;;  %v15779_v3 = vrot.slane %v11379_v14, 6  ;;  %v15780_v1 = vrot.slane %v11501_v40, 7 }
 0x2e7   : > { %v4793_v8 = vsel %vm2236_vm5, %v4741_v63, %v14416_v19  ;;  %v4921_v13 = vsel %vm2493_vm2, %v4869_v24, %v14415_v55  ;;  %v15781_v63 = vrot.slane %v11379_v14, 7  ;;  %v4266_v24 = vmax.f32 %v11457_v23, %v11217_v15  ;;  %v15785_v14 = vld [vmem:[#allocation136_spill] sm:$0xff] }
 0x2e8   : > { %v4805_v41 = vadd.f32 %v4793_v8, %v15777_v4  ;;  %v4537_v43 = vsel %vm1722_vm3, %v15779_v3, %v15778_v34  ;;  %v3230_v21 = vmax.f32 %v2702_v18, %v11238_v36  ;;  %v11560_v4 = vpop.permute.xlu1 %2342  ;;  %v15783_v8 = vld [vmem:[#allocation224_spill] sm:$0xff]  ;;  %v11565_v55 = vadd.f32 %v11457_v23, %v15647_v61  ;;  %v15784_v34 = vld [vmem:[#allocation47_spill] sm:$0xff] }
 0x2e9   : > { %v4665_v26 = vsel %vm1979_vm4, %v15781_v63, %v15780_v1  ;;  %15782 = vst [vmem:[#allocation72_spill] sm:$0xff] %v11560_v4  ;;  %v4933_v51 = vadd.f32 %v4921_v13, %v15783_v8  ;;  %v4298_v3 = vadd.f32 %v11281_v16, %v15784_v34  ;;  %v3386_v19 = vadd.f32 %v2702_v18, %v15785_v14  ;;  %v15788_v8 = vld [vmem:[#allocation212_spill] sm:$0xff] }
 0x2ea   : > { %v2415_v1 = vadd.f32 %v11560_v4, %v15786_v9  ;;  %v2726_v63 = vpack.c.bf16 %v2703_v49, %v2702_v18  ;;  %v4837_v15 = vmax.f32 %v4709_v54, %v4805_v41  ;;  %v11573_v36 = vmax.f32 %v3230_v21, %v11343_v22  ;;  %v15791_v21 = vld [vmem:[#allocation75_spill] sm:$0xff] }
 0x2eb   : > { %v3324_v29 = vadd.f32 %v2702_v18, %v15787_v30  ;;  %v14419_v13 = vrot.slane %v11506_v12, 6  ;;  %v4550_v61 = vadd.f32 %v4537_v43, %v15788_v8  ;;  %v3418_v34 = vmax.f32 %v15789_v6, %v3386_v19 }
 0x2ec   : > { %v2447_v33 = vmax.f32 %v2190_v20, %v2415_v1  ;;  %6276 = vmatprep.mubr.msk.bf16.mxu0 %vm2751_vm1, %v2726_v63  ;;  %v11582_v10 = vmax.f32 %v4837_v15, %v4933_v51  ;;  %v11584_v49 = vmax.f32 %v4266_v24, %v4298_v3  ;;  %v3707_v22 = vrot.slane %v11506_v12, 1  ;;  %v11593_v39 = vpop.permute.xlu1 %2346  ;;  %v15793_v3 = vld [vmem:[#allocation55_spill] sm:$0xff] }
 0x2ed   : > { %v4582_v9 = vmax.f32 %v11501_v40, %v4550_v61  ;;  %v4678_v41 = vadd.f32 %v4665_v26, %v15631_v59  ;;  %v3450_v43 = vrot.slane %v3418_v34, 6  ;;  %15792 = vst [vmem:[#allocation182_spill] sm:$0xff] %v11593_v39  ;;  %v3706_v60 = vrot.slane %v3418_v34, 1  ;;  %v15794_v26 = vld [vmem:[#allocation144_spill] sm:$0xff] }
 0x2ee   : > { %15790 = vst [vmem:[#allocation299_spill] sm:$0xff] %v11582_v10  ;;  %v11591_v8 = vmax.f32 %v2447_v33, %v15791_v21  ;;  %v3834_v20 = vrot.slane %v3418_v34, 2  ;;  %v3578_v6 = vrot.slane %v3418_v34, 7  ;;  %v3835_v19 = vrot.slane %v11506_v12, 2  ;;  %v15800_v10 = vld [vmem:[#allocation259_spill] sm:$0xff] }
 0x2ef   : > { %v11598_v51 = vmax.f32 %v4582_v9, %v4678_v41  ;;  %v3264_v1 = vadd.f32 %v2702_v18, %v15793_v3  ;;  %v3356_v59 = vmax.f32 %v11364_v45, %v3324_v29  ;;  %v15795_v15 = vrot.slane %v11375_v7, 1  ;;  %v15797_v29 = vld [vmem:[#allocation15_spill] sm:$0xff]  ;;  %v15798_v41 = vld [vmem:[#allocation26_spill] sm:$0xff] }
 0x2f0   : > { %v3232_v33 = vmax.f32 %v11591_v8, %v11339_v25  ;;  %v3388_v63 = vadd.f32 %v11591_v8, %v15794_v26  ;;  %v15796_v21 = vrot.slane %v11375_v7, 2  ;;  %v3488_v45 = vsel %vm1722_vm3, %v3450_v43, %v14419_v13  ;;  %v11630_v4 = vpop.permute.xlu1 %1840  ;;  %v15803_v3 = vld [vmem:[#allocation271_spill] sm:$0xff] }
 0x2f1   : > { %v3745_v61 = vsel %vm2236_vm5, %v15795_v15, %v3706_v60  ;;  %v11620_v25 = vadd.f32 %v11244_v17, %v15797_v29  ;;  %v11623_v24 = vadd.f32 %v2702_v18, %v15798_v41  ;;  %15801 = vst [vmem:[#allocation166_spill] sm:$0xff] %v11630_v4  ;;  %v3515_v30 = vadd.f32 %v3488_v45, %v15803_v3  ;;  %v15807_v29 = vld [vmem:[#allocation168_spill] sm:$0xff]  ;;  %v15809_v45 = vld [vmem:[#allocation313_spill] sm:$0xff] }
 0x2f2   : > { %v3873_v9 = vsel %vm2493_vm2, %v15796_v21, %v3834_v20  ;;  %v11625_v54 = vmax.f32 %v3232_v33, %v3264_v1  ;;  %v11627_v15 = vmax.f32 %v3356_v59, %v3388_v63  ;;  %v3769_v26 = vadd.f32 %v3745_v61, %v15800_v10  ;;  %v15805_v1 = vld [vmem:[#allocation18_spill] sm:$0xff]  ;;  %v15806_v63 = vld [vmem:[#allocation181_spill] sm:$0xff]  ;;  %v15810_v3 = vld [vmem:[#allocation108_spill] sm:$0xff] }
 0x2f3   : > { %v15802_v21 = vrot.slane %v11375_v7, 6  ;;  %v15804_v17 = vrot.slane %v11506_v12, 7  ;;  %v11643_v59 = vadd.f32 %v11281_v16, %v15805_v1  ;;  %v3897_v61 = vadd.f32 %v3873_v9, %v15806_v63  ;;  %v15871_v63 = vld [vmem:[#allocation219_spill] sm:$0xff] }
 0x2f4   : > { %15799 = vst [vmem:[#allocation298_spill] sm:$0xff] %v11625_v54  ;;  %v3801_v33 = vmax.f32 %v11455_v38, %v3769_v26  ;;  %v15808_v10 = vrot.slane %v11375_v7, 7  ;;  %v14420_v16 = vrot.slane %v11627_v15, 1  ;;  %v15811_v26 = vld [vmem:[#allocation283_spill] sm:$0xff]  ;;  %v3744_v7 = vsel %vm2236_vm5, %v3706_v60, %v3707_v22  ;;  %v15815_v60 = vld [vmem:[#allocation213_spill] sm:$0xff] }
 0x2f5   : > { %v3489_v13 = vsel %vm1722_vm3, %v15802_v21, %v3450_v43  ;;  %v3616_v18 = vsel %vm1979_vm4, %v3578_v6, %v15804_v17  ;;  %v2416_v21 = vadd.f32 %v11593_v39, %v15809_v45  ;;  %v3547_v17 = vmax.f32 %v11506_v12, %v3515_v30  ;;  %v11668_v45 = vpop.permute.xlu1 %2093 }
 0x2f6   : > { %v3514_v41 = vadd.f32 %v3489_v13, %v15807_v29  ;;  %v3617_v43 = vsel %vm1979_vm4, %v15808_v10, %v3578_v6  ;;  %v3643_v14 = vadd.f32 %v3616_v18, %v15810_v3  ;;  %v11657_v1 = vmax.f32 %v3801_v33, %v3897_v61  ;;  %v15812_v6 = vld [vmem:[#allocation230_spill] sm:$0xff]  ;;  %15813 = vst [vmem:[#allocation300_spill] sm:$0xff] %v11668_v45  ;;  %v15819_v3 = vld [vmem:[#allocation256_spill] sm:$0xff] }
 0x2f7   : > { %v3642_v9 = vadd.f32 %v3617_v43, %v15811_v26  ;;  %v3743_v10 = vsel %vm2236_vm5, %v3707_v22, %v14420_v16  ;;  %v3770_v30 = vadd.f32 %v3744_v7, %v15812_v6  ;;  %v14425_v18 = vrot.slane %v11627_v15, 2  ;;  %v15814_v33 = vld [vmem:[#allocation258_spill] sm:$0xff]  ;;  %v15870_v29 = vld [vmem:[#allocation272_spill] sm:$0xff] }
 0x2f8   : > { %v3546_v38 = vmax.f32 %v3418_v34, %v3514_v41  ;;  %v3675_v13 = vmax.f32 %v3547_v17, %v3643_v14  ;;  %v3955_v34 = vpack.c.bf16 %v11657_v1, %v11457_v23  ;;  %v3771_v61 = vadd.f32 %v3743_v10, %v15814_v33  ;;  %v15816_v10 = vld [vmem:[#allocation88_spill] sm:$0xff]  ;;  %v15817_v6 = vld [vmem:[#allocation86_spill] sm:$0xff] }
 0x2f9   : > { %v3872_v14 = vsel %vm2493_vm2, %v3834_v20, %v3835_v19  ;;  %v2160_v43 = vadd.f32 %v11668_v45, %v15815_v60  ;;  %v3871_v22 = vsel %vm2493_vm2, %v3835_v19, %v14425_v18  ;;  %v14427_v7 = vrot.slane %v11627_v15, 6  ;;  %v15818_v33 = vld [vmem:[#allocation200_spill] sm:$0xff]  ;;  %v11712_v18 = vpop.permute.xlu1 %2603 }
 0x2fa   : > { %v3674_v41 = vmax.f32 %v3546_v38, %v3642_v9  ;;  %v3898_v17 = vadd.f32 %v3872_v14, %v11071_v11  ;;  %6341 = vmatmul.mubr.msk.bf16.gmra.mrb[28].mxu1 %vm2751_vm1, %v3955_v34  ;;  %v3803_v9 = vmax.f32 %v3675_v13, %v3771_v61  ;;  %v3899_v16 = vadd.f32 %v3871_v22, %v15816_v10  ;;  %v15823_v14 = vld [vmem:[#allocation178_spill] sm:$0xff] }
 0x2fb   : > { %v14426_v20 = vrot.slane %v11627_v15, 7  ;;  %v3326_v60 = vadd.f32 %v11591_v8, %v15817_v6  ;;  %v15820_v39 = vmax.f32 %v15818_v33, %v15819_v3  ;;  %v15821_v19 = vrot.slane %v11506_v12, 6  ;;  %15826 = vst [vmem:[#allocation170_spill] sm:$0xff] %v11712_v18 }
 0x2fc   : > { %v3802_v38 = vmax.f32 %v3674_v41, %v3770_v30  ;;  %v15822_v30 = vld [vmem:[#allocation110_spill] sm:$0xff]  ;;  %v11701_v61 = vmax.f32 %v3803_v9, %v3899_v16  ;;  %v2448_v33 = vmax.f32 %v11518_v56, %v2416_v21  ;;  %v15828_v16 = vmax.f32 %v11333_v50, %v11423_v42  ;;  %v15830_v56 = vld [vmem:[#allocation123_spill] sm:$0xff]  ;;  %v15833_v50 = vld [vmem:[#allocation49_spill] sm:$0xff] }
 0x2fd   : > { %v2192_v45 = vmax.f32 %v15820_v39, %v2160_v43  ;;  %v3487_v34 = vsel %vm1722_vm3, %v15821_v19, %v14427_v7  ;;  %v4423_v13 = vadd.f32 %v11657_v1, %v15822_v30  ;;  %v15824_v39 = vrot.slane %v11506_v12, 7  ;;  %v15825_v43 = vld [vmem:[#allocation251_spill] sm:$0xff]  ;;  %v15827_v30 = vld [vmem:[#allocation288_spill] sm:$0xff]  ;;  %v15829_v9 = vld [vmem:[#allocation314_spill] sm:$0xff] }
 0x2fe   : > { %v11699_v41 = vmax.f32 %v3802_v38, %v3898_v17  ;;  %v3516_v22 = vadd.f32 %v3487_v34, %v15823_v14  ;;  %v2673_v34 = vadd.f32 %v11712_v18, %v15829_v9  ;;  %v11736_v42 = vadd.f32 %v11457_v23, %v15833_v50 }
 0x2ff   : > { %v3615_v3 = vsel %vm1979_vm4, %v15824_v39, %v14426_v20  ;;  %v2449_v19 = vmax.f32 %v2192_v45, %v15825_v43  ;;  %v11718_v38 = vmax.f32 %v15828_v16, %v4423_v13  ;;  %v15831_v45 = vld [vmem:[#allocation148_spill] sm:$0xff]  ;;  %v15834_v13 = vld [vmem:[#allocation17_spill] sm:$0xff]  ;;  %v15856_v10 = vrot.slane %v11501_v40, 7 }
 0x300   : > { %v3644_v17 = vadd.f32 %v3615_v3, %v15827_v30  ;;  %v3956_v12 = vpack.c.bf16 %v11701_v61, %v11699_v41  ;;  %v3548_v39 = vmax.f32 %v11627_v15, %v3516_v22  ;;  %v4424_v21 = vadd.f32 %v11699_v41, %v15830_v56  ;;  %v15832_v3 = vld [vmem:[#allocation48_spill] sm:$0xff] }
 0x301   : > { %v11728_v43 = vmax.f32 %v2449_v19, %v15831_v45  ;;  %v11732_v20 = vadd.f32 %v11301_v57, %v15832_v3  ;;  %v11740_v16 = vadd.f32 %v11301_v57, %v15834_v13  ;;  %v3358_v22 = vmax.f32 %v11573_v36, %v3326_v60  ;;  %v15837_v3 = vld [vmem:[#allocation310_spill] sm:$0xff] }
 0x302   : > { %v11743_v9 = vmax.f32 %v2448_v33, %v2673_v34  ;;  %6344 = vmatprep.mubr.msk.bf16.mxu1 %vm2751_vm1, %v3956_v12  ;;  %v3676_v19 = vmax.f32 %v3548_v39, %v3644_v17  ;;  %v15836_v56 = vmax.f32 %v11384_v47, %v11565_v55  ;;  %v11753_v50 = vadd.f32 %v11630_v4, %v15837_v3  ;;  %v15838_v13 = vld [vmem:[#allocation90_spill] sm:$0xff]  ;;  %v15841_v17 = vld [vmem:[#allocation57_spill] sm:$0xff]  ;;  %v15842_v55 = vld [vmem:[#allocation91_spill] sm:$0xff]  ;;  %v11771_v39 = vpop.permute.xlu1 %1848 }
 0x303   : > { %15835 = vst [vmem:[#allocation183_spill] sm:$0xff] %v11740_v16  ;;  %v3234_v57 = vmax.f32 %v11728_v43, %v11623_v24  ;;  %v11759_v36 = vadd.f32 %v11728_v43, %v15838_v13  ;;  %v15840_v60 = vld [vmem:[#allocation150_spill] sm:$0xff]  ;;  %v3266_v34 = vadd.f32 %v11591_v8, %v15841_v17  ;;  %15843 = vst [vmem:[#allocation73_spill] sm:$0xff] %v11771_v39  ;;  %v15851_v13 = vrot.slane %v11501_v40, 6  ;;  %v15862_v4 = vld [vmem:[#allocation176_spill] sm:$0xff] }
 0x304   : > { %v11749_v45 = vmax.f32 %v15836_v56, %v4424_v21  ;;  %v3390_v33 = vadd.f32 %v11728_v43, %v15840_v60  ;;  %v3233_v47 = vmax.f32 %v11743_v9, %v11485_v46  ;;  %v11769_v12 = vadd.f32 %v11743_v9, %v15842_v55  ;;  %v15844_v56 = vld [vmem:[#allocation130_spill] sm:$0xff] }
 0x305   : > { %15839 = vst [vmem:[#allocation71_spill] sm:$0xff] %v11759_v36  ;;  %v3389_v3 = vadd.f32 %v11743_v9, %v15844_v56  ;;  %v2727_v7 = vpack.c.bf16 %v11743_v9, %v11591_v8  ;;  %v11786_v55 = vmax.f32 %v3234_v57, %v3266_v34  ;;  %v15847_v30 = vmax.f32 %v11362_v31, %v11490_v58  ;;  %v15852_v58 = vld [vmem:[#allocation80_spill] sm:$0xff]  ;;  %v15854_v34 = vld [vmem:[#allocation211_spill] sm:$0xff] }
 0x306   : > { %v11774_v21 = vmax.f32 %v3358_v22, %v3390_v33  ;;  %v11782_v46 = vmax.f32 %v3233_v47, %v11511_v32  ;;  %v15846_v33 = vld [vmem:[#allocation193_spill] sm:$0xff]  ;;  %v15848_v47 = vld [vmem:[#allocation28_spill] sm:$0xff]  ;;  %v15850_v22 = vrot.slane %v11718_v38, 6  ;;  %v15855_v56 = vrot.slane %v11718_v38, 7 }
 0x307   : > { %15845 = vst [vmem:[#allocation82_spill] sm:$0xff] %v11786_v55  ;;  %v3421_v14 = vmax.f32 %v15847_v30, %v3389_v3  ;;  %6277 = vmatmul.mubr.msk.bf16.gmra.mrb[48].mxu0 %vm2751_vm1, %v2727_v7  ;;  %v11799_v17 = vadd.f32 %v11591_v8, %v15848_v47  ;;  %v11811_v7 = vadd.f32 %v11657_v1, %v15852_v58  ;;  %v11813_v3 = vpop.permute.xlu1 %2097  ;;  %v15857_v58 = vrot.slane %v11627_v15, 6 }
 0x308   : > { %v4536_v31 = vsel %vm1722_vm3, %v15851_v13, %v15850_v22  ;;  %15853 = vst [vmem:[#allocation107_spill] sm:$0xff] %v11813_v3  ;;  %v4664_v13 = vsel %vm1979_vm4, %v15856_v10, %v15855_v56  ;;  %v4743_v22 = vrot.slane %v11718_v38, 1  ;;  %v15858_v6 = vrot.slane %v11627_v15, 7  ;;  %v15861_v56 = vld [vmem:[#allocation255_spill] sm:$0xff] }
 0x309   : > { %15849 = vst [vmem:[#allocation104_spill] sm:$0xff] %v11799_v17  ;;  %v3453_v30 = vrot.slane %v3421_v14, 6  ;;  %v3581_v8 = vrot.slane %v3421_v14, 7  ;;  %v3709_v24 = vrot.slane %v3421_v14, 1  ;;  %v3837_v32 = vrot.slane %v3421_v14, 2 }
 0x30a   : > { %v4551_v60 = vadd.f32 %v4536_v31, %v15854_v34  ;;  %v15859_v34 = vrot.slane %v11774_v21, 1  ;;  %v15860_v18 = vrot.slane %v11627_v15, 1  ;;  %v15865_v55 = vrot.slane %v11774_v21, 2 }
 0x30b   : > { %v3486_v11 = vsel %vm1722_vm3, %v15857_v58, %v3453_v30  ;;  %v3614_v57 = vsel %vm1979_vm4, %v15858_v6, %v3581_v8  ;;  %v15863_v58 = vld [vmem:[#allocation59_spill] sm:$0xff]  ;;  %v4871_v6 = vrot.slane %v11718_v38, 2  ;;  %v15866_v17 = vrot.slane %v11627_v15, 2 }
 0x30c   : > { %v3741_v31 = vsel %vm2236_vm5, %v3709_v24, %v15859_v34  ;;  %v3742_v10 = vsel %vm2236_vm5, %v15860_v18, %v3709_v24  ;;  %v3517_v47 = vadd.f32 %v3486_v11, %v15861_v56  ;;  %v11844_v54 = vadd.f32 %v11728_v43, %v15863_v58  ;;  %v15869_v58 = vld [vmem:[#allocation289_spill] sm:$0xff] }
 0x30d   : > { %v3772_v36 = vadd.f32 %v3742_v10, %v15862_v4  ;;  %v3869_v34 = vsel %vm2493_vm2, %v3837_v32, %v15865_v55  ;;  %v3870_v18 = vsel %vm2493_vm2, %v15866_v17, %v3837_v32  ;;  %v15867_v11 = vrot.slane %v11774_v21, 6  ;;  %v11860_v4 = vpop.permute.xlu1 %1852 }
 0x30e   : > { %15864 = vst [vmem:[#allocation109_spill] sm:$0xff] %v11844_v54  ;;  %15868 = vst [vmem:[#allocation14_spill] sm:$0xff] %v11860_v4  ;;  %v3549_v56 = vmax.f32 %v3421_v14, %v3517_v47  ;;  %v3645_v54 = vadd.f32 %v3614_v57, %v15869_v58  ;;  %v3900_v55 = vadd.f32 %v3870_v18, %v15870_v29  ;;  %v15872_v17 = vrot.slane %v11774_v21, 7  ;;  %v15873_v47 = vld [vmem:[#allocation264_spill] sm:$0xff] }
 0x30f   : > { %v3485_v24 = vsel %vm1722_vm3, %v3453_v30, %v15867_v11  ;;  %v3804_v26 = vmax.f32 %v3676_v19, %v3772_v36  ;;  %v3773_v15 = vadd.f32 %v3741_v31, %v11160_v53  ;;  %v4583_v30 = vmax.f32 %v11718_v38, %v4551_v60  ;;  %v15943_v53 = vld [vmem:[#allocation29_spill] sm:$0xff] }
 0x310   : > { %v3518_v16 = vadd.f32 %v3485_v24, %v15871_v63  ;;  %v3613_v32 = vsel %vm1979_vm4, %v3581_v8, %v15872_v17  ;;  %v3677_v11 = vmax.f32 %v3549_v56, %v3645_v54  ;;  %v3901_v10 = vadd.f32 %v3869_v34, %v11286_v48  ;;  %v15877_v34 = vld [vmem:[#allocation122_spill] sm:$0xff]  ;;  %v15878_v24 = vld [vmem:[#allocation325_spill] sm:$0xff] }
 0x311   : > { %v11872_v14 = vmax.f32 %v3804_v26, %v3900_v55  ;;  %v4679_v19 = vadd.f32 %v4664_v13, %v15873_v47  ;;  %v3646_v57 = vadd.f32 %v3613_v32, %v11248_v35  ;;  %v15874_v31 = vrot.slane %v11749_v45, 1  ;;  %v11885_v60 = vpop.permute.xlu1 %1856  ;;  %v15879_v55 = vld [vmem:[#allocation317_spill] sm:$0xff] }
 0x312   : > { %v3550_v36 = vmax.f32 %v11774_v21, %v3518_v16  ;;  %v15875_v8 = vrot.slane %v11501_v40, 1  ;;  %15876 = vst [vmem:[#allocation44_spill] sm:$0xff] %v11885_v60  ;;  %v3805_v26 = vmax.f32 %v3677_v11, %v3773_v15  ;;  %v1908_v17 = vadd.f32 %v11885_v60, %v15879_v55  ;;  %v15882_v11 = vld [vmem:[#allocation237_spill] sm:$0xff] }
 0x313   : > { %v4791_v18 = vsel %vm2236_vm5, %v4743_v22, %v15874_v31  ;;  %v4711_v56 = vmax.f32 %v4583_v30, %v4679_v19  ;;  %v14436_v47 = vrot.slane %v11749_v45, 2  ;;  %v15880_v31 = vrot.slane %v11501_v40, 2 }
 0x314   : > { %v4792_v54 = vsel %vm2236_vm5, %v15875_v8, %v4743_v22  ;;  %v4807_v16 = vadd.f32 %v4791_v18, %v15878_v24  ;;  %v11891_v32 = vmax.f32 %v3550_v36, %v3646_v57  ;;  %v11898_v8 = vmax.f32 %v3805_v26, %v3901_v10  ;;  %v15883_v18 = vld [vmem:[#allocation225_spill] sm:$0xff]  ;;  %v15884_v57 = vld [vmem:[#allocation79_spill] sm:$0xff]  ;;  %v15887_v24 = vld [vmem:[#allocation270_spill] sm:$0xff] }
 0x315   : > { %v4806_v13 = vadd.f32 %v4792_v54, %v15877_v34  ;;  %v4920_v22 = vsel %vm2493_vm2, %v15880_v31, %v4871_v6  ;;  %v1940_v54 = vmax.f32 %v15883_v18, %v1908_v17  ;;  %v4919_v36 = vsel %vm2493_vm2, %v4871_v6, %v14436_v47  ;;  %v11919_v55 = vpop.permute.xlu1 %2105  ;;  %v15889_v17 = vld [vmem:[#allocation129_spill] sm:$0xff]  ;;  %v15893_v18 = vld [vmem:[#allocation284_spill] sm:$0xff] }
 0x316   : > { %15881 = vst [vmem:[#allocation228_spill] sm:$0xff] %v11898_v8  ;;  %v4839_v30 = vmax.f32 %v4711_v56, %v4807_v16  ;;  %v4934_v19 = vadd.f32 %v4920_v22, %v15882_v11  ;;  %v4362_v40 = vadd.f32 %v11699_v41, %v15884_v57  ;;  %v4393_v34 = vmax.f32 %v11531_v27, %v11811_v7  ;;  %v15886_v56 = vld [vmem:[#allocation113_spill] sm:$0xff]  ;;  %v15890_v7 = vld [vmem:[#allocation27_spill] sm:$0xff] }
 0x317   : > { %v4838_v15 = vmax.f32 %v11598_v51, %v4806_v13  ;;  %v3957_v10 = vpack.c.bf16 %v11898_v8, %v11872_v14  ;;  %v4935_v51 = vadd.f32 %v4919_v36, %v15698_v28  ;;  %v4425_v13 = vadd.f32 %v11701_v61, %v15886_v56  ;;  %15888 = vst [vmem:[#allocation301_spill] sm:$0xff] %v11919_v55  ;;  %v15895_v56 = vld [vmem:[#allocation315_spill] sm:$0xff] }
 0x318   : > { %v2197_v16 = vmax.f32 %v1940_v54, %v15887_v24  ;;  %v4394_v6 = vmax.f32 %v11584_v49, %v4362_v40  ;;  %v4426_v31 = vadd.f32 %v11872_v14, %v15889_v17  ;;  %v4488_v27 = vrot.slane %v11749_v45, 6  ;;  %v15897_v24 = vld [vmem:[#allocation292_spill] sm:$0xff] }
 0x319   : > { %v11914_v26 = vmax.f32 %v4838_v15, %v4934_v19  ;;  %v11927_v22 = vadd.f32 %v11743_v9, %v15890_v7  ;;  %6345 = vmatmul.mubr.msk.bf16.gmra.mrb[0].mxu1 %vm2751_vm1, %v3957_v10  ;;  %v11930_v28 = vmax.f32 %v4839_v30, %v4935_v51  ;;  %v11932_v15 = vmax.f32 %v4393_v34, %v4425_v13  ;;  %v15892_v19 = vld [vmem:[#allocation316_spill] sm:$0xff]  ;;  %v15896_v51 = vld [vmem:[#allocation125_spill] sm:$0xff] }
 0x31a   : > { %v4616_v11 = vrot.slane %v11749_v45, 7  ;;  %v2161_v49 = vadd.f32 %v11813_v3, %v15892_v19  ;;  %v2454_v54 = vmax.f32 %v2197_v16, %v15893_v18  ;;  %v11938_v36 = vmax.f32 %v4394_v6, %v4426_v31  ;;  %v11959_v18 = vpop.permute.xlu1 %2354  ;;  %v15902_v34 = vld [vmem:[#allocation33_spill] sm:$0xff]  ;;  %v15903_v16 = vld [vmem:[#allocation323_spill] sm:$0xff] }
 0x31b   : > { %15885 = vst [vmem:[#allocation269_spill] sm:$0xff] %v11914_v26  ;;  %15891 = vst [vmem:[#allocation206_spill] sm:$0xff] %v11930_v28  ;;  %v15894_v57 = vrot.slane %v11718_v38, 6  ;;  %v1906_v30 = vadd.f32 %v11771_v39, %v15895_v56  ;;  %v14437_v10 = vrot.slane %v11932_v15, 6  ;;  %v15899_v6 = vrot.slane %v11718_v38, 7  ;;  %v15907_v56 = vld [vmem:[#allocation205_spill] sm:$0xff] }
 0x31c   : > { %v11951_v17 = vmax.f32 %v2454_v54, %v15897_v24  ;;  %v4745_v19 = vrot.slane %v11932_v15, 1  ;;  %v15901_v24 = vmax.f32 %v15846_v33, %v11753_v50  ;;  %v2418_v7 = vadd.f32 %v11959_v18, %v15903_v16  ;;  %v15908_v33 = vld [vmem:[#allocation240_spill] sm:$0xff] }
 0x31d   : > { %v4535_v40 = vsel %vm1722_vm3, %v15894_v57, %v4488_v27  ;;  %v4663_v31 = vsel %vm1979_vm4, %v15899_v6, %v4616_v11  ;;  %v4534_v57 = vsel %vm1722_vm3, %v4488_v27, %v14437_v10  ;;  %v15904_v27 = vld [vmem:[#allocation202_spill] sm:$0xff]  ;;  %v1907_v50 = vadd.f32 %v11860_v4, %v15907_v56 }
 0x31e   : > { %v4552_v13 = vadd.f32 %v4535_v40, %v15896_v51  ;;  %15898 = vst [vmem:[#allocation302_spill] sm:$0xff] %v11951_v17  ;;  %v4680_v54 = vadd.f32 %v4663_v31, %v15704_v62  ;;  %v15900_v51 = vld [vmem:[#allocation58_spill] sm:$0xff]  ;;  %v2193_v6 = vmax.f32 %v15901_v24, %v2161_v49  ;;  %v3211_v47 = vadd.f32 %v11951_v17, %v15902_v34 }
 0x31f   : > { %v3267_v38 = vadd.f32 %v11743_v9, %v15900_v51  ;;  %v1938_v10 = vmax.f32 %v15904_v27, %v1906_v30  ;;  %v15906_v62 = vrot.slane %v11932_v15, 7  ;;  %v15909_v51 = vrot.slane %v11938_v36, 1 }
 0x320   : > { %v4584_v40 = vmax.f32 %v11749_v45, %v4552_v13  ;;  %v15905_v13 = vld [vmem:[#allocation216_spill] sm:$0xff]  ;;  %v3243_v49 = vmax.f32 %v15908_v33, %v3211_v47  ;;  %v2450_v24 = vmax.f32 %v2193_v6, %v2418_v7  ;;  %v15910_v27 = vrot.slane %v11749_v45, 1  ;;  %v12001_v6 = vpop.permute.xlu1 %1860 }
 0x321   : > { %v4553_v35 = vadd.f32 %v4534_v57, %v15905_v13  ;;  %v4662_v31 = vsel %vm1979_vm4, %v4616_v11, %v15906_v62  ;;  %v4789_v16 = vsel %vm2236_vm5, %v4745_v19, %v15909_v51  ;;  %v15912_v47 = vld [vmem:[#allocation16_spill] sm:$0xff]  ;;  %15913 = vst [vmem:[#allocation304_spill] sm:$0xff] %v12001_v6  ;;  %v4267_v63 = vmax.f32 %v11657_v1, %v11620_v25 }
 0x322   : > { %v4712_v9 = vmax.f32 %v4584_v40, %v4680_v54  ;;  %v4681_v57 = vadd.f32 %v4662_v31, %v10403_v52  ;;  %v4790_v11 = vsel %vm2236_vm5, %v15910_v27, %v4745_v19  ;;  %v4873_v40 = vrot.slane %v11932_v15, 2  ;;  %v15911_v54 = vld [vmem:[#allocation330_spill] sm:$0xff]  ;;  %v15914_v13 = vld [vmem:[#allocation40_spill] sm:$0xff]  ;;  %v15916_v27 = vld [vmem:[#allocation9_spill] sm:$0xff] }
 0x323   : > { %v4585_v30 = vmax.f32 %v11932_v15, %v4553_v35  ;;  %v3307_v56 = vmax.f32 %v3243_v49, %v15911_v54  ;;  %v11999_v7 = vmax.f32 %v2450_v24, %v15912_v47  ;;  %v4808_v51 = vadd.f32 %v4790_v11, %v15707_v0  ;;  %v15917_v54 = vld [vmem:[#allocation318_spill] sm:$0xff]  ;;  %v15920_v11 = vld [vmem:[#allocation93_spill] sm:$0xff]  ;;  %v15927_v25 = vld [vmem:[#allocation320_spill] sm:$0xff] }
 0x324   : > { %v4809_v35 = vadd.f32 %v4789_v16, %v15914_v13  ;;  %v15915_v31 = vrot.slane %v11749_v45, 2  ;;  %v4268_v49 = vmax.f32 %v11699_v41, %v11643_v59  ;;  %v2163_v47 = vadd.f32 %v11919_v55, %v15917_v54  ;;  %v15918_v16 = vld [vmem:[#allocation30_spill] sm:$0xff] }
 0x325   : > { %v4713_v62 = vmax.f32 %v4585_v30, %v4681_v57  ;;  %v3371_v24 = vmax.f32 %v3307_v56, %v15916_v27  ;;  %v3235_v0 = vmax.f32 %v11999_v7, %v11514_v37  ;;  %v12019_v30 = vadd.f32 %v11728_v43, %v15918_v16  ;;  %v15919_v57 = vld [vmem:[#allocation198_spill] sm:$0xff]  ;;  %v15922_v27 = vld [vmem:[#allocation45_spill] sm:$0xff] }
 0x326   : > { %v4918_v19 = vsel %vm2493_vm2, %v15915_v31, %v4873_v40  ;;  %v1939_v45 = vmax.f32 %v15919_v57, %v1907_v50  ;;  %v12024_v13 = vadd.f32 %v11999_v7, %v15920_v11  ;;  %v15921_v31 = vld [vmem:[#allocation137_spill] sm:$0xff]  ;;  %v2728_v56 = vpack.c.bf16 %v11999_v7, %v11728_v43  ;;  %v12043_v11 = vpop.permute.xlu1 %2109  ;;  %v15932_v43 = vld [vmem:[#allocation267_spill] sm:$0xff] }
 0x327   : > { %v3391_v59 = vadd.f32 %v11999_v7, %v15921_v31  ;;  %v12031_v54 = vmax.f32 %v3371_v24, %v15922_v27  ;;  %v12033_v37 = vmax.f32 %v3235_v0, %v3267_v38  ;;  %v4840_v52 = vmax.f32 %v4712_v9, %v4808_v51  ;;  %15925 = vst [vmem:[#allocation112_spill] sm:$0xff] %v12043_v11  ;;  %v15930_v27 = vld [vmem:[#allocation64_spill] sm:$0xff]  ;;  %v15940_v31 = vld [vmem:[#allocation261_spill] sm:$0xff] }
 0x328   : > { %v15923_v50 = vmax.f32 %v11492_v5, %v11769_v12  ;;  %6280 = vmatprep.mubr.msk.bf16.mxu0 %vm2751_vm1, %v2728_v56  ;;  %v4841_v24 = vmax.f32 %v4713_v62, %v4809_v35  ;;  %v15926_v38 = vrot.slane %v11938_v36, 2  ;;  %v12051_v51 = vmax.f32 %v1938_v10, %v2163_v47  ;;  %v15928_v12 = vld [vmem:[#allocation97_spill] sm:$0xff] }
 0x329   : > { %v2164_v5 = vadd.f32 %v12043_v11, %v15927_v25  ;;  %v12057_v0 = vadd.f32 %v11951_v17, %v15928_v12  ;;  %v15935_v28 = vrot.slane %v11774_v21, 7  ;;  %v15967_v34 = vrot.slane %v11938_v36, 1 }
 0x32a   : > { %v12040_v57 = vmax.f32 %v15923_v50, %v3391_v59  ;;  %v4917_v9 = vsel %vm2493_vm2, %v4873_v40, %v15926_v38  ;;  %v15929_v59 = vld [vmem:[#allocation151_spill] sm:$0xff]  ;;  %v12067_v40 = vadd.f32 %v11951_v17, %v15930_v27  ;;  %v15931_v38 = vld [vmem:[#allocation196_spill] sm:$0xff] }
 0x32b   : > { %v12061_v56 = vadd.f32 %v11951_v17, %v15929_v59  ;;  %v12070_v47 = vmax.f32 %v1939_v45, %v2164_v5  ;;  %v4936_v25 = vadd.f32 %v4918_v19, %v15931_v38  ;;  %v4937_v12 = vadd.f32 %v4917_v9, %v15932_v43  ;;  %v15937_v5 = vld [vmem:[#allocation319_spill] sm:$0xff] }
 0x32c   : > { %15924 = vst [vmem:[#allocation306_spill] sm:$0xff] %v12040_v57  ;;  %v14441_v35 = vrot.slane %v12040_v57, 6  ;;  %v14444_v10 = vrot.slane %v12040_v57, 1  ;;  %v15933_v59 = vrot.slane %v11774_v21, 6  ;;  %v15934_v26 = vrot.slane %v12040_v57, 7 }
 0x32d   : > { %v15936_v19 = vrot.slane %v11774_v21, 1  ;;  %v4331_v9 = vmax.f32 %v4267_v63, %v11732_v20  ;;  %v1909_v38 = vadd.f32 %v12001_v6, %v15937_v5  ;;  %v15944_v63 = vld [vmem:[#allocation297_spill] sm:$0xff]  ;;  %v6637_v5 = vld [vmem:[%s13955_s3 + $0x38] sm:$0xff]  }
 0x32e   : > { %v3484_v62 = vsel %vm1722_vm3, %v15933_v59, %v14441_v35  ;;  %v3612_v45 = vsel %vm1979_vm4, %v15935_v28, %v15934_v26  ;;  %v12096_v59 = vpop.permute.xlu1 %2358  ;;  %v15939_v35 = vld [vmem:[#allocation70_spill] sm:$0xff]  ;;  %v15941_v26 = vrot.slane %v12040_v57, 2  ;;  %v15942_v28 = vrot.slane %v11774_v21, 2  ;;  %6366 = vmatprep.subr.bf16.mxu1 %v6637_v5 }
 0x32f   : > { %v3740_v43 = vsel %vm2236_vm5, %v15936_v19, %v14444_v10  ;;  %15938 = vst [vmem:[#allocation159_spill] sm:$0xff] %v12096_v59  ;;  %v3519_v50 = vadd.f32 %v3484_v62, %v15939_v35  ;;  %v12108_v19 = vadd.f32 %v11999_v7, %v15943_v53  ;;  %v3647_v20 = vadd.f32 %v3612_v45, %v15944_v63  ;;  %v15948_v35 = vld [vmem:[#allocation81_spill] sm:$0xff] }
 0x330   : > { %v3774_v48 = vadd.f32 %v3740_v43, %v15940_v31  ;;  %v3868_v29 = vsel %vm2493_vm2, %v15942_v28, %v15941_v26  ;;  %v12114_v62 = vmax.f32 %v4840_v52, %v4936_v25  ;;  %v12116_v43 = vmax.f32 %v4841_v24, %v4937_v12  ;;  %v15947_v28 = vld [vmem:[#allocation83_spill] sm:$0xff]  ;;  %6367 = vmatpush3.bf16.msra.mxu1 %v6637_v5  ;;  %v15958_v5 = vld [vmem:[#allocation324_spill] sm:$0xff] }
 0x331   : > { %v3551_v10 = vmax.f32 %v12040_v57, %v3519_v50  ;;  %v3902_v26 = vadd.f32 %v3868_v29, %v11508_v44  ;;  %v4363_v31 = vadd.f32 %v11701_v61, %v15947_v28  ;;  %v4332_v63 = vmax.f32 %v4268_v49, %v11736_v42  ;;  %v15949_v24 = vld [vmem:[#allocation119_spill] sm:$0xff]  ;;  %v15954_v49 = vld [vmem:[#allocation20_spill] sm:$0xff] }
 0x332   : > { %15945 = vst [vmem:[#allocation173_spill] sm:$0xff] %v12114_v62  ;;  %15946 = vst [vmem:[#allocation222_spill] sm:$0xff] %v12116_v43  ;;  %v3806_v21 = vmax.f32 %v11891_v32, %v3774_v48  ;;  %v4364_v52 = vadd.f32 %v11872_v14, %v15948_v35  ;;  %v4427_v12 = vadd.f32 %v11898_v8, %v15949_v24  ;;  %v12130_v50 = vpop.permute.xlu1 %2362  ;;  %v4490_v25 = vrot.slane %v11938_v36, 6  ;;  %v15953_v28 = vld [vmem:[#allocation199_spill] sm:$0xff]  ;;  %v15955_v62 = vld [vmem:[#allocation136_spill] sm:$0xff] }
 0x333   : > { %15950 = vst [vmem:[#allocation308_spill] sm:$0xff] %v12130_v50  ;;  %v12132_v48 = vmax.f32 %v3551_v10, %v3647_v20  ;;  %v4395_v32 = vmax.f32 %v4331_v9, %v4363_v31  ;;  %v1941_v45 = vmax.f32 %v15953_v28, %v1909_v38  ;;  %v4618_v42 = vrot.slane %v11938_v36, 7  ;;  %v15957_v31 = vld [vmem:[#allocation183_spill] sm:$0xff] }
 0x334   : > { %v12134_v29 = vmax.f32 %v3806_v21, %v3902_v26  ;;  %v4396_v44 = vmax.f32 %v4332_v63, %v4364_v52  ;;  %v4238_v35 = vadd.f32 %v11457_v23, %v15954_v49  ;;  %v15956_v10 = vrot.slane %v11932_v15, 6  ;;  %v15959_v63 = vld [vmem:[#allocation117_spill] sm:$0xff]  ;;  %v15962_v28 = vld [vmem:[#allocation279_spill] sm:$0xff] }
 0x335   : > { %15951 = vst [vmem:[#allocation78_spill] sm:$0xff] %v12132_v48  ;;  %v4459_v43 = vmax.f32 %v4395_v32, %v4427_v12  ;;  %v4269_v9 = vmax.f32 %v11701_v61, %v15957_v31  ;;  %v12151_v38 = vadd.f32 %v12096_v59, %v15958_v5  ;;  %v15960_v23 = vrot.slane %v11932_v15, 7  ;;  %v15966_v48 = vld [vmem:[#allocation229_spill] sm:$0xff] }
 0x336   : > { %15952 = vst [vmem:[#allocation42_spill] sm:$0xff] %v12134_v29  ;;  %v4428_v24 = vadd.f32 %v12134_v29, %v15955_v62  ;;  %v4533_v20 = vsel %vm1722_vm3, %v15956_v10, %v4490_v25  ;;  %v4270_v26 = vmax.f32 %v11872_v14, %v4238_v35  ;;  %v12162_v10 = vpop.permute.xlu1 %2117 }
 0x337   : > { %v4554_v21 = vadd.f32 %v4533_v20, %v15959_v63  ;;  %v4661_v62 = vsel %vm1979_vm4, %v15960_v23, %v4618_v42  ;;  %v4491_v12 = vrot.slane %v4459_v43, 6  ;;  %v4619_v32 = vrot.slane %v4459_v43, 7  ;;  %v15963_v20 = vld [vmem:[#allocation50_spill] sm:$0xff]  ;;  %v15964_v63 = vld [vmem:[#allocation321_spill] sm:$0xff] }
 0x338   : > { %v12159_v52 = vmax.f32 %v4396_v44, %v4428_v24  ;;  %v4682_v49 = vadd.f32 %v4661_v62, %v15962_v28  ;;  %v4747_v5 = vrot.slane %v4459_v43, 1  ;;  %v4875_v58 = vrot.slane %v4459_v43, 2  ;;  %v15965_v62 = vld [vmem:[#allocation143_spill] sm:$0xff] }
 0x339   : > { %v4586_v31 = vmax.f32 %v11938_v36, %v4554_v21  ;;  %v4301_v15 = vadd.f32 %v11657_v1, %v15963_v20  ;;  %v2166_v23 = vadd.f32 %v12162_v10, %v15964_v63  ;;  %v4532_v44 = vsel %vm1722_vm3, %v4490_v25, %v4491_v12 }
 0x33a   : > { %15961 = vst [vmem:[#allocation305_spill] sm:$0xff] %v12159_v52  ;;  %v4660_v35 = vsel %vm1979_vm4, %v4618_v42, %v4619_v32  ;;  %v14448_v24 = vrot.slane %v12159_v52, 1  ;;  %v4555_v28 = vadd.f32 %v4532_v44, %v15965_v62  ;;  %v4788_v20 = vsel %vm2236_vm5, %v15967_v34, %v4747_v5  ;;  %v15968_v42 = vld [vmem:[#allocation243_spill] sm:$0xff] }
 0x33b   : > { %v4683_v21 = vadd.f32 %v4660_v35, %v15966_v48  ;;  %v4714_v33 = vmax.f32 %v4586_v31, %v4682_v49  ;;  %v12180_v27 = vmax.f32 %v1941_v45, %v2166_v23  ;;  %v4810_v63 = vadd.f32 %v4788_v20, %v15968_v42  ;;  %v15969_v62 = vld [vmem:[#allocation259_spill] sm:$0xff]  ;;  %v12195_v23 = vpop.permute.xlu1 %2366 }
 0x33c   : > { %v4787_v25 = vsel %vm2236_vm5, %v4747_v5, %v14448_v24  ;;  %v14449_v53 = vrot.slane %v12159_v52, 2  ;;  %v4587_v44 = vmax.f32 %v4459_v43, %v4555_v28  ;;  %v15970_v49 = vrot.slane %v11938_v36, 2  ;;  %v15971_v34 = vld [vmem:[#allocation51_spill] sm:$0xff]  ;;  %15972 = vst [vmem:[#allocation207_spill] sm:$0xff] %v12195_v23 }
 0x33d   : > { %v4811_v48 = vadd.f32 %v4787_v25, %v15969_v62  ;;  %v4302_v45 = vadd.f32 %v11699_v41, %v15971_v34  ;;  %v15973_v35 = vld [vmem:[#allocation43_spill] sm:$0xff]  ;;  %v4842_v24 = vmax.f32 %v4714_v33, %v4810_v63  ;;  %v15976_v62 = vld [vmem:[#allocation181_spill] sm:$0xff]  ;;  %v12209_v34 = vmax.f32 %v4269_v9, %v4301_v15  ;;  %v15984_v15 = vld [vmem:[#allocation234_spill] sm:$0xff] }
 0x33e   : > { %v4916_v31 = vsel %vm2493_vm2, %v15970_v49, %v4875_v58  ;;  %v4915_v43 = vsel %vm2493_vm2, %v4875_v58, %v14449_v53  ;;  %v15974_v28 = vld [vmem:[#allocation287_spill] sm:$0xff]  ;;  %v4715_v42 = vmax.f32 %v4587_v44, %v4683_v21  ;;  %v15980_v33 = vld [vmem:[#allocation85_spill] sm:$0xff]  ;;  %v15982_v58 = vld [vmem:[#allocation84_spill] sm:$0xff]  ;;  %v14451_v44 = vrot.slane %v12159_v52, 6 }
 0x33f   : > { %v4938_v20 = vadd.f32 %v4916_v31, %v15974_v28  ;;  %v15975_v36 = vld [vmem:[#allocation247_spill] sm:$0xff]  ;;  %v4939_v49 = vadd.f32 %v4915_v43, %v15976_v62  ;;  %15977 = vst [vmem:[#allocation13_spill] sm:$0xff] %v12209_v34  ;;  %v12213_v5 = vmax.f32 %v4270_v26, %v4302_v45  ;;  %v12217_v63 = vadd.f32 %v11898_v8, %v15980_v33  ;;  %v15990_v33 = vld [vmem:[#allocation168_spill] sm:$0xff] }
 0x340   : > { %v12206_v25 = vadd.f32 %v12195_v23, %v15975_v36  ;;  %v12221_v31 = vadd.f32 %v12134_v29, %v15982_v58  ;;  %v4843_v21 = vmax.f32 %v4715_v42, %v4811_v48  ;;  %v14450_v9 = vrot.slane %v12159_v52, 7  ;;  %v15985_v43 = vld [vmem:[#allocation19_spill] sm:$0xff]  ;;  %v12235_v36 = vpop.permute.xlu1 %2615  ;;  %v16002_v53 = vld [vmem:[#allocation328_spill] sm:$0xff] }
 0x341   : > { %v12211_v16 = vmax.f32 %v4842_v24, %v4938_v20  ;;  %15979 = vst [vmem:[#allocation278_spill] sm:$0xff] %v12213_v5  ;;  %15981 = vst [vmem:[#allocation106_spill] sm:$0xff] %v12217_v63  ;;  %v2451_v26 = vmax.f32 %v15984_v15, %v12151_v38  ;;  %v4239_v20 = vadd.f32 %v11657_v1, %v15985_v43  ;;  %v15989_v62 = vld [vmem:[#allocation327_spill] sm:$0xff]  ;;  %v15992_v43 = vld [vmem:[#allocation326_spill] sm:$0xff] }
 0x342   : > { %15983 = vst [vmem:[#allocation233_spill] sm:$0xff] %v12221_v31  ;;  %v2453_v28 = vmax.f32 %v12070_v47, %v12206_v25  ;;  %15986 = vst [vmem:[#allocation276_spill] sm:$0xff] %v12235_v36  ;;  %v12237_v47 = vmax.f32 %v4843_v21, %v4939_v49  ;;  %v4531_v48 = vsel %vm1722_vm3, %v4491_v12, %v14451_v44  ;;  %v15988_v25 = vld [vmem:[#allocation22_spill] sm:$0xff]  ;;  %v15991_v21 = vld [vmem:[#allocation52_spill] sm:$0xff] }
 0x343   : > { %15978 = vst [vmem:[#allocation209_spill] sm:$0xff] %v12211_v16  ;;  %v4659_v38 = vsel %vm1979_vm4, %v4619_v32, %v14450_v9  ;;  %v4240_v42 = vadd.f32 %v11699_v41, %v15988_v25  ;;  %v2676_v1 = vadd.f32 %v12235_v36, %v15989_v62  ;;  %v4556_v58 = vadd.f32 %v4531_v48, %v15990_v33  ;;  %v15993_v9 = vld [vmem:[#allocation53_spill] sm:$0xff]  ;;  %v15994_v25 = vld [vmem:[#allocation60_spill] sm:$0xff]  ;;  %v16031_v5 = vld [vmem:[#allocation134_spill] sm:$0xff] }
 0x344   : > { %15987 = vst [vmem:[#allocation118_spill] sm:$0xff] %v12237_v47  ;;  %v4271_v49 = vmax.f32 %v11898_v8, %v4239_v20  ;;  %v4303_v15 = vadd.f32 %v11701_v61, %v15991_v21  ;;  %v2420_v12 = vadd.f32 %v12130_v50, %v15992_v43  ;;  %v4304_v41 = vadd.f32 %v11872_v14, %v15993_v9  ;;  %v12269_v21 = vpop.permute.xlu1 %2619  ;;  %v15999_v9 = vld [vmem:[#allocation104_spill] sm:$0xff] }
 0x345   : > { %v4272_v32 = vmax.f32 %v12134_v29, %v4240_v42  ;;  %v3269_v62 = vadd.f32 %v11999_v7, %v15994_v25  ;;  %v12264_v48 = vmax.f32 %v2451_v26, %v2676_v1  ;;  %v4588_v20 = vmax.f32 %v12159_v52, %v4556_v58  ;;  %15996 = vst [vmem:[#allocation194_spill] sm:$0xff] %v12269_v21  ;;  %v15997_v42 = vld [vmem:[#allocation283_spill] sm:$0xff]  ;;  %v16000_v26 = vld [vmem:[#allocation92_spill] sm:$0xff] }
 0x346   : > { %v12267_v33 = vmax.f32 %v4271_v49, %v4303_v15  ;;  %v3239_v43 = vmax.f32 %v11951_v17, %v12108_v19  ;;  %v4684_v44 = vadd.f32 %v4659_v38, %v15997_v42  ;;  %v2452_v15 = vmax.f32 %v12051_v51, %v2420_v12  ;;  %v16001_v19 = vld [vmem:[#allocation87_spill] sm:$0xff]  ;;  %v16008_v51 = vld [vmem:[#allocation298_spill] sm:$0xff]  ;;  %v16017_v25 = vld [vmem:[#allocation32_spill] sm:$0xff] }
 0x347   : > { %v12275_v45 = vmax.f32 %v4272_v32, %v4304_v41  ;;  %v3236_v7 = vmax.f32 %v12264_v48, %v15999_v9  ;;  %v12281_v1 = vadd.f32 %v12264_v48, %v16000_v26  ;;  %v3392_v24 = vadd.f32 %v12264_v48, %v16001_v19  ;;  %v16004_v41 = vld [vmem:[#allocation109_spill] sm:$0xff]  ;;  %v16005_v9 = vld [vmem:[#allocation82_spill] sm:$0xff]  ;;  %v16009_v12 = vld [vmem:[#allocation71_spill] sm:$0xff] }
 0x348   : > { %15995 = vst [vmem:[#allocation191_spill] sm:$0xff] %v12267_v33  ;;  %v2677_v38 = vadd.f32 %v12269_v21, %v16002_v53  ;;  %v12290_v32 = vmax.f32 %v4588_v20, %v4684_v44  ;;  %v16006_v26 = vld [vmem:[#allocation21_spill] sm:$0xff]  ;;  %v16010_v16 = vmax.f32 %v16008_v51, %v16009_v12  ;;  %v12309_v44 = vpop.permute.xlu1 %2623  ;;  %v16013_v20 = vld [vmem:[#allocation24_spill] sm:$0xff]  ;;  %v16022_v19 = vld [vmem:[#allocation31_spill] sm:$0xff]  ;;  %v16025_v12 = vrot.slane %v12040_v57, 6 }
 0x349   : > { %15998 = vst [vmem:[#allocation185_spill] sm:$0xff] %v12275_v45  ;;  %v12293_v42 = vmax.f32 %v3236_v7, %v16004_v41  ;;  %v12300_v49 = vadd.f32 %v11701_v61, %v16006_v26  ;;  %16012 = vst [vmem:[#allocation249_spill] sm:$0xff] %v12309_v44  ;;  %v12313_v7 = vadd.f32 %v11872_v14, %v16013_v20  ;;  %v16015_v41 = vld [vmem:[#allocation54_spill] sm:$0xff]  ;;  %v16018_v26 = vld [vmem:[#allocation61_spill] sm:$0xff] }
 0x34a   : > { %16003 = vst [vmem:[#allocation322_spill] sm:$0xff] %v12290_v32  ;;  %v12305_v47 = vmax.f32 %v16010_v16, %v3392_v24  ;;  %v12307_v53 = vmax.f32 %v2452_v15, %v2677_v38  ;;  %v12317_v58 = vadd.f32 %v11898_v8, %v16015_v41  ;;  %v12321_v61 = vadd.f32 %v12264_v48, %v16017_v25  ;;  %v16019_v24 = vld [vmem:[#allocation139_spill] sm:$0xff]  ;;  %v16028_v33 = vld [vmem:[#allocation145_spill] sm:$0xff]  ;;  %v16032_v34 = vld [vmem:[#allocation236_spill] sm:$0xff] }
 0x34b   : > { %16007 = vst [vmem:[#allocation46_spill] sm:$0xff] %v12300_v49  ;;  %16014 = vst [vmem:[#allocation260_spill] sm:$0xff] %v12313_v7  ;;  %v3270_v16 = vadd.f32 %v12264_v48, %v16018_v26  ;;  %v2678_v15 = vadd.f32 %v12309_v44, %v16019_v24  ;;  %v16020_v38 = vld [vmem:[#allocation55_spill] sm:$0xff]  ;;  %v16023_v49 = vld [vmem:[#allocation62_spill] sm:$0xff] }
 0x34c   : > { %16011 = vst [vmem:[#allocation309_spill] sm:$0xff] %v12305_v47  ;;  %16016 = vst [vmem:[#allocation224_spill] sm:$0xff] %v12317_v58  ;;  %v12329_v51 = vadd.f32 %v12134_v29, %v16020_v38  ;;  %v14461_v14 = vrot.slane %v12305_v47, 6  ;;  %v3209_v58 = vadd.f32 %v12307_v53, %v16022_v19  ;;  %v3237_v7 = vmax.f32 %v12307_v53, %v11927_v22  ;;  %v16024_v45 = vld [vmem:[#allocation95_spill] sm:$0xff]  ;;  %v16107_v19 = vld [vmem:[#allocation190_spill] sm:$0xff] }
 0x34d   : > { %v3271_v24 = vadd.f32 %v12307_v53, %v16023_v49  ;;  %v3331_v38 = vadd.f32 %v12307_v53, %v16024_v45  ;;  %v16026_v41 = vrot.slane %v12305_v47, 7  ;;  %v3393_v32 = vadd.f32 %v12307_v53, %v16028_v33  ;;  %v16030_v45 = vld [vmem:[#allocation201_spill] sm:$0xff] }
 0x34e   : > { %16021 = vst [vmem:[#allocation47_spill] sm:$0xff] %v12329_v51  ;;  %v3483_v20 = vsel %vm1722_vm3, %v16025_v12, %v14461_v14  ;;  %v16027_v51 = vrot.slane %v12040_v57, 7  ;;  %v12357_v52 = vmax.f32 %v2453_v28, %v2678_v15  ;;  %v3241_v17 = vmax.f32 %v16032_v34, %v3209_v58 }
 0x34f   : > { %v3520_v31 = vadd.f32 %v3483_v20, %v16030_v45  ;;  %v3301_v49 = vmax.f32 %v3237_v7, %v3269_v62  ;;  %v3303_v12 = vmax.f32 %v3239_v43, %v3271_v24  ;;  %v3363_v14 = vmax.f32 %v12033_v37, %v3331_v38  ;;  %v16036_v62 = vld [vmem:[#allocation63_spill] sm:$0xff]  ;;  %v16038_v20 = vld [vmem:[#allocation332_spill] sm:$0xff] }
 0x350   : > { %v3611_v22 = vsel %vm1979_vm4, %v16027_v51, %v16026_v41  ;;  %16029 = vst [vmem:[#allocation311_spill] sm:$0xff] %v12357_v52  ;;  %v16033_v57 = vmax.f32 %v11782_v46, %v12024_v13  ;;  %v16035_v51 = vld [vmem:[#allocation34_spill] sm:$0xff]  ;;  %v3238_v58 = vmax.f32 %v12357_v52, %v12019_v30  ;;  %v3272_v43 = vadd.f32 %v12357_v52, %v16036_v62  ;;  %v16037_v37 = vld [vmem:[#allocation331_spill] sm:$0xff] }
 0x351   : > { %v3648_v63 = vadd.f32 %v3611_v22, %v16031_v5  ;;  %v12370_v41 = vadd.f32 %v12357_v52, %v16035_v51  ;;  %v3552_v28 = vmax.f32 %v12305_v47, %v3520_v31  ;;  %v3365_v15 = vmax.f32 %v3301_v49, %v12057_v0  ;;  %v16043_v22 = vld [vmem:[#allocation329_spill] sm:$0xff]  ;;  %v16044_v13 = vld [vmem:[#allocation94_spill] sm:$0xff]  ;;  %v16046_v45 = vld [vmem:[#allocation179_spill] sm:$0xff] }
 0x352   : > { %v12366_v26 = vmax.f32 %v16033_v57, %v3393_v32  ;;  %v3367_v7 = vmax.f32 %v3303_v12, %v16037_v37  ;;  %v12380_v46 = vmax.f32 %v3363_v14, %v12061_v56  ;;  %v12393_v14 = vpop.permute.xlu1 %2631  ;;  %v16041_v37 = vld [vmem:[#allocation250_spill] sm:$0xff]  ;;  %v16042_v56 = vld [vmem:[#allocation72_spill] sm:$0xff]  ;;  %v3302_v24 = vmax.f32 %v3238_v58, %v3270_v16  ;;  %v16060_v16 = vld [vmem:[#allocation147_spill] sm:$0xff] }
 0x353   : > { %v3680_v32 = vmax.f32 %v3552_v28, %v3648_v63  ;;  %v12385_v31 = vmax.f32 %v3365_v15, %v16038_v20  ;;  %v16039_v63 = vrot.slane %v12305_v47, 1  ;;  %v16040_v28 = vrot.slane %v12305_v47, 2  ;;  %v16045_v5 = vld [vmem:[#allocation154_spill] sm:$0xff] }
 0x354   : > { %16034 = vst [vmem:[#allocation212_spill] sm:$0xff] %v12366_v26  ;;  %v14464_v0 = vrot.slane %v12366_v26, 1  ;;  %v14465_v30 = vrot.slane %v12366_v26, 2  ;;  %v3242_v20 = vmax.f32 %v16041_v37, %v12370_v41  ;;  %v3332_v49 = vadd.f32 %v12357_v52, %v16044_v13 }
 0x355   : > { %v16048_v58 = vmax.f32 %v16005_v9, %v12281_v1  ;;  %v16058_v1 = vrot.slane %v12380_v46, 7 }
 0x356   : > { %v3738_v12 = vsel %vm2236_vm5, %v16039_v63, %v14464_v0  ;;  %v3866_v15 = vsel %vm2493_vm2, %v16040_v28, %v14465_v30  ;;  %v3394_v63 = vadd.f32 %v12357_v52, %v16045_v5  ;;  %v2729_v0 = vpack.c.bf16 %v12307_v53, %v12264_v48 }
 0x357   : > { %v3776_v38 = vadd.f32 %v3738_v12, %v16042_v56  ;;  %v3904_v57 = vadd.f32 %v3866_v15, %v16043_v22  ;;  %v2680_v28 = vadd.f32 %v12393_v14, %v16046_v45  ;;  %v3305_v30 = vmax.f32 %v3241_v17, %v12067_v40  ;;  %v16047_v56 = vld [vmem:[#allocation223_spill] sm:$0xff]  ;;  %v16052_v17 = vld [vmem:[#allocation217_spill] sm:$0xff] }
 0x358   : > { %v3364_v12 = vmax.f32 %v12293_v42, %v3332_v49  ;;  %v12423_v15 = vmax.f32 %v3367_v7, %v16047_v56  ;;  %v12429_v22 = vmax.f32 %v16048_v58, %v3394_v63  ;;  %6281 = vmatmul.mubr.msk.bf16.gmra.mrb[52].mxu0 %vm2751_vm1, %v2729_v0  ;;  %v16050_v45 = vmax.f32 %v12180_v27, %v15973_v35  ;;  %v16053_v49 = vld [vmem:[#allocation36_spill] sm:$0xff]  ;;  %v16061_v27 = vld [vmem:[#allocation166_spill] sm:$0xff] }
 0x359   : > { %v3808_v41 = vmax.f32 %v3680_v32, %v3776_v38  ;;  %v3369_v40 = vmax.f32 %v3305_v30, %v16052_v17  ;;  %v16054_v38 = vld [vmem:[#allocation65_spill] sm:$0xff]  ;;  %v16055_v63 = vld [vmem:[#allocation96_spill] sm:$0xff]  ;;  %v16059_v42 = vrot.slane %v12366_v26, 7 }
 0x35a   : > { %16049 = vst [vmem:[#allocation75_spill] sm:$0xff] %v12429_v22  ;;  %v12435_v48 = vmax.f32 %v16050_v45, %v2680_v28  ;;  %v3463_v7 = vrot.slane %v12423_v15, 6  ;;  %v3458_v9 = vrot.slane %v12429_v22, 6  ;;  %v3586_v0 = vrot.slane %v12429_v22, 7 }
 0x35b   : > { %v12439_v53 = vmax.f32 %v3808_v41, %v3904_v57  ;;  %v16056_v41 = vrot.slane %v12380_v46, 6  ;;  %v16057_v45 = vrot.slane %v12366_v26, 6  ;;  %v16065_v26 = vrot.slane %v12380_v46, 2 }
 0x35c   : > { %16051 = vst [vmem:[#allocation15_spill] sm:$0xff] %v12435_v48  ;;  %v3212_v30 = vadd.f32 %v12435_v48, %v16053_v49  ;;  %v3240_v57 = vmax.f32 %v12435_v48, %v12321_v61  ;;  %v3274_v56 = vadd.f32 %v12435_v48, %v16054_v38  ;;  %v3334_v28 = vadd.f32 %v12435_v48, %v16055_v63  ;;  %v16071_v63 = vld [vmem:[#allocation253_spill] sm:$0xff] }
 0x35d   : > { %v3480_v58 = vsel %vm1722_vm3, %v3458_v9, %v16056_v41  ;;  %v3481_v17 = vsel %vm1722_vm3, %v16057_v45, %v3458_v9  ;;  %v3608_v61 = vsel %vm1979_vm4, %v3586_v0, %v16058_v1  ;;  %v3609_v32 = vsel %vm1979_vm4, %v16059_v42, %v3586_v0  ;;  %v16062_v41 = vld [vmem:[#allocation300_spill] sm:$0xff]  ;;  %v16067_v0 = vld [vmem:[#allocation262_spill] sm:$0xff]  ;;  %v16092_v49 = vld [vmem:[#allocation77_spill] sm:$0xff] }
 0x35e   : > { %v3522_v35 = vadd.f32 %v3481_v17, %v16060_v16  ;;  %v3523_v5 = vadd.f32 %v3480_v58, %v16061_v27  ;;  %v3650_v33 = vadd.f32 %v3609_v32, %v16062_v41  ;;  %v3651_v37 = vadd.f32 %v3608_v61, %v11813_v3  ;;  %v16068_v3 = vld [vmem:[#allocation226_spill] sm:$0xff] }
 0x35f   : > { %v16063_v9 = vrot.slane %v12380_v46, 1  ;;  %v16064_v45 = vrot.slane %v12429_v22, 1  ;;  %v16066_v47 = vrot.slane %v12429_v22, 2  ;;  %v3244_v58 = vmax.f32 %v16067_v0, %v3212_v30  ;;  %v16069_v41 = vld [vmem:[#allocation186_spill] sm:$0xff] }
 0x360   : > { %v3304_v17 = vmax.f32 %v3240_v57, %v3272_v43  ;;  %v3554_v32 = vmax.f32 %v12429_v22, %v3522_v35  ;;  %v3555_v61 = vmax.f32 %v12380_v46, %v3523_v5  ;;  %v3306_v34 = vmax.f32 %v3242_v20, %v3274_v56  ;;  %v16073_v43 = vld [vmem:[#allocation335_spill] sm:$0xff]  ;;  %v16074_v5 = vld [vmem:[#allocation210_spill] sm:$0xff]  ;;  %v16075_v57 = vld [vmem:[#allocation169_spill] sm:$0xff] }
 0x361   : > { %v3736_v1 = vsel %vm2236_vm5, %v16064_v45, %v16063_v9  ;;  %v3864_v42 = vsel %vm2493_vm2, %v16066_v47, %v16065_v26  ;;  %v16070_v9 = vld [vmem:[#allocation244_spill] sm:$0xff]  ;;  %v3366_v52 = vmax.f32 %v3302_v24, %v3334_v28  ;;  %v16072_v47 = vld [vmem:[#allocation161_spill] sm:$0xff]  ;;  %v12500_v35 = vmax.f32 %v3369_v40, %v16073_v43  ;;  %v16088_v22 = vld [vmem:[#allocation158_spill] sm:$0xff] }
 0x362   : > { %v3778_v27 = vadd.f32 %v3736_v1, %v16068_v3  ;;  %v3906_v16 = vadd.f32 %v3864_v42, %v16069_v41  ;;  %v3308_v45 = vmax.f32 %v3244_v58, %v16070_v9  ;;  %v3368_v13 = vmax.f32 %v3304_v17, %v16071_v63  ;;  %v16076_v42 = vld [vmem:[#allocation265_spill] sm:$0xff]  ;;  %v16078_v58 = vld [vmem:[#allocation266_spill] sm:$0xff] }
 0x363   : > { %v3682_v38 = vmax.f32 %v3554_v32, %v3650_v33  ;;  %v12495_v62 = vmax.f32 %v3555_v61, %v3651_v37  ;;  %v3396_v26 = vadd.f32 %v12435_v48, %v16072_v47  ;;  %v3370_v30 = vmax.f32 %v3306_v34, %v16074_v5  ;;  %v16077_v56 = vld [vmem:[#allocation281_spill] sm:$0xff]  ;;  %v16079_v17 = vld [vmem:[#allocation246_spill] sm:$0xff] }
 0x364   : > { %v3372_v1 = vmax.f32 %v3308_v45, %v16075_v57  ;;  %v12505_v20 = vmax.f32 %v3366_v52, %v16076_v42  ;;  %v12508_v24 = vmax.f32 %v3368_v13, %v16077_v56  ;;  %v3465_v37 = vrot.slane %v12500_v35, 6  ;;  %v16083_v56 = vld [vmem:[#allocation160_spill] sm:$0xff]  ;;  %v16090_v48 = vld [vmem:[#allocation133_spill] sm:$0xff] }
 0x365   : > { %v3810_v63 = vmax.f32 %v3682_v38, %v3778_v27  ;;  %v12510_v33 = vmax.f32 %v3364_v12, %v3396_v26  ;;  %v3593_v28 = vrot.slane %v12500_v35, 7  ;;  %v12515_v40 = vmax.f32 %v3370_v30, %v16078_v58 }
 0x366   : > { %v12518_v34 = vmax.f32 %v3372_v1, %v16079_v17  ;;  %v3462_v32 = vrot.slane %v12505_v20, 6  ;;  %v3464_v52 = vrot.slane %v12508_v24, 6  ;;  %v3590_v27 = vrot.slane %v12505_v20, 7 }
 0x367   : > { %v12522_v61 = vmax.f32 %v3810_v63, %v3906_v16  ;;  %v3460_v13 = vrot.slane %v12510_v33, 6  ;;  %v3588_v12 = vrot.slane %v12510_v33, 7  ;;  %v3466_v38 = vrot.slane %v12515_v40, 6 }
 0x368   : > { %v3468_v9 = vrot.slane %v12518_v34, 6  ;;  %v3474_v45 = vsel %vm1722_vm3, %v3464_v52, %v3465_v37  ;;  %v3475_v26 = vsel %vm1722_vm3, %v3463_v7, %v3464_v52  ;;  %v3476_v16 = vsel %vm1722_vm3, %v3462_v32, %v3463_v7 }
 0x369   : > { %v16080_v43 = vrot.slane %v12385_v31, 6  ;;  %v16082_v1 = vrot.slane %v12380_v46, 6  ;;  %v16084_v63 = vrot.slane %v16083_v56, 6  ;;  %v16085_v58 = vrot.slane %v12031_v54, 6 }
 0x36a   : > { %v3528_v3 = vadd.f32 %v3475_v26, %v12001_v6 }
 0x36b   : > { %v3477_v5 = vsel %vm1722_vm3, %v16080_v43, %v3462_v32  ;;  %v16081_v30 = vmov %v16080_v43  ;;  %v3479_v42 = vsel %vm1722_vm3, %v16082_v1, %v3460_v13  ;;  %v3470_v7 = vsel %vm1722_vm3, %v3468_v9, %v16084_v63 }
 0x36c   : > { %v3478_v57 = vsel %vm1722_vm3, %v3460_v13, %v16081_v30  ;;  %v3471_v17 = vsel %vm1722_vm3, %v16085_v58, %v3468_v9  ;;  %v16086_v32 = vmov %v16085_v58  ;;  %v3473_v43 = vsel %vm1722_vm3, %v3465_v37, %v3466_v38  ;;  %v16087_v30 = vld [vmem:[#allocation227_spill] sm:$0xff]  ;;  %v16089_v58 = vld [vmem:[#allocation132_spill] sm:$0xff] }
 0x36d   : > { %v3472_v52 = vsel %vm1722_vm3, %v3466_v38, %v16086_v32  ;;  %v3524_v13 = vadd.f32 %v3479_v42, %v16087_v30  ;;  %v3525_v1 = vadd.f32 %v3478_v57, %v11771_v39  ;;  %v3526_v41 = vadd.f32 %v3477_v5, %v11860_v4  ;;  %v16091_v32 = vld [vmem:[#allocation131_spill] sm:$0xff] }
 0x36e   : > { %v3527_v63 = vadd.f32 %v3476_v16, %v11885_v60  ;;  %v3529_v9 = vadd.f32 %v3474_v45, %v16088_v22  ;;  %v3530_v0 = vadd.f32 %v3473_v43, %v16089_v58  ;;  %v3531_v47 = vadd.f32 %v3472_v52, %v16090_v48  ;;  %v16104_v30 = vld [vmem:[#allocation163_spill] sm:$0xff]  ;;  %v16105_v22 = vld [vmem:[#allocation153_spill] sm:$0xff] }
 0x36f   : > { %v3532_v29 = vadd.f32 %v3471_v17, %v16091_v32  ;;  %v3533_v37 = vadd.f32 %v3470_v7, %v16092_v49  ;;  %v3556_v38 = vmax.f32 %v12510_v33, %v3524_v13  ;;  %v3557_v57 = vmax.f32 %v12385_v31, %v3525_v1  ;;  %v16097_v32 = vld [vmem:[#allocation220_spill] sm:$0xff] }
 0x370   : > { %v3558_v5 = vmax.f32 %v12505_v20, %v3526_v41  ;;  %v3559_v16 = vmax.f32 %v12423_v15, %v3527_v63  ;;  %v3560_v26 = vmax.f32 %v12508_v24, %v3528_v3  ;;  %v3561_v45 = vmax.f32 %v12500_v35, %v3529_v9 }
 0x371   : > { %v3562_v42 = vmax.f32 %v12515_v40, %v3530_v0  ;;  %v3563_v52 = vmax.f32 %v12031_v54, %v3531_v47  ;;  %v3564_v17 = vmax.f32 %v12518_v34, %v3532_v29  ;;  %v3565_v7 = vmax.f32 %v16083_v56, %v3533_v37 }
 0x372   : > { %v3592_v43 = vrot.slane %v12508_v24, 7  ;;  %v3594_v13 = vrot.slane %v12515_v40, 7  ;;  %v3596_v41 = vrot.slane %v12518_v34, 7  ;;  %v16093_v1 = vrot.slane %v12423_v15, 7 }
 0x373   : > { %v16094_v63 = vrot.slane %v12385_v31, 7  ;;  %v16096_v9 = vrot.slane %v12380_v46, 7  ;;  %v16098_v49 = vrot.slane %v16083_v56, 7  ;;  %v16099_v58 = vrot.slane %v12031_v54, 7 }
 0x374   : > { %v3604_v3 = vsel %vm1979_vm4, %v3590_v27, %v16093_v1 }
 0x375   : > { %v3605_v0 = vsel %vm1979_vm4, %v16094_v63, %v3590_v27  ;;  %v16095_v29 = vmov %v16094_v63  ;;  %v3607_v37 = vsel %vm1979_vm4, %v16096_v9, %v3588_v12  ;;  %v3655_v48 = vadd.f32 %v3604_v3, %v16097_v32  ;;  %v16102_v32 = vld [vmem:[#allocation290_spill] sm:$0xff] }
 0x376   : > { %v3606_v47 = vsel %vm1979_vm4, %v3588_v12, %v16095_v29  ;;  %v3598_v1 = vsel %vm1979_vm4, %v3596_v41, %v16098_v49  ;;  %v3599_v27 = vsel %vm1979_vm4, %v16099_v58, %v3596_v41  ;;  %v16100_v63 = vmov %v16099_v58 }
 0x377   : > { %v3600_v29 = vsel %vm1979_vm4, %v3594_v13, %v16100_v63  ;;  %v3601_v12 = vsel %vm1979_vm4, %v3593_v28, %v3594_v13  ;;  %v3602_v3 = vsel %vm1979_vm4, %v3592_v43, %v3593_v28  ;;  %v16101_v9 = vrot.slane %v12423_v15, 7  ;;  %v16103_v63 = vld [vmem:[#allocation235_spill] sm:$0xff]  ;;  %v16106_v28 = vld [vmem:[#allocation214_spill] sm:$0xff] }
 0x378   : > { %v3652_v4 = vadd.f32 %v3607_v37, %v16102_v32  ;;  %v3653_v58 = vadd.f32 %v3606_v47, %v11919_v55  ;;  %v3654_v41 = vadd.f32 %v3605_v0, %v12043_v11  ;;  %v3657_v60 = vadd.f32 %v3602_v3, %v16103_v63  ;;  %v16121_v11 = vld [vmem:[#allocation242_spill] sm:$0xff] }
 0x379   : > { %v3603_v49 = vsel %vm1979_vm4, %v16101_v9, %v3592_v43  ;;  %v3658_v13 = vadd.f32 %v3601_v12, %v16104_v30  ;;  %v3659_v6 = vadd.f32 %v3600_v29, %v16105_v22  ;;  %v3660_v51 = vadd.f32 %v3599_v27, %v16106_v28  ;;  %v16118_v28 = vld [vmem:[#allocation307_spill] sm:$0xff] }
 0x37a   : > { %v3656_v39 = vadd.f32 %v3603_v49, %v12162_v10  ;;  %v3661_v25 = vadd.f32 %v3598_v1, %v16107_v19  ;;  %v12630_v8 = vmax.f32 %v3556_v38, %v3652_v4  ;;  %v12632_v43 = vmax.f32 %v3557_v57, %v3653_v58  ;;  %v16120_v22 = vld [vmem:[#allocation231_spill] sm:$0xff] }
 0x37b   : > { %v12634_v37 = vmax.f32 %v3558_v5, %v3654_v41  ;;  %v12636_v47 = vmax.f32 %v3559_v16, %v3655_v48  ;;  %v12640_v9 = vmax.f32 %v3561_v45, %v3657_v60  ;;  %v12642_v3 = vmax.f32 %v3562_v42, %v3658_v13 }
 0x37c   : > { %v12638_v0 = vmax.f32 %v3560_v26, %v3656_v39  ;;  %v12644_v12 = vmax.f32 %v3563_v52, %v3659_v6  ;;  %v12646_v29 = vmax.f32 %v3564_v17, %v3660_v51  ;;  %v12648_v27 = vmax.f32 %v3565_v7, %v3661_v25 }
 0x37d   : > { %v3716_v4 = vrot.slane %v12510_v33, 1  ;;  %v3718_v38 = vrot.slane %v12505_v20, 1  ;;  %v3720_v57 = vrot.slane %v12508_v24, 1  ;;  %v3721_v48 = vrot.slane %v12500_v35, 1 }
 0x37e   : > { %v3722_v39 = vrot.slane %v12515_v40, 1  ;;  %v3724_v60 = vrot.slane %v12518_v34, 1  ;;  %v3844_v5 = vrot.slane %v12510_v33, 2  ;;  %v16108_v6 = vrot.slane %v12423_v15, 1 }
 0x37f   : > { %v16110_v26 = vrot.slane %v12385_v31, 1  ;;  %v16112_v52 = vrot.slane %v16083_v56, 1  ;;  %v16113_v7 = vrot.slane %v12031_v54, 1  ;;  %v3730_v13 = vsel %vm2236_vm5, %v3720_v57, %v3721_v48 }
 0x380   : > { %v3731_v25 = vsel %vm2236_vm5, %v16108_v6, %v3720_v57  ;;  %v16109_v51 = vmov %v16108_v6  ;;  %v3729_v41 = vsel %vm2236_vm5, %v3721_v48, %v3722_v39  ;;  %v16119_v57 = vld [vmem:[#allocation187_spill] sm:$0xff] }
 0x381   : > { %v3732_v16 = vsel %vm2236_vm5, %v3718_v38, %v16109_v51  ;;  %v3733_v45 = vsel %vm2236_vm5, %v16110_v26, %v3718_v38  ;;  %v16111_v42 = vmov %v16110_v26  ;;  %v3726_v17 = vsel %vm2236_vm5, %v3724_v60, %v16112_v52  ;;  %v16116_v52 = vld [vmem:[#allocation10_spill] sm:$0xff] }
 0x382   : > { %v3734_v33 = vsel %vm2236_vm5, %v3716_v4, %v16111_v42  ;;  %v3727_v1 = vsel %vm2236_vm5, %v16113_v7, %v3724_v60  ;;  %v16114_v49 = vmov %v16113_v7  ;;  %v16115_v38 = vrot.slane %v12380_v46, 1 }
 0x383   : > { %v3728_v58 = vsel %vm2236_vm5, %v3722_v39, %v16114_v49  ;;  %v3780_v51 = vadd.f32 %v3734_v33, %v12096_v59  ;;  %v3781_v60 = vadd.f32 %v3733_v45, %v12130_v50  ;;  %v3782_v42 = vadd.f32 %v3732_v16, %v12195_v23  ;;  %v16117_v49 = vld [vmem:[#allocation268_spill] sm:$0xff]  ;;  %v16277_v59 = vld [vmem:[#allocation195_spill] sm:$0xff] }
 0x384   : > { %v3735_v6 = vsel %vm2236_vm5, %v16115_v38, %v3716_v4  ;;  %v3783_v7 = vadd.f32 %v3731_v25, %v16116_v52  ;;  %v3784_v39 = vadd.f32 %v3730_v13, %v16117_v49  ;;  %v3785_v19 = vadd.f32 %v3729_v41, %v16118_v28 }
 0x385   : > { %v3779_v26 = vadd.f32 %v3735_v6, %v11959_v18  ;;  %v3786_v48 = vadd.f32 %v3728_v58, %v16119_v57  ;;  %v3787_v30 = vadd.f32 %v3727_v1, %v16120_v22  ;;  %v3788_v4 = vadd.f32 %v3726_v17, %v16121_v11  ;;  %v16122_v6 = vld [vmem:[#allocation277_spill] sm:$0xff] }
 0x386   : > { %v3812_v45 = vmax.f32 %v12630_v8, %v3780_v51  ;;  %v3813_v38 = vmax.f32 %v12632_v43, %v3781_v60  ;;  %v3814_v16 = vmax.f32 %v12634_v37, %v3782_v42  ;;  %v3815_v25 = vmax.f32 %v12636_v47, %v3783_v7  ;;  %v16127_v51 = vld [vmem:[#allocation156_spill] sm:$0xff]  ;;  %v16128_v7 = vld [vmem:[#allocation273_spill] sm:$0xff] }
 0x387   : > { %v3811_v33 = vmax.f32 %v12495_v62, %v3779_v26  ;;  %v3816_v13 = vmax.f32 %v12638_v0, %v3784_v39  ;;  %v3817_v41 = vmax.f32 %v12640_v9, %v3785_v19  ;;  %v3818_v58 = vmax.f32 %v12642_v3, %v3786_v48 }
 0x388   : > { %v3819_v1 = vmax.f32 %v12644_v12, %v3787_v30  ;;  %v3820_v17 = vmax.f32 %v12646_v29, %v3788_v4  ;;  %v3821_v62 = vmax.f32 %v12648_v27, %v16122_v6  ;;  %v3845_v8 = vrot.slane %v12385_v31, 2  ;;  %v16129_v4 = vld [vmem:[#allocation177_spill] sm:$0xff]  ;;  %v16130_v6 = vld [vmem:[#allocation263_spill] sm:$0xff] }
 0x389   : > { %v3846_v43 = vrot.slane %v12505_v20, 2  ;;  %v3847_v37 = vrot.slane %v12423_v15, 2  ;;  %v3848_v47 = vrot.slane %v12508_v24, 2  ;;  %v3849_v0 = vrot.slane %v12500_v35, 2 }
 0x38a   : > { %v3850_v19 = vrot.slane %v12515_v40, 2  ;;  %v3852_v9 = vrot.slane %v12518_v34, 2  ;;  %v3862_v30 = vsel %vm2493_vm2, %v3844_v5, %v3845_v8  ;;  %v16123_v3 = vrot.slane %v12380_v46, 2 }
 0x38b   : > { %v3858_v20 = vsel %vm2493_vm2, %v3848_v47, %v3849_v0  ;;  %v3859_v15 = vsel %vm2493_vm2, %v3847_v37, %v3848_v47  ;;  %v3860_v35 = vsel %vm2493_vm2, %v3846_v43, %v3847_v37  ;;  %v3861_v24 = vsel %vm2493_vm2, %v3845_v8, %v3846_v43  ;;  %v16131_v43 = vld [vmem:[#allocation140_spill] sm:$0xff]  ;;  %v16132_v47 = vld [vmem:[#allocation295_spill] sm:$0xff] }
 0x38c   : > { %v3863_v31 = vsel %vm2493_vm2, %v16123_v3, %v3844_v5  ;;  %v16124_v40 = vrot.slane %v16083_v56, 2  ;;  %v16125_v34 = vrot.slane %v12031_v54, 2  ;;  %v3857_v5 = vsel %vm2493_vm2, %v3849_v0, %v3850_v19 }
 0x38d   : > { %v3907_v60 = vadd.f32 %v3863_v31, %v16127_v51  ;;  %v3908_v56 = vadd.f32 %v3862_v30, %v12235_v36  ;;  %v3909_v26 = vadd.f32 %v3861_v24, %v12269_v21  ;;  %v3910_v42 = vadd.f32 %v3860_v35, %v12309_v44  ;;  %v16160_v44 = vld [vmem:[#allocation99_spill] sm:$0xff] }
 0x38e   : > { %v3854_v46 = vsel %vm2493_vm2, %v3852_v9, %v16124_v40  ;;  %v3855_v12 = vsel %vm2493_vm2, %v16125_v34, %v3852_v9  ;;  %v16126_v29 = vmov %v16125_v34  ;;  %v3911_v39 = vadd.f32 %v3859_v15, %v16128_v7  ;;  %v16136_v34 = vld [vmem:[#allocation23_spill] sm:$0xff]  ;;  %v16159_v7 = vld [vmem:[#allocation96_spill] sm:$0xff] }
 0x38f   : > { %v3856_v27 = vsel %vm2493_vm2, %v3850_v19, %v16126_v29  ;;  %v3912_v48 = vadd.f32 %v3858_v20, %v12393_v14  ;;  %v3913_v54 = vadd.f32 %v3857_v5, %v16129_v4  ;;  %v3915_v37 = vadd.f32 %v3855_v12, %v16131_v43  ;;  %v16140_v29 = vld [vmem:[#allocation31_spill] sm:$0xff] }
 0x390   : > { %v3914_v8 = vadd.f32 %v3856_v27, %v16130_v6  ;;  %v3916_v0 = vadd.f32 %v3854_v46, %v16132_v47  ;;  %v12760_v19 = vmax.f32 %v3811_v33, %v3907_v60  ;;  %v12762_v9 = vmax.f32 %v3812_v45, %v3908_v56  ;;  %v16133_v33 = vld [vmem:[#allocation282_spill] sm:$0xff]  ;;  %v16134_v45 = vld [vmem:[#allocation28_spill] sm:$0xff] }
 0x391   : > { %v12764_v30 = vmax.f32 %v3813_v38, %v3909_v26  ;;  %v12766_v3 = vmax.f32 %v3814_v16, %v3910_v42  ;;  %v12768_v31 = vmax.f32 %v3815_v25, %v3911_v39  ;;  %v12770_v15 = vmax.f32 %v3816_v13, %v3912_v48  ;;  %v16135_v16 = vld [vmem:[#allocation30_spill] sm:$0xff]  ;;  %v16137_v13 = vld [vmem:[#allocation228_spill] sm:$0xff]  ;;  %v16143_v26 = vld [vmem:[#allocation35_spill] sm:$0xff] }
 0x392   : > { %v12772_v20 = vmax.f32 %v3817_v41, %v3913_v54  ;;  %v12774_v35 = vmax.f32 %v3818_v58, %v3914_v8  ;;  %v12776_v24 = vmax.f32 %v3819_v1, %v3915_v37  ;;  %v12778_v40 = vmax.f32 %v3820_v17, %v3916_v0  ;;  %v16138_v41 = vld [vmem:[#allocation29_spill] sm:$0xff]  ;;  %v16139_v1 = vld [vmem:[#allocation32_spill] sm:$0xff]  ;;  %v16141_v27 = vld [vmem:[#allocation34_spill] sm:$0xff] }
 0x393   : > { %v12781_v46 = vmax.f32 %v3821_v62, %v16133_v33  ;;  %v4246_v38 = vadd.f32 %v12439_v53, %v16134_v45  ;;  %v4248_v25 = vadd.f32 %v12522_v61, %v16135_v16  ;;  %v12789_v12 = vadd.f32 %v16137_v13, %v16136_v34  ;;  %v16142_v60 = vld [vmem:[#allocation36_spill] sm:$0xff]  ;;  %v16144_v48 = vld [vmem:[#allocation26_spill] sm:$0xff]  ;;  %v16146_v13 = vld [vmem:[#allocation59_spill] sm:$0xff] }
 0x394   : > { %v4249_v58 = vadd.f32 %v12760_v19, %v16138_v41  ;;  %v4250_v17 = vadd.f32 %v12762_v9, %v16139_v1  ;;  %v4251_v62 = vadd.f32 %v12764_v30, %v16140_v29  ;;  %v4252_v5 = vadd.f32 %v12766_v3, %v16141_v27  ;;  %v16145_v54 = vld [vmem:[#allocation42_spill] sm:$0xff] }
 0x395   : > { %v4254_v56 = vadd.f32 %v12770_v15, %v16142_v60  ;;  %v12803_v42 = vadd.f32 %v12772_v20, %v16143_v26  ;;  %v4278_v39 = vmax.f32 %v12762_v9, %v4246_v38  ;;  %v12808_v8 = vadd.f32 %v16145_v54, %v16144_v48  ;;  %v16147_v38 = vld [vmem:[#allocation61_spill] sm:$0xff]  ;;  %v16148_v29 = vld [vmem:[#allocation62_spill] sm:$0xff]  ;;  %v16150_v60 = vld [vmem:[#allocation64_spill] sm:$0xff] }
 0x396   : > { %v4280_v37 = vmax.f32 %v12766_v3, %v4248_v25  ;;  %v4281_v0 = vmax.f32 %v12768_v31, %v4249_v58  ;;  %v4282_v33 = vmax.f32 %v12770_v15, %v4250_v17  ;;  %v4283_v45 = vmax.f32 %v12772_v20, %v4251_v62  ;;  %v16149_v25 = vld [vmem:[#allocation63_spill] sm:$0xff]  ;;  %v16151_v62 = vld [vmem:[#allocation65_spill] sm:$0xff]  ;;  %v16155_v6 = vld [vmem:[#allocation66_spill] sm:$0xff] }
 0x397   : > { %v4284_v16 = vmax.f32 %v12774_v35, %v4252_v5  ;;  %v4286_v34 = vmax.f32 %v12778_v40, %v4254_v56  ;;  %v4310_v41 = vadd.f32 %v12522_v61, %v16146_v13  ;;  %v4312_v1 = vadd.f32 %v12762_v9, %v16147_v38  ;;  %v16152_v26 = vld [vmem:[#allocation33_spill] sm:$0xff]  ;;  %v16154_v13 = vld [vmem:[#allocation67_spill] sm:$0xff] }
 0x398   : > { %v4313_v27 = vadd.f32 %v12764_v30, %v16148_v29  ;;  %v4314_v58 = vadd.f32 %v12766_v3, %v16149_v25  ;;  %v4315_v17 = vadd.f32 %v12768_v31, %v16150_v60  ;;  %v4316_v5 = vadd.f32 %v12770_v15, %v16151_v62 }
 0x399   : > { %v12830_v56 = vadd.f32 %v12768_v31, %v16152_v26  ;;  %v4287_v48 = vmax.f32 %v12781_v46, %v12803_v42  ;;  %v4318_v38 = vadd.f32 %v12774_v35, %v16154_v13  ;;  %v4342_v29 = vmax.f32 %v4278_v39, %v4310_v41  ;;  %v16158_v26 = vld [vmem:[#allocation94_spill] sm:$0xff] }
 0x39a   : > { %v4344_v47 = vmax.f32 %v4280_v37, %v4312_v1  ;;  %v4345_v11 = vmax.f32 %v4281_v0, %v4313_v27  ;;  %v4346_v25 = vmax.f32 %v4282_v33, %v4314_v58  ;;  %v4347_v43 = vmax.f32 %v4283_v45, %v4315_v17  ;;  %v16161_v37 = vld [vmem:[#allocation98_spill] sm:$0xff]  ;;  %v16162_v33 = vld [vmem:[#allocation101_spill] sm:$0xff] }
 0x39b   : > { %16153 = vst [vmem:[#allocation18_spill] sm:$0xff] %v12830_v56  ;;  %v12838_v60 = vadd.f32 %v12772_v20, %v16155_v6  ;;  %v4348_v62 = vmax.f32 %v4284_v16, %v4316_v5  ;;  %v12840_v22 = vmax.f32 %v4286_v34, %v4318_v38  ;;  %v4374_v57 = vadd.f32 %v12766_v3, %v16158_v26  ;;  %v16163_v6 = vld [vmem:[#allocation68_spill] sm:$0xff]  ;;  %v16165_v27 = vld [vmem:[#allocation161_spill] sm:$0xff]  ;;  %v16169_v56 = vld [vmem:[#allocation162_spill] sm:$0xff] }
 0x39c   : > { %v4376_v42 = vadd.f32 %v12770_v15, %v16159_v7  ;;  %v4377_v39 = vadd.f32 %v12772_v20, %v16160_v44  ;;  %v4378_v0 = vadd.f32 %v12774_v35, %v16161_v37  ;;  %v4379_v45 = vadd.f32 %v12776_v24, %v16162_v33  ;;  %v16164_v34 = vld [vmem:[#allocation100_spill] sm:$0xff]  ;;  %v16167_v37 = vld [vmem:[#allocation155_spill] sm:$0xff] }
 0x39d   : > { %16156 = vst [vmem:[#allocation313_spill] sm:$0xff] %v12838_v60  ;;  %16157 = vst [vmem:[#allocation213_spill] sm:$0xff] %v12840_v22  ;;  %v4319_v16 = vadd.f32 %v12776_v24, %v16163_v6  ;;  %v4380_v41 = vadd.f32 %v12778_v40, %v16164_v34  ;;  %v4406_v1 = vmax.f32 %v4342_v29, %v4374_v57  ;;  %v16166_v38 = vld [vmem:[#allocation164_spill] sm:$0xff]  ;;  %v16168_v60 = vld [vmem:[#allocation171_spill] sm:$0xff] }
 0x39e   : > { %v4438_v58 = vadd.f32 %v12770_v15, %v16165_v27  ;;  %v4408_v7 = vmax.f32 %v4344_v47, %v4376_v42  ;;  %v4409_v17 = vmax.f32 %v4345_v11, %v4377_v39  ;;  %v4410_v5 = vmax.f32 %v4346_v25, %v4378_v0  ;;  %v16170_v34 = vld [vmem:[#allocation311_spill] sm:$0xff]  ;;  %v16171_v47 = vld [vmem:[#allocation302_spill] sm:$0xff] }
 0x39f   : > { %v4411_v44 = vmax.f32 %v4347_v43, %v4379_v45  ;;  %v4412_v13 = vmax.f32 %v4348_v62, %v4380_v41  ;;  %v4440_v26 = vadd.f32 %v12774_v35, %v16166_v38  ;;  %v4441_v33 = vadd.f32 %v12776_v24, %v16167_v37  ;;  %v16172_v25 = vld [vmem:[#allocation15_spill] sm:$0xff]  ;;  %v16173_v43 = vld [vmem:[#allocation236_spill] sm:$0xff]  ;;  %v16180_v27 = vld [vmem:[#allocation306_spill] sm:$0xff] }
 0x3a0   : > { %v4442_v6 = vadd.f32 %v12778_v40, %v16168_v60  ;;  %v4443_v57 = vadd.f32 %v12781_v46, %v16169_v56  ;;  %v12866_v29 = vmax.f32 %v4406_v1, %v4438_v58  ;;  %v2730_v11 = vpack.c.bf16 %v16171_v47, %v16170_v34  ;;  %v16175_v45 = vld [vmem:[#allocation280_spill] sm:$0xff]  ;;  %v16178_v56 = vld [vmem:[#allocation309_spill] sm:$0xff] }
 0x3a1   : > { %v2731_v62 = vpack.c.bf16 %v16173_v43, %v16172_v25  ;;  %v12872_v42 = vmax.f32 %v4408_v7, %v4440_v26  ;;  %v12874_v39 = vmax.f32 %v4409_v17, %v4441_v33  ;;  %v12879_v41 = vmax.f32 %v4412_v13, %v16175_v45  ;;  %v16184_v13 = vld [vmem:[#allocation212_spill] sm:$0xff] }
 0x3a2   : > { %v12876_v0 = vmax.f32 %v4410_v5, %v4442_v6  ;;  %v12881_v60 = vmax.f32 %v4411_v44, %v4443_v57  ;;  %6284 = vmatprep.mubr.msk.bf16.mxu0 %vm2751_vm1, %v2730_v11  ;;  %v16179_v1 = vrot.slane %v16178_v56, 1  ;;  %v16181_v58 = vrot.slane %v16180_v27, 1  ;;  %v16187_v45 = vld [vmem:[#allocation240_spill] sm:$0xff] }
 0x3a3   : > { %16176 = vst [vmem:[#allocation256_spill] sm:$0xff] %v12879_v41  ;;  %v16182_v7 = vrot.slane %v16178_v56, 2  ;;  %v16183_v17 = vrot.slane %v16180_v27, 2  ;;  %v16185_v26 = vrot.slane %v16184_v13, 6  ;;  %v16186_v44 = vrot.slane %v16178_v56, 6  ;;  %6285 = vmatmul.mubr.msk.bf16.gmra.mrb[56].mxu0 %vm2751_vm1, %v2731_v62 }
 0x3a4   : > { %16174 = vst [vmem:[#allocation200_spill] sm:$0xff] %v12876_v0  ;;  %16177 = vst [vmem:[#allocation110_spill] sm:$0xff] %v12881_v60  ;;  %v3739_v38 = vsel %vm2236_vm5, %v16181_v58, %v16179_v1  ;;  %v14484_v33 = vrot.slane %v12874_v39, 6  ;;  %v4506_v6 = vrot.slane %v12876_v0, 6  ;;  %v14485_v57 = vrot.slane %v12874_v39, 7  ;;  %v16188_v1 = vld [vmem:[#allocation250_spill] sm:$0xff] }
 0x3a5   : > { %v3867_v5 = vsel %vm2493_vm2, %v16183_v17, %v16182_v7  ;;  %v3482_v37 = vsel %vm1722_vm3, %v16186_v44, %v16185_v26  ;;  %v4634_v34 = vrot.slane %v12876_v0, 7  ;;  %v14488_v47 = vrot.slane %v12881_v60, 6 }
 0x3a6   : > { %v14487_v11 = vrot.slane %v12881_v60, 7  ;;  %v14489_v25 = vrot.slane %v12876_v0, 1  ;;  %v4763_v43 = vrot.slane %v12881_v60, 1  ;;  %v16189_v27 = vpack.c.bf16 %v16187_v45, %v16188_v1 }
 0x3a7   : > { %v12915_v58 = vmax.f32 %v4287_v48, %v4319_v16  ;;  %v4517_v62 = vsel %vm1722_vm3, %v14484_v33, %v4506_v6  ;;  %v4645_v7 = vsel %vm1979_vm4, %v14485_v57, %v4634_v34  ;;  %v14486_v17 = vrot.slane %v12879_v41, 1  ;;  %v16191_v16 = vld [vmem:[#allocation304_spill] sm:$0xff] }
 0x3a8   : > { %6288 = vmatprep.mubr.msk.bf16.mxu0 %vm2751_vm1, %v16189_v27  ;;  %v4516_v48 = vsel %vm1722_vm3, %v4506_v6, %v14488_v47  ;;  %v4570_v45 = vadd.f32 %v4517_v62, %v16191_v16  ;;  %v4644_v1 = vsel %vm1979_vm4, %v4634_v34, %v14487_v11  ;;  %v16192_v27 = vld [vmem:[#allocation158_spill] sm:$0xff]  ;;  %v4698_v57 = vadd.f32 %v4645_v7, %v12162_v10 }
 0x3a9   : > { %v4571_v33 = vadd.f32 %v4516_v48, %v16192_v27  ;;  %v4771_v44 = vsel %vm2236_vm5, %v4763_v43, %v14486_v17  ;;  %v4772_v6 = vsel %vm2236_vm5, %v14489_v25, %v4763_v43  ;;  %v4699_v16 = vadd.f32 %v4644_v1, %v16103_v63  ;;  %v16193_v17 = vld [vmem:[#allocation142_spill] sm:$0xff]  ;;  %v16194_v43 = vld [vmem:[#allocation241_spill] sm:$0xff] }
 0x3aa   : > { %v4602_v62 = vmax.f32 %v12876_v0, %v4570_v45  ;;  %v4826_v34 = vadd.f32 %v4772_v6, %v16117_v49  ;;  %v14492_v48 = vrot.slane %v12876_v0, 2  ;;  %v4891_v7 = vrot.slane %v12881_v60, 2  ;;  %v16195_v45 = vld [vmem:[#allocation157_spill] sm:$0xff]  ;;  %v16196_v1 = vld [vmem:[#allocation78_spill] sm:$0xff] }
 0x3ab   : > { %v4603_v10 = vmax.f32 %v12881_v60, %v4571_v33  ;;  %v14491_v27 = vrot.slane %v12879_v41, 2  ;;  %v3775_v11 = vadd.f32 %v3739_v38, %v16193_v17  ;;  %v4827_v26 = vadd.f32 %v4771_v44, %v16118_v28  ;;  %v16198_v6 = vld [vmem:[#allocation262_spill] sm:$0xff] }
 0x3ac   : > { %v4730_v47 = vmax.f32 %v4602_v62, %v4698_v57  ;;  %v3903_v25 = vadd.f32 %v3867_v5, %v16194_v43  ;;  %v3521_v22 = vadd.f32 %v3482_v37, %v16195_v45  ;;  %v4900_v33 = vsel %vm2493_vm2, %v14492_v48, %v4891_v7  ;;  %v16197_v57 = vld [vmem:[#allocation192_spill] sm:$0xff] }
 0x3ad   : > { %v4731_v63 = vmax.f32 %v4603_v10, %v4699_v16  ;;  %v4899_v49 = vsel %vm2493_vm2, %v4891_v7, %v14491_v27  ;;  %v3807_v38 = vmax.f32 %v16196_v1, %v3775_v11  ;;  %v16199_v28 = vpack.c.bf16 %v16197_v57, %v16198_v6  ;;  %v16200_v62 = vld [vmem:[#allocation116_spill] sm:$0xff]  ;;  %v16201_v16 = vld [vmem:[#allocation114_spill] sm:$0xff] }
 0x3ae   : > { %v4858_v5 = vmax.f32 %v4730_v47, %v4826_v34  ;;  %v4954_v37 = vadd.f32 %v4900_v33, %v12393_v14  ;;  %v4955_v44 = vadd.f32 %v4899_v49, %v16129_v4  ;;  %v16202_v10 = vpack.c.bf16 %v16200_v62, %v16201_v16  ;;  %v16205_v14 = vld [vmem:[#allocation75_spill] sm:$0xff]  ;;  %v16214_v62 = vld [vmem:[#allocation170_spill] sm:$0xff] }
 0x3af   : > { %6289 = vmatmul.mubr.msk.bf16.gmra.mrb[60].mxu0 %vm2751_vm1, %v16199_v28  ;;  %v3553_v27 = vmax.f32 %v16184_v13, %v3521_v22  ;;  %v4859_v7 = vmax.f32 %v4731_v63, %v4827_v26  ;;  %v12978_v48 = vmax.f32 %v3807_v38, %v3903_v25  ;;  %v16203_v11 = vrot.slane %v16184_v13, 7  ;;  %v16209_v22 = vld [vmem:[#allocation41_spill] sm:$0xff]  ;;  %v16210_v25 = vld [vmem:[#allocation182_spill] sm:$0xff] }
 0x3b0   : > { %6296 = vmatprep.mubr.msk.bf16.mxu0 %vm2751_vm1, %v16202_v10  ;;  %v16204_v1 = vrot.slane %v16178_v56, 7  ;;  %v16206_v34 = vrot.slane %v16205_v14, 1  ;;  %v16207_v4 = vrot.slane %v16184_v13, 1  ;;  %v12992_v33 = vmax.f32 %v4858_v5, %v4954_v37 }
 0x3b1   : > { %v16211_v38 = vrot.slane %v16205_v14, 2  ;;  %v16212_v56 = vrot.slane %v16184_v13, 2  ;;  %v13002_v6 = vmax.f32 %v4859_v7, %v4955_v44  ;;  %v3958_v28 = vpack.c.bf16 %v12978_v48, %v16145_v54  ;;  %v16215_v7 = vld [vmem:[#allocation6_spill] sm:$0xff]  ;;  %v16216_v14 = vld [vmem:[#allocation8_spill] sm:$0xff] }
 0x3b2   : > { %v3610_v47 = vsel %vm1979_vm4, %v16204_v1, %v16203_v11  ;;  %v3737_v49 = vsel %vm2236_vm5, %v16207_v4, %v16206_v34  ;;  %16208 = vst [vmem:[#allocation251_spill] sm:$0xff] %v12992_v33  ;;  %v3960_v5 = vpack.c.bf16 %v12760_v19, %v12522_v61  ;;  %v4224_v1 = vadd.f32 %v12774_v35, %v16215_v7  ;;  %v16217_v4 = vld [vmem:[#allocation5_spill] sm:$0xff]  ;;  %v16222_v44 = vld [vmem:[#allocation274_spill] sm:$0xff] }
 0x3b3   : > { %v3649_v26 = vadd.f32 %v3610_v47, %v16209_v22  ;;  %v3777_v63 = vadd.f32 %v3737_v49, %v16210_v25  ;;  %v3865_v57 = vsel %vm2493_vm2, %v16212_v56, %v16211_v38  ;;  %16213 = vst [vmem:[#allocation314_spill] sm:$0xff] %v13002_v6  ;;  %6348 = vmatprep.mubr.msk.bf16.mxu1 %vm2751_vm1, %v3958_v28  ;;  %v16219_v56 = vld [vmem:[#allocation115_spill] sm:$0xff]  ;;  %v16223_v54 = vld [vmem:[#allocation38_spill] sm:$0xff] }
 0x3b4   : > { %v3905_v16 = vadd.f32 %v3865_v57, %v16214_v62  ;;  %v4225_v34 = vadd.f32 %v12776_v24, %v16216_v14  ;;  %v4226_v49 = vadd.f32 %v12778_v40, %v16217_v4  ;;  %v16220_v57 = vld [vmem:[#allocation111_spill] sm:$0xff]  ;;  %v4288_v7 = vadd.f32 %v12778_v40, %v16223_v54  ;;  %v16225_v14 = vld [vmem:[#allocation180_spill] sm:$0xff]  ;;  %v16226_v13 = vld [vmem:[#allocation126_spill] sm:$0xff] }
 0x3b5   : > { %v3681_v37 = vmax.f32 %v3553_v27, %v3649_v26  ;;  %v16218_v26 = vld [vmem:[#allocation7_spill] sm:$0xff]  ;;  %v16221_v28 = vpack.c.bf16 %v16219_v56, %v16220_v57  ;;  %v4256_v27 = vmax.f32 %v16222_v44, %v4224_v1  ;;  %v4415_v11 = vmax.f32 %v12915_v58, %v16225_v14  ;;  %v16229_v56 = vld [vmem:[#allocation232_spill] sm:$0xff]  ;;  %v16231_v1 = vld [vmem:[#allocation334_spill] sm:$0xff] }
 0x3b6   : > { %v4227_v38 = vadd.f32 %v12781_v46, %v16218_v26  ;;  %v16227_v26 = vld [vmem:[#allocation121_spill] sm:$0xff]  ;;  %v4257_v57 = vmax.f32 %v16229_v56, %v4225_v34  ;;  %v16232_v6 = vld [vmem:[#allocation286_spill] sm:$0xff]  ;;  %v16236_v14 = vld [vmem:[#allocation175_spill] sm:$0xff]  ;;  %v16268_v52 = vpack.c.bf16 %v12764_v30, %v12762_v9 }
 0x3b7   : > { %v3809_v47 = vmax.f32 %v3681_v37, %v3777_v63  ;;  %6297 = vmatmul.mubr.msk.bf16.vlgmr.msra.gmra.mrb[32].mxu0 %vm2751_vm1, %v16221_v28  ;;  %v16224_v63 = vld [vmem:[#allocation37_spill] sm:$0xff]  ;;  %v16228_v10 = vpack.c.bf16 %v16226_v13, %v16227_v26  ;;  %v4320_v54 = vmax.f32 %v4256_v27, %v4288_v7  ;;  %v13051_v60 = vmax.f32 %v4415_v11, %v16232_v6  ;;  %v16237_v26 = vld [vmem:[#allocation167_spill] sm:$0xff]  ;;  %v16240_v7 = vld [vmem:[#allocation106_spill] sm:$0xff] }
 0x3b8   : > { %v4289_v37 = vadd.f32 %v12781_v46, %v16224_v63  ;;  %v16230_v28 = vld [vmem:[#allocation333_spill] sm:$0xff]  ;;  %v4259_v33 = vmax.f32 %v16231_v1, %v4227_v38  ;;  %v16234_v63 = vld [vmem:[#allocation124_spill] sm:$0xff] }
 0x3b9   : > { %v13041_v4 = vmax.f32 %v3809_v47, %v3905_v16  ;;  %6300 = vmatprep.mubr.msk.bf16.mxu0 %vm2751_vm1, %v16228_v10  ;;  %v4258_v44 = vmax.f32 %v16230_v28, %v4226_v49  ;;  %16233 = vst [vmem:[#allocation123_spill] sm:$0xff] %v13051_v60  ;;  %v4429_v58 = vadd.f32 %v12978_v48, %v16234_v63  ;;  %v16235_v16 = vld [vmem:[#allocation144_spill] sm:$0xff]  ;;  %v16238_v28 = vld [vmem:[#allocation74_spill] sm:$0xff]  ;;  %v16239_v11 = vld [vmem:[#allocation13_spill] sm:$0xff] }
 0x3ba   : > { %v4430_v47 = vadd.f32 %v12439_v53, %v16235_v16  ;;  %v4321_v10 = vmax.f32 %v4257_v57, %v4289_v37  ;;  %v4323_v49 = vmax.f32 %v4259_v33, %v16237_v26  ;;  %v4384_v38 = vmax.f32 %v4320_v54, %v16238_v28  ;;  %v13069_v16 = vpop.f32.mrb[44].mxu0  ;;  %v16243_v37 = vld [vmem:[#allocation149_spill] sm:$0xff]  ;;  %v16245_v33 = vld [vmem:[#allocation102_spill] sm:$0xff] }
 0x3bb   : > { %v3959_v13 = vpack.c.bf16 %v13041_v4, %v12439_v53  ;;  %v4322_v34 = vmax.f32 %v4258_v44, %v16236_v14  ;;  %v16241_v1 = vmax.f32 %v16239_v11, %v16240_v7  ;;  %16242 = vst [vmem:[#allocation148_spill] sm:$0xff] %v13069_v16  ;;  %v16244_v44 = vld [vmem:[#allocation291_spill] sm:$0xff]  ;;  %v16246_v54 = vld [vmem:[#allocation278_spill] sm:$0xff]  ;;  %v16247_v28 = vld [vmem:[#allocation233_spill] sm:$0xff]  ;;  %v13080_v6 = vpop.f32.mrb[45].mxu0 }
 0x3bc   : > { %v4385_v57 = vmax.f32 %v4321_v10, %v16243_v37  ;;  %v4387_v26 = vmax.f32 %v4323_v49, %v16245_v33  ;;  %v16248_v27 = vmax.f32 %v16246_v54, %v16247_v28  ;;  %16249 = vst [vmem:[#allocation48_spill] sm:$0xff] %v13080_v6  ;;  %v13089_v7 = vpop.f32.mrb[46].mxu0  ;;  %v16253_v49 = vld [vmem:[#allocation39_spill] sm:$0xff]  ;;  %v16254_v37 = vld [vmem:[#allocation69_spill] sm:$0xff]  ;;  %v16258_v54 = vld [vmem:[#allocation120_spill] sm:$0xff] }
 0x3bd   : > { %v13067_v63 = vmax.f32 %v16241_v1, %v4429_v58  ;;  %6349 = vmatmul.mubr.msk.bf16.gmra.mrb[4].mxu1 %vm2751_vm1, %v3959_v13  ;;  %v4386_v14 = vmax.f32 %v4322_v34, %v16244_v44  ;;  %v16250_v58 = vld [vmem:[#allocation296_spill] sm:$0xff]  ;;  %16252 = vst [vmem:[#allocation17_spill] sm:$0xff] %v13089_v7  ;;  %v16257_v33 = vld [vmem:[#allocation127_spill] sm:$0xff]  ;;  %v16264_v13 = vrot.slane %v13051_v60, 7 }
 0x3be   : > { %v13078_v56 = vmax.f32 %v16248_v27, %v4430_v47  ;;  %6352 = vmatprep.mubr.msk.bf16.mxu1 %vm2751_vm1, %v3960_v5  ;;  %v13084_v11 = vmax.f32 %v4384_v38, %v16250_v58  ;;  %v4449_v1 = vmax.f32 %v4385_v57, %v16253_v49  ;;  %v16255_v27 = vld [vmem:[#allocation12_spill] sm:$0xff]  ;;  %v13099_v38 = vpop.f32.mrb[47].mxu0  ;;  %v16259_v28 = vpack.c.bf16 %v16257_v33, %v16258_v54  ;;  %v16260_v49 = vld [vmem:[#allocation141_spill] sm:$0xff] }
 0x3bf   : > { %v13093_v47 = vmax.f32 %v4386_v14, %v16254_v37  ;;  %v13096_v44 = vmax.f32 %v4387_v26, %v16255_v27  ;;  %16256 = vst [vmem:[#allocation310_spill] sm:$0xff] %v13099_v38  ;;  %v16261_v26 = vld [vmem:[#allocation128_spill] sm:$0xff]  ;;  %v16263_v54 = vrot.slane %v13051_v60, 6 }
 0x3c0   : > { %16251 = vst [vmem:[#allocation49_spill] sm:$0xff] %v13084_v11  ;;  %6301 = vmatmul.mubr.msk.bf16.gmra.mrb[36].mxu0 %vm2751_vm1, %v16259_v28  ;;  %v4480_v58 = vrot.slane %v13084_v11, 6  ;;  %v4608_v34 = vrot.slane %v13084_v11, 7  ;;  %v16262_v37 = vpack.c.bf16 %v16260_v49, %v16261_v26  ;;  %v4481_v27 = vrot.slane %v4449_v1, 6  ;;  %v16265_v38 = vld [vmem:[#allocation188_spill] sm:$0xff] }
 0x3c1   : > { %v4482_v5 = vrot.slane %v13093_v47, 6  ;;  %v4609_v10 = vrot.slane %v4449_v1, 7  ;;  %v4610_v33 = vrot.slane %v13093_v47, 7  ;;  %v4737_v57 = vrot.slane %v4449_v1, 1 }
 0x3c2   : > { %6304 = vmatprep.mubr.msk.bf16.mxu0 %vm2751_vm1, %v16262_v37  ;;  %v4543_v28 = vsel %vm1722_vm3, %v16263_v54, %v4480_v58  ;;  %v4671_v14 = vsel %vm1979_vm4, %v16264_v13, %v4608_v34  ;;  %v4738_v49 = vrot.slane %v13093_v47, 1  ;;  %v4542_v37 = vsel %vm1722_vm3, %v4480_v58, %v4481_v27  ;;  %v16266_v54 = vld [vmem:[#allocation204_spill] sm:$0xff]  ;;  %v16267_v13 = vld [vmem:[#allocation245_spill] sm:$0xff] }
 0x3c3   : > { %v4541_v26 = vsel %vm1722_vm3, %v4481_v27, %v4482_v5  ;;  %v4544_v7 = vadd.f32 %v4543_v28, %v16265_v38  ;;  %v4669_v6 = vsel %vm1979_vm4, %v4609_v10, %v4610_v33  ;;  %v4545_v16 = vadd.f32 %v4542_v37, %v16266_v54  ;;  %v16269_v38 = vld [vmem:[#allocation174_spill] sm:$0xff] }
 0x3c4   : > { %v4670_v60 = vsel %vm1979_vm4, %v4608_v34, %v4609_v10  ;;  %v4672_v41 = vadd.f32 %v4671_v14, %v16267_v13  ;;  %v4739_v23 = vrot.slane %v13096_v44, 1  ;;  %v4797_v28 = vsel %vm2236_vm5, %v4737_v57, %v4738_v49 }
 0x3c5   : > { %6353 = vmatmul.mubr.msk.bf16.gmra.mrb[8].mxu1 %vm2751_vm1, %v16268_v52  ;;  %v4576_v58 = vmax.f32 %v13084_v11, %v4544_v7  ;;  %v4673_v27 = vadd.f32 %v4670_v60, %v16269_v38  ;;  %v16270_v37 = vrot.slane %v13084_v11, 1  ;;  %v16271_v34 = vpack.c.bf16 %v12768_v31, %v12766_v3  ;;  %v16272_v7 = vld [vmem:[#allocation215_spill] sm:$0xff]  ;;  %v16273_v60 = vld [vmem:[#allocation252_spill] sm:$0xff] }
 0x3c6   : > { %v4577_v14 = vmax.f32 %v4449_v1, %v4545_v16  ;;  %v4796_v52 = vsel %vm2236_vm5, %v4738_v49, %v4739_v23  ;;  %v4801_v13 = vadd.f32 %v4797_v28, %v16273_v60  ;;  %v4865_v21 = vrot.slane %v4449_v1, 2  ;;  %v16280_v60 = vld [vmem:[#allocation254_spill] sm:$0xff] }
 0x3c7   : > { %v4798_v10 = vsel %vm2236_vm5, %v16270_v37, %v4737_v57  ;;  %6356 = vmatprep.mubr.msk.bf16.mxu1 %vm2751_vm1, %v16271_v34  ;;  %v4704_v38 = vmax.f32 %v4576_v58, %v4672_v41  ;;  %v4866_v50 = vrot.slane %v13093_v47, 2  ;;  %v4867_v36 = vrot.slane %v13096_v44, 2  ;;  %v16274_v57 = vld [vmem:[#allocation146_spill] sm:$0xff]  ;;  %v16275_v37 = vld [vmem:[#allocation135_spill] sm:$0xff] }
 0x3c8   : > { %v4800_v54 = vadd.f32 %v4798_v10, %v16272_v7  ;;  %v16276_v55 = vpack.c.bf16 %v16274_v57, %v16275_v37  ;;  %v4705_v34 = vmax.f32 %v4577_v14, %v4673_v27  ;;  %v4483_v16 = vrot.slane %v13096_v44, 6  ;;  %v16279_v27 = vld [vmem:[#allocation184_spill] sm:$0xff] }
 0x3c9   : > { %v4546_v49 = vadd.f32 %v4541_v26, %v16277_v59  ;;  %v4611_v10 = vrot.slane %v13096_v44, 7  ;;  %v4924_v41 = vsel %vm2493_vm2, %v4866_v50, %v4867_v36  ;;  %v4925_v1 = vsel %vm2493_vm2, %v4865_v21, %v4866_v50  ;;  %v16281_v26 = vld [vmem:[#allocation203_spill] sm:$0xff]  ;;  %v16282_v37 = vld [vmem:[#allocation248_spill] sm:$0xff] }
 0x3ca   : > { %6305 = vmatmul.mubr.msk.bf16.gmra.mrb[40].mxu0 %vm2751_vm1, %v16276_v55  ;;  %v4832_v7 = vmax.f32 %v4704_v38, %v4800_v54  ;;  %v16278_v58 = vrot.slane %v13084_v11, 2  ;;  %v4833_v55 = vmax.f32 %v4705_v34, %v4801_v13  ;;  %v4929_v57 = vadd.f32 %v4925_v1, %v16280_v60  ;;  %v16284_v34 = vld [vmem:[#allocation138_spill] sm:$0xff] }
 0x3cb   : > { %v4540_v59 = vsel %vm1722_vm3, %v4482_v5, %v4483_v16  ;;  %v4578_v38 = vmax.f32 %v13093_v47, %v4546_v49  ;;  %v4668_v50 = vsel %vm1979_vm4, %v4610_v33, %v4611_v10  ;;  %v4674_v11 = vadd.f32 %v4669_v6, %v16282_v37  ;;  %v16287_v33 = vld [vmem:[#allocation285_spill] sm:$0xff] }
 0x3cc   : > { %v4926_v28 = vsel %vm2493_vm2, %v16278_v58, %v4865_v21  ;;  %v4547_v54 = vadd.f32 %v4540_v59, %v16281_v26  ;;  %v4961_v32 = vmax.f32 %v4833_v55, %v4929_v57  ;;  %v16283_v21 = vld [vmem:[#allocation238_spill] sm:$0xff]  ;;  %v16285_v58 = vrot.slane %v16284_v34, 1  ;;  %v16288_v6 = vld [vmem:[#allocation221_spill] sm:$0xff] }
 0x3cd   : > { %v4928_v14 = vadd.f32 %v4926_v28, %v16279_v27  ;;  %v4675_v13 = vadd.f32 %v4668_v50, %v16283_v21  ;;  %v16286_v5 = vpack.c.bf16 %v12772_v20, %v12770_v15  ;;  %v4706_v49 = vmax.f32 %v4578_v38, %v4674_v11  ;;  %v16293_v59 = vld [vmem:[#allocation197_spill] sm:$0xff] }
 0x3ce   : > { %v4795_v1 = vsel %vm2236_vm5, %v4739_v23, %v16285_v58  ;;  %v4579_v47 = vmax.f32 %v13096_v44, %v4547_v54  ;;  %v4802_v28 = vadd.f32 %v4796_v52, %v16287_v33  ;;  %v16289_v55 = vpack.c.bf16 %v12776_v24, %v12774_v35  ;;  %v16294_v35 = vld [vmem:[#allocation208_spill] sm:$0xff]  ;;  %v16297_v38 = vld [vmem:[#allocation305_spill] sm:$0xff] }
 0x3cf   : > { %v4960_v0 = vmax.f32 %v4832_v7, %v4928_v14  ;;  %6357 = vmatmul.mubr.msk.bf16.gmra.mrb[12].mxu1 %vm2751_vm1, %v16286_v5  ;;  %v4803_v7 = vadd.f32 %v4795_v1, %v16288_v6  ;;  %v16290_v23 = vrot.slane %v16284_v34, 2  ;;  %v16291_v14 = vld [vmem:[#allocation189_spill] sm:$0xff]  ;;  %v16292_v44 = vrot.slane %v16284_v34, 6 }
 0x3d0   : > { %6360 = vmatprep.mubr.msk.bf16.mxu1 %vm2751_vm1, %v16289_v55  ;;  %v4930_v60 = vadd.f32 %v4924_v41, %v16291_v14  ;;  %v4707_v52 = vmax.f32 %v4579_v47, %v4675_v13  ;;  %v4834_v57 = vmax.f32 %v4706_v49, %v4802_v28  ;;  %v16298_v41 = vrot.slane %v16297_v38, 6  ;;  %v16303_v49 = vld [vmem:[#allocation257_spill] sm:$0xff]  ;;  %v16304_v28 = vld [vmem:[#allocation271_spill] sm:$0xff]  ;;  %v16305_v55 = vld [vmem:[#allocation108_spill] sm:$0xff] }
 0x3d1   : > { %v4992_v27 = vpack.c.bf16 %v4961_v32, %v4960_v0  ;;  %v4923_v15 = vsel %vm2493_vm2, %v4867_v36, %v16290_v23  ;;  %v4539_v11 = vsel %vm1722_vm3, %v4483_v16, %v16292_v44  ;;  %v16295_v32 = vrot.slane %v16284_v34, 7 }
 0x3d2   : > { %v4931_v26 = vadd.f32 %v4923_v15, %v16293_v59  ;;  %v4548_v54 = vadd.f32 %v4539_v11, %v16294_v35  ;;  %v16296_v36 = vrot.slane %v13067_v63, 6  ;;  %v16299_v16 = vrot.slane %v13067_v63, 7  ;;  %v16308_v11 = vld [vmem:[#allocation258_spill] sm:$0xff] }
 0x3d3   : > { %v4667_v0 = vsel %vm1979_vm4, %v4611_v10, %v16295_v32  ;;  %v16300_v37 = vrot.slane %v16297_v38, 7  ;;  %v16301_v13 = vrot.slane %v13078_v56, 1  ;;  %v16302_v58 = vrot.slane %v13067_v63, 1  ;;  %v16310_v32 = vld [vmem:[#allocation89_spill] sm:$0xff] }
 0x3d4   : > { %v4530_v50 = vsel %vm1722_vm3, %v16298_v41, %v16296_v36  ;;  %v4835_v1 = vmax.f32 %v4707_v52, %v4803_v7  ;;  %v4962_v5 = vmax.f32 %v4834_v57, %v4930_v60  ;;  %v4580_v47 = vmax.f32 %v16284_v34, %v4548_v54  ;;  %v16309_v60 = vld [vmem:[#allocation230_spill] sm:$0xff] }
 0x3d5   : > { %v4658_v21 = vsel %vm1979_vm4, %v16300_v37, %v16299_v16  ;;  %v4785_v10 = vsel %vm2236_vm5, %v16302_v58, %v16301_v13  ;;  %v4676_v33 = vadd.f32 %v4667_v0, %v16303_v49  ;;  %v4557_v6 = vadd.f32 %v4530_v50, %v16304_v28  ;;  %v16311_v36 = vld [vmem:[#allocation86_spill] sm:$0xff]  ;;  %v16313_v16 = vld [vmem:[#allocation11_spill] sm:$0xff] }
 0x3d6   : > { %v4685_v23 = vadd.f32 %v4658_v21, %v16305_v55  ;;  %v16306_v15 = vmov %v16302_v58  ;;  %v16307_v14 = vrot.slane %v16297_v38, 1  ;;  %v4813_v59 = vadd.f32 %v4785_v10, %v16308_v11  ;;  %v16314_v21 = vld [vmem:[#allocation322_spill] sm:$0xff]  ;;  %v16316_v49 = vld [vmem:[#allocation239_spill] sm:$0xff]  ;;  %v16319_v55 = vld [vmem:[#allocation88_spill] sm:$0xff] }
 0x3d7   : > { %v4963_v35 = vmax.f32 %v4835_v1, %v4931_v26  ;;  %v4708_v7 = vmax.f32 %v4580_v47, %v4676_v33  ;;  %v4877_v34 = vrot.slane %v13067_v63, 2  ;;  %v4589_v57 = vmax.f32 %v13067_v63, %v4557_v6  ;;  %v16317_v33 = vld [vmem:[#allocation191_spill] sm:$0xff] }
 0x3d8   : > { %v4786_v44 = vsel %vm2236_vm5, %v16307_v14, %v16306_v15  ;;  %v4878_v54 = vrot.slane %v13078_v56, 2  ;;  %v4367_v0 = vadd.f32 %v12978_v48, %v16310_v32  ;;  %v4368_v41 = vadd.f32 %v12439_v53, %v16311_v36  ;;  %v16320_v14 = vld [vmem:[#allocation185_spill] sm:$0xff] }
 0x3d9   : > { %v4812_v52 = vadd.f32 %v4786_v44, %v16309_v60  ;;  %v16312_v50 = vpack.c.bf16 %v12781_v46, %v12778_v40  ;;  %v4993_v26 = vpack.c.bf16 %v4963_v35, %v4962_v5  ;;  %v4836_v37 = vmax.f32 %v4708_v7, %v16313_v16  ;;  %v16318_v5 = vld [vmem:[#allocation294_spill] sm:$0xff] }
 0x3da   : > { %v16315_v58 = vrot.slane %v16297_v38, 2  ;;  %v4717_v1 = vmax.f32 %v4589_v57, %v4685_v23  ;;  %v4913_v47 = vsel %vm2493_vm2, %v4877_v34, %v4878_v54  ;;  %v4399_v28 = vmax.f32 %v16317_v33, %v4367_v0  ;;  %v16321_v38 = vld [vmem:[#allocation130_spill] sm:$0xff]  ;;  %v16329_v33 = vld [vmem:[#allocation288_spill] sm:$0xff] }
 0x3db   : > { %6361 = vmatmul.mubr.msk.bf16.gmra.mrb[16].mxu1 %vm2751_vm1, %v16312_v50  ;;  %v4844_v13 = vmax.f32 %v16314_v21, %v4812_v52  ;;  %v4964_v6 = vmax.f32 %v4836_v37, %v16318_v5  ;;  %v4941_v15 = vadd.f32 %v4913_v47, %v16319_v55  ;;  %v4400_v44 = vmax.f32 %v16320_v14, %v4368_v41  ;;  %v16323_v52 = vld [vmem:[#allocation299_spill] sm:$0xff]  ;;  %v16324_v0 = vld [vmem:[#allocation46_spill] sm:$0xff]  ;;  %v16326_v37 = vld [vmem:[#allocation260_spill] sm:$0xff] }
 0x3dc   : > { %v4914_v10 = vsel %vm2493_vm2, %v16315_v58, %v4877_v34  ;;  %6368 = vmatprep.mubr.msk.bf16.mxu1 %vm2751_vm1, %v4992_v27  ;;  %v4431_v11 = vadd.f32 %v13041_v4, %v16321_v38  ;;  %v4845_v35 = vmax.f32 %v4717_v1, %v4813_v59  ;;  %v16322_v27 = vld [vmem:[#allocation150_spill] sm:$0xff]  ;;  %v4494_v60 = vrot.slane %v13078_v56, 6 }
 0x3dd   : > { %v4940_v40 = vadd.f32 %v4914_v10, %v16316_v49  ;;  %v4432_v23 = vadd.f32 %v12522_v61, %v16322_v27  ;;  %v4994_v34 = vpack.c.bf16 %v16323_v52, %v4964_v6  ;;  %v4622_v32 = vrot.slane %v13078_v56, 7  ;;  %v16327_v58 = vld [vmem:[#allocation178_spill] sm:$0xff]  ;;  %v16333_v52 = vld [vmem:[#allocation176_spill] sm:$0xff] }
 0x3de   : > { %v4463_v57 = vmax.f32 %v4399_v28, %v4431_v11  ;;  %v4273_v36 = vmax.f32 %v12978_v48, %v16324_v0  ;;  %v13279_v41 = vmax.f32 %v4845_v35, %v4941_v15  ;;  %v16325_v59 = vrot.slane %v13067_v63, 6  ;;  %v16331_v11 = vld [vmem:[#allocation289_spill] sm:$0xff] }
 0x3df   : > { %v13270_v7 = vmax.f32 %v4844_v13, %v4940_v40  ;;  %v13281_v50 = vmax.f32 %v4400_v44, %v4432_v23  ;;  %v4274_v21 = vmax.f32 %v12439_v53, %v16326_v37  ;;  %v16328_v47 = vrot.slane %v13067_v63, 7  ;;  %v16330_v44 = vld [vmem:[#allocation255_spill] sm:$0xff] }
 0x3e0   : > { %v4529_v16 = vsel %vm1722_vm3, %v16325_v59, %v4494_v60  ;;  %v4495_v13 = vrot.slane %v4463_v57, 6  ;;  %v4623_v1 = vrot.slane %v4463_v57, 7  ;;  %v4751_v5 = vrot.slane %v4463_v57, 1  ;;  %v16334_v59 = vld [vmem:[#allocation218_spill] sm:$0xff] }
 0x3e1   : > { %v4558_v10 = vadd.f32 %v4529_v16, %v16327_v58  ;;  %v4657_v49 = vsel %vm1979_vm4, %v16328_v47, %v4622_v32  ;;  %v4998_v40 = vpack.c.bf16 %v13279_v41, %v13270_v7  ;;  %v4752_v6 = vrot.slane %v13281_v50, 1  ;;  %v16335_v58 = vld [vmem:[#allocation224_spill] sm:$0xff]  ;;  %v16336_v47 = vld [vmem:[#allocation47_spill] sm:$0xff] }
 0x3e2   : > { %v4686_v28 = vadd.f32 %v4657_v49, %v16329_v33  ;;  %v4528_v55 = vsel %vm1722_vm3, %v4494_v60, %v4495_v13  ;;  %v4656_v63 = vsel %vm1979_vm4, %v4622_v32, %v4623_v1  ;;  %v4879_v14 = vrot.slane %v4463_v57, 2 }
 0x3e3   : > { %6369 = vmatmul.mubr.msk.bf16.vlgmr.msra.gmra.mrb[20].mxu1 %vm2751_vm1, %v4993_v26  ;;  %v4590_v15 = vmax.f32 %v13078_v56, %v4558_v10  ;;  %v4559_v38 = vadd.f32 %v4528_v55, %v16330_v44  ;;  %v4687_v35 = vadd.f32 %v4656_v63, %v16331_v11  ;;  %v4783_v27 = vsel %vm2236_vm5, %v4751_v5, %v4752_v6  ;;  %v16338_v55 = vld [vmem:[#allocation91_spill] sm:$0xff]  ;;  %v16339_v44 = vld [vmem:[#allocation172_spill] sm:$0xff] }
 0x3e4   : > { %6372 = vmatprep.mubr.msk.bf16.mxu1 %vm2751_vm1, %v4994_v34  ;;  %v16332_v26 = vrot.slane %v13078_v56, 1  ;;  %v4815_v32 = vadd.f32 %v4783_v27, %v16334_v59  ;;  %v4880_v16 = vrot.slane %v13281_v50, 2  ;;  %v4912_v37 = vsel %vm2493_vm2, %v4878_v54, %v4879_v14  ;;  %v16341_v54 = vld [vmem:[#allocation137_spill] sm:$0xff] }
 0x3e5   : > { %v4718_v60 = vmax.f32 %v4590_v15, %v4686_v28  ;;  %v4591_v34 = vmax.f32 %v4463_v57, %v4559_v38  ;;  %v4337_v10 = vmax.f32 %v4273_v36, %v16335_v58  ;;  %v4338_v49 = vmax.f32 %v4274_v21, %v16336_v47  ;;  %v16340_v57 = vld [vmem:[#allocation90_spill] sm:$0xff] }
 0x3e6   : > { %v4784_v23 = vsel %vm2236_vm5, %v16332_v26, %v4751_v5  ;;  %v4911_v56 = vsel %vm2493_vm2, %v4879_v14, %v4880_v16  ;;  %v16337_v5 = vld [vmem:[#allocation272_spill] sm:$0xff]  ;;  %v4369_v15 = vadd.f32 %v13041_v4, %v16338_v55  ;;  %v4370_v38 = vadd.f32 %v12522_v61, %v16340_v57  ;;  %v16342_v26 = vld [vmem:[#allocation87_spill] sm:$0xff] }
 0x3e7   : > { %v4814_v0 = vadd.f32 %v4784_v23, %v16333_v52  ;;  %v4942_v28 = vadd.f32 %v4912_v37, %v16337_v5  ;;  %v4719_v63 = vmax.f32 %v4591_v34, %v4687_v35  ;;  %v4943_v11 = vadd.f32 %v4911_v56, %v16339_v44  ;;  %v16343_v34 = vld [vmem:[#allocation206_spill] sm:$0xff]  ;;  %v16344_v37 = vld [vmem:[#allocation269_spill] sm:$0xff] }
 0x3e8   : > { %v4433_v36 = vadd.f32 %v12760_v19, %v16341_v54  ;;  %v4401_v21 = vmax.f32 %v4337_v10, %v4369_v15  ;;  %v4434_v14 = vadd.f32 %v12762_v9, %v16342_v26  ;;  %v4496_v23 = vrot.slane %v13281_v50, 6 }
 0x3e9   : > { %v4846_v33 = vmax.f32 %v4718_v60, %v4814_v0  ;;  %v4847_v60 = vmax.f32 %v4719_v63, %v4815_v32  ;;  %v4402_v52 = vmax.f32 %v4338_v49, %v4370_v38  ;;  %v4624_v35 = vrot.slane %v13281_v50, 7  ;;  %v16346_v49 = vld [vmem:[#allocation222_spill] sm:$0xff] }
 0x3ea   : > { %v4275_v0 = vmax.f32 %v13041_v4, %v12789_v12  ;;  %v4889_v59 = vrot.slane %v12874_v39, 2  ;;  %v16345_v58 = vpack.c.bf16 %v16343_v34, %v16344_v37  ;;  %v4465_v10 = vmax.f32 %v4401_v21, %v4433_v36  ;;  %v16353_v37 = vld [vmem:[#allocation297_spill] sm:$0xff] }
 0x3eb   : > { %v13330_v27 = vmax.f32 %v4846_v33, %v4942_v28  ;;  %v4527_v47 = vsel %vm1722_vm3, %v4495_v13, %v4496_v23  ;;  %v4276_v32 = vmax.f32 %v12522_v61, %v12808_v8  ;;  %v16347_v33 = vld [vmem:[#allocation173_spill] sm:$0xff]  ;;  %v13351_v12 = vmax.f32 %v4847_v60, %v4943_v11  ;;  %v16349_v28 = vld [vmem:[#allocation219_spill] sm:$0xff] }
 0x3ec   : > { %6373 = vmatmul.mubr.msk.bf16.gmra.mrb[24].mxu1 %vm2751_vm1, %v16345_v58  ;;  %v16348_v56 = vpack.c.bf16 %v16346_v49, %v16347_v33  ;;  %v13353_v5 = vmax.f32 %v4402_v52, %v4434_v14  ;;  %v4560_v55 = vadd.f32 %v4527_v47, %v16349_v28  ;;  %v4655_v15 = vsel %vm1979_vm4, %v4623_v1, %v4624_v35  ;;  %v16350_v13 = vld [vmem:[#allocation105_spill] sm:$0xff]  ;;  %v16351_v14 = vld [vmem:[#allocation70_spill] sm:$0xff] }
 0x3ed   : > { %v4497_v63 = vrot.slane %v4465_v10, 6  ;;  %v4625_v44 = vrot.slane %v4465_v10, 7  ;;  %v4688_v57 = vadd.f32 %v4655_v15, %v16350_v13  ;;  %v4753_v38 = vrot.slane %v4465_v10, 1  ;;  %v16356_v28 = vld [vmem:[#allocation57_spill] sm:$0xff]  ;;  %v13385_v15 = vpop.f32.mrb[48].mxu0  ;;  %v16357_v13 = vld [vmem:[#allocation118_spill] sm:$0xff] }
 0x3ee   : > { %6376 = vmatprep.mubr.msk.bf16.mxu1 %vm2751_vm1, %v16348_v56  ;;  %v4999_v61 = vpack.c.bf16 %v13351_v12, %v13330_v27  ;;  %v4592_v8 = vmax.f32 %v13281_v50, %v4560_v55  ;;  %v4754_v11 = vrot.slane %v13353_v5, 1  ;;  %v4881_v54 = vrot.slane %v4465_v10, 2  ;;  %v16352_v27 = vld [vmem:[#allocation56_spill] sm:$0xff] }
 0x3ef   : > { %v4526_v36 = vsel %vm1722_vm3, %v4496_v23, %v4497_v63  ;;  %v4654_v21 = vsel %vm1979_vm4, %v4624_v35, %v4625_v44  ;;  %v4782_v1 = vsel %vm2236_vm5, %v4752_v6, %v4753_v38  ;;  %v4882_v26 = vrot.slane %v13353_v5, 2  ;;  %v16354_v23 = vld [vmem:[#allocation261_spill] sm:$0xff]  ;;  %v16355_v56 = vld [vmem:[#allocation76_spill] sm:$0xff] }
 0x3f0   : > { %v4561_v60 = vadd.f32 %v4526_v36, %v16351_v14  ;;  %v4720_v52 = vmax.f32 %v4592_v8, %v4688_v57  ;;  %v4781_v50 = vsel %vm2236_vm5, %v4753_v38, %v4754_v11  ;;  %v4307_v34 = vadd.f32 %v12978_v48, %v16352_v27  ;;  %v16358_v57 = vld [vmem:[#allocation209_spill] sm:$0xff] }
 0x3f1   : > { %v4689_v58 = vadd.f32 %v4654_v21, %v16353_v37  ;;  %v4816_v47 = vadd.f32 %v4782_v1, %v16354_v23  ;;  %v4909_v35 = vsel %vm2493_vm2, %v4881_v54, %v4882_v26  ;;  %v4910_v6 = vsel %vm2493_vm2, %v4880_v16, %v4881_v54  ;;  %v16360_v21 = vld [vmem:[#allocation93_spill] sm:$0xff]  ;;  %v13395_v54 = vpop.f32.mrb[49].mxu0 }
 0x3f2   : > { %v4593_v49 = vmax.f32 %v4465_v10, %v4561_v60  ;;  %v4817_v33 = vadd.f32 %v4781_v50, %v16193_v17  ;;  %v4944_v12 = vadd.f32 %v4910_v6, %v16355_v56  ;;  %v4308_v55 = vadd.f32 %v12439_v53, %v16356_v28  ;;  %v16361_v10 = vld [vmem:[#allocation92_spill] sm:$0xff]  ;;  %v16362_v14 = vld [vmem:[#allocation145_spill] sm:$0xff]  ;;  %v13405_v50 = vpop.f32.mrb[50].mxu0 }
 0x3f3   : > { %v16359_v38 = vpack.c.bf16 %v16357_v13, %v16358_v57  ;;  %v4848_v8 = vmax.f32 %v4720_v52, %v4816_v47  ;;  %v4339_v36 = vmax.f32 %v4275_v0, %v4307_v34  ;;  %v4371_v16 = vadd.f32 %v12760_v19, %v16360_v21  ;;  %v16363_v52 = vld [vmem:[#allocation154_spill] sm:$0xff]  ;;  %v13409_v23 = vpop.f32.mrb[51].mxu0 }
 0x3f4   : > { %v4372_v17 = vadd.f32 %v12762_v9, %v16361_v10  ;;  %v4721_v53 = vmax.f32 %v4593_v49, %v4689_v58  ;;  %v4340_v1 = vmax.f32 %v4276_v32, %v4308_v55  ;;  %v4435_v60 = vadd.f32 %v12764_v30, %v16362_v14  ;;  %v16364_v32 = vld [vmem:[#allocation25_spill] sm:$0xff]  ;;  %v16365_v49 = vld [vmem:[#allocation58_spill] sm:$0xff] }
 0x3f5   : > { %6377 = vmatmul.mubr.msk.bf16.gmra.mrb[28].mxu1 %vm2751_vm1, %v16359_v38  ;;  %v4436_v0 = vadd.f32 %v12766_v3, %v16363_v52  ;;  %v4976_v27 = vmax.f32 %v4848_v8, %v4944_v12  ;;  %v4403_v34 = vmax.f32 %v4339_v36, %v4371_v16  ;;  %v4498_v9 = vrot.slane %v13353_v5, 6  ;;  %v16369_v52 = vld [vmem:[#allocation72_spill] sm:$0xff] }
 0x3f6   : > { %6380 = vmatprep.mubr.msk.bf16.mxu1 %vm2751_vm1, %v4998_v40  ;;  %v4626_v37 = vrot.slane %v13353_v5, 7  ;;  %v4849_v7 = vmax.f32 %v4721_v53, %v4817_v33  ;;  %v4945_v41 = vadd.f32 %v4909_v35, %v16194_v43  ;;  %v4404_v40 = vmax.f32 %v4340_v1, %v4372_v17  ;;  %v16366_v33 = vld [vmem:[#allocation201_spill] sm:$0xff]  ;;  %v16367_v43 = vld [vmem:[#allocation134_spill] sm:$0xff]  ;;  %v16368_v1 = vld [vmem:[#allocation95_spill] sm:$0xff] }
 0x3f7   : > { %v4245_v58 = vadd.f32 %v12978_v48, %v16364_v32  ;;  %v4467_v47 = vmax.f32 %v4403_v34, %v4435_v60  ;;  %v4525_v3 = vsel %vm1722_vm3, %v4497_v63, %v4498_v9  ;;  %v4309_v56 = vadd.f32 %v13041_v4, %v16365_v49 }
 0x3f8   : > { %v4653_v6 = vsel %vm1979_vm4, %v4625_v44, %v4626_v37  ;;  %v4977_v12 = vmax.f32 %v4849_v7, %v4945_v41  ;;  %v13420_v28 = vmax.f32 %v4404_v40, %v4436_v0  ;;  %v4562_v55 = vadd.f32 %v4525_v3, %v16366_v33  ;;  %v16371_v41 = vld [vmem:[#allocation151_spill] sm:$0xff] }
 0x3f9   : > { %v4690_v35 = vadd.f32 %v4653_v6, %v16367_v43  ;;  %v4499_v13 = vrot.slane %v4467_v47, 6  ;;  %v4627_v57 = vrot.slane %v4467_v47, 7  ;;  %v4755_v48 = vrot.slane %v4467_v47, 1 }
 0x3fa   : > { %v4883_v38 = vrot.slane %v4467_v47, 2  ;;  %v5000_v8 = vpack.c.bf16 %v4977_v12, %v4976_v27  ;;  %v4594_v63 = vmax.f32 %v13353_v5, %v4562_v55  ;;  %v4756_v36 = vrot.slane %v13420_v28, 1  ;;  %v16370_v27 = vld [vmem:[#allocation329_spill] sm:$0xff]  ;;  %v16372_v12 = vld [vmem:[#allocation27_spill] sm:$0xff] }
 0x3fb   : > { %v4884_v44 = vrot.slane %v13420_v28, 2  ;;  %v4524_v21 = vsel %vm1722_vm3, %v4498_v9, %v4499_v13  ;;  %v4652_v16 = vsel %vm1979_vm4, %v4626_v37, %v4627_v57  ;;  %v4780_v10 = vsel %vm2236_vm5, %v4754_v11, %v4755_v48 }
 0x3fc   : > { %v4908_v17 = vsel %vm2493_vm2, %v4882_v26, %v4883_v38  ;;  %v4563_v5 = vadd.f32 %v4524_v21, %v16195_v45  ;;  %v4722_v53 = vmax.f32 %v4594_v63, %v4690_v35  ;;  %v4373_v14 = vadd.f32 %v12764_v30, %v16368_v1  ;;  %v16373_v35 = vld [vmem:[#allocation147_spill] sm:$0xff] }
 0x3fd   : > { %6381 = vmatmul.mubr.msk.bf16.gmra.mrb[0].mxu1 %vm2751_vm1, %v4999_v61  ;;  %v4779_v61 = vsel %vm2236_vm5, %v4755_v48, %v4756_v36  ;;  %v4691_v60 = vadd.f32 %v4652_v16, %v16209_v22  ;;  %v4818_v11 = vadd.f32 %v4780_v10, %v16369_v52  ;;  %v4907_v45 = vsel %vm2493_vm2, %v4883_v38, %v4884_v44  ;;  %v16374_v38 = vld [vmem:[#allocation60_spill] sm:$0xff]  ;;  %v16376_v16 = vld [vmem:[#allocation97_spill] sm:$0xff] }
 0x3fe   : > { %6384 = vmatprep.mubr.msk.bf16.mxu1 %vm2751_vm1, %v5000_v8  ;;  %v4819_v0 = vadd.f32 %v4779_v61, %v16210_v25  ;;  %v4595_v26 = vmax.f32 %v4467_v47, %v4563_v5  ;;  %v4946_v34 = vadd.f32 %v4908_v17, %v16370_v27  ;;  %v4947_v9 = vadd.f32 %v4907_v45, %v16214_v62  ;;  %v16375_v8 = vld [vmem:[#allocation300_spill] sm:$0xff] }
 0x3ff   : > { %v4277_v37 = vmax.f32 %v12760_v19, %v4245_v58  ;;  %v4850_v7 = vmax.f32 %v4722_v53, %v4818_v11  ;;  %v4437_v22 = vadd.f32 %v12768_v31, %v16371_v41  ;;  %v4500_v40 = vrot.slane %v13420_v28, 6  ;;  %v16377_v61 = vld [vmem:[#allocation152_spill] sm:$0xff] }
 0x400   : > { %v4628_v25 = vrot.slane %v13420_v28, 7  ;;  %v4723_v32 = vmax.f32 %v4595_v26, %v4691_v60  ;;  %v4758_v6 = vrot.slane %v12866_v29, 1  ;;  %v4886_v47 = vrot.slane %v12866_v29, 2 }
 0x401   : > { %v4341_v3 = vmax.f32 %v4277_v37, %v4309_v56  ;;  %v4978_v49 = vmax.f32 %v4850_v7, %v4946_v34  ;;  %v4523_v62 = vsel %vm1722_vm3, %v4499_v13, %v4500_v40  ;;  %v4247_v33 = vadd.f32 %v13041_v4, %v16372_v12  ;;  %v16378_v37 = vld [vmem:[#allocation166_spill] sm:$0xff] }
 0x402   : > { %v4651_v58 = vsel %vm1979_vm4, %v4627_v57, %v4628_v25  ;;  %v4851_v55 = vmax.f32 %v4723_v32, %v4819_v0  ;;  %v4564_v48 = vadd.f32 %v4523_v62, %v16373_v35  ;;  %v4311_v56 = vadd.f32 %v12760_v19, %v16374_v38  ;;  %v16380_v32 = vld [vmem:[#allocation107_spill] sm:$0xff] }
 0x403   : > { %v4405_v43 = vmax.f32 %v4341_v3, %v4373_v14  ;;  %v4692_v63 = vadd.f32 %v4651_v58, %v16375_v8  ;;  %v4279_v21 = vmax.f32 %v12764_v30, %v4247_v33  ;;  %v4375_v13 = vadd.f32 %v12768_v31, %v16376_v16 }
 0x404   : > { %v4502_v10 = vrot.slane %v12866_v29, 6  ;;  %v4979_v57 = vmax.f32 %v4851_v55, %v4947_v9  ;;  %v4596_v4 = vmax.f32 %v13420_v28, %v4564_v48  ;;  %v4630_v5 = vrot.slane %v12866_v29, 7  ;;  %v16382_v55 = vld [vmem:[#allocation186_spill] sm:$0xff] }
 0x405   : > { %v4469_v17 = vmax.f32 %v4405_v43, %v4437_v22  ;;  %v4343_v53 = vmax.f32 %v4279_v21, %v4311_v56  ;;  %v4439_v1 = vadd.f32 %v12772_v20, %v16377_v61  ;;  %v4760_v19 = vrot.slane %v12872_v42, 1  ;;  %v16383_v56 = vld [vmem:[#allocation227_spill] sm:$0xff] }
 0x406   : > { %v4504_v14 = vrot.slane %v12872_v42, 6  ;;  %v5001_v30 = vpack.c.bf16 %v4979_v57, %v4978_v49  ;;  %v4724_v31 = vmax.f32 %v4596_v4, %v4692_v63  ;;  %v4888_v26 = vrot.slane %v12872_v42, 2  ;;  %v16381_v49 = vld [vmem:[#allocation226_spill] sm:$0xff]  ;;  %v16384_v63 = vld [vmem:[#allocation44_spill] sm:$0xff] }
 0x407   : > { %v4501_v60 = vrot.slane %v4469_v17, 6  ;;  %v4629_v52 = vrot.slane %v4469_v17, 7  ;;  %v4757_v11 = vrot.slane %v4469_v17, 1  ;;  %v4885_v0 = vrot.slane %v4469_v17, 2 }
 0x408   : > { %v4407_v45 = vmax.f32 %v4343_v53, %v4375_v13  ;;  %6385 = vmatmul.mubr.msk.bf16.gmra.mrb[4].mxu1 %vm2751_vm1, %v5001_v30 }
 0x409   : > { %v4522_v27 = vsel %vm1722_vm3, %v4500_v40, %v4501_v60  ;;  %v4650_v20 = vsel %vm1979_vm4, %v4628_v25, %v4629_v52  ;;  %v4521_v34 = vsel %vm1722_vm3, %v4501_v60, %v4502_v10  ;;  %v4649_v9 = vsel %vm1979_vm4, %v4629_v52, %v4630_v5  ;;  %v16386_v60 = vld [vmem:[#allocation200_spill] sm:$0xff] }
 0x40a   : > { %v4565_v7 = vadd.f32 %v4522_v27, %v16378_v37  ;;  %v4777_v41 = vsel %vm2236_vm5, %v4757_v11, %v4758_v6  ;;  %v4778_v22 = vsel %vm2236_vm5, %v4756_v36, %v4757_v11  ;;  %v16379_v40 = vrot.slane %v12874_v39, 6  ;;  %v16388_v11 = vld [vmem:[#allocation73_spill] sm:$0xff]  ;;  %v16389_v27 = vld [vmem:[#allocation159_spill] sm:$0xff] }
 0x40b   : > { %v4693_v3 = vadd.f32 %v4650_v20, %v16380_v32  ;;  %v4820_v62 = vadd.f32 %v4778_v22, %v16381_v49  ;;  %v4905_v58 = vsel %vm2493_vm2, %v4885_v0, %v4886_v47  ;;  %v4906_v12 = vsel %vm2493_vm2, %v4884_v44, %v4885_v0  ;;  %v16391_v32 = vld [vmem:[#allocation276_spill] sm:$0xff]  ;;  %v16392_v49 = vld [vmem:[#allocation14_spill] sm:$0xff] }
 0x40c   : > { %v4518_v25 = vsel %vm1722_vm3, %v4504_v14, %v16379_v40  ;;  %v4597_v36 = vmax.f32 %v4469_v17, %v4565_v7  ;;  %v4821_v33 = vadd.f32 %v4777_v41, %v11959_v18  ;;  %v4948_v43 = vadd.f32 %v4906_v12, %v16382_v55  ;;  %v16385_v17 = vld [vmem:[#allocation290_spill] sm:$0xff]  ;;  %v16390_v7 = vld [vmem:[#allocation301_spill] sm:$0xff]  ;;  %v16393_v12 = vld [vmem:[#allocation308_spill] sm:$0xff] }
 0x40d   : > { %v4471_v35 = vmax.f32 %v4407_v45, %v4439_v1  ;;  %v4852_v48 = vmax.f32 %v4724_v31, %v4820_v62  ;;  %v4949_v38 = vadd.f32 %v4905_v58, %v16127_v51  ;;  %v4566_v8 = vadd.f32 %v4521_v34, %v16383_v56 }
 0x40e   : > { %v4569_v21 = vadd.f32 %v4518_v25, %v16384_v63  ;;  %v4725_v16 = vmax.f32 %v4597_v36, %v4693_v3  ;;  %v4694_v53 = vadd.f32 %v4649_v9, %v16385_v17  ;;  %v16387_v52 = vrot.slane %v16386_v60, 2  ;;  %v16400_v17 = vld [vmem:[#allocation207_spill] sm:$0xff] }
 0x40f   : > { %v4503_v13 = vrot.slane %v4471_v35, 6  ;;  %v4631_v57 = vrot.slane %v4471_v35, 7  ;;  %v4759_v28 = vrot.slane %v4471_v35, 1  ;;  %v4980_v4 = vmax.f32 %v4852_v48, %v4948_v43 }
 0x410   : > { %v4598_v44 = vmax.f32 %v12866_v29, %v4566_v8  ;;  %v4887_v18 = vrot.slane %v4471_v35, 2  ;;  %v4853_v61 = vmax.f32 %v4725_v16, %v4821_v33  ;;  %v4901_v31 = vsel %vm2493_vm2, %v4889_v59, %v16387_v52  ;;  %v16394_v29 = vld [vmem:[#allocation194_spill] sm:$0xff]  ;;  %v16397_v16 = vld [vmem:[#allocation112_spill] sm:$0xff]  ;;  %v16404_v52 = vld [vmem:[#allocation213_spill] sm:$0xff] }
 0x411   : > { %v4520_v1 = vsel %vm1722_vm3, %v4502_v10, %v4503_v13  ;;  %v4648_v51 = vsel %vm1979_vm4, %v4630_v5, %v4631_v57  ;;  %v4775_v30 = vsel %vm2236_vm5, %v4759_v28, %v4760_v19  ;;  %v4776_v10 = vsel %vm2236_vm5, %v4758_v6, %v4759_v28  ;;  %v16398_v28 = vld [vmem:[#allocation220_spill] sm:$0xff] }
 0x412   : > { %v4567_v0 = vadd.f32 %v4520_v1, %v16388_v11  ;;  %v4726_v45 = vmax.f32 %v4598_v44, %v4694_v53  ;;  %v4981_v5 = vmax.f32 %v4853_v61, %v4949_v38  ;;  %v4822_v20 = vadd.f32 %v4776_v10, %v16389_v27  ;;  %v16402_v61 = vld [vmem:[#allocation103_spill] sm:$0xff] }
 0x413   : > { %v4903_v34 = vsel %vm2493_vm2, %v4887_v18, %v4888_v26  ;;  %v4601_v9 = vmax.f32 %v12874_v39, %v4569_v21  ;;  %v4695_v41 = vadd.f32 %v4648_v51, %v16390_v7  ;;  %v4904_v22 = vsel %vm2493_vm2, %v4886_v47, %v4887_v18  ;;  %v16405_v11 = vld [vmem:[#allocation275_spill] sm:$0xff] }
 0x414   : > { %v4599_v37 = vmax.f32 %v4471_v35, %v4567_v0  ;;  %v4519_v40 = vsel %vm1722_vm3, %v4503_v13, %v4504_v14  ;;  %v5002_v6 = vpack.c.bf16 %v4981_v5, %v4980_v4  ;;  %v4854_v25 = vmax.f32 %v4726_v45, %v4822_v20  ;;  %v16408_v5 = vld [vmem:[#allocation249_spill] sm:$0xff] }
 0x415   : > { %v4950_v3 = vadd.f32 %v4904_v22, %v16391_v32  ;;  %v4568_v62 = vadd.f32 %v4519_v40, %v16392_v49  ;;  %v4823_v36 = vadd.f32 %v4775_v30, %v16393_v12  ;;  %v4632_v33 = vrot.slane %v12872_v42, 7  ;;  %v16409_v20 = vld [vmem:[#allocation313_spill] sm:$0xff]  ;;  %v16414_v32 = vld [vmem:[#allocation232_spill] sm:$0xff] }
 0x416   : > { %v4727_v58 = vmax.f32 %v4599_v37, %v4695_v41  ;;  %v4761_v55 = vrot.slane %v12874_v39, 1  ;;  %6388 = vmatprep.mubr.msk.bf16.mxu1 %vm2751_vm1, %v5002_v6  ;;  %v4951_v47 = vadd.f32 %v4903_v34, %v16394_v29  ;;  %v4902_v35 = vsel %vm2493_vm2, %v4888_v26, %v4889_v59  ;;  %v16399_v59 = vld [vmem:[#allocation10_spill] sm:$0xff]  ;;  %v16415_v49 = vld [vmem:[#allocation132_spill] sm:$0xff] }
 0x417   : > { %v4982_v43 = vmax.f32 %v4854_v25, %v4950_v3  ;;  %v4600_v14 = vmax.f32 %v12872_v42, %v4568_v62  ;;  %v16395_v38 = vrot.slane %v12874_v39, 7  ;;  %v4647_v8 = vsel %vm1979_vm4, %v4631_v57, %v4632_v33  ;;  %v16401_v57 = vld [vmem:[#allocation18_spill] sm:$0xff]  ;;  %v16413_v25 = vld [vmem:[#allocation165_spill] sm:$0xff] }
 0x418   : > { %v4855_v48 = vmax.f32 %v4727_v58, %v4823_v36  ;;  %v16396_v63 = vrot.slane %v16386_v60, 1  ;;  %v4696_v13 = vadd.f32 %v4647_v8, %v16397_v16  ;;  %v4774_v39 = vsel %vm2236_vm5, %v4760_v19, %v4761_v55  ;;  %v16403_v60 = vld [vmem:[#allocation293_spill] sm:$0xff]  ;;  %v16407_v19 = vld [vmem:[#allocation256_spill] sm:$0xff] }
 0x419   : > { %v4646_v56 = vsel %vm1979_vm4, %v4632_v33, %v16395_v38  ;;  %v4824_v53 = vadd.f32 %v4774_v39, %v16400_v17  ;;  %v4285_v18 = vmax.f32 %v12776_v24, %v16401_v57  ;;  %v4381_v1 = vadd.f32 %v12781_v46, %v16402_v61  ;;  %v16410_v46 = vld [vmem:[#allocation273_spill] sm:$0xff] }
 0x41a   : > { %v4773_v21 = vsel %vm2236_vm5, %v4761_v55, %v16396_v63  ;;  %v4697_v4 = vadd.f32 %v4646_v56, %v16398_v28  ;;  %v4983_v44 = vmax.f32 %v4855_v48, %v4951_v47  ;;  %v4728_v51 = vmax.f32 %v4600_v14, %v4696_v13  ;;  %v16418_v48 = vld [vmem:[#allocation163_spill] sm:$0xff]  ;;  %v16422_v61 = vld [vmem:[#allocation133_spill] sm:$0xff] }
 0x41b   : > { %v4825_v26 = vadd.f32 %v4773_v21, %v16399_v59  ;;  %v16406_v42 = vmax.f32 %v16404_v52, %v16405_v11  ;;  %v4508_v45 = vrot.slane %v16407_v19, 6  ;;  %v4952_v27 = vadd.f32 %v4902_v35, %v16408_v5  ;;  %v16420_v59 = vld [vmem:[#allocation77_spill] sm:$0xff]  ;;  %v16428_v5 = vld [vmem:[#allocation251_spill] sm:$0xff] }
 0x41c   : > { %v4729_v30 = vmax.f32 %v4601_v9, %v4697_v4  ;;  %v5003_v10 = vpack.c.bf16 %v4983_v44, %v4982_v43  ;;  %v4349_v34 = vmax.f32 %v4285_v18, %v16409_v20  ;;  %v4636_v24 = vrot.slane %v16407_v19, 7  ;;  %v16411_v9 = vld [vmem:[#allocation110_spill] sm:$0xff]  ;;  %v16417_v43 = vld [vmem:[#allocation123_spill] sm:$0xff]  ;;  %v16425_v11 = vld [vmem:[#allocation49_spill] sm:$0xff] }
 0x41d   : > { %v13588_v0 = vmax.f32 %v16406_v42, %v16403_v60  ;;  %v4856_v37 = vmax.f32 %v4728_v51, %v4824_v53  ;;  %v4953_v41 = vadd.f32 %v4901_v31, %v16410_v46  ;;  %v16412_v22 = vrot.slane %v16411_v9, 6  ;;  %v16423_v51 = vld [vmem:[#allocation187_spill] sm:$0xff] }
 0x41e   : > { %v4857_v7 = vmax.f32 %v4729_v30, %v4825_v26  ;;  %6389 = vmatmul.mubr.msk.bf16.gmra.mrb[8].mxu1 %vm2751_vm1, %v5003_v10  ;;  %v4413_v6 = vmax.f32 %v4349_v34, %v4381_v1  ;;  %v4445_v3 = vadd.f32 %v16414_v32, %v16413_v25  ;;  %v16416_v58 = vrot.slane %v16411_v9, 7  ;;  %v16427_v10 = vld [vmem:[#allocation314_spill] sm:$0xff] }
 0x41f   : > { %v4515_v40 = vsel %vm1722_vm3, %v16412_v22, %v4508_v45  ;;  %v4984_v36 = vmax.f32 %v4856_v37, %v4952_v27  ;;  %v4510_v33 = vrot.slane %v13588_v0, 6  ;;  %v4766_v47 = vrot.slane %v13588_v0, 1  ;;  %v16433_v32 = vld [vmem:[#allocation190_spill] sm:$0xff] }
 0x420   : > { %v4572_v62 = vadd.f32 %v4515_v40, %v16415_v49  ;;  %v4643_v12 = vsel %vm1979_vm4, %v16416_v58, %v4636_v24  ;;  %v4985_v31 = vmax.f32 %v4857_v7, %v4953_v41  ;;  %v4477_v55 = vmax.f32 %v4413_v6, %v4445_v3  ;;  %v16431_v41 = vld [vmem:[#allocation153_spill] sm:$0xff]  ;;  %v16432_v6 = vld [vmem:[#allocation131_spill] sm:$0xff] }
 0x421   : > { %v4767_v14 = vrot.slane %v16417_v43, 1  ;;  %v4700_v38 = vadd.f32 %v4643_v12, %v16418_v48  ;;  %v16419_v56 = vrot.slane %v16417_v43, 6  ;;  %v4638_v63 = vrot.slane %v13588_v0, 7  ;;  %v16434_v58 = vld [vmem:[#allocation231_spill] sm:$0xff] }
 0x422   : > { %v4604_v29 = vmax.f32 %v16407_v19, %v4572_v62  ;;  %v5004_v35 = vpack.c.bf16 %v4985_v31, %v4984_v36  ;;  %v4509_v21 = vrot.slane %v4477_v55, 6  ;;  %v4637_v16 = vrot.slane %v4477_v55, 7  ;;  %v16435_v36 = vld [vmem:[#allocation263_spill] sm:$0xff] }
 0x423   : > { %v4512_v8 = vsel %vm1722_vm3, %v4510_v33, %v16419_v56  ;;  %v4765_v13 = vrot.slane %v4477_v55, 1  ;;  %v4893_v4 = vrot.slane %v4477_v55, 2  ;;  %v4894_v39 = vrot.slane %v13588_v0, 2 }
 0x424   : > { %6392 = vmatprep.mubr.msk.bf16.mxu1 %vm2751_vm1, %v5004_v35  ;;  %v4732_v28 = vmax.f32 %v4604_v29, %v4700_v38  ;;  %v4575_v26 = vadd.f32 %v4512_v8, %v16420_v59  ;;  %v4514_v44 = vsel %vm1722_vm3, %v4508_v45, %v4509_v21  ;;  %v4642_v17 = vsel %vm1979_vm4, %v4636_v24, %v4637_v16  ;;  %v16439_v8 = vld [vmem:[#allocation140_spill] sm:$0xff] }
 0x425   : > { %v16421_v53 = vrot.slane %v16407_v19, 1  ;;  %v4768_v18 = vsel %vm2236_vm5, %v4766_v47, %v4767_v14  ;;  %v4573_v1 = vadd.f32 %v4514_v44, %v16422_v61  ;;  %v16424_v60 = vrot.slane %v16417_v43, 7 }
 0x426   : > { %v16426_v42 = vrot.slane %v16425_v11, 1  ;;  %v16429_v27 = vpack.c.bf16 %v16427_v10, %v16428_v5  ;;  %v4769_v20 = vsel %vm2236_vm5, %v4765_v13, %v4766_v47  ;;  %v16430_v34 = vrot.slane %v16407_v19, 2  ;;  %v16437_v47 = vld [vmem:[#allocation214_spill] sm:$0xff] }
 0x427   : > { %v4770_v57 = vsel %vm2236_vm5, %v16421_v53, %v4765_v13  ;;  %v4640_v52 = vsel %vm1979_vm4, %v4638_v63, %v16424_v60  ;;  %v4513_v37 = vsel %vm1722_vm3, %v4509_v21, %v4510_v33  ;;  %v4607_v7 = vmax.f32 %v16417_v43, %v4575_v26  ;;  %v16436_v33 = vld [vmem:[#allocation312_spill] sm:$0xff]  ;;  %v16440_v13 = vld [vmem:[#allocation242_spill] sm:$0xff] }
 0x428   : > { %v4828_v30 = vadd.f32 %v4770_v57, %v16423_v51  ;;  %v4799_v45 = vsel %vm2236_vm5, %v4767_v14, %v16426_v42  ;;  %6393 = vmatmul.mubr.msk.bf16.gmra.mrb[12].mxu1 %vm2751_vm1, %v16429_v27  ;;  %v4898_v24 = vsel %vm2493_vm2, %v16430_v34, %v4893_v4  ;;  %v4605_v46 = vmax.f32 %v4477_v55, %v4573_v1 }
 0x429   : > { %v4701_v9 = vadd.f32 %v4642_v17, %v16431_v41  ;;  %v4897_v40 = vsel %vm2493_vm2, %v4893_v4, %v4894_v39  ;;  %v4574_v25 = vadd.f32 %v4513_v37, %v16432_v6  ;;  %v4641_v19 = vsel %vm1979_vm4, %v4637_v16, %v4638_v63  ;;  %v16442_v17 = vld [vmem:[#allocation295_spill] sm:$0xff] }
 0x42a   : > { %v4860_v22 = vmax.f32 %v4732_v28, %v4828_v30  ;;  %v4703_v3 = vadd.f32 %v4640_v52, %v16433_v32  ;;  %v4895_v49 = vrot.slane %v16417_v43, 2  ;;  %v4829_v12 = vadd.f32 %v4769_v20, %v16434_v58  ;;  %v13705_v32 = vld [vmem:[%s13956_s4] ss:$0 sm:$0xff] }
 0x42b   : > { %v4733_v62 = vmax.f32 %v4605_v46, %v4701_v9  ;;  %v4956_v31 = vadd.f32 %v4898_v24, %v16435_v36  ;;  %v4831_v55 = vadd.f32 %v4799_v45, %v16436_v33  ;;  %v4606_v29 = vmax.f32 %v13588_v0, %v4574_v25  ;;  %v16441_v0 = vld [vmem:[#allocation303_spill] sm:$0xff]  ;;  %v13678_v2 = vpop.f32.mrb[52].mxu0 }
 0x42c   : > { %v4702_v14 = vadd.f32 %v4641_v19, %v16437_v47  ;;  %v4735_v35 = vmax.f32 %v4607_v7, %v4703_v3  ;;  %v16438_v48 = vrot.slane %v16425_v11, 2  ;;  %v4957_v43 = vadd.f32 %v4897_v40, %v16439_v8 }
 0x42d   : > { %v4861_v56 = vmax.f32 %v4733_v62, %v4829_v12  ;;  %v4988_v63 = vmax.f32 %v4860_v22, %v4956_v31  ;;  %v4896_v21 = vsel %vm2493_vm2, %v4894_v39, %v4895_v49  ;;  %v4830_v28 = vadd.f32 %v4768_v18, %v16440_v13  ;;  %v13680_v39 = vpop.f32.mrb[53].mxu0 }
 0x42e   : > { %v4927_v38 = vsel %vm2493_vm2, %v4895_v49, %v16438_v48  ;;  %v4734_v16 = vmax.f32 %v4606_v29, %v4702_v14  ;;  %v4863_v4 = vmax.f32 %v4735_v35, %v4831_v55  ;;  %v4958_v53 = vadd.f32 %v4896_v21, %v16442_v17  ;;  %v13682_v18 = vpop.f32.mrb[54].mxu0 }
 0x42f   : > { %v4959_v59 = vadd.f32 %v4927_v38, %v16441_v0  ;;  %v4989_v26 = vmax.f32 %v4861_v56, %v4957_v43  ;;  %v13684_v30 = vpop.f32.mrb[55].mxu0 }
 0x430   : > { %v4862_v44 = vmax.f32 %v4734_v16, %v4830_v28 }
 0x431   : > { %v4991_v57 = vmax.f32 %v4863_v4, %v4959_v59  ;;  %v5006_v61 = vpack.c.bf16 %v4989_v26, %v4988_v63 }
 0x432   : > { %v4990_v1 = vmax.f32 %v4862_v44, %v4958_v53 }
 0x433   : > { %6396 = vmatprep.mubr.msk.bf16.mxu1 %vm2751_vm1, %v5006_v61 }
 0x434   : > { %v5007_v51 = vpack.c.bf16 %v4991_v57, %v4990_v1 }
 0x436   : > { %6397 = vmatmul.mubr.msk.bf16.gmra.mrb[16].mxu1 %vm2751_vm1, %v5007_v51 }
 0x476   : > { %v13686_v60 = vpop.f32.mrb[56].mxu0 }
 0x477   : > { %v13688_v52 = vpop.f32.mrb[57].mxu0 }
 0x478   : > { %v13690_v11 = vpop.f32.mrb[58].mxu0 }
 0x479   : > { %v13692_v42 = vpop.f32.mrb[59].mxu0 }
 0x482   : > { %v13694_v45 = vpop.f32.mrb[60].mxu0 }
 0x483   : > { %v13696_v10 = vpop.f32.mrb[61].mxu0 }
 0x484   : > { %v13698_v5 = vpop.f32.mrb[62].mxu0 }
 0x485   : > { %v13700_v27 = vpop.f32.mrb[63].mxu0 }
 0x48a   : > { %v6298_v20 = vpop.f32.mrb[32].mxu0 }
 0x48b   : > { %v3055_v34 = vpop.f32.mrb[33].mxu0 }
 0x48c   : > { %v6299_v24 = vpop.f32.mrb[34].mxu0 }
 0x48d   : > { %v3058_v37 = vpop.f32.mrb[35].mxu0 }
 0x493   : > { %v6302_v7 = vpop.f32.mrb[36].mxu0 }
 0x494   : > { %v3071_v46 = vpop.f32.mrb[37].mxu0 }
 0x495   : > { %v6303_v41 = vpop.f32.mrb[38].mxu0 }
 0x496   : > { %v3074_v9 = vpop.f32.mrb[39].mxu0 }
 0x49d   : > { %v6306_v22 = vpop.f32.mrb[40].mxu0 }
 0x49e   : > { %v3087_v40 = vpop.f32.mrb[41].mxu0 }
 0x49f   : > { %v6307_v6 = vpop.f32.mrb[42].mxu0 }
 0x4a0   : > { %v3090_v25 = vpop.f32.mrb[43].mxu0 }
 0x4b6   : > { %v6370_v19 = vpop.f32.mrb[20].mxu1 }
 0x4b7   : > { %v6404_v3 = vadd.f32 %v6370_v19, %v6298_v20  ;;  %v5107_v49 = vpop.f32.mrb[21].mxu1 }
 0x4b8   : > { %v6405_v62 = vadd.f32 %v5107_v49, %v3055_v34  ;;  %v6371_v58 = vpop.f32.mrb[22].mxu1 }
 0x4b9   : > { %v13708_v12 = vadd.f32 %v6404_v3, %v13705_v32  ;;  %v6406_v36 = vadd.f32 %v6371_v58, %v6299_v24  ;;  %v5110_v31 = vpop.f32.mrb[23].mxu1 }
 0x4ba   : > { %v13711_v33 = vadd.f32 %v6405_v62, %v13705_v32  ;;  %v6407_v55 = vadd.f32 %v5110_v31, %v3058_v37 }
 0x4bb   : > { %v5928_v29 = vmul.f32 -1.442695, %v13708_v12  ;;  %v13715_v47 = vadd.f32 %v6406_v36, %v13705_v32 }
 0x4bc   : > { %v5926_v14 = vmul.f32 -1.442695, %v13711_v33  ;;  %v13719_v35 = vadd.f32 %v6407_v55, %v13705_v32 }
 0x4bd   : > { %6766 = vpow2.f32 %v5928_v29  ;;  %v5929_v48 = vmul.f32 -1.442695, %v13715_v47 }
 0x4be   : > { %6768 = vpow2.f32 %v5926_v14  ;;  %v5927_v38 = vmul.f32 -1.442695, %v13719_v35 }
 0x4bf   : > { %v6374_v56 = vpop.f32.mrb[24].mxu1  ;;  %6770 = vpow2.f32 %v5929_v48 }
 0x4c0   : > { %v6408_v8 = vadd.f32 %v6374_v56, %v6302_v7  ;;  %v5123_v43 = vpop.f32.mrb[25].mxu1  ;;  %6772 = vpow2.f32 %v5927_v38  ;;  %v16443_v38 = vld [vmem:[#allocation148_spill] sm:$0xff] }
 0x4c1   : > { %v6409_v63 = vadd.f32 %v5123_v43, %v3071_v46  ;;  %v6375_v21 = vpop.f32.mrb[26].mxu1 }
 0x4c2   : > { %v13724_v16 = vadd.f32 %v6408_v8, %v13705_v32  ;;  %v6410_v13 = vadd.f32 %v6375_v21, %v6303_v41  ;;  %v5126_v28 = vpop.f32.mrb[27].mxu1  ;;  %v16444_v21 = vld [vmem:[#allocation48_spill] sm:$0xff] }
 0x4c3   : > { %v13727_v4 = vadd.f32 %v6409_v63, %v13705_v32  ;;  %v6411_v0 = vadd.f32 %v5126_v28, %v3074_v9 }
 0x4c4   : > { %v5932_v59 = vmul.f32 -1.442695, %v13724_v16  ;;  %v13731_v26 = vadd.f32 %v6410_v13, %v13705_v32 }
 0x4c5   : > { %v5930_v44 = vmul.f32 -1.442695, %v13727_v4  ;;  %v13735_v17 = vadd.f32 %v6411_v0, %v13705_v32 }
 0x4c6   : > { %6774 = vpow2.f32 %v5932_v59  ;;  %v5933_v53 = vmul.f32 -1.442695, %v13731_v26 }
 0x4c7   : > { %6776 = vpow2.f32 %v5930_v44  ;;  %v5931_v57 = vmul.f32 -1.442695, %v13735_v17  ;;  %v6767_v1 = vpop.eup %6766 }
 0x4c8   : > { %v6378_v61 = vpop.f32.mrb[28].mxu1  ;;  %6778 = vpow2.f32 %v5933_v53  ;;  %v6769_v34 = vpop.eup %6768  ;;  %v5403_v24 = vadd.f32 1.0, %v6767_v1  ;;  %v16445_v53 = vld [vmem:[#allocation17_spill] sm:$0xff] }
 0x4c9   : > { %v6412_v51 = vadd.f32 %v6378_v61, %v6306_v22  ;;  %v5139_v20 = vpop.f32.mrb[29].mxu1  ;;  %6780 = vpow2.f32 %v5931_v57  ;;  %v6771_v46 = vpop.eup %6770  ;;  %v5401_v41 = vadd.f32 1.0, %v6769_v34  ;;  %v16446_v34 = vld [vmem:[#allocation310_spill] sm:$0xff] }
 0x4ca   : > { %v6413_v37 = vadd.f32 %v5139_v20, %v3087_v40  ;;  %v6379_v7 = vpop.f32.mrb[30].mxu1  ;;  %v6773_v49 = vpop.eup %6772  ;;  %6782 = vrcp.f32 %v5403_v24  ;;  %v5404_v62 = vadd.f32 1.0, %v6771_v46 }
 0x4cb   : > { %v13740_v9 = vadd.f32 %v6412_v51, %v13705_v32  ;;  %v6414_v19 = vadd.f32 %v6379_v7, %v6307_v6  ;;  %v5142_v3 = vpop.f32.mrb[31].mxu1  ;;  %6784 = vrcp.f32 %v5401_v41  ;;  %v5402_v36 = vadd.f32 1.0, %v6773_v49 }
 0x4cc   : > { %v13743_v58 = vadd.f32 %v6413_v37, %v13705_v32  ;;  %v6415_v22 = vadd.f32 %v5142_v3, %v3090_v25  ;;  %6786 = vrcp.f32 %v5404_v62 }
 0x4cd   : > { %v5936_v31 = vmul.f32 -1.442695, %v13740_v9  ;;  %v13747_v40 = vadd.f32 %v6414_v19, %v13705_v32  ;;  %6788 = vrcp.f32 %v5402_v36 }
 0x4ce   : > { %v5934_v55 = vmul.f32 -1.442695, %v13743_v58  ;;  %v13751_v6 = vadd.f32 %v6415_v22, %v13705_v32 }
 0x4cf   : > { %v5937_v29 = vmul.f32 -1.442695, %v13747_v40  ;;  %6790 = vpow2.f32 %v5936_v31 }
 0x4d0   : > { %v5935_v14 = vmul.f32 -1.442695, %v13751_v6  ;;  %v6382_v25 = vpop.f32.mrb[0].mxu1  ;;  %v6775_v48 = vpop.eup %6774  ;;  %6792 = vpow2.f32 %v5934_v55 }
 0x4d1   : > { %v6416_v56 = vadd.f32 %v6382_v25, %v16443_v38  ;;  %v5155_v8 = vpop.f32.mrb[1].mxu1  ;;  %v6777_v43 = vpop.eup %6776  ;;  %v5407_v63 = vadd.f32 1.0, %v6775_v48  ;;  %6794 = vpow2.f32 %v5937_v29 }
 0x4d2   : > { %v6417_v13 = vadd.f32 %v5155_v8, %v16444_v21  ;;  %v6383_v28 = vpop.f32.mrb[2].mxu1  ;;  %v6779_v0 = vpop.eup %6778  ;;  %v5405_v59 = vadd.f32 1.0, %v6777_v43  ;;  %6796 = vpow2.f32 %v5935_v14 }
 0x4d3   : > { %v13758_v44 = vadd.f32 %v6416_v56, %v13705_v32  ;;  %v6418_v57 = vadd.f32 %v6383_v28, %v16445_v53  ;;  %v5158_v61 = vpop.f32.mrb[3].mxu1  ;;  %v6781_v1 = vpop.eup %6780  ;;  %6798 = vrcp.f32 %v5407_v63  ;;  %v5408_v51 = vadd.f32 1.0, %v6779_v0 }
 0x4d4   : > { %v13763_v20 = vadd.f32 %v6417_v13, %v13705_v32  ;;  %v6419_v24 = vadd.f32 %v5158_v61, %v16446_v34  ;;  %6800 = vrcp.f32 %v5405_v59  ;;  %v5406_v37 = vadd.f32 1.0, %v6781_v1  ;;  %v6783_v41 = vpop.eup %6782 }
 0x4d5   : > { %v5940_v7 = vmul.f32 -1.442695, %v13758_v44  ;;  %v13768_v46 = vadd.f32 %v6418_v57, %v13705_v32  ;;  %6802 = vrcp.f32 %v5408_v51  ;;  %v6785_v49 = vpop.eup %6784  ;;  %v5499_v55 = vmul.f32 %v6783_v41, %v13708_v12 }
 0x4d6   : > { %v5938_v19 = vmul.f32 -1.442695, %v13763_v20  ;;  %v13772_v3 = vadd.f32 %v6419_v24, %v13705_v32  ;;  %6804 = vrcp.f32 %v5406_v37  ;;  %v6787_v22 = vpop.eup %6786  ;;  %v5497_v25 = vmul.f32 %v6785_v49, %v13711_v33 }
 0x4d7   : > { %v5941_v62 = vmul.f32 -1.442695, %v13768_v46  ;;  %6806 = vpow2.f32 %v5940_v7  ;;  %v6789_v31 = vpop.eup %6788  ;;  %v5500_v29 = vmul.f32 %v6787_v22, %v13715_v47 }
 0x4d8   : > { %v5939_v36 = vmul.f32 -1.442695, %v13772_v3  ;;  %6808 = vpow2.f32 %v5938_v19  ;;  %v5498_v48 = vmul.f32 %v6789_v31, %v13719_v35 }
 0x4d9   : > { %v6791_v14 = vpop.eup %6790  ;;  %6810 = vpow2.f32 %v5941_v62  ;;  %v6037_v56 = vpack.c.bf16 %v5500_v29, %v5499_v55 }
 0x4da   : > { %v6793_v38 = vpop.eup %6792  ;;  %v5411_v8 = vadd.f32 1.0, %v6791_v14  ;;  %6812 = vpow2.f32 %v5939_v36  ;;  %v6032_v63 = vpack.c.bf16 %v5498_v48, %v5497_v25 }
 0x4db   : > { %v6795_v43 = vpop.eup %6794  ;;  %v5409_v21 = vadd.f32 1.0, %v6793_v38  ;;  %6109 = vst [vmem:[%s13782_s15 + $0x8] sm:$0xff] %v6037_v56   ;;  %v6386_v47 = vpop.f32.mrb[4].mxu1 }
 0x4dc   : > { %v6797_v13 = vpop.eup %6796  ;;  %6814 = vrcp.f32 %v5411_v8  ;;  %v5412_v12 = vadd.f32 1.0, %v6795_v43  ;;  %6033 = vst [vmem:[%s13782_s15] sm:$0xff] %v6032_v63   ;;  %v6420_v28 = vadd.f32 %v6386_v47, %v13385_v15  ;;  %v5171_v0 = vpop.f32.mrb[5].mxu1 }
 0x4dd   : > { %v6799_v33 = vpop.eup %6798  ;;  %6816 = vrcp.f32 %v5409_v21  ;;  %v5410_v35 = vadd.f32 1.0, %v6797_v13  ;;  %v6421_v53 = vadd.f32 %v5171_v0, %v13395_v54  ;;  %v6387_v57 = vpop.f32.mrb[6].mxu1 }
 0x4de   : > { %v6801_v59 = vpop.eup %6800  ;;  %6818 = vrcp.f32 %v5412_v12  ;;  %v13789_v1 = vadd.f32 %v6420_v28, %v13705_v32  ;;  %v6422_v51 = vadd.f32 %v6387_v57, %v13405_v50  ;;  %v5174_v34 = vpop.f32.mrb[7].mxu1  ;;  %v5503_v37 = vmul.f32 %v6799_v33, %v13724_v16 }
 0x4df   : > { %v6803_v61 = vpop.eup %6802  ;;  %6820 = vrcp.f32 %v5410_v35  ;;  %v13795_v15 = vadd.f32 %v6421_v53, %v13705_v32  ;;  %v6423_v54 = vadd.f32 %v5174_v34, %v13409_v23  ;;  %v5501_v19 = vmul.f32 %v6801_v59, %v13727_v4 }
 0x4e0   : > { %v6805_v24 = vpop.eup %6804  ;;  %v5504_v7 = vmul.f32 %v6803_v61, %v13731_v26  ;;  %v5944_v50 = vmul.f32 -1.442695, %v13789_v1  ;;  %v13802_v62 = vadd.f32 %v6422_v51, %v13705_v32 }
 0x4e1   : > { %v6807_v41 = vpop.eup %6806  ;;  %v5502_v49 = vmul.f32 %v6805_v24, %v13735_v17  ;;  %v13805_v36 = vadd.f32 %v6423_v54, %v13705_v32  ;;  %v5942_v17 = vmul.f32 -1.442695, %v13795_v15 }
 0x4e2   : > { %v6809_v16 = vpop.eup %6808  ;;  %v6047_v22 = vpack.c.bf16 %v5504_v7, %v5503_v37  ;;  %v5415_v26 = vadd.f32 1.0, %v6807_v41  ;;  %6822 = vpow2.f32 %v5944_v50  ;;  %v5945_v25 = vmul.f32 -1.442695, %v13802_v62 }
 0x4e3   : > { %v6811_v31 = vpop.eup %6810  ;;  %v6042_v55 = vpack.c.bf16 %v5502_v49, %v5501_v19  ;;  %v5413_v23 = vadd.f32 1.0, %v6809_v16  ;;  %v5943_v38 = vmul.f32 -1.442695, %v13805_v36 }
 0x4e4   : > { %v6813_v29 = vpop.eup %6812  ;;  %6111 = vst [vmem:[%s13782_s15 + $0x18] sm:$0xff] %v6047_v22   ;;  %6824 = vrcp.f32 %v5415_v26  ;;  %v5416_v4 = vadd.f32 1.0, %v6811_v31 }
 0x4e5   : > { %6110 = vst [vmem:[%s13782_s15 + $0x10] sm:$0xff] %v6042_v55   ;;  %6826 = vrcp.f32 %v5413_v23  ;;  %v5414_v14 = vadd.f32 1.0, %v6813_v29 }
 0x4e6   : > { %v6815_v48 = vpop.eup %6814  ;;  %6828 = vrcp.f32 %v5416_v4 }
 0x4e7   : > { %v6817_v56 = vpop.eup %6816  ;;  %6830 = vrcp.f32 %v5414_v14  ;;  %v5507_v63 = vmul.f32 %v6815_v48, %v13740_v9 }
 0x4e8   : > { %v6819_v8 = vpop.eup %6818  ;;  %6832 = vpow2.f32 %v5942_v17  ;;  %v5505_v13 = vmul.f32 %v6817_v56, %v13743_v58 }
 0x4e9   : > { %v6821_v43 = vpop.eup %6820  ;;  %v5508_v21 = vmul.f32 %v6819_v8, %v13747_v40  ;;  %6834 = vpow2.f32 %v5945_v25 }
 0x4ea   : > { %v5506_v12 = vmul.f32 %v6821_v43, %v13751_v6  ;;  %6836 = vpow2.f32 %v5943_v38 }
 0x4eb   : > { %v6057_v47 = vpack.c.bf16 %v5508_v21, %v5507_v63 }
 0x4ec   : > { %v6052_v33 = vpack.c.bf16 %v5506_v12, %v5505_v13  ;;  %v6823_v35 = vpop.eup %6822 }
 0x4ed   : > { %6113 = vst [vmem:[%s13782_s15 + $0x28] sm:$0xff] %v6057_v47   ;;  %v5419_v0 = vadd.f32 1.0, %v6823_v35 }
 0x4ee   : > { %v6825_v28 = vpop.eup %6824  ;;  %6112 = vst [vmem:[%s13782_s15 + $0x20] sm:$0xff] %v6052_v33  }
 0x4ef   : > { %v6827_v59 = vpop.eup %6826  ;;  %v5511_v9 = vmul.f32 %v6825_v28, %v13758_v44  ;;  %6838 = vrcp.f32 %v5419_v0 }
 0x4f0   : > { %v6829_v53 = vpop.eup %6828  ;;  %v5509_v34 = vmul.f32 %v6827_v59, %v13763_v20 }
 0x4f1   : > { %v6390_v57 = vpop.f32.mrb[8].mxu1  ;;  %v6831_v61 = vpop.eup %6830  ;;  %v5512_v40 = vmul.f32 %v6829_v53, %v13768_v46 }
 0x4f2   : > { %v6424_v58 = vadd.f32 %v6390_v57, %v13678_v2  ;;  %v5187_v51 = vpop.f32.mrb[9].mxu1  ;;  %v6833_v6 = vpop.eup %6832  ;;  %v5510_v24 = vmul.f32 %v6831_v61, %v13772_v3 }
 0x4f3   : > { %v6425_v37 = vadd.f32 %v5187_v51, %v13680_v39  ;;  %v6391_v7 = vpop.f32.mrb[10].mxu1  ;;  %v6835_v54 = vpop.eup %6834  ;;  %v6067_v41 = vpack.c.bf16 %v5512_v40, %v5511_v9  ;;  %v5417_v19 = vadd.f32 1.0, %v6833_v6 }
 0x4f4   : > { %v13825_v44 = vadd.f32 %v6424_v58, %v13705_v32  ;;  %v6426_v2 = vadd.f32 %v6391_v7, %v13682_v18  ;;  %v5190_v46 = vpop.f32.mrb[11].mxu1  ;;  %v6837_v49 = vpop.eup %6836  ;;  %v6062_v50 = vpack.c.bf16 %v5510_v24, %v5509_v34  ;;  %v5420_v20 = vadd.f32 1.0, %v6835_v54 }
 0x4f5   : > { %v13829_v16 = vadd.f32 %v6425_v37, %v13705_v32  ;;  %v6427_v3 = vadd.f32 %v5190_v46, %v13684_v30  ;;  %6115 = vst [vmem:[%s13782_s15 + $0x38] sm:$0xff] %v6067_v41   ;;  %6840 = vrcp.f32 %v5417_v19  ;;  %v5418_v39 = vadd.f32 1.0, %v6837_v49 }
 0x4f6   : > { %v5948_v22 = vmul.f32 -1.442695, %v13825_v44  ;;  %v13835_v26 = vadd.f32 %v6426_v2, %v13705_v32  ;;  %6114 = vst [vmem:[%s13782_s15 + $0x30] sm:$0xff] %v6062_v50   ;;  %6842 = vrcp.f32 %v5420_v20 }
 0x4f7   : > { %v5946_v18 = vmul.f32 -1.442695, %v13829_v16  ;;  %v13840_v31 = vadd.f32 %v6427_v3, %v13705_v32  ;;  %6844 = vrcp.f32 %v5418_v39 }
 0x4f8   : > { %v5949_v55 = vmul.f32 -1.442695, %v13835_v26  ;;  %6846 = vpow2.f32 %v5948_v22 }
 0x4f9   : > { %v5947_v30 = vmul.f32 -1.442695, %v13840_v31  ;;  %6848 = vpow2.f32 %v5946_v18  ;;  %v6839_v56 = vpop.eup %6838 }
 0x4fa   : > { %6850 = vpow2.f32 %v5949_v55  ;;  %v5515_v33 = vmul.f32 %v6839_v56, %v13789_v1 }
 0x4fb   : > { %v6394_v23 = vpop.f32.mrb[12].mxu1  ;;  %6852 = vpow2.f32 %v5947_v30 }
 0x4fc   : > { %v6428_v29 = vadd.f32 %v6394_v23, %v13686_v60  ;;  %v5203_v4 = vpop.f32.mrb[13].mxu1 }
 0x4fd   : > { %v6429_v17 = vadd.f32 %v5203_v4, %v13688_v52  ;;  %v6395_v14 = vpop.f32.mrb[14].mxu1 }
 0x4fe   : > { %v13847_v25 = vadd.f32 %v6428_v29, %v13705_v32  ;;  %v6430_v48 = vadd.f32 %v6395_v14, %v13690_v11  ;;  %v5206_v38 = vpop.f32.mrb[15].mxu1 }
 0x4ff   : > { %v13851_v8 = vadd.f32 %v6429_v17, %v13705_v32  ;;  %v6431_v43 = vadd.f32 %v5206_v38, %v13692_v42  ;;  %v6841_v13 = vpop.eup %6840 }
 0x500   : > { %v5952_v60 = vmul.f32 -1.442695, %v13847_v25  ;;  %v13856_v63 = vadd.f32 %v6430_v48, %v13705_v32  ;;  %v6843_v12 = vpop.eup %6842  ;;  %v5513_v0 = vmul.f32 %v6841_v13, %v13795_v15 }
 0x501   : > { %v5950_v52 = vmul.f32 -1.442695, %v13851_v8  ;;  %v13860_v21 = vadd.f32 %v6431_v43, %v13705_v32  ;;  %v6845_v42 = vpop.eup %6844  ;;  %v5516_v35 = vmul.f32 %v6843_v12, %v13802_v62 }
 0x502   : > { %6854 = vpow2.f32 %v5952_v60  ;;  %v5953_v11 = vmul.f32 -1.442695, %v13856_v63  ;;  %v6847_v28 = vpop.eup %6846  ;;  %v5514_v59 = vmul.f32 %v6845_v42, %v13805_v36 }
 0x503   : > { %6856 = vpow2.f32 %v5950_v52  ;;  %v5951_v47 = vmul.f32 -1.442695, %v13860_v21  ;;  %v6849_v53 = vpop.eup %6848  ;;  %v6077_v57 = vpack.c.bf16 %v5516_v35, %v5515_v33  ;;  %v5423_v61 = vadd.f32 1.0, %v6847_v28 }
 0x504   : > { %6858 = vpow2.f32 %v5953_v11  ;;  %v6851_v9 = vpop.eup %6850  ;;  %v6072_v40 = vpack.c.bf16 %v5514_v59, %v5513_v0  ;;  %v5421_v58 = vadd.f32 1.0, %v6849_v53 }
 0x505   : > { %6860 = vpow2.f32 %v5951_v47  ;;  %v6853_v51 = vpop.eup %6852  ;;  %6117 = vst [vmem:[%s13782_s15 + $0x48] sm:$0xff] %v6077_v57   ;;  %v5424_v1 = vadd.f32 1.0, %v6851_v9 }
 0x506   : > { %6862 = vrcp.f32 %v5423_v61  ;;  %6116 = vst [vmem:[%s13782_s15 + $0x40] sm:$0xff] %v6072_v40   ;;  %v5422_v62 = vadd.f32 1.0, %v6853_v51 }
 0x507   : > { %6864 = vrcp.f32 %v5421_v58 }
 0x508   : > { %6866 = vrcp.f32 %v5424_v1 }
 0x509   : > { %v6398_v6 = vpop.f32.mrb[16].mxu1  ;;  %6868 = vrcp.f32 %v5422_v62 }
 0x50a   : > { %v6432_v15 = vadd.f32 %v6398_v6, %v13694_v45  ;;  %v5219_v34 = vpop.f32.mrb[17].mxu1 }
 0x50b   : > { %v6433_v36 = vadd.f32 %v5219_v34, %v13696_v10  ;;  %v6399_v24 = vpop.f32.mrb[18].mxu1 }
 0x50c   : > { %v6855_v37 = vpop.eup %6854  ;;  %v13873_v7 = vadd.f32 %v6432_v15, %v13705_v32  ;;  %v6434_v54 = vadd.f32 %v6399_v24, %v13698_v5  ;;  %v5222_v41 = vpop.f32.mrb[19].mxu1 }
 0x50d   : > { %v6857_v19 = vpop.eup %6856  ;;  %v5427_v2 = vadd.f32 1.0, %v6855_v37  ;;  %v13877_v46 = vadd.f32 %v6433_v36, %v13705_v32  ;;  %v6435_v49 = vadd.f32 %v5222_v41, %v13700_v27 }
 0x50e   : > { %v6859_v45 = vpop.eup %6858  ;;  %v5425_v50 = vadd.f32 1.0, %v6857_v19  ;;  %v5304_v20 = vadd.f32 %v6434_v54, %v13705_v32  ;;  %v5956_v39 = vmul.f32 -1.442695, %v13873_v7 }
 0x50f   : > { %v6861_v10 = vpop.eup %6860  ;;  %6870 = vrcp.f32 %v5427_v2  ;;  %v5428_v3 = vadd.f32 1.0, %v6859_v45  ;;  %v5302_v22 = vadd.f32 %v6435_v49, %v13705_v32  ;;  %v5954_v18 = vmul.f32 -1.442695, %v13877_v46 }
 0x510   : > { %6872 = vrcp.f32 %v5425_v50  ;;  %v5426_v5 = vadd.f32 1.0, %v6861_v10  ;;  %v5957_v55 = vmul.f32 -1.442695, %v5304_v20  ;;  %v6863_v30 = vpop.eup %6862 }
 0x511   : > { %6874 = vrcp.f32 %v5428_v3  ;;  %v5955_v27 = vmul.f32 -1.442695, %v5302_v22  ;;  %v6865_v23 = vpop.eup %6864  ;;  %v5519_v17 = vmul.f32 %v6863_v30, %v13825_v44 }
 0x512   : > { %6876 = vrcp.f32 %v5426_v5  ;;  %v6867_v29 = vpop.eup %6866  ;;  %v5517_v14 = vmul.f32 %v6865_v23, %v13829_v16 }
 0x513   : > { %6878 = vpow2.f32 %v5956_v39  ;;  %v6869_v4 = vpop.eup %6868  ;;  %v5520_v32 = vmul.f32 %v6867_v29, %v13835_v26 }
 0x514   : > { %6880 = vpow2.f32 %v5954_v18  ;;  %v5518_v48 = vmul.f32 %v6869_v4, %v13840_v31 }
 0x515   : > { %6882 = vpow2.f32 %v5957_v55  ;;  %v6087_v38 = vpack.c.bf16 %v5520_v32, %v5519_v17 }
 0x516   : > { %6884 = vpow2.f32 %v5955_v27  ;;  %v6082_v56 = vpack.c.bf16 %v5518_v48, %v5517_v14 }
 0x517   : > { %6119 = vst [vmem:[%s13782_s15 + $0x58] sm:$0xff] %v6087_v38  }
 0x518   : > { %6118 = vst [vmem:[%s13782_s15 + $0x50] sm:$0xff] %v6082_v56  }
 0x519   : > { %v6871_v43 = vpop.eup %6870 }
 0x51a   : > { %v6873_v60 = vpop.eup %6872  ;;  %v5523_v44 = vmul.f32 %v6871_v43, %v13847_v25 }
 0x51b   : > { %v6875_v52 = vpop.eup %6874  ;;  %v5521_v16 = vmul.f32 %v6873_v60, %v13851_v8 }
 0x51c   : > { %v6877_v13 = vpop.eup %6876  ;;  %v5524_v26 = vmul.f32 %v6875_v52, %v13856_v63 }
 0x51d   : > { %v6879_v11 = vpop.eup %6878  ;;  %v5522_v31 = vmul.f32 %v6877_v13, %v13860_v21 }
 0x51e   : > { %v6881_v12 = vpop.eup %6880  ;;  %v6097_v47 = vpack.c.bf16 %v5524_v26, %v5523_v44  ;;  %v5431_v42 = vadd.f32 1.0, %v6879_v11 }
 0x51f   : > { %v6883_v33 = vpop.eup %6882  ;;  %v6092_v35 = vpack.c.bf16 %v5522_v31, %v5521_v16  ;;  %v5429_v28 = vadd.f32 1.0, %v6881_v12 }
 0x520   : > { %v6885_v0 = vpop.eup %6884  ;;  %6121 = vst [vmem:[%s13782_s15 + $0x68] sm:$0xff] %v6097_v47   ;;  %6886 = vrcp.f32 %v5431_v42  ;;  %v5432_v59 = vadd.f32 1.0, %v6883_v33 }
 0x521   : > { %6120 = vst [vmem:[%s13782_s15 + $0x60] sm:$0xff] %v6092_v35   ;;  %6888 = vrcp.f32 %v5429_v28  ;;  %v5430_v25 = vadd.f32 1.0, %v6885_v0 }
 0x522   : > { %6890 = vrcp.f32 %v5432_v59 }
 0x523   : > { %6892 = vrcp.f32 %v5430_v25 }
 0x52a   : > { %v6887_v8 = vpop.eup %6886 }
 0x52b   : > { %v6889_v63 = vpop.eup %6888  ;;  %v5527_v57 = vmul.f32 %v6887_v8, %v13873_v7 }
 0x52c   : > { %v6891_v21 = vpop.eup %6890  ;;  %v5525_v9 = vmul.f32 %v6889_v63, %v13877_v46 }
 0x52d   : > { %v6893_v53 = vpop.eup %6892  ;;  %v5528_v61 = vmul.f32 %v6891_v21, %v5304_v20 }
 0x52e   : > { %v5526_v40 = vmul.f32 %v6893_v53, %v5302_v22 }
 0x52f   : > { %v6107_v58 = vpack.c.bf16 %v5528_v61, %v5527_v57 }
 0x530   : > { %v6102_v51 = vpack.c.bf16 %v5526_v40, %v5525_v9 }
 0x531   : > { %6123 = vst [vmem:[%s13782_s15 + $0x78] sm:$0xff] %v6107_v58  }
 0x532   : > { %6122 = vst [vmem:[%s13782_s15 + $0x70] sm:$0xff] %v6102_v51  }
 0x533   : > { %6949 = shalt.err (!%p6946_p3)
}
 0x534   : > { %s6950_s10 = scalar_lea.hbm %s13903_s20, 2048  ;;  %s6954_s14 = scalar_lea.hbm %s13958_s6, 4096 }
 0x535   : > { %p6951_p4 = scmp.ne.s32.totalorder %s13903_s20, %s6950_s10  ;;  %p6955_p9 = scmp.lt.u32.totalorder %s13903_s20, %s13958_s6 }
 0x536   : > { %p6956_p10 = scmp.lt.u32.totalorder %s6954_s14, %s6950_s10  ;;  %p6958_p12 = scmp.lt.u32.totalorder %s6950_s10, %s13903_s20 }
 0x537   : > { %p6952_p7 = pnand %p6951_p4, %p7084_p5 }
 0x538   : > { %p6957_p11 = por %p6956_p10, %p6955_p9 }
 0x539   : > { %p6953_p8 = pneg %p6952_p7 }
 0x53a   : > { %p6959_p13 = por %p6958_p12, %p6957_p11 }
 0x53c   : > { %p6960_p0 = pnand %p6959_p13, %p6953_p8 }
 0x53e   : > { %6963 = shalt.err (!%p6960_p0)
}
 0x53f   : > { %s7009_s16 = smov 64   ;;  %s7010_s18 = smov 4  }
 0x540   : > { %6500 = dma.vmem_to_hbm [thread:$0]  (%p7084_p5), %s13905_s17, 2048, %s13903_s20, %s13911_s25, %s7009_s16, %s7009_s16, %s7010_s18  }
 0x541 PF: > { %p6506_p1 = scmp.ge.s32.totalorder %s6998_s24, 2  ;;  %s5718_s19 = sand.u32 1, %s6986_s21  }
 0x542   : > { %s5719_s26 = scalar_lea.sflag [#allocation3], %s5718_s19 }
 0x543   : > { %p6503_p2 = pnand %p6506_p1, %p7088_p6 }
 0x545   : > { %6981 = dma.done.wait (!%p6503_p2), %s5719_s26, 2048  }
 0x546   : > { %6983 = vsyncadd (!%p6503_p2), %s5719_s26, 4294965248  ;;  %p16_p3 = scmp.ge.s32.totalorder %s7071_s27, 4   ;;  %s16447_s21 = smov %s6990_s22 }
 0x547   : > { %s16448_s22 = smov %s6994_s23  ;;  %s16449_s23 = smov %s7082_s30 }
 0x548   : > { %s16450_s24 = smov %s7071_s27  ;;  %18 = sbr.rel (!%p16_p3) target bundleno = 3 (0x3), region = 82 }
 0x54f   :  { %5724 = vsyncpa [#allocation3], 1 }
 0x550   :  { %5726 = vsyncpa [#allocation3 + $0x1], 1 }

</bundles_post_ra>
